<compile_context>
chip_gen: v7x
topology: tpu7x:2x2x1
jax: 0.10.0
libtpu: 0.0.40
codegen_flags: <defaults>
</compile_context>

<pallas_src>
import functools
import math

import jax
import jax.numpy as jnp
from jax import lax
from jax.experimental import pallas as pl
from jax.experimental.pallas import tpu as pltpu

F32 = jnp.float32


# ---------------------------------------------------------------------------
# BlockSpec helpers
# ---------------------------------------------------------------------------

def _vmem():
    # full-array VMEM operand for grid-free kernels
    return pl.BlockSpec(memory_space=pltpu.MemorySpace.VMEM)


def _full_spec(shape):
    # whole array, identical block for every grid step (weights / shared tensors)
    nd = len(shape)
    return pl.BlockSpec(tuple(shape), lambda b: (0,) * nd)


def _batch_spec(shape):
    # per-batch block along the leading axis (grid=(B,))
    nd = len(shape)
    return pl.BlockSpec((1,) + tuple(shape[1:]),
                        lambda b: (b,) + (0,) * (nd - 1))


# ---------------------------------------------------------------------------
# Kernel 1: setup — fc projection + the three matrix-factorisation adjacencies
# ---------------------------------------------------------------------------

def _setup_kernel(data_ref, fcw_ref, fcb_ref,
                  emb_ref, ti_ref,
                  s2e_ref, s2ti_ref, s3e_ref, s3ti_ref,
                  t2_ref, t3_ref,
                  x_ref, adj_ref, sd2_ref, td2_ref, tr3_ref, td3_ref,
                  *, N, T):
    # fc: x = data @ W + b
    x_ref[...] = (jnp.dot(data_ref[...], fcw_ref[...],
                          preferred_element_type=F32) + fcb_ref[...])

    def row_softmax(a):
        a = a - jnp.max(a, axis=1, keepdims=True)
        e = jnp.exp(a)
        return e / jnp.sum(e, axis=1, keepdims=True)

    def mf_logits(emb, ti):
        last = emb[emb.shape[0] - N:, :]                       # (N, L)
        g = lax.dot_general(last, emb, (((1,), (1,)), ((), ())),
                            preferred_element_type=F32)        # emb[-N:] @ emb.T
        return g + ti

    # main spatio-temporal adjacency (N, ms*N); nn.Dropout is identity in eval.
    adj_ref[...] = row_softmax(mf_logits(emb_ref[...], ti_ref[...]))

    eye_n = (lax.broadcasted_iota(jnp.int32, (N, N), 0)
             == lax.broadcasted_iota(jnp.int32, (N, N), 1)).astype(F32)
    s2 = row_softmax(mf_logits(s2e_ref[...], s2ti_ref[...]))
    sd2_ref[...] = jnp.sum(s2 * eye_n, axis=1, keepdims=True)          # diag  (N,1)
    s3 = row_softmax(mf_logits(s3e_ref[...], s3ti_ref[...]))
    tr3_ref[...] = jnp.sum(s3 * eye_n, axis=(0, 1), keepdims=True)     # trace (1,1)

    eye_t = (lax.broadcasted_iota(jnp.int32, (T, T), 0)
             == lax.broadcasted_iota(jnp.int32, (T, T), 1)).astype(F32)
    td2_ref[...] = jnp.sum(t2_ref[...] * eye_t, axis=1, keepdims=True) + 1.0
    td3_ref[...] = jnp.sum(t3_ref[...] * eye_t, axis=1, keepdims=True) + 1.0


def setup_call(data_flat, fcw, fcb, emb, ti, s2e, s2ti, s3e, s3ti, t2, t3,
               *, N, T, C):
    M = data_flat.shape[0]
    out_shapes = (
        jax.ShapeDtypeStruct((M, C), F32),             # x (flattened)
        jax.ShapeDtypeStruct((N, emb.shape[0]), F32),  # adj (N, ms*N)
        jax.ShapeDtypeStruct((N, 1), F32),             # diag(adj_s2)
        jax.ShapeDtypeStruct((T, 1), F32),             # diag(adj_t2) = diag(mf_t2)+1
        jax.ShapeDtypeStruct((1, 1), F32),             # trace(adj_s3)
        jax.ShapeDtypeStruct((T, 1), F32),             # diag(adj_t3) = diag(mf_t3)+1
    )
    return pl.pallas_call(
        functools.partial(_setup_kernel, N=N, T=T),
        out_shape=out_shapes,
        in_specs=[_vmem() for _ in range(11)],
        out_specs=tuple(_vmem() for _ in range(6)),
    )(data_flat, fcw, fcb, emb, ti, s2e, s2ti, s3e, s3ti, t2, t3)


# ---------------------------------------------------------------------------
# Kernel 2: one fused fstgcn block
#   (time-conv GLU residual + position embedding + all J windows x K filters
#    of the stack-GCN, fully unrolled, intermediates VMEM-resident)
# ---------------------------------------------------------------------------

def _fstgcn_kernel(data_ref, orig_ref, c1w_ref, c1b_ref, c2w_ref, c2b_ref,
                   temb_ref, semb_ref, adjw_ref, adjs_ref, gw_ref, gb_ref,
                   out_ref, *, ms, N, C, K, J, has_conv2):
    def time_conv_glu(src_ref, w_ref, b_ref):
        # Conv2d(C, 2C, kernel=(1,k)) expressed as a sum of k shifted
        # (J*N, C) @ (C, 2C) matmuls on the VMEM-resident block (no host-side
        # window gather), then sigmoid(left) * right (reference res-conv gate).
        ksz = w_ref.shape[0]
        acc = None
        for s in range(ksz):
            xs = src_ref[0, s:s + J].reshape(J * N, C)
            t = jnp.dot(xs, w_ref[s], preferred_element_type=F32)
            acc = t if acc is None else acc + t
        acc = acc + b_ref[...]
        return jax.nn.sigmoid(acc[:, :C]) * acc[:, C:]              # (J*N, C)

    d_res = time_conv_glu(data_ref, c1w_ref, c1b_ref)
    if has_conv2:
        d_res = d_res + time_conv_glu(orig_ref, c2w_ref, c2b_ref)
    d_res = d_res.reshape(J, N, C)

    # additive position embedding
    dpe = data_ref[0] + temb_ref[0] + semb_ref[0]                   # (T_in, N, C)

    adj_wing = adjw_ref[...]                                        # (N, 3N)
    adj_self = adjs_ref[...]                                        # (N, N)

    for j in range(J):
        win = dpe[j:j + ms]                                         # (ms, N, C)
        wing = win[:ms - 1].reshape((ms - 1) * N, C)                # (3N, C)
        cur = win[ms - 1]                                           # (N, C)
        res = cur
        # the wing part of adj @ [wing; cur] is filter-invariant: hoist it
        z_wing = jnp.dot(adj_wing, wing, preferred_element_type=F32)
        best = None
        for f in range(K):
            z = z_wing + jnp.dot(adj_self, cur, preferred_element_type=F32)
            h = (jnp.dot(z, gw_ref[j, f], preferred_element_type=F32)
                 + gb_ref[j, f])
            cur = h[:, :C] * jax.nn.sigmoid(h[:, C:])               # glu
            best = cur if best is None else jnp.maximum(best, cur)
        out_ref[0, j] = best + res + d_res[j]


def fstgcn_call(p, orig, data, adj, *, ms, N, C, K):
    B, T_in = data.shape[0], data.shape[1]
    J = T_in - (ms - 1)
    has_conv2 = "conv2_w" in p

    def conv_wf(w):  # (2C, C, 1, k) -> (k, C, 2C) with feature order (s, c)
        k = w.shape[3]
        return jnp.transpose(w[:, :, 0, :], (2, 1, 0)).reshape(k, C, 2 * C)

    c1w = conv_wf(p["conv1_w"])
    c1b = p["conv1_b"].reshape(1, 2 * C)
    if has_conv2:
        c2w = conv_wf(p["conv2_w"])
        c2b = p["conv2_b"].reshape(1, 2 * C)
    else:
        # TODO(synk): unreachable with this config (current_step != 12 always);
        # dummy operands keep a single kernel signature.
        c2w = jnp.zeros((1, C, 2 * C), F32)
        c2b = jnp.zeros((1, 2 * C), F32)

    adj_wing = adj[:, :(ms - 1) * N]
    adj_self = adj[:, (ms - 1) * N:]

    operands = [data, orig, c1w, c1b, c2w, c2b,
                p["temporal_emb"], p["spatial_emb"],
                adj_wing, adj_self, p["gcn_w"], p["gcn_b"]]
    in_specs = [_batch_spec(data.shape), _batch_spec(orig.shape)]
    in_specs += [_full_spec(a.shape) for a in operands[2:]]

    return pl.pallas_call(
        functools.partial(_fstgcn_kernel, ms=ms, N=N, C=C, K=K, J=J,
                          has_conv2=has_conv2),
        out_shape=jax.ShapeDtypeStruct((B, J, N, C), F32),
        grid=(B,),
        in_specs=in_specs,
        out_specs=_batch_spec((B, J, N, C)),
        compiler_params=pltpu.CompilerParams(
            dimension_semantics=("parallel",)),
    )(*operands)


# ---------------------------------------------------------------------------
# Kernel 3: s2t + t2s branches + 1x1 head convs + add to x1 (one kernel)
# ---------------------------------------------------------------------------

def _branch_kernel(x_ref, x1_ref,
                   temb2_ref, semb2_ref, gw2_ref, gb2_ref, h2w_ref, h2b_ref,
                   temb3_ref, semb3_ref, gw3_ref, gb3_ref, h3w_ref, h3b_ref,
                   facn2_ref, fact2_ref, tr3_ref, fact3_ref,
                   out_ref, *, T, N, C, P):
    x = x_ref[0]                                   # (T, N, C)
    x2d = x.reshape(T * N, C)

    def branch(temb_ref, semb_ref, fac_n, fac_t, fac_scalar, gw_ref, gb_ref):
        d = x + temb_ref[0] + semb_ref[0]
        if fac_n is not None:
            d = d * fac_n                          # einsum('nn,btnc->btnc'): diag over N
        d = d * fac_t                              # einsum('tt,btnc->btnc'): diag over T
        if fac_scalar is not None:
            d = d * fac_scalar                     # einsum('ss,btnc->btnc'): trace scalar
        h = (jnp.dot(d.reshape(T * N, C), gw_ref[...],
                     preferred_element_type=F32) + gb_ref[...])
        g = h[:, :C] * jax.nn.sigmoid(h[:, C:])    # glu: lhs * sigmoid(rhs)
        return g + 2.0 * x2d                       # + res + temp  (both == x)

    x2 = branch(temb2_ref, semb2_ref, facn2_ref[...], fact2_ref[...], None,
                gw2_ref, gb2_ref)
    x3 = branch(temb3_ref, semb3_ref, None, fact3_ref[...], tr3_ref[...],
                gw3_ref, gb3_ref)

    # Conv2d(T, 3, kernel=(1,1)) heads as (P*N, T*N) x (T*N, C) matmuls
    # (weight = kron(conv_w, I_N) built host-side) -> only leading-dim reshapes.
    o2 = jnp.dot(h2w_ref[...], x2, preferred_element_type=F32) + h2b_ref[...]
    o3 = jnp.dot(h3w_ref[...], x3, preferred_element_type=F32) + h3b_ref[...]
    out_ref[0] = x1_ref[0] + (o2 + o3).reshape(P, N, C)


def branch_call(x4d, x1, fac_n2, fac_t2, tr3, fac_t3,
                p_s2t, p_t2s, h2w4, h2b, h3w4, h3b, *, N, C):
    B, T = x4d.shape[0], x4d.shape[1]
    P = h2w4.shape[0]
    eye_n = jnp.eye(N, dtype=F32)
    h2w = jnp.kron(h2w4[:, :, 0, 0], eye_n)                 # (P*N, T*N)
    h3w = jnp.kron(h3w4[:, :, 0, 0], eye_n)
    h2bk = jnp.repeat(h2b.reshape(P, 1), N, axis=0)          # (P*N, 1)
    h3bk = jnp.repeat(h3b.reshape(P, 1), N, axis=0)

    operands = [x4d, x1,
                p_s2t["temporal_emb"], p_s2t["spatial_emb"],
                p_s2t["glu_w"], p_s2t["glu_b"], h2w, h2bk,
                p_t2s["temporal_emb"], p_t2s["spatial_emb"],
                p_t2s["glu_w"], p_t2s["glu_b"], h3w, h3bk,
                fac_n2, fac_t2, tr3, fac_t3]
    in_specs = [_batch_spec(x4d.shape), _batch_spec(x1.shape)]
    in_specs += [_full_spec(a.shape) for a in operands[2:]]

    return pl.pallas_call(
        functools.partial(_branch_kernel, T=T, N=N, C=C, P=P),
        out_shape=jax.ShapeDtypeStruct((B, P, N, C), F32),
        grid=(B,),
        in_specs=in_specs,
        out_specs=_batch_spec((B, P, N, C)),
        compiler_params=pltpu.CompilerParams(
            dimension_semantics=("parallel",)),
    )(*operands)


# ---------------------------------------------------------------------------
# Kernel 4: fused output layer (relu matmuls + pos emb + w2 reduction)
#   (the reference's bias1/bias2 are never used in forward — omitted)
# ---------------------------------------------------------------------------

def _output_kernel(d_ref, w1_ref, pt_ref, ps_ref, w2_ref, out_ref,
                   *, B, N, P, H):
    d = d_ref[...]                                          # (B*N, fl*C)
    for p in range(P):
        y = jnp.maximum(jnp.dot(d, w1_ref[p],
                                preferred_element_type=F32), 0.0)   # (B*N, H)
        y = y.reshape(B, N, H) + pt_ref[p] + ps_ref[...]             # pos embeddings
        out_ref[p] = jnp.sum(y * w2_ref[p], axis=-1)                 # (B, N)


def output_call(d, w1, pt, ps, w2, *, B, N, P, H):
    return pl.pallas_call(
        functools.partial(_output_kernel, B=B, N=N, P=P, H=H),
        out_shape=jax.ShapeDtypeStruct((P, B, N), F32),
        in_specs=[_vmem() for _ in range(5)],
        out_specs=_vmem(),
    )(d, w1, pt, ps, w2)


# ---------------------------------------------------------------------------
# Full model forward
# ---------------------------------------------------------------------------

def make_model_forward(params, data, cfg):
    B, T, N, Fin = data.shape
    C = cfg["C"]; ms = cfg["receptive_length"]
    P = cfg["predict_length"]; H = cfg["hidden"]
    st = cfg["stack_times"]; fl = cfg["final_length"]
    K = cfg["num_of_gcn_filters"]

    # --- setup: fc + three adjacency softmaxes (one kernel) ---
    x_flat, adj, sd2, td2, tr3, td3 = setup_call(
        data.reshape(B * T * N, Fin),
        params["fc_w"], params["fc_b"],
        params["mf_emb"], params["mf_TI"],
        params["mf_s2_emb"], params["mf_s2_TI"],
        params["mf_s3_emb"], params["mf_s3_TI"],
        params["mf_t2"], params["mf_t3"],
        N=N, T=T, C=C)
    x = x_flat.reshape(B, T, N, C)

    # --- x1: stacked fstgcn blocks (one kernel each) ---
    temp = x
    x1 = x
    for i in range(st):
        x1 = fstgcn_call(params["fstgcns"][i], temp, x1, adj,
                         ms=ms, N=N, C=C, K=K)

    # --- x2 / x3 branches + 1x1 head convs + sum with x1 (one kernel) ---
    i = st - 1      # s2t/t2s run ONCE with the last loop index (reference behaviour)
    fac_n2 = jnp.broadcast_to(jnp.reshape(sd2, (1, N, 1)), (1, N, C))
    fac_t2 = jnp.broadcast_to(jnp.reshape(td2, (T, 1, 1)), (T, 1, C))
    fac_t3 = jnp.broadcast_to(jnp.reshape(td3, (T, 1, 1)), (T, 1, C))
    out = branch_call(
        x, x1, fac_n2, fac_t2, tr3, fac_t3,
        params["s2t"][i], params["t2s"][i],
        params["head2_w"], params["head2_b"],
        params["head3_w"], params["head3_b"],
        N=N, C=C)                                            # (B, fl, N, C)

    # --- output layer (one kernel) ---
    d = jnp.transpose(out, (0, 2, 1, 3)).reshape(B * N, fl * C)
    o = output_call(
        d, params["out"]["w1"],
        params["out"]["pos_temporal"].reshape(P, 1, H),
        params["out"]["pos_spatial"].reshape(N, H),
        jnp.transpose(params["out"]["w2"], (0, 2, 1)),
        B=B, N=N, P=P, H=H)                                  # (P, B, N)
    return jnp.transpose(o, (1, 0, 2))                       # (B, P, N)


# ---------------------------------------------------------------------------
# Deterministic parameter construction (synthetic, not a checkpoint load)
# ---------------------------------------------------------------------------

def xavier_normal(key, shape, gain):
    if len(shape) == 1:
        fan_in = fan_out = shape[0]
    else:
        rec = 1
        for s in shape[2:]:
            rec *= s
        fan_out = shape[0] * rec
        fan_in = shape[1] * rec
    std = gain * math.sqrt(2.0 / (fan_in + fan_out))
    return (std * jax.random.normal(key, shape)).astype(F32)


def build_params(key, cfg, adj_st):
    keys = iter(jax.random.split(key, 1024))
    nk = lambda: next(keys)
    T, N, Fin, C = cfg["T"], cfg["N"], cfg["F"], cfg["C"]
    ms, P, L = cfg["receptive_length"], cfg["predict_length"], cfg["num_of_latents"]
    K, H = cfg["num_of_gcn_filters"], cfg["hidden"]
    st, fl = cfg["stack_times"], cfg["final_length"]

    p = {}
    p["fc_w"] = xavier_normal(nk(), (Fin, C), 0.0003)
    p["fc_b"] = jax.random.normal(nk(), (1, C), dtype=F32)

    p["mf_emb"] = xavier_normal(nk(), (ms * N, L), 0.02)
    p["mf_TI"] = adj_st
    p["mf_s2_emb"] = xavier_normal(nk(), (N, L), 0.02)
    p["mf_s2_TI"] = adj_st[:, -N:]
    p["mf_s3_emb"] = xavier_normal(nk(), (N, L), 0.02)
    p["mf_s3_TI"] = adj_st[:, -N:]
    p["mf_t2"] = xavier_normal(nk(), (T, T), 0.0003)
    p["mf_t3"] = xavier_normal(nk(), (T, T), 0.0003)

    fstgcns = []
    for i in range(st):
        cur = T - (ms - 1) * i
        J = cur - (ms - 1)
        fp = {
            "conv1_w": 0.05 * jax.random.normal(nk(), (2 * C, C, 1, ms), dtype=F32),
            "conv1_b": 0.05 * jax.random.normal(nk(), (2 * C,), dtype=F32),
            "temporal_emb": xavier_normal(nk(), (1, cur, 1, C), 0.0003),
            "spatial_emb": xavier_normal(nk(), (1, 1, N, C), 0.0003),
        }
        if cur != 12:   # matches the reference construction quirk
            kw2 = ms + (ms - 1) * i
            fp["conv2_w"] = 0.05 * jax.random.normal(nk(), (2 * C, C, 1, kw2), dtype=F32)
            fp["conv2_b"] = 0.05 * jax.random.normal(nk(), (2 * C,), dtype=F32)
        gw, gb = [], []
        for _j in range(J):
            gw.append(jnp.stack([xavier_normal(nk(), (C, 2 * C), 0.0003)
                                 for _k in range(K)], axis=0))
            gb.append(jnp.stack([jax.random.normal(nk(), (1, 2 * C), dtype=F32)
                                 for _k in range(K)], axis=0))
        fp["gcn_w"] = jnp.stack(gw, axis=0)          # (J, K, C, 2C)
        fp["gcn_b"] = jnp.stack(gb, axis=0)          # (J, K, 1, 2C)
        fstgcns.append(fp)
    p["fstgcns"] = fstgcns

    def branch_params():
        return {"temporal_emb": xavier_normal(nk(), (1, T, 1, C), 0.0003),
                "spatial_emb": xavier_normal(nk(), (1, 1, N, C), 0.0003),
                "glu_w": xavier_normal(nk(), (C, 2 * C), 0.0003),
                "glu_b": jax.random.normal(nk(), (1, 2 * C), dtype=F32)}
    p["s2t"] = [branch_params() for _ in range(st)]
    p["t2s"] = [branch_params() for _ in range(st)]

    p["head2_w"] = 0.05 * jax.random.normal(nk(), (3, T, 1, 1), dtype=F32)
    p["head2_b"] = 0.05 * jax.random.normal(nk(), (3,), dtype=F32)
    p["head3_w"] = 0.05 * jax.random.normal(nk(), (3, T, 1, 1), dtype=F32)
    p["head3_b"] = 0.05 * jax.random.normal(nk(), (3,), dtype=F32)

    p["out"] = {"w1": xavier_normal(nk(), (P, fl * C, H), 0.0003),
                "w2": xavier_normal(nk(), (P, H, 1), 0.0003),
                "pos_temporal": xavier_normal(nk(), (1, P, 1, H), 0.0003),
                "pos_spatial": xavier_normal(nk(), (1, 1, N, H), 0.0003)}
    return p


# ---------------------------------------------------------------------------

if __name__ == "__main__":
    cfg = dict(B=2, T=9, N=8, F=2, C=16,
               receptive_length=4, predict_length=3,
               num_of_latents=8, num_of_gcn_filters=2, hidden=128)
    cfg["stack_times"] = (cfg["T"] - 1) // (cfg["receptive_length"] - 1)          # 2
    cfg["final_length"] = cfg["T"] - cfg["stack_times"] * (cfg["receptive_length"] - 1)  # 3

    key = jax.random.PRNGKey(0)
    k_adj, k_par, k_x = jax.random.split(key, 3)
    adj_st = jax.random.uniform(k_adj,
                                (cfg["N"], cfg["receptive_length"] * cfg["N"]),
                                dtype=F32)                                        # (N, 4N)
    params = build_params(k_par, cfg, adj_st)
    data = jax.random.normal(k_x, (cfg["B"], cfg["T"], cfg["N"], cfg["F"]), dtype=F32)

    fwd = jax.jit(lambda p, x: make_model_forward(p, x, cfg))
    out = fwd(params, data)
    jax.block_until_ready(out)
    assert out.shape == (cfg["B"], cfg["predict_length"], cfg["N"]), out.shape
    assert bool(jnp.all(jnp.isfinite(out)))
    print("KERNEL_OK")
</pallas_src>

<mosaic_0001>
module attributes {stable_mosaic.version = 11 : i64} {
  func.func @_setup_kernel(%arg0: memref<144x2xf32, #tpu.memory_space<vmem>>, %arg1: memref<2x16xf32, #tpu.memory_space<vmem>>, %arg2: memref<1x16xf32, #tpu.memory_space<vmem>>, %arg3: memref<32x8xf32, #tpu.memory_space<vmem>>, %arg4: memref<8x32xf32, #tpu.memory_space<vmem>>, %arg5: memref<8x8xf32, #tpu.memory_space<vmem>>, %arg6: memref<8x8xf32, #tpu.memory_space<vmem>>, %arg7: memref<8x8xf32, #tpu.memory_space<vmem>>, %arg8: memref<8x8xf32, #tpu.memory_space<vmem>>, %arg9: memref<9x9xf32, #tpu.memory_space<vmem>>, %arg10: memref<9x9xf32, #tpu.memory_space<vmem>>, %arg11: memref<144x16xf32, #tpu.memory_space<vmem>>, %arg12: memref<8x32xf32, #tpu.memory_space<vmem>>, %arg13: memref<8x1xf32, #tpu.memory_space<vmem>>, %arg14: memref<9x1xf32, #tpu.memory_space<vmem>>, %arg15: memref<1x1xf32, #tpu.memory_space<vmem>>, %arg16: memref<9x1xf32, #tpu.memory_space<vmem>>) attributes {dimension_semantics = [], scalar_prefetch = 0 : i64, scratch_operands = 0 : i64, tpu.core_type = #tpu.core_type<tc>} {
    %c0 = arith.constant 0 : index
    %c0_0 = arith.constant 0 : index
    %0 = vector.load %arg0[%c0, %c0_0] : memref<144x2xf32, #tpu.memory_space<vmem>>, vector<144x2xf32>
    %c0_1 = arith.constant 0 : index
    %c0_2 = arith.constant 0 : index
    %1 = vector.load %arg1[%c0_1, %c0_2] : memref<2x16xf32, #tpu.memory_space<vmem>>, vector<2x16xf32>
    %cst = arith.constant dense<0.000000e+00> : vector<144x16xf32>
    %2 = tpu.matmul %0, %1, %cst {dimension_numbers = #tpu.dot_dimension_numbers<[1], [0], [0], [1], [0, 0, 1, 1], [], []>} : vector<144x2xf32>, vector<2x16xf32>, vector<144x16xf32> -> vector<144x16xf32>
    %c0_3 = arith.constant 0 : index
    %c0_4 = arith.constant 0 : index
    %3 = vector.load %arg2[%c0_3, %c0_4] : memref<1x16xf32, #tpu.memory_space<vmem>>, vector<1x16xf32>
    %4 = vector.broadcast %3 : vector<1x16xf32> to vector<144x16xf32>
    %5 = arith.addf %2, %4 : vector<144x16xf32>
    %c0_5 = arith.constant 0 : index
    %c0_6 = arith.constant 0 : index
    %6 = vector.load %arg11[%c0_5, %c0_6] : memref<144x16xf32, #tpu.memory_space<vmem>>, vector<144x16xf32>
    tpu.vector_store %arg11[%c0_5, %c0_6], %5 {strides = array<i32>} : memref<144x16xf32, #tpu.memory_space<vmem>>, vector<144x16xf32>,
    %c0_7 = arith.constant 0 : index
    %c0_8 = arith.constant 0 : index
    %7 = vector.load %arg3[%c0_7, %c0_8] : memref<32x8xf32, #tpu.memory_space<vmem>>, vector<32x8xf32>
    %c0_9 = arith.constant 0 : index
    %c0_10 = arith.constant 0 : index
    %8 = vector.load %arg4[%c0_9, %c0_10] : memref<8x32xf32, #tpu.memory_space<vmem>>, vector<8x32xf32>
    %9 = vector.extract_strided_slice %7 {offsets = [24, 0], sizes = [8, 8], strides = [1, 1]} : vector<32x8xf32> to vector<8x8xf32>
    %cst_11 = arith.constant dense<0.000000e+00> : vector<8x32xf32>
    %10 = tpu.matmul %9, %7, %cst_11 {dimension_numbers = #tpu.dot_dimension_numbers<[1], [1], [0], [0], [0, 0, 1, 0], [], []>} : vector<8x8xf32>, vector<32x8xf32>, vector<8x32xf32> -> vector<8x32xf32>
    %11 = arith.addf %10, %8 : vector<8x32xf32>
    %cst_12 = arith.constant dense<0xFF800000> : vector<8xf32>
    %12 = vector.multi_reduction <maximumf>, %11, %cst_12 [1] : vector<8x32xf32> to vector<8xf32>
    %13 = vector.shape_cast %12 : vector<8xf32> to vector<8x1xf32>
    %14 = vector.broadcast %13 : vector<8x1xf32> to vector<8x32xf32>
    %15 = arith.subf %11, %14 : vector<8x32xf32>
    %16 = math.exp %15 : vector<8x32xf32>
    %cst_13 = arith.constant dense<0.000000e+00> : vector<8xf32>
    %17 = vector.multi_reduction <add>, %16, %cst_13 [1] : vector<8x32xf32> to vector<8xf32>
    %18 = vector.shape_cast %17 : vector<8xf32> to vector<8x1xf32>
    %19 = vector.broadcast %18 : vector<8x1xf32> to vector<8x32xf32>
    %20 = arith.divf %16, %19 : vector<8x32xf32>
    %c0_14 = arith.constant 0 : index
    %c0_15 = arith.constant 0 : index
    %21 = vector.load %arg12[%c0_14, %c0_15] : memref<8x32xf32, #tpu.memory_space<vmem>>, vector<8x32xf32>
    tpu.vector_store %arg12[%c0_14, %c0_15], %20 {strides = array<i32>} : memref<8x32xf32, #tpu.memory_space<vmem>>, vector<8x32xf32>,
    %22 = tpu.iota {dimensions = array<i32: 0>} : vector<8x8xi32>
    %23 = tpu.iota {dimensions = array<i32: 1>} : vector<8x8xi32>
    %24 = arith.cmpi eq, %22, %23 : vector<8x8xi32>
    %25 = arith.extui %24 : vector<8x8xi1> to vector<8x8xi32>
    %26 = arith.sitofp %25 : vector<8x8xi32> to vector<8x8xf32>
    %c0_16 = arith.constant 0 : index
    %c0_17 = arith.constant 0 : index
    %27 = vector.load %arg5[%c0_16, %c0_17] : memref<8x8xf32, #tpu.memory_space<vmem>>, vector<8x8xf32>
    %c0_18 = arith.constant 0 : index
    %c0_19 = arith.constant 0 : index
    %28 = vector.load %arg6[%c0_18, %c0_19] : memref<8x8xf32, #tpu.memory_space<vmem>>, vector<8x8xf32>
    %cst_20 = arith.constant dense<0.000000e+00> : vector<8x8xf32>
    %29 = tpu.matmul %27, %27, %cst_20 {dimension_numbers = #tpu.dot_dimension_numbers<[1], [1], [0], [0], [0, 0, 1, 0], [], []>} : vector<8x8xf32>, vector<8x8xf32>, vector<8x8xf32> -> vector<8x8xf32>
    %30 = arith.addf %29, %28 : vector<8x8xf32>
    %cst_21 = arith.constant dense<0xFF800000> : vector<8xf32>
    %31 = vector.multi_reduction <maximumf>, %30, %cst_21 [1] : vector<8x8xf32> to vector<8xf32>
    %32 = vector.shape_cast %31 : vector<8xf32> to vector<8x1xf32>
    %33 = vector.broadcast %32 : vector<8x1xf32> to vector<8x8xf32>
    %34 = arith.subf %30, %33 : vector<8x8xf32>
    %35 = math.exp %34 : vector<8x8xf32>
    %cst_22 = arith.constant dense<0.000000e+00> : vector<8xf32>
    %36 = vector.multi_reduction <add>, %35, %cst_22 [1] : vector<8x8xf32> to vector<8xf32>
    %37 = vector.shape_cast %36 : vector<8xf32> to vector<8x1xf32>
    %38 = vector.broadcast %37 : vector<8x1xf32> to vector<8x8xf32>
    %39 = arith.divf %35, %38 : vector<8x8xf32>
    %40 = arith.mulf %39, %26 : vector<8x8xf32>
    %cst_23 = arith.constant dense<0.000000e+00> : vector<8xf32>
    %41 = vector.multi_reduction <add>, %40, %cst_23 [1] : vector<8x8xf32> to vector<8xf32>
    %42 = vector.shape_cast %41 : vector<8xf32> to vector<8x1xf32>
    %c0_24 = arith.constant 0 : index
    %c0_25 = arith.constant 0 : index
    %43 = vector.load %arg13[%c0_24, %c0_25] : memref<8x1xf32, #tpu.memory_space<vmem>>, vector<8x1xf32>
    tpu.vector_store %arg13[%c0_24, %c0_25], %42 {strides = array<i32>} : memref<8x1xf32, #tpu.memory_space<vmem>>, vector<8x1xf32>,
    %c0_26 = arith.constant 0 : index
    %c0_27 = arith.constant 0 : index
    %44 = vector.load %arg7[%c0_26, %c0_27] : memref<8x8xf32, #tpu.memory_space<vmem>>, vector<8x8xf32>
    %c0_28 = arith.constant 0 : index
    %c0_29 = arith.constant 0 : index
    %45 = vector.load %arg8[%c0_28, %c0_29] : memref<8x8xf32, #tpu.memory_space<vmem>>, vector<8x8xf32>
    %cst_30 = arith.constant dense<0.000000e+00> : vector<8x8xf32>
    %46 = tpu.matmul %44, %44, %cst_30 {dimension_numbers = #tpu.dot_dimension_numbers<[1], [1], [0], [0], [0, 0, 1, 0], [], []>} : vector<8x8xf32>, vector<8x8xf32>, vector<8x8xf32> -> vector<8x8xf32>
    %47 = arith.addf %46, %45 : vector<8x8xf32>
    %cst_31 = arith.constant dense<0xFF800000> : vector<8xf32>
    %48 = vector.multi_reduction <maximumf>, %47, %cst_31 [1] : vector<8x8xf32> to vector<8xf32>
    %49 = vector.shape_cast %48 : vector<8xf32> to vector<8x1xf32>
    %50 = vector.broadcast %49 : vector<8x1xf32> to vector<8x8xf32>
    %51 = arith.subf %47, %50 : vector<8x8xf32>
    %52 = math.exp %51 : vector<8x8xf32>
    %cst_32 = arith.constant dense<0.000000e+00> : vector<8xf32>
    %53 = vector.multi_reduction <add>, %52, %cst_32 [1] : vector<8x8xf32> to vector<8xf32>
    %54 = vector.shape_cast %53 : vector<8xf32> to vector<8x1xf32>
    %55 = vector.broadcast %54 : vector<8x1xf32> to vector<8x8xf32>
    %56 = arith.divf %52, %55 : vector<8x8xf32>
    %57 = arith.mulf %56, %26 : vector<8x8xf32>
    %58 = vector.shape_cast %57 : vector<8x8xf32> to vector<1x8x8xf32>
    %cst_33 = arith.constant dense<0.000000e+00> : vector<1xf32>
    %59 = vector.multi_reduction <add>, %58, %cst_33 [1, 2] : vector<1x8x8xf32> to vector<1xf32>
    %60 = vector.shape_cast %59 : vector<1xf32> to vector<1x1x1xf32>
    %61 = vector.extract %60[0, 0, 0] : f32 from vector<1x1x1xf32>
    %62 = vector.broadcast %61 : f32 to vector<1x1xf32>
    %c0_34 = arith.constant 0 : index
    %c0_35 = arith.constant 0 : index
    %63 = vector.load %arg15[%c0_34, %c0_35] : memref<1x1xf32, #tpu.memory_space<vmem>>, vector<1x1xf32>
    tpu.vector_store %arg15[%c0_34, %c0_35], %62 {strides = array<i32>} : memref<1x1xf32, #tpu.memory_space<vmem>>, vector<1x1xf32>,
    %64 = tpu.iota {dimensions = array<i32: 0>} : vector<9x9xi32>
    %65 = tpu.iota {dimensions = array<i32: 1>} : vector<9x9xi32>
    %66 = arith.cmpi eq, %64, %65 : vector<9x9xi32>
    %67 = arith.extui %66 : vector<9x9xi1> to vector<9x9xi32>
    %68 = arith.sitofp %67 : vector<9x9xi32> to vector<9x9xf32>
    %c0_36 = arith.constant 0 : index
    %c0_37 = arith.constant 0 : index
    %69 = vector.load %arg9[%c0_36, %c0_37] : memref<9x9xf32, #tpu.memory_space<vmem>>, vector<9x9xf32>
    %70 = arith.mulf %69, %68 : vector<9x9xf32>
    %cst_38 = arith.constant dense<0.000000e+00> : vector<9xf32>
    %71 = vector.multi_reduction <add>, %70, %cst_38 [1] : vector<9x9xf32> to vector<9xf32>
    %72 = vector.shape_cast %71 : vector<9xf32> to vector<9x1xf32>
    %cst_39 = arith.constant 1.000000e+00 : f32
    %73 = vector.broadcast %cst_39 : f32 to vector<9x1xf32>
    %74 = arith.addf %72, %73 : vector<9x1xf32>
    %c0_40 = arith.constant 0 : index
    %c0_41 = arith.constant 0 : index
    %75 = vector.load %arg14[%c0_40, %c0_41] : memref<9x1xf32, #tpu.memory_space<vmem>>, vector<9x1xf32>
    tpu.vector_store %arg14[%c0_40, %c0_41], %74 {strides = array<i32>} : memref<9x1xf32, #tpu.memory_space<vmem>>, vector<9x1xf32>,
    %c0_42 = arith.constant 0 : index
    %c0_43 = arith.constant 0 : index
    %76 = vector.load %arg10[%c0_42, %c0_43] : memref<9x9xf32, #tpu.memory_space<vmem>>, vector<9x9xf32>
    %77 = arith.mulf %76, %68 : vector<9x9xf32>
    %cst_44 = arith.constant dense<0.000000e+00> : vector<9xf32>
    %78 = vector.multi_reduction <add>, %77, %cst_44 [1] : vector<9x9xf32> to vector<9xf32>
    %79 = vector.shape_cast %78 : vector<9xf32> to vector<9x1xf32>
    %cst_45 = arith.constant 1.000000e+00 : f32
    %80 = vector.broadcast %cst_45 : f32 to vector<9x1xf32>
    %81 = arith.addf %79, %80 : vector<9x1xf32>
    %c0_46 = arith.constant 0 : index
    %c0_47 = arith.constant 0 : index
    %82 = vector.load %arg16[%c0_46, %c0_47] : memref<9x1xf32, #tpu.memory_space<vmem>>, vector<9x1xf32>
    tpu.vector_store %arg16[%c0_46, %c0_47], %81 {strides = array<i32>} : memref<9x1xf32, #tpu.memory_space<vmem>>, vector<9x1xf32>,
    return
  }
}

module attributes {stable_mosaic.version = 11 : i64} {
  func.func @_fstgcn_kernel(%arg0: i32, %arg1: memref<1x6x8x16xf32, #tpu.memory_space<vmem>>, %arg2: memref<1x9x8x16xf32, #tpu.memory_space<vmem>>, %arg3: memref<4x16x32xf32, #tpu.memory_space<vmem>>, %arg4: memref<1x32xf32, #tpu.memory_space<vmem>>, %arg5: memref<7x16x32xf32, #tpu.memory_space<vmem>>, %arg6: memref<1x32xf32, #tpu.memory_space<vmem>>, %arg7: memref<1x6x1x16xf32, #tpu.memory_space<vmem>>, %arg8: memref<1x1x8x16xf32, #tpu.memory_space<vmem>>, %arg9: memref<8x24xf32, #tpu.memory_space<vmem>>, %arg10: memref<8x8xf32, #tpu.memory_space<vmem>>, %arg11: memref<3x2x16x32xf32, #tpu.memory_space<vmem>>, %arg12: memref<3x2x1x32xf32, #tpu.memory_space<vmem>>, %arg13: memref<1x3x8x16xf32, #tpu.memory_space<vmem>>) attributes {dimension_semantics = [#tpu.dimension_semantics<parallel>], iteration_bounds = array<i64: 2>, scalar_prefetch = 0 : i64, scratch_operands = 0 : i64, tpu.core_type = #tpu.core_type<tc>, window_params = [{transform_indices = @transform_0, window_bounds = array<i64: 1, 6, 8, 16>}, {transform_indices = @transform_1, window_bounds = array<i64: 1, 9, 8, 16>}, {pipeline_mode = #tpu.pipeline_mode<synchronous>, transform_indices = @transform_2, window_bounds = array<i64: 4, 16, 32>}, {pipeline_mode = #tpu.pipeline_mode<synchronous>, transform_indices = @transform_3, window_bounds = array<i64: 1, 32>}, {pipeline_mode = #tpu.pipeline_mode<synchronous>, transform_indices = @transform_4, window_bounds = array<i64: 7, 16, 32>}, {pipeline_mode = #tpu.pipeline_mode<synchronous>, transform_indices = @transform_5, window_bounds = array<i64: 1, 32>}, {pipeline_mode = #tpu.pipeline_mode<synchronous>, transform_indices = @transform_6, window_bounds = array<i64: 1, 6, 1, 16>}, {pipeline_mode = #tpu.pipeline_mode<synchronous>, transform_indices = @transform_7, window_bounds = array<i64: 1, 1, 8, 16>}, {pipeline_mode = #tpu.pipeline_mode<synchronous>, transform_indices = @transform_8, window_bounds = array<i64: 8, 24>}, {pipeline_mode = #tpu.pipeline_mode<synchronous>, transform_indices = @transform_9, window_bounds = array<i64: 8, 8>}, {pipeline_mode = #tpu.pipeline_mode<synchronous>, transform_indices = @transform_10, window_bounds = array<i64: 3, 2, 16, 32>}, {pipeline_mode = #tpu.pipeline_mode<synchronous>, transform_indices = @transform_11, window_bounds = array<i64: 3, 2, 1, 32>}, {transform_indices = @transform_12, window_bounds = array<i64: 1, 3, 8, 16>}]} {
    %c0 = arith.constant 0 : index
    %c0_0 = arith.constant 0 : index
    %c0_1 = arith.constant 0 : index
    %c0_2 = arith.constant 0 : index
    %0 = vector.load %arg1[%c0, %c0_0, %c0_1, %c0_2] : memref<1x6x8x16xf32, #tpu.memory_space<vmem>>, vector<1x3x8x16xf32>
    %1 = vector.shape_cast %0 : vector<1x3x8x16xf32> to vector<3x8x16xf32>
    %2 = vector.shape_cast %1 : vector<3x8x16xf32> to vector<24x16xf32>
    %c0_3 = arith.constant 0 : index
    %c0_4 = arith.constant 0 : index
    %c0_5 = arith.constant 0 : index
    %3 = vector.load %arg3[%c0_3, %c0_4, %c0_5] : memref<4x16x32xf32, #tpu.memory_space<vmem>>, vector<1x16x32xf32>
    %4 = vector.shape_cast %3 : vector<1x16x32xf32> to vector<16x32xf32>
    %cst = arith.constant dense<0.000000e+00> : vector<24x32xf32>
    %5 = tpu.matmul %2, %4, %cst {dimension_numbers = #tpu.dot_dimension_numbers<[1], [0], [0], [1], [0, 0, 1, 1], [], []>} : vector<24x16xf32>, vector<16x32xf32>, vector<24x32xf32> -> vector<24x32xf32>
    %c0_6 = arith.constant 0 : index
    %c1 = arith.constant 1 : index
    %c0_7 = arith.constant 0 : index
    %c0_8 = arith.constant 0 : index
    %6 = vector.load %arg1[%c0_6, %c1, %c0_7, %c0_8] : memref<1x6x8x16xf32, #tpu.memory_space<vmem>>, vector<1x3x8x16xf32>
    %7 = vector.shape_cast %6 : vector<1x3x8x16xf32> to vector<3x8x16xf32>
    %8 = vector.shape_cast %7 : vector<3x8x16xf32> to vector<24x16xf32>
    %c1_9 = arith.constant 1 : index
    %c0_10 = arith.constant 0 : index
    %c0_11 = arith.constant 0 : index
    %9 = vector.load %arg3[%c1_9, %c0_10, %c0_11] : memref<4x16x32xf32, #tpu.memory_space<vmem>>, vector<1x16x32xf32>
    %10 = vector.shape_cast %9 : vector<1x16x32xf32> to vector<16x32xf32>
    %cst_12 = arith.constant dense<0.000000e+00> : vector<24x32xf32>
    %11 = tpu.matmul %8, %10, %cst_12 {dimension_numbers = #tpu.dot_dimension_numbers<[1], [0], [0], [1], [0, 0, 1, 1], [], []>} : vector<24x16xf32>, vector<16x32xf32>, vector<24x32xf32> -> vector<24x32xf32>
    %12 = arith.addf %5, %11 : vector<24x32xf32>
    %c0_13 = arith.constant 0 : index
    %c2 = arith.constant 2 : index
    %c0_14 = arith.constant 0 : index
    %c0_15 = arith.constant 0 : index
    %13 = vector.load %arg1[%c0_13, %c2, %c0_14, %c0_15] : memref<1x6x8x16xf32, #tpu.memory_space<vmem>>, vector<1x3x8x16xf32>
    %14 = vector.shape_cast %13 : vector<1x3x8x16xf32> to vector<3x8x16xf32>
    %15 = vector.shape_cast %14 : vector<3x8x16xf32> to vector<24x16xf32>
    %c2_16 = arith.constant 2 : index
    %c0_17 = arith.constant 0 : index
    %c0_18 = arith.constant 0 : index
    %16 = vector.load %arg3[%c2_16, %c0_17, %c0_18] : memref<4x16x32xf32, #tpu.memory_space<vmem>>, vector<1x16x32xf32>
    %17 = vector.shape_cast %16 : vector<1x16x32xf32> to vector<16x32xf32>
    %cst_19 = arith.constant dense<0.000000e+00> : vector<24x32xf32>
    %18 = tpu.matmul %15, %17, %cst_19 {dimension_numbers = #tpu.dot_dimension_numbers<[1], [0], [0], [1], [0, 0, 1, 1], [], []>} : vector<24x16xf32>, vector<16x32xf32>, vector<24x32xf32> -> vector<24x32xf32>
    %19 = arith.addf %12, %18 : vector<24x32xf32>
    %c0_20 = arith.constant 0 : index
    %c3 = arith.constant 3 : index
    %c0_21 = arith.constant 0 : index
    %c0_22 = arith.constant 0 : index
    %20 = vector.load %arg1[%c0_20, %c3, %c0_21, %c0_22] : memref<1x6x8x16xf32, #tpu.memory_space<vmem>>, vector<1x3x8x16xf32>
    %21 = vector.shape_cast %20 : vector<1x3x8x16xf32> to vector<3x8x16xf32>
    %22 = vector.shape_cast %21 : vector<3x8x16xf32> to vector<24x16xf32>
    %c3_23 = arith.constant 3 : index
    %c0_24 = arith.constant 0 : index
    %c0_25 = arith.constant 0 : index
    %23 = vector.load %arg3[%c3_23, %c0_24, %c0_25] : memref<4x16x32xf32, #tpu.memory_space<vmem>>, vector<1x16x32xf32>
    %24 = vector.shape_cast %23 : vector<1x16x32xf32> to vector<16x32xf32>
    %cst_26 = arith.constant dense<0.000000e+00> : vector<24x32xf32>
    %25 = tpu.matmul %22, %24, %cst_26 {dimension_numbers = #tpu.dot_dimension_numbers<[1], [0], [0], [1], [0, 0, 1, 1], [], []>} : vector<24x16xf32>, vector<16x32xf32>, vector<24x32xf32> -> vector<24x32xf32>
    %26 = arith.addf %19, %25 : vector<24x32xf32>
    %c0_27 = arith.constant 0 : index
    %c0_28 = arith.constant 0 : index
    %27 = vector.load %arg4[%c0_27, %c0_28] : memref<1x32xf32, #tpu.memory_space<vmem>>, vector<1x32xf32>
    %28 = vector.broadcast %27 : vector<1x32xf32> to vector<24x32xf32>
    %29 = arith.addf %26, %28 : vector<24x32xf32>
    %30 = vector.extract_strided_slice %29 {offsets = [0, 0], sizes = [24, 16], strides = [1, 1]} : vector<24x32xf32> to vector<24x16xf32>
    %31 = arith.negf %30 : vector<24x16xf32>
    %32 = math.exp %31 : vector<24x16xf32>
    %cst_29 = arith.constant 1.000000e+00 : f32
    %33 = vector.broadcast %cst_29 : f32 to vector<24x16xf32>
    %34 = arith.addf %33, %32 : vector<24x16xf32>
    %35 = arith.divf %33, %34 : vector<24x16xf32>
    %36 = vector.extract_strided_slice %29 {offsets = [0, 16], sizes = [24, 16], strides = [1, 1]} : vector<24x32xf32> to vector<24x16xf32>
    %37 = arith.mulf %35, %36 : vector<24x16xf32>
    %c0_30 = arith.constant 0 : index
    %c0_31 = arith.constant 0 : index
    %c0_32 = arith.constant 0 : index
    %c0_33 = arith.constant 0 : index
    %38 = vector.load %arg2[%c0_30, %c0_31, %c0_32, %c0_33] : memref<1x9x8x16xf32, #tpu.memory_space<vmem>>, vector<1x3x8x16xf32>
    %39 = vector.shape_cast %38 : vector<1x3x8x16xf32> to vector<3x8x16xf32>
    %40 = vector.shape_cast %39 : vector<3x8x16xf32> to vector<24x16xf32>
    %c0_34 = arith.constant 0 : index
    %c0_35 = arith.constant 0 : index
    %c0_36 = arith.constant 0 : index
    %41 = vector.load %arg5[%c0_34, %c0_35, %c0_36] : memref<7x16x32xf32, #tpu.memory_space<vmem>>, vector<1x16x32xf32>
    %42 = vector.shape_cast %41 : vector<1x16x32xf32> to vector<16x32xf32>
    %cst_37 = arith.constant dense<0.000000e+00> : vector<24x32xf32>
    %43 = tpu.matmul %40, %42, %cst_37 {dimension_numbers = #tpu.dot_dimension_numbers<[1], [0], [0], [1], [0, 0, 1, 1], [], []>} : vector<24x16xf32>, vector<16x32xf32>, vector<24x32xf32> -> vector<24x32xf32>
    %c0_38 = arith.constant 0 : index
    %c1_39 = arith.constant 1 : index
    %c0_40 = arith.constant 0 : index
    %c0_41 = arith.constant 0 : index
    %44 = vector.load %arg2[%c0_38, %c1_39, %c0_40, %c0_41] : memref<1x9x8x16xf32, #tpu.memory_space<vmem>>, vector<1x3x8x16xf32>
    %45 = vector.shape_cast %44 : vector<1x3x8x16xf32> to vector<3x8x16xf32>
    %46 = vector.shape_cast %45 : vector<3x8x16xf32> to vector<24x16xf32>
    %c1_42 = arith.constant 1 : index
    %c0_43 = arith.constant 0 : index
    %c0_44 = arith.constant 0 : index
    %47 = vector.load %arg5[%c1_42, %c0_43, %c0_44] : memref<7x16x32xf32, #tpu.memory_space<vmem>>, vector<1x16x32xf32>
    %48 = vector.shape_cast %47 : vector<1x16x32xf32> to vector<16x32xf32>
    %cst_45 = arith.constant dense<0.000000e+00> : vector<24x32xf32>
    %49 = tpu.matmul %46, %48, %cst_45 {dimension_numbers = #tpu.dot_dimension_numbers<[1], [0], [0], [1], [0, 0, 1, 1], [], []>} : vector<24x16xf32>, vector<16x32xf32>, vector<24x32xf32> -> vector<24x32xf32>
    %50 = arith.addf %43, %49 : vector<24x32xf32>
    %c0_46 = arith.constant 0 : index
    %c2_47 = arith.constant 2 : index
    %c0_48 = arith.constant 0 : index
    %c0_49 = arith.constant 0 : index
    %51 = vector.load %arg2[%c0_46, %c2_47, %c0_48, %c0_49] : memref<1x9x8x16xf32, #tpu.memory_space<vmem>>, vector<1x3x8x16xf32>
    %52 = vector.shape_cast %51 : vector<1x3x8x16xf32> to vector<3x8x16xf32>
    %53 = vector.shape_cast %52 : vector<3x8x16xf32> to vector<24x16xf32>
    %c2_50 = arith.constant 2 : index
    %c0_51 = arith.constant 0 : index
    %c0_52 = arith.constant 0 : index
    %54 = vector.load %arg5[%c2_50, %c0_51, %c0_52] : memref<7x16x32xf32, #tpu.memory_space<vmem>>, vector<1x16x32xf32>
    %55 = vector.shape_cast %54 : vector<1x16x32xf32> to vector<16x32xf32>
    %cst_53 = arith.constant dense<0.000000e+00> : vector<24x32xf32>
    %56 = tpu.matmul %53, %55, %cst_53 {dimension_numbers = #tpu.dot_dimension_numbers<[1], [0], [0], [1], [0, 0, 1, 1], [], []>} : vector<24x16xf32>, vector<16x32xf32>, vector<24x32xf32> -> vector<24x32xf32>
    %57 = arith.addf %50, %56 : vector<24x32xf32>
    %c0_54 = arith.constant 0 : index
    %c3_55 = arith.constant 3 : index
    %c0_56 = arith.constant 0 : index
    %c0_57 = arith.constant 0 : index
    %58 = vector.load %arg2[%c0_54, %c3_55, %c0_56, %c0_57] : memref<1x9x8x16xf32, #tpu.memory_space<vmem>>, vector<1x3x8x16xf32>
    %59 = vector.shape_cast %58 : vector<1x3x8x16xf32> to vector<3x8x16xf32>
    %60 = vector.shape_cast %59 : vector<3x8x16xf32> to vector<24x16xf32>
    %c3_58 = arith.constant 3 : index
    %c0_59 = arith.constant 0 : index
    %c0_60 = arith.constant 0 : index
    %61 = vector.load %arg5[%c3_58, %c0_59, %c0_60] : memref<7x16x32xf32, #tpu.memory_space<vmem>>, vector<1x16x32xf32>
    %62 = vector.shape_cast %61 : vector<1x16x32xf32> to vector<16x32xf32>
    %cst_61 = arith.constant dense<0.000000e+00> : vector<24x32xf32>
    %63 = tpu.matmul %60, %62, %cst_61 {dimension_numbers = #tpu.dot_dimension_numbers<[1], [0], [0], [1], [0, 0, 1, 1], [], []>} : vector<24x16xf32>, vector<16x32xf32>, vector<24x32xf32> -> vector<24x32xf32>
    %64 = arith.addf %57, %63 : vector<24x32xf32>
    %c0_62 = arith.constant 0 : index
    %c4 = arith.constant 4 : index
    %c0_63 = arith.constant 0 : index
    %c0_64 = arith.constant 0 : index
    %65 = vector.load %arg2[%c0_62, %c4, %c0_63, %c0_64] : memref<1x9x8x16xf32, #tpu.memory_space<vmem>>, vector<1x3x8x16xf32>
    %66 = vector.shape_cast %65 : vector<1x3x8x16xf32> to vector<3x8x16xf32>
    %67 = vector.shape_cast %66 : vector<3x8x16xf32> to vector<24x16xf32>
    %c4_65 = arith.constant 4 : index
    %c0_66 = arith.constant 0 : index
    %c0_67 = arith.constant 0 : index
    %68 = vector.load %arg5[%c4_65, %c0_66, %c0_67] : memref<7x16x32xf32, #tpu.memory_space<vmem>>, vector<1x16x32xf32>
    %69 = vector.shape_cast %68 : vector<1x16x32xf32> to vector<16x32xf32>
    %cst_68 = arith.constant dense<0.000000e+00> : vector<24x32xf32>
    %70 = tpu.matmul %67, %69, %cst_68 {dimension_numbers = #tpu.dot_dimension_numbers<[1], [0], [0], [1], [0, 0, 1, 1], [], []>} : vector<24x16xf32>, vector<16x32xf32>, vector<24x32xf32> -> vector<24x32xf32>
    %71 = arith.addf %64, %70 : vector<24x32xf32>
    %c0_69 = arith.constant 0 : index
    %c5 = arith.constant 5 : index
    %c0_70 = arith.constant 0 : index
    %c0_71 = arith.constant 0 : index
    %72 = vector.load %arg2[%c0_69, %c5, %c0_70, %c0_71] : memref<1x9x8x16xf32, #tpu.memory_space<vmem>>, vector<1x3x8x16xf32>
    %73 = vector.shape_cast %72 : vector<1x3x8x16xf32> to vector<3x8x16xf32>
    %74 = vector.shape_cast %73 : vector<3x8x16xf32> to vector<24x16xf32>
    %c5_72 = arith.constant 5 : index
    %c0_73 = arith.constant 0 : index
    %c0_74 = arith.constant 0 : index
    %75 = vector.load %arg5[%c5_72, %c0_73, %c0_74] : memref<7x16x32xf32, #tpu.memory_space<vmem>>, vector<1x16x32xf32>
    %76 = vector.shape_cast %75 : vector<1x16x32xf32> to vector<16x32xf32>
    %cst_75 = arith.constant dense<0.000000e+00> : vector<24x32xf32>
    %77 = tpu.matmul %74, %76, %cst_75 {dimension_numbers = #tpu.dot_dimension_numbers<[1], [0], [0], [1], [0, 0, 1, 1], [], []>} : vector<24x16xf32>, vector<16x32xf32>, vector<24x32xf32> -> vector<24x32xf32>
    %78 = arith.addf %71, %77 : vector<24x32xf32>
    %c0_76 = arith.constant 0 : index
    %c6 = arith.constant 6 : index
    %c0_77 = arith.constant 0 : index
    %c0_78 = arith.constant 0 : index
    %79 = vector.load %arg2[%c0_76, %c6, %c0_77, %c0_78] : memref<1x9x8x16xf32, #tpu.memory_space<vmem>>, vector<1x3x8x16xf32>
    %80 = vector.shape_cast %79 : vector<1x3x8x16xf32> to vector<3x8x16xf32>
    %81 = vector.shape_cast %80 : vector<3x8x16xf32> to vector<24x16xf32>
    %c6_79 = arith.constant 6 : index
    %c0_80 = arith.constant 0 : index
    %c0_81 = arith.constant 0 : index
    %82 = vector.load %arg5[%c6_79, %c0_80, %c0_81] : memref<7x16x32xf32, #tpu.memory_space<vmem>>, vector<1x16x32xf32>
    %83 = vector.shape_cast %82 : vector<1x16x32xf32> to vector<16x32xf32>
    %cst_82 = arith.constant dense<0.000000e+00> : vector<24x32xf32>
    %84 = tpu.matmul %81, %83, %cst_82 {dimension_numbers = #tpu.dot_dimension_numbers<[1], [0], [0], [1], [0, 0, 1, 1], [], []>} : vector<24x16xf32>, vector<16x32xf32>, vector<24x32xf32> -> vector<24x32xf32>
    %85 = arith.addf %78, %84 : vector<24x32xf32>
    %c0_83 = arith.constant 0 : index
    %c0_84 = arith.constant 0 : index
    %86 = vector.load %arg6[%c0_83, %c0_84] : memref<1x32xf32, #tpu.memory_space<vmem>>, vector<1x32xf32>
    %87 = vector.broadcast %86 : vector<1x32xf32> to vector<24x32xf32>
    %88 = arith.addf %85, %87 : vector<24x32xf32>
    %89 = vector.extract_strided_slice %88 {offsets = [0, 0], sizes = [24, 16], strides = [1, 1]} : vector<24x32xf32> to vector<24x16xf32>
    %90 = arith.negf %89 : vector<24x16xf32>
    %91 = math.exp %90 : vector<24x16xf32>
    %cst_85 = arith.constant 1.000000e+00 : f32
    %92 = vector.broadcast %cst_85 : f32 to vector<24x16xf32>
    %93 = arith.addf %92, %91 : vector<24x16xf32>
    %94 = arith.divf %92, %93 : vector<24x16xf32>
    %95 = vector.extract_strided_slice %88 {offsets = [0, 16], sizes = [24, 16], strides = [1, 1]} : vector<24x32xf32> to vector<24x16xf32>
    %96 = arith.mulf %94, %95 : vector<24x16xf32>
    %97 = arith.addf %37, %96 : vector<24x16xf32>
    %98 = vector.shape_cast %97 : vector<24x16xf32> to vector<3x8x16xf32>
    %c0_86 = arith.constant 0 : index
    %c0_87 = arith.constant 0 : index
    %c0_88 = arith.constant 0 : index
    %c0_89 = arith.constant 0 : index
    %99 = vector.load %arg1[%c0_86, %c0_87, %c0_88, %c0_89] : memref<1x6x8x16xf32, #tpu.memory_space<vmem>>, vector<1x6x8x16xf32>
    %100 = vector.shape_cast %99 : vector<1x6x8x16xf32> to vector<6x8x16xf32>
    %c0_90 = arith.constant 0 : index
    %c0_91 = arith.constant 0 : index
    %c0_92 = arith.constant 0 : index
    %c0_93 = arith.constant 0 : index
    %101 = vector.load %arg7[%c0_90, %c0_91, %c0_92, %c0_93] : memref<1x6x1x16xf32, #tpu.memory_space<vmem>>, vector<1x6x1x16xf32>
    %102 = vector.shape_cast %101 : vector<1x6x1x16xf32> to vector<6x1x16xf32>
    %103 = vector.broadcast %102 : vector<6x1x16xf32> to vector<6x8x16xf32>
    %104 = arith.addf %100, %103 : vector<6x8x16xf32>
    %c0_94 = arith.constant 0 : index
    %c0_95 = arith.constant 0 : index
    %c0_96 = arith.constant 0 : index
    %c0_97 = arith.constant 0 : index
    %105 = vector.load %arg8[%c0_94, %c0_95, %c0_96, %c0_97] : memref<1x1x8x16xf32, #tpu.memory_space<vmem>>, vector<1x1x8x16xf32>
    %106 = vector.shape_cast %105 : vector<1x1x8x16xf32> to vector<1x8x16xf32>
    %107 = vector.broadcast %106 : vector<1x8x16xf32> to vector<6x8x16xf32>
    %108 = arith.addf %104, %107 : vector<6x8x16xf32>
    %c0_98 = arith.constant 0 : index
    %c0_99 = arith.constant 0 : index
    %109 = vector.load %arg9[%c0_98, %c0_99] : memref<8x24xf32, #tpu.memory_space<vmem>>, vector<8x24xf32>
    %c0_100 = arith.constant 0 : index
    %c0_101 = arith.constant 0 : index
    %110 = vector.load %arg10[%c0_100, %c0_101] : memref<8x8xf32, #tpu.memory_space<vmem>>, vector<8x8xf32>
    %111 = vector.extract_strided_slice %108 {offsets = [0, 0, 0], sizes = [4, 8, 16], strides = [1, 1, 1]} : vector<6x8x16xf32> to vector<4x8x16xf32>
    %112 = vector.extract_strided_slice %111 {offsets = [0, 0, 0], sizes = [3, 8, 16], strides = [1, 1, 1]} : vector<4x8x16xf32> to vector<3x8x16xf32>
    %113 = vector.shape_cast %112 : vector<3x8x16xf32> to vector<24x16xf32>
    %114 = vector.extract_strided_slice %111 {offsets = [3, 0, 0], sizes = [1, 8, 16], strides = [1, 1, 1]} : vector<4x8x16xf32> to vector<1x8x16xf32>
    %115 = vector.shape_cast %114 : vector<1x8x16xf32> to vector<8x16xf32>
    %cst_102 = arith.constant dense<0.000000e+00> : vector<8x16xf32>
    %116 = tpu.matmul %109, %113, %cst_102 {dimension_numbers = #tpu.dot_dimension_numbers<[1], [0], [0], [1], [0, 0, 1, 1], [], []>} : vector<8x24xf32>, vector<24x16xf32>, vector<8x16xf32> -> vector<8x16xf32>
    %cst_103 = arith.constant dense<0.000000e+00> : vector<8x16xf32>
    %117 = tpu.matmul %110, %115, %cst_103 {dimension_numbers = #tpu.dot_dimension_numbers<[1], [0], [0], [1], [0, 0, 1, 1], [], []>} : vector<8x8xf32>, vector<8x16xf32>, vector<8x16xf32> -> vector<8x16xf32>
    %118 = arith.addf %116, %117 : vector<8x16xf32>
    %c0_104 = arith.constant 0 : index
    %c0_105 = arith.constant 0 : index
    %c0_106 = arith.constant 0 : index
    %c0_107 = arith.constant 0 : index
    %119 = vector.load %arg11[%c0_104, %c0_105, %c0_106, %c0_107] : memref<3x2x16x32xf32, #tpu.memory_space<vmem>>, vector<1x1x16x32xf32>
    %120 = vector.shape_cast %119 : vector<1x1x16x32xf32> to vector<16x32xf32>
    %cst_108 = arith.constant dense<0.000000e+00> : vector<8x32xf32>
    %121 = tpu.matmul %118, %120, %cst_108 {dimension_numbers = #tpu.dot_dimension_numbers<[1], [0], [0], [1], [0, 0, 1, 1], [], []>} : vector<8x16xf32>, vector<16x32xf32>, vector<8x32xf32> -> vector<8x32xf32>
    %c0_109 = arith.constant 0 : index
    %c0_110 = arith.constant 0 : index
    %c0_111 = arith.constant 0 : index
    %c0_112 = arith.constant 0 : index
    %122 = vector.load %arg12[%c0_109, %c0_110, %c0_111, %c0_112] : memref<3x2x1x32xf32, #tpu.memory_space<vmem>>, vector<1x1x1x32xf32>
    %123 = vector.shape_cast %122 : vector<1x1x1x32xf32> to vector<1x32xf32>
    %124 = vector.broadcast %123 : vector<1x32xf32> to vector<8x32xf32>
    %125 = arith.addf %121, %124 : vector<8x32xf32>
    %126 = vector.extract_strided_slice %125 {offsets = [0, 0], sizes = [8, 16], strides = [1, 1]} : vector<8x32xf32> to vector<8x16xf32>
    %127 = vector.extract_strided_slice %125 {offsets = [0, 16], sizes = [8, 16], strides = [1, 1]} : vector<8x32xf32> to vector<8x16xf32>
    %128 = arith.negf %127 : vector<8x16xf32>
    %129 = math.exp %128 : vector<8x16xf32>
    %cst_113 = arith.constant 1.000000e+00 : f32
    %130 = vector.broadcast %cst_113 : f32 to vector<8x16xf32>
    %131 = arith.addf %130, %129 : vector<8x16xf32>
    %132 = arith.divf %130, %131 : vector<8x16xf32>
    %133 = arith.mulf %126, %132 : vector<8x16xf32>
    %cst_114 = arith.constant dense<0.000000e+00> : vector<8x16xf32>
    %134 = tpu.matmul %110, %133, %cst_114 {dimension_numbers = #tpu.dot_dimension_numbers<[1], [0], [0], [1], [0, 0, 1, 1], [], []>} : vector<8x8xf32>, vector<8x16xf32>, vector<8x16xf32> -> vector<8x16xf32>
    %135 = arith.addf %116, %134 : vector<8x16xf32>
    %c0_115 = arith.constant 0 : index
    %c1_116 = arith.constant 1 : index
    %c0_117 = arith.constant 0 : index
    %c0_118 = arith.constant 0 : index
    %136 = vector.load %arg11[%c0_115, %c1_116, %c0_117, %c0_118] : memref<3x2x16x32xf32, #tpu.memory_space<vmem>>, vector<1x1x16x32xf32>
    %137 = vector.shape_cast %136 : vector<1x1x16x32xf32> to vector<16x32xf32>
    %cst_119 = arith.constant dense<0.000000e+00> : vector<8x32xf32>
    %138 = tpu.matmul %135, %137, %cst_119 {dimension_numbers = #tpu.dot_dimension_numbers<[1], [0], [0], [1], [0, 0, 1, 1], [], []>} : vector<8x16xf32>, vector<16x32xf32>, vector<8x32xf32> -> vector<8x32xf32>
    %c0_120 = arith.constant 0 : index
    %c1_121 = arith.constant 1 : index
    %c0_122 = arith.constant 0 : index
    %c0_123 = arith.constant 0 : index
    %139 = vector.load %arg12[%c0_120, %c1_121, %c0_122, %c0_123] : memref<3x2x1x32xf32, #tpu.memory_space<vmem>>, vector<1x1x1x32xf32>
    %140 = vector.shape_cast %139 : vector<1x1x1x32xf32> to vector<1x32xf32>
    %141 = vector.broadcast %140 : vector<1x32xf32> to vector<8x32xf32>
    %142 = arith.addf %138, %141 : vector<8x32xf32>
    %143 = vector.extract_strided_slice %142 {offsets = [0, 0], sizes = [8, 16], strides = [1, 1]} : vector<8x32xf32> to vector<8x16xf32>
    %144 = vector.extract_strided_slice %142 {offsets = [0, 16], sizes = [8, 16], strides = [1, 1]} : vector<8x32xf32> to vector<8x16xf32>
    %145 = arith.negf %144 : vector<8x16xf32>
    %146 = math.exp %145 : vector<8x16xf32>
    %cst_124 = arith.constant 1.000000e+00 : f32
    %147 = vector.broadcast %cst_124 : f32 to vector<8x16xf32>
    %148 = arith.addf %147, %146 : vector<8x16xf32>
    %149 = arith.divf %147, %148 : vector<8x16xf32>
    %150 = arith.mulf %143, %149 : vector<8x16xf32>
    %151 = arith.maximumf %133, %150 : vector<8x16xf32>
    %152 = arith.addf %151, %115 : vector<8x16xf32>
    %153 = vector.extract_strided_slice %98 {offsets = [0, 0, 0], sizes = [1, 8, 16], strides = [1, 1, 1]} : vector<3x8x16xf32> to vector<1x8x16xf32>
    %154 = vector.shape_cast %153 : vector<1x8x16xf32> to vector<8x16xf32>
    %155 = arith.addf %152, %154 : vector<8x16xf32>
    %c0_125 = arith.constant 0 : index
    %c0_126 = arith.constant 0 : index
    %c0_127 = arith.constant 0 : index
    %c0_128 = arith.constant 0 : index
    %156 = vector.load %arg13[%c0_125, %c0_126, %c0_127, %c0_128] : memref<1x3x8x16xf32, #tpu.memory_space<vmem>>, vector<1x1x8x16xf32>
    %157 = vector.shape_cast %156 : vector<1x1x8x16xf32> to vector<8x16xf32>
    %158 = vector.shape_cast %155 : vector<8x16xf32> to vector<1x1x8x16xf32>
    tpu.vector_store %arg13[%c0_125, %c0_126, %c0_127, %c0_128], %158 {strides = array<i32>} : memref<1x3x8x16xf32, #tpu.memory_space<vmem>>, vector<1x1x8x16xf32>,
    %159 = vector.extract_strided_slice %108 {offsets = [1, 0, 0], sizes = [4, 8, 16], strides = [1, 1, 1]} : vector<6x8x16xf32> to vector<4x8x16xf32>
    %160 = vector.extract_strided_slice %159 {offsets = [0, 0, 0], sizes = [3, 8, 16], strides = [1, 1, 1]} : vector<4x8x16xf32> to vector<3x8x16xf32>
    %161 = vector.shape_cast %160 : vector<3x8x16xf32> to vector<24x16xf32>
    %162 = vector.extract_strided_slice %159 {offsets = [3, 0, 0], sizes = [1, 8, 16], strides = [1, 1, 1]} : vector<4x8x16xf32> to vector<1x8x16xf32>
    %163 = vector.shape_cast %162 : vector<1x8x16xf32> to vector<8x16xf32>
    %cst_129 = arith.constant dense<0.000000e+00> : vector<8x16xf32>
    %164 = tpu.matmul %109, %161, %cst_129 {dimension_numbers = #tpu.dot_dimension_numbers<[1], [0], [0], [1], [0, 0, 1, 1], [], []>} : vector<8x24xf32>, vector<24x16xf32>, vector<8x16xf32> -> vector<8x16xf32>
    %cst_130 = arith.constant dense<0.000000e+00> : vector<8x16xf32>
    %165 = tpu.matmul %110, %163, %cst_130 {dimension_numbers = #tpu.dot_dimension_numbers<[1], [0], [0], [1], [0, 0, 1, 1], [], []>} : vector<8x8xf32>, vector<8x16xf32>, vector<8x16xf32> -> vector<8x16xf32>
    %166 = arith.addf %164, %165 : vector<8x16xf32>
    %c1_131 = arith.constant 1 : index
    %c0_132 = arith.constant 0 : index
    %c0_133 = arith.constant 0 : index
    %c0_134 = arith.constant 0 : index
    %167 = vector.load %arg11[%c1_131, %c0_132, %c0_133, %c0_134] : memref<3x2x16x32xf32, #tpu.memory_space<vmem>>, vector<1x1x16x32xf32>
    %168 = vector.shape_cast %167 : vector<1x1x16x32xf32> to vector<16x32xf32>
    %cst_135 = arith.constant dense<0.000000e+00> : vector<8x32xf32>
    %169 = tpu.matmul %166, %168, %cst_135 {dimension_numbers = #tpu.dot_dimension_numbers<[1], [0], [0], [1], [0, 0, 1, 1], [], []>} : vector<8x16xf32>, vector<16x32xf32>, vector<8x32xf32> -> vector<8x32xf32>
    %c1_136 = arith.constant 1 : index
    %c0_137 = arith.constant 0 : index
    %c0_138 = arith.constant 0 : index
    %c0_139 = arith.constant 0 : index
    %170 = vector.load %arg12[%c1_136, %c0_137, %c0_138, %c0_139] : memref<3x2x1x32xf32, #tpu.memory_space<vmem>>, vector<1x1x1x32xf32>
    %171 = vector.shape_cast %170 : vector<1x1x1x32xf32> to vector<1x32xf32>
    %172 = vector.broadcast %171 : vector<1x32xf32> to vector<8x32xf32>
    %173 = arith.addf %169, %172 : vector<8x32xf32>
    %174 = vector.extract_strided_slice %173 {offsets = [0, 0], sizes = [8, 16], strides = [1, 1]} : vector<8x32xf32> to vector<8x16xf32>
    %175 = vector.extract_strided_slice %173 {offsets = [0, 16], sizes = [8, 16], strides = [1, 1]} : vector<8x32xf32> to vector<8x16xf32>
    %176 = arith.negf %175 : vector<8x16xf32>
    %177 = math.exp %176 : vector<8x16xf32>
    %cst_140 = arith.constant 1.000000e+00 : f32
    %178 = vector.broadcast %cst_140 : f32 to vector<8x16xf32>
    %179 = arith.addf %178, %177 : vector<8x16xf32>
    %180 = arith.divf %178, %179 : vector<8x16xf32>
    %181 = arith.mulf %174, %180 : vector<8x16xf32>
    %cst_141 = arith.constant dense<0.000000e+00> : vector<8x16xf32>
    %182 = tpu.matmul %110, %181, %cst_141 {dimension_numbers = #tpu.dot_dimension_numbers<[1], [0], [0], [1], [0, 0, 1, 1], [], []>} : vector<8x8xf32>, vector<8x16xf32>, vector<8x16xf32> -> vector<8x16xf32>
    %183 = arith.addf %164, %182 : vector<8x16xf32>
    %c1_142 = arith.constant 1 : index
    %c1_143 = arith.constant 1 : index
    %c0_144 = arith.constant 0 : index
    %c0_145 = arith.constant 0 : index
    %184 = vector.load %arg11[%c1_142, %c1_143, %c0_144, %c0_145] : memref<3x2x16x32xf32, #tpu.memory_space<vmem>>, vector<1x1x16x32xf32>
    %185 = vector.shape_cast %184 : vector<1x1x16x32xf32> to vector<16x32xf32>
    %cst_146 = arith.constant dense<0.000000e+00> : vector<8x32xf32>
    %186 = tpu.matmul %183, %185, %cst_146 {dimension_numbers = #tpu.dot_dimension_numbers<[1], [0], [0], [1], [0, 0, 1, 1], [], []>} : vector<8x16xf32>, vector<16x32xf32>, vector<8x32xf32> -> vector<8x32xf32>
    %c1_147 = arith.constant 1 : index
    %c1_148 = arith.constant 1 : index
    %c0_149 = arith.constant 0 : index
    %c0_150 = arith.constant 0 : index
    %187 = vector.load %arg12[%c1_147, %c1_148, %c0_149, %c0_150] : memref<3x2x1x32xf32, #tpu.memory_space<vmem>>, vector<1x1x1x32xf32>
    %188 = vector.shape_cast %187 : vector<1x1x1x32xf32> to vector<1x32xf32>
    %189 = vector.broadcast %188 : vector<1x32xf32> to vector<8x32xf32>
    %190 = arith.addf %186, %189 : vector<8x32xf32>
    %191 = vector.extract_strided_slice %190 {offsets = [0, 0], sizes = [8, 16], strides = [1, 1]} : vector<8x32xf32> to vector<8x16xf32>
    %192 = vector.extract_strided_slice %190 {offsets = [0, 16], sizes = [8, 16], strides = [1, 1]} : vector<8x32xf32> to vector<8x16xf32>
    %193 = arith.negf %192 : vector<8x16xf32>
    %194 = math.exp %193 : vector<8x16xf32>
    %cst_151 = arith.constant 1.000000e+00 : f32
    %195 = vector.broadcast %cst_151 : f32 to vector<8x16xf32>
    %196 = arith.addf %195, %194 : vector<8x16xf32>
    %197 = arith.divf %195, %196 : vector<8x16xf32>
    %198 = arith.mulf %191, %197 : vector<8x16xf32>
    %199 = arith.maximumf %181, %198 : vector<8x16xf32>
    %200 = arith.addf %199, %163 : vector<8x16xf32>
    %201 = vector.extract_strided_slice %98 {offsets = [1, 0, 0], sizes = [1, 8, 16], strides = [1, 1, 1]} : vector<3x8x16xf32> to vector<1x8x16xf32>
    %202 = vector.shape_cast %201 : vector<1x8x16xf32> to vector<8x16xf32>
    %203 = arith.addf %200, %202 : vector<8x16xf32>
    %c0_152 = arith.constant 0 : index
    %c1_153 = arith.constant 1 : index
    %c0_154 = arith.constant 0 : index
    %c0_155 = arith.constant 0 : index
    %204 = vector.load %arg13[%c0_152, %c1_153, %c0_154, %c0_155] : memref<1x3x8x16xf32, #tpu.memory_space<vmem>>, vector<1x1x8x16xf32>
    %205 = vector.shape_cast %204 : vector<1x1x8x16xf32> to vector<8x16xf32>
    %206 = vector.shape_cast %203 : vector<8x16xf32> to vector<1x1x8x16xf32>
    tpu.vector_store %arg13[%c0_152, %c1_153, %c0_154, %c0_155], %206 {strides = array<i32>} : memref<1x3x8x16xf32, #tpu.memory_space<vmem>>, vector<1x1x8x16xf32>,
    %207 = vector.extract_strided_slice %108 {offsets = [2, 0, 0], sizes = [4, 8, 16], strides = [1, 1, 1]} : vector<6x8x16xf32> to vector<4x8x16xf32>
    %208 = vector.extract_strided_slice %207 {offsets = [0, 0, 0], sizes = [3, 8, 16], strides = [1, 1, 1]} : vector<4x8x16xf32> to vector<3x8x16xf32>
    %209 = vector.shape_cast %208 : vector<3x8x16xf32> to vector<24x16xf32>
    %210 = vector.extract_strided_slice %207 {offsets = [3, 0, 0], sizes = [1, 8, 16], strides = [1, 1, 1]} : vector<4x8x16xf32> to vector<1x8x16xf32>
    %211 = vector.shape_cast %210 : vector<1x8x16xf32> to vector<8x16xf32>
    %cst_156 = arith.constant dense<0.000000e+00> : vector<8x16xf32>
    %212 = tpu.matmul %109, %209, %cst_156 {dimension_numbers = #tpu.dot_dimension_numbers<[1], [0], [0], [1], [0, 0, 1, 1], [], []>} : vector<8x24xf32>, vector<24x16xf32>, vector<8x16xf32> -> vector<8x16xf32>
    %cst_157 = arith.constant dense<0.000000e+00> : vector<8x16xf32>
    %213 = tpu.matmul %110, %211, %cst_157 {dimension_numbers = #tpu.dot_dimension_numbers<[1], [0], [0], [1], [0, 0, 1, 1], [], []>} : vector<8x8xf32>, vector<8x16xf32>, vector<8x16xf32> -> vector<8x16xf32>
    %214 = arith.addf %212, %213 : vector<8x16xf32>
    %c2_158 = arith.constant 2 : index
    %c0_159 = arith.constant 0 : index
    %c0_160 = arith.constant 0 : index
    %c0_161 = arith.constant 0 : index
    %215 = vector.load %arg11[%c2_158, %c0_159, %c0_160, %c0_161] : memref<3x2x16x32xf32, #tpu.memory_space<vmem>>, vector<1x1x16x32xf32>
    %216 = vector.shape_cast %215 : vector<1x1x16x32xf32> to vector<16x32xf32>
    %cst_162 = arith.constant dense<0.000000e+00> : vector<8x32xf32>
    %217 = tpu.matmul %214, %216, %cst_162 {dimension_numbers = #tpu.dot_dimension_numbers<[1], [0], [0], [1], [0, 0, 1, 1], [], []>} : vector<8x16xf32>, vector<16x32xf32>, vector<8x32xf32> -> vector<8x32xf32>
    %c2_163 = arith.constant 2 : index
    %c0_164 = arith.constant 0 : index
    %c0_165 = arith.constant 0 : index
    %c0_166 = arith.constant 0 : index
    %218 = vector.load %arg12[%c2_163, %c0_164, %c0_165, %c0_166] : memref<3x2x1x32xf32, #tpu.memory_space<vmem>>, vector<1x1x1x32xf32>
    %219 = vector.shape_cast %218 : vector<1x1x1x32xf32> to vector<1x32xf32>
    %220 = vector.broadcast %219 : vector<1x32xf32> to vector<8x32xf32>
    %221 = arith.addf %217, %220 : vector<8x32xf32>
    %222 = vector.extract_strided_slice %221 {offsets = [0, 0], sizes = [8, 16], strides = [1, 1]} : vector<8x32xf32> to vector<8x16xf32>
    %223 = vector.extract_strided_slice %221 {offsets = [0, 16], sizes = [8, 16], strides = [1, 1]} : vector<8x32xf32> to vector<8x16xf32>
    %224 = arith.negf %223 : vector<8x16xf32>
    %225 = math.exp %224 : vector<8x16xf32>
    %cst_167 = arith.constant 1.000000e+00 : f32
    %226 = vector.broadcast %cst_167 : f32 to vector<8x16xf32>
    %227 = arith.addf %226, %225 : vector<8x16xf32>
    %228 = arith.divf %226, %227 : vector<8x16xf32>
    %229 = arith.mulf %222, %228 : vector<8x16xf32>
    %cst_168 = arith.constant dense<0.000000e+00> : vector<8x16xf32>
    %230 = tpu.matmul %110, %229, %cst_168 {dimension_numbers = #tpu.dot_dimension_numbers<[1], [0], [0], [1], [0, 0, 1, 1], [], []>} : vector<8x8xf32>, vector<8x16xf32>, vector<8x16xf32> -> vector<8x16xf32>
    %231 = arith.addf %212, %230 : vector<8x16xf32>
    %c2_169 = arith.constant 2 : index
    %c1_170 = arith.constant 1 : index
    %c0_171 = arith.constant 0 : index
    %c0_172 = arith.constant 0 : index
    %232 = vector.load %arg11[%c2_169, %c1_170, %c0_171, %c0_172] : memref<3x2x16x32xf32, #tpu.memory_space<vmem>>, vector<1x1x16x32xf32>
    %233 = vector.shape_cast %232 : vector<1x1x16x32xf32> to vector<16x32xf32>
    %cst_173 = arith.constant dense<0.000000e+00> : vector<8x32xf32>
    %234 = tpu.matmul %231, %233, %cst_173 {dimension_numbers = #tpu.dot_dimension_numbers<[1], [0], [0], [1], [0, 0, 1, 1], [], []>} : vector<8x16xf32>, vector<16x32xf32>, vector<8x32xf32> -> vector<8x32xf32>
    %c2_174 = arith.constant 2 : index
    %c1_175 = arith.constant 1 : index
    %c0_176 = arith.constant 0 : index
    %c0_177 = arith.constant 0 : index
    %235 = vector.load %arg12[%c2_174, %c1_175, %c0_176, %c0_177] : memref<3x2x1x32xf32, #tpu.memory_space<vmem>>, vector<1x1x1x32xf32>
    %236 = vector.shape_cast %235 : vector<1x1x1x32xf32> to vector<1x32xf32>
    %237 = vector.broadcast %236 : vector<1x32xf32> to vector<8x32xf32>
    %238 = arith.addf %234, %237 : vector<8x32xf32>
    %239 = vector.extract_strided_slice %238 {offsets = [0, 0], sizes = [8, 16], strides = [1, 1]} : vector<8x32xf32> to vector<8x16xf32>
    %240 = vector.extract_strided_slice %238 {offsets = [0, 16], sizes = [8, 16], strides = [1, 1]} : vector<8x32xf32> to vector<8x16xf32>
    %241 = arith.negf %240 : vector<8x16xf32>
    %242 = math.exp %241 : vector<8x16xf32>
    %cst_178 = arith.constant 1.000000e+00 : f32
    %243 = vector.broadcast %cst_178 : f32 to vector<8x16xf32>
    %244 = arith.addf %243, %242 : vector<8x16xf32>
    %245 = arith.divf %243, %244 : vector<8x16xf32>
    %246 = arith.mulf %239, %245 : vector<8x16xf32>
    %247 = arith.maximumf %229, %246 : vector<8x16xf32>
    %248 = arith.addf %247, %211 : vector<8x16xf32>
    %249 = vector.extract_strided_slice %98 {offsets = [2, 0, 0], sizes = [1, 8, 16], strides = [1, 1, 1]} : vector<3x8x16xf32> to vector<1x8x16xf32>
    %250 = vector.shape_cast %249 : vector<1x8x16xf32> to vector<8x16xf32>
    %251 = arith.addf %248, %250 : vector<8x16xf32>
    %c0_179 = arith.constant 0 : index
    %c2_180 = arith.constant 2 : index
    %c0_181 = arith.constant 0 : index
    %c0_182 = arith.constant 0 : index
    %252 = vector.load %arg13[%c0_179, %c2_180, %c0_181, %c0_182] : memref<1x3x8x16xf32, #tpu.memory_space<vmem>>, vector<1x1x8x16xf32>
    %253 = vector.shape_cast %252 : vector<1x1x8x16xf32> to vector<8x16xf32>
    %254 = vector.shape_cast %251 : vector<8x16xf32> to vector<1x1x8x16xf32>
    tpu.vector_store %arg13[%c0_179, %c2_180, %c0_181, %c0_182], %254 {strides = array<i32>} : memref<1x3x8x16xf32, #tpu.memory_space<vmem>>, vector<1x1x8x16xf32>,
    return
  }
  func.func @transform_0(%arg0: i32) -> (i32, i32, i32, i32) {
    %c0_i32 = arith.constant 0 : i32
    %c0_i32_0 = arith.constant 0 : i32
    %c0_i32_1 = arith.constant 0 : i32
    %c0_i32_2 = arith.constant 0 : i32
    return %arg0, %c0_i32, %c0_i32_0, %c0_i32_1 : i32, i32, i32, i32
  }
  func.func @transform_1(%arg0: i32) -> (i32, i32, i32, i32) {
    %c0_i32 = arith.constant 0 : i32
    %c0_i32_0 = arith.constant 0 : i32
    %c0_i32_1 = arith.constant 0 : i32
    %c0_i32_2 = arith.constant 0 : i32
    return %arg0, %c0_i32, %c0_i32_0, %c0_i32_1 : i32, i32, i32, i32
  }
  func.func @transform_2(%arg0: i32) -> (i32, i32, i32) {
    %c0_i32 = arith.constant 0 : i32
    %c0_i32_0 = arith.constant 0 : i32
    %c0_i32_1 = arith.constant 0 : i32
    %c0_i32_2 = arith.constant 0 : i32
    return %c0_i32, %c0_i32_0, %c0_i32_1 : i32, i32, i32
  }
  func.func @transform_3(%arg0: i32) -> (i32, i32) {
    %c0_i32 = arith.constant 0 : i32
    %c0_i32_0 = arith.constant 0 : i32
    %c0_i32_1 = arith.constant 0 : i32
    return %c0_i32, %c0_i32_0 : i32, i32
  }
  func.func @transform_4(%arg0: i32) -> (i32, i32, i32) {
    %c0_i32 = arith.constant 0 : i32
    %c0_i32_0 = arith.constant 0 : i32
    %c0_i32_1 = arith.constant 0 : i32
    %c0_i32_2 = arith.constant 0 : i32
    return %c0_i32, %c0_i32_0, %c0_i32_1 : i32, i32, i32
  }
  func.func @transform_5(%arg0: i32) -> (i32, i32) {
    %c0_i32 = arith.constant 0 : i32
    %c0_i32_0 = arith.constant 0 : i32
    %c0_i32_1 = arith.constant 0 : i32
    return %c0_i32, %c0_i32_0 : i32, i32
  }
  func.func @transform_6(%arg0: i32) -> (i32, i32, i32, i32) {
    %c0_i32 = arith.constant 0 : i32
    %c0_i32_0 = arith.constant 0 : i32
    %c0_i32_1 = arith.constant 0 : i32
    %c0_i32_2 = arith.constant 0 : i32
    %c0_i32_3 = arith.constant 0 : i32
    return %c0_i32, %c0_i32_0, %c0_i32_1, %c0_i32_2 : i32, i32, i32, i32
  }
  func.func @transform_7(%arg0: i32) -> (i32, i32, i32, i32) {
    %c0_i32 = arith.constant 0 : i32
    %c0_i32_0 = arith.constant 0 : i32
    %c0_i32_1 = arith.constant 0 : i32
    %c0_i32_2 = arith.constant 0 : i32
    %c0_i32_3 = arith.constant 0 : i32
    return %c0_i32, %c0_i32_0, %c0_i32_1, %c0_i32_2 : i32, i32, i32, i32
  }
  func.func @transform_8(%arg0: i32) -> (i32, i32) {
    %c0_i32 = arith.constant 0 : i32
    %c0_i32_0 = arith.constant 0 : i32
    %c0_i32_1 = arith.constant 0 : i32
    return %c0_i32, %c0_i32_0 : i32, i32
  }
  func.func @transform_9(%arg0: i32) -> (i32, i32) {
    %c0_i32 = arith.constant 0 : i32
    %c0_i32_0 = arith.constant 0 : i32
    %c0_i32_1 = arith.constant 0 : i32
    return %c0_i32, %c0_i32_0 : i32, i32
  }
  func.func @transform_10(%arg0: i32) -> (i32, i32, i32, i32) {
    %c0_i32 = arith.constant 0 : i32
    %c0_i32_0 = arith.constant 0 : i32
    %c0_i32_1 = arith.constant 0 : i32
    %c0_i32_2 = arith.constant 0 : i32
    %c0_i32_3 = arith.constant 0 : i32
    return %c0_i32, %c0_i32_0, %c0_i32_1, %c0_i32_2 : i32, i32, i32, i32
  }
  func.func @transform_11(%arg0: i32) -> (i32, i32, i32, i32) {
    %c0_i32 = arith.constant 0 : i32
    %c0_i32_0 = arith.constant 0 : i32
    %c0_i32_1 = arith.constant 0 : i32
    %c0_i32_2 = arith.constant 0 : i32
    %c0_i32_3 = arith.constant 0 : i32
    return %c0_i32, %c0_i32_0, %c0_i32_1, %c0_i32_2 : i32, i32, i32, i32
  }
  func.func @transform_12(%arg0: i32) -> (i32, i32, i32, i32) {
    %c0_i32 = arith.constant 0 : i32
    %c0_i32_0 = arith.constant 0 : i32
    %c0_i32_1 = arith.constant 0 : i32
    %c0_i32_2 = arith.constant 0 : i32
    return %arg0, %c0_i32, %c0_i32_0, %c0_i32_1 : i32, i32, i32, i32
  }
}

module attributes {stable_mosaic.version = 11 : i64} {
  func.func @_fstgcn_kernel(%arg0: i32, %arg1: memref<1x9x8x16xf32, #tpu.memory_space<vmem>>, %arg2: memref<1x9x8x16xf32, #tpu.memory_space<vmem>>, %arg3: memref<4x16x32xf32, #tpu.memory_space<vmem>>, %arg4: memref<1x32xf32, #tpu.memory_space<vmem>>, %arg5: memref<4x16x32xf32, #tpu.memory_space<vmem>>, %arg6: memref<1x32xf32, #tpu.memory_space<vmem>>, %arg7: memref<1x9x1x16xf32, #tpu.memory_space<vmem>>, %arg8: memref<1x1x8x16xf32, #tpu.memory_space<vmem>>, %arg9: memref<8x24xf32, #tpu.memory_space<vmem>>, %arg10: memref<8x8xf32, #tpu.memory_space<vmem>>, %arg11: memref<6x2x16x32xf32, #tpu.memory_space<vmem>>, %arg12: memref<6x2x1x32xf32, #tpu.memory_space<vmem>>, %arg13: memref<1x6x8x16xf32, #tpu.memory_space<vmem>>) attributes {dimension_semantics = [#tpu.dimension_semantics<parallel>], iteration_bounds = array<i64: 2>, scalar_prefetch = 0 : i64, scratch_operands = 0 : i64, tpu.core_type = #tpu.core_type<tc>, window_params = [{transform_indices = @transform_0, window_bounds = array<i64: 1, 9, 8, 16>}, {transform_indices = @transform_1, window_bounds = array<i64: 1, 9, 8, 16>}, {pipeline_mode = #tpu.pipeline_mode<synchronous>, transform_indices = @transform_2, window_bounds = array<i64: 4, 16, 32>}, {pipeline_mode = #tpu.pipeline_mode<synchronous>, transform_indices = @transform_3, window_bounds = array<i64: 1, 32>}, {pipeline_mode = #tpu.pipeline_mode<synchronous>, transform_indices = @transform_4, window_bounds = array<i64: 4, 16, 32>}, {pipeline_mode = #tpu.pipeline_mode<synchronous>, transform_indices = @transform_5, window_bounds = array<i64: 1, 32>}, {pipeline_mode = #tpu.pipeline_mode<synchronous>, transform_indices = @transform_6, window_bounds = array<i64: 1, 9, 1, 16>}, {pipeline_mode = #tpu.pipeline_mode<synchronous>, transform_indices = @transform_7, window_bounds = array<i64: 1, 1, 8, 16>}, {pipeline_mode = #tpu.pipeline_mode<synchronous>, transform_indices = @transform_8, window_bounds = array<i64: 8, 24>}, {pipeline_mode = #tpu.pipeline_mode<synchronous>, transform_indices = @transform_9, window_bounds = array<i64: 8, 8>}, {pipeline_mode = #tpu.pipeline_mode<synchronous>, transform_indices = @transform_10, window_bounds = array<i64: 6, 2, 16, 32>}, {pipeline_mode = #tpu.pipeline_mode<synchronous>, transform_indices = @transform_11, window_bounds = array<i64: 6, 2, 1, 32>}, {transform_indices = @transform_12, window_bounds = array<i64: 1, 6, 8, 16>}]} {
    %c0 = arith.constant 0 : index
    %c0_0 = arith.constant 0 : index
    %c0_1 = arith.constant 0 : index
    %c0_2 = arith.constant 0 : index
    %0 = vector.load %arg1[%c0, %c0_0, %c0_1, %c0_2] : memref<1x9x8x16xf32, #tpu.memory_space<vmem>>, vector<1x6x8x16xf32>
    %1 = vector.shape_cast %0 : vector<1x6x8x16xf32> to vector<6x8x16xf32>
    %2 = vector.shape_cast %1 : vector<6x8x16xf32> to vector<48x16xf32>
    %c0_3 = arith.constant 0 : index
    %c0_4 = arith.constant 0 : index
    %c0_5 = arith.constant 0 : index
    %3 = vector.load %arg3[%c0_3, %c0_4, %c0_5] : memref<4x16x32xf32, #tpu.memory_space<vmem>>, vector<1x16x32xf32>
    %4 = vector.shape_cast %3 : vector<1x16x32xf32> to vector<16x32xf32>
    %cst = arith.constant dense<0.000000e+00> : vector<48x32xf32>
    %5 = tpu.matmul %2, %4, %cst {dimension_numbers = #tpu.dot_dimension_numbers<[1], [0], [0], [1], [0, 0, 1, 1], [], []>} : vector<48x16xf32>, vector<16x32xf32>, vector<48x32xf32> -> vector<48x32xf32>
    %c0_6 = arith.constant 0 : index
    %c1 = arith.constant 1 : index
    %c0_7 = arith.constant 0 : index
    %c0_8 = arith.constant 0 : index
    %6 = vector.load %arg1[%c0_6, %c1, %c0_7, %c0_8] : memref<1x9x8x16xf32, #tpu.memory_space<vmem>>, vector<1x6x8x16xf32>
    %7 = vector.shape_cast %6 : vector<1x6x8x16xf32> to vector<6x8x16xf32>
    %8 = vector.shape_cast %7 : vector<6x8x16xf32> to vector<48x16xf32>
    %c1_9 = arith.constant 1 : index
    %c0_10 = arith.constant 0 : index
    %c0_11 = arith.constant 0 : index
    %9 = vector.load %arg3[%c1_9, %c0_10, %c0_11] : memref<4x16x32xf32, #tpu.memory_space<vmem>>, vector<1x16x32xf32>
    %10 = vector.shape_cast %9 : vector<1x16x32xf32> to vector<16x32xf32>
    %cst_12 = arith.constant dense<0.000000e+00> : vector<48x32xf32>
    %11 = tpu.matmul %8, %10, %cst_12 {dimension_numbers = #tpu.dot_dimension_numbers<[1], [0], [0], [1], [0, 0, 1, 1], [], []>} : vector<48x16xf32>, vector<16x32xf32>, vector<48x32xf32> -> vector<48x32xf32>
    %12 = arith.addf %5, %11 : vector<48x32xf32>
    %c0_13 = arith.constant 0 : index
    %c2 = arith.constant 2 : index
    %c0_14 = arith.constant 0 : index
    %c0_15 = arith.constant 0 : index
    %13 = vector.load %arg1[%c0_13, %c2, %c0_14, %c0_15] : memref<1x9x8x16xf32, #tpu.memory_space<vmem>>, vector<1x6x8x16xf32>
    %14 = vector.shape_cast %13 : vector<1x6x8x16xf32> to vector<6x8x16xf32>
    %15 = vector.shape_cast %14 : vector<6x8x16xf32> to vector<48x16xf32>
    %c2_16 = arith.constant 2 : index
    %c0_17 = arith.constant 0 : index
    %c0_18 = arith.constant 0 : index
    %16 = vector.load %arg3[%c2_16, %c0_17, %c0_18] : memref<4x16x32xf32, #tpu.memory_space<vmem>>, vector<1x16x32xf32>
    %17 = vector.shape_cast %16 : vector<1x16x32xf32> to vector<16x32xf32>
    %cst_19 = arith.constant dense<0.000000e+00> : vector<48x32xf32>
    %18 = tpu.matmul %15, %17, %cst_19 {dimension_numbers = #tpu.dot_dimension_numbers<[1], [0], [0], [1], [0, 0, 1, 1], [], []>} : vector<48x16xf32>, vector<16x32xf32>, vector<48x32xf32> -> vector<48x32xf32>
    %19 = arith.addf %12, %18 : vector<48x32xf32>
    %c0_20 = arith.constant 0 : index
    %c3 = arith.constant 3 : index
    %c0_21 = arith.constant 0 : index
    %c0_22 = arith.constant 0 : index
    %20 = vector.load %arg1[%c0_20, %c3, %c0_21, %c0_22] : memref<1x9x8x16xf32, #tpu.memory_space<vmem>>, vector<1x6x8x16xf32>
    %21 = vector.shape_cast %20 : vector<1x6x8x16xf32> to vector<6x8x16xf32>
    %22 = vector.shape_cast %21 : vector<6x8x16xf32> to vector<48x16xf32>
    %c3_23 = arith.constant 3 : index
    %c0_24 = arith.constant 0 : index
    %c0_25 = arith.constant 0 : index
    %23 = vector.load %arg3[%c3_23, %c0_24, %c0_25] : memref<4x16x32xf32, #tpu.memory_space<vmem>>, vector<1x16x32xf32>
    %24 = vector.shape_cast %23 : vector<1x16x32xf32> to vector<16x32xf32>
    %cst_26 = arith.constant dense<0.000000e+00> : vector<48x32xf32>
    %25 = tpu.matmul %22, %24, %cst_26 {dimension_numbers = #tpu.dot_dimension_numbers<[1], [0], [0], [1], [0, 0, 1, 1], [], []>} : vector<48x16xf32>, vector<16x32xf32>, vector<48x32xf32> -> vector<48x32xf32>
    %26 = arith.addf %19, %25 : vector<48x32xf32>
    %c0_27 = arith.constant 0 : index
    %c0_28 = arith.constant 0 : index
    %27 = vector.load %arg4[%c0_27, %c0_28] : memref<1x32xf32, #tpu.memory_space<vmem>>, vector<1x32xf32>
    %28 = vector.broadcast %27 : vector<1x32xf32> to vector<48x32xf32>
    %29 = arith.addf %26, %28 : vector<48x32xf32>
    %30 = vector.extract_strided_slice %29 {offsets = [0, 0], sizes = [48, 16], strides = [1, 1]} : vector<48x32xf32> to vector<48x16xf32>
    %31 = arith.negf %30 : vector<48x16xf32>
    %32 = math.exp %31 : vector<48x16xf32>
    %cst_29 = arith.constant 1.000000e+00 : f32
    %33 = vector.broadcast %cst_29 : f32 to vector<48x16xf32>
    %34 = arith.addf %33, %32 : vector<48x16xf32>
    %35 = arith.divf %33, %34 : vector<48x16xf32>
    %36 = vector.extract_strided_slice %29 {offsets = [0, 16], sizes = [48, 16], strides = [1, 1]} : vector<48x32xf32> to vector<48x16xf32>
    %37 = arith.mulf %35, %36 : vector<48x16xf32>
    %c0_30 = arith.constant 0 : index
    %c0_31 = arith.constant 0 : index
    %c0_32 = arith.constant 0 : index
    %c0_33 = arith.constant 0 : index
    %38 = vector.load %arg2[%c0_30, %c0_31, %c0_32, %c0_33] : memref<1x9x8x16xf32, #tpu.memory_space<vmem>>, vector<1x6x8x16xf32>
    %39 = vector.shape_cast %38 : vector<1x6x8x16xf32> to vector<6x8x16xf32>
    %40 = vector.shape_cast %39 : vector<6x8x16xf32> to vector<48x16xf32>
    %c0_34 = arith.constant 0 : index
    %c0_35 = arith.constant 0 : index
    %c0_36 = arith.constant 0 : index
    %41 = vector.load %arg5[%c0_34, %c0_35, %c0_36] : memref<4x16x32xf32, #tpu.memory_space<vmem>>, vector<1x16x32xf32>
    %42 = vector.shape_cast %41 : vector<1x16x32xf32> to vector<16x32xf32>
    %cst_37 = arith.constant dense<0.000000e+00> : vector<48x32xf32>
    %43 = tpu.matmul %40, %42, %cst_37 {dimension_numbers = #tpu.dot_dimension_numbers<[1], [0], [0], [1], [0, 0, 1, 1], [], []>} : vector<48x16xf32>, vector<16x32xf32>, vector<48x32xf32> -> vector<48x32xf32>
    %c0_38 = arith.constant 0 : index
    %c1_39 = arith.constant 1 : index
    %c0_40 = arith.constant 0 : index
    %c0_41 = arith.constant 0 : index
    %44 = vector.load %arg2[%c0_38, %c1_39, %c0_40, %c0_41] : memref<1x9x8x16xf32, #tpu.memory_space<vmem>>, vector<1x6x8x16xf32>
    %45 = vector.shape_cast %44 : vector<1x6x8x16xf32> to vector<6x8x16xf32>
    %46 = vector.shape_cast %45 : vector<6x8x16xf32> to vector<48x16xf32>
    %c1_42 = arith.constant 1 : index
    %c0_43 = arith.constant 0 : index
    %c0_44 = arith.constant 0 : index
    %47 = vector.load %arg5[%c1_42, %c0_43, %c0_44] : memref<4x16x32xf32, #tpu.memory_space<vmem>>, vector<1x16x32xf32>
    %48 = vector.shape_cast %47 : vector<1x16x32xf32> to vector<16x32xf32>
    %cst_45 = arith.constant dense<0.000000e+00> : vector<48x32xf32>
    %49 = tpu.matmul %46, %48, %cst_45 {dimension_numbers = #tpu.dot_dimension_numbers<[1], [0], [0], [1], [0, 0, 1, 1], [], []>} : vector<48x16xf32>, vector<16x32xf32>, vector<48x32xf32> -> vector<48x32xf32>
    %50 = arith.addf %43, %49 : vector<48x32xf32>
    %c0_46 = arith.constant 0 : index
    %c2_47 = arith.constant 2 : index
    %c0_48 = arith.constant 0 : index
    %c0_49 = arith.constant 0 : index
    %51 = vector.load %arg2[%c0_46, %c2_47, %c0_48, %c0_49] : memref<1x9x8x16xf32, #tpu.memory_space<vmem>>, vector<1x6x8x16xf32>
    %52 = vector.shape_cast %51 : vector<1x6x8x16xf32> to vector<6x8x16xf32>
    %53 = vector.shape_cast %52 : vector<6x8x16xf32> to vector<48x16xf32>
    %c2_50 = arith.constant 2 : index
    %c0_51 = arith.constant 0 : index
    %c0_52 = arith.constant 0 : index
    %54 = vector.load %arg5[%c2_50, %c0_51, %c0_52] : memref<4x16x32xf32, #tpu.memory_space<vmem>>, vector<1x16x32xf32>
    %55 = vector.shape_cast %54 : vector<1x16x32xf32> to vector<16x32xf32>
    %cst_53 = arith.constant dense<0.000000e+00> : vector<48x32xf32>
    %56 = tpu.matmul %53, %55, %cst_53 {dimension_numbers = #tpu.dot_dimension_numbers<[1], [0], [0], [1], [0, 0, 1, 1], [], []>} : vector<48x16xf32>, vector<16x32xf32>, vector<48x32xf32> -> vector<48x32xf32>
    %57 = arith.addf %50, %56 : vector<48x32xf32>
    %c0_54 = arith.constant 0 : index
    %c3_55 = arith.constant 3 : index
    %c0_56 = arith.constant 0 : index
    %c0_57 = arith.constant 0 : index
    %58 = vector.load %arg2[%c0_54, %c3_55, %c0_56, %c0_57] : memref<1x9x8x16xf32, #tpu.memory_space<vmem>>, vector<1x6x8x16xf32>
    %59 = vector.shape_cast %58 : vector<1x6x8x16xf32> to vector<6x8x16xf32>
    %60 = vector.shape_cast %59 : vector<6x8x16xf32> to vector<48x16xf32>
    %c3_58 = arith.constant 3 : index
    %c0_59 = arith.constant 0 : index
    %c0_60 = arith.constant 0 : index
    %61 = vector.load %arg5[%c3_58, %c0_59, %c0_60] : memref<4x16x32xf32, #tpu.memory_space<vmem>>, vector<1x16x32xf32>
    %62 = vector.shape_cast %61 : vector<1x16x32xf32> to vector<16x32xf32>
    %cst_61 = arith.constant dense<0.000000e+00> : vector<48x32xf32>
    %63 = tpu.matmul %60, %62, %cst_61 {dimension_numbers = #tpu.dot_dimension_numbers<[1], [0], [0], [1], [0, 0, 1, 1], [], []>} : vector<48x16xf32>, vector<16x32xf32>, vector<48x32xf32> -> vector<48x32xf32>
    %64 = arith.addf %57, %63 : vector<48x32xf32>
    %c0_62 = arith.constant 0 : index
    %c0_63 = arith.constant 0 : index
    %65 = vector.load %arg6[%c0_62, %c0_63] : memref<1x32xf32, #tpu.memory_space<vmem>>, vector<1x32xf32>
    %66 = vector.broadcast %65 : vector<1x32xf32> to vector<48x32xf32>
    %67 = arith.addf %64, %66 : vector<48x32xf32>
    %68 = vector.extract_strided_slice %67 {offsets = [0, 0], sizes = [48, 16], strides = [1, 1]} : vector<48x32xf32> to vector<48x16xf32>
    %69 = arith.negf %68 : vector<48x16xf32>
    %70 = math.exp %69 : vector<48x16xf32>
    %cst_64 = arith.constant 1.000000e+00 : f32
    %71 = vector.broadcast %cst_64 : f32 to vector<48x16xf32>
    %72 = arith.addf %71, %70 : vector<48x16xf32>
    %73 = arith.divf %71, %72 : vector<48x16xf32>
    %74 = vector.extract_strided_slice %67 {offsets = [0, 16], sizes = [48, 16], strides = [1, 1]} : vector<48x32xf32> to vector<48x16xf32>
    %75 = arith.mulf %73, %74 : vector<48x16xf32>
    %76 = arith.addf %37, %75 : vector<48x16xf32>
    %77 = vector.shape_cast %76 : vector<48x16xf32> to vector<6x8x16xf32>
    %c0_65 = arith.constant 0 : index
    %c0_66 = arith.constant 0 : index
    %c0_67 = arith.constant 0 : index
    %c0_68 = arith.constant 0 : index
    %78 = vector.load %arg1[%c0_65, %c0_66, %c0_67, %c0_68] : memref<1x9x8x16xf32, #tpu.memory_space<vmem>>, vector<1x9x8x16xf32>
    %79 = vector.shape_cast %78 : vector<1x9x8x16xf32> to vector<9x8x16xf32>
    %c0_69 = arith.constant 0 : index
    %c0_70 = arith.constant 0 : index
    %c0_71 = arith.constant 0 : index
    %c0_72 = arith.constant 0 : index
    %80 = vector.load %arg7[%c0_69, %c0_70, %c0_71, %c0_72] : memref<1x9x1x16xf32, #tpu.memory_space<vmem>>, vector<1x9x1x16xf32>
    %81 = vector.shape_cast %80 : vector<1x9x1x16xf32> to vector<9x1x16xf32>
    %82 = vector.broadcast %81 : vector<9x1x16xf32> to vector<9x8x16xf32>
    %83 = arith.addf %79, %82 : vector<9x8x16xf32>
    %c0_73 = arith.constant 0 : index
    %c0_74 = arith.constant 0 : index
    %c0_75 = arith.constant 0 : index
    %c0_76 = arith.constant 0 : index
    %84 = vector.load %arg8[%c0_73, %c0_74, %c0_75, %c0_76] : memref<1x1x8x16xf32, #tpu.memory_space<vmem>>, vector<1x1x8x16xf32>
    %85 = vector.shape_cast %84 : vector<1x1x8x16xf32> to vector<1x8x16xf32>
    %86 = vector.broadcast %85 : vector<1x8x16xf32> to vector<9x8x16xf32>
    %87 = arith.addf %83, %86 : vector<9x8x16xf32>
    %c0_77 = arith.constant 0 : index
    %c0_78 = arith.constant 0 : index
    %88 = vector.load %arg9[%c0_77, %c0_78] : memref<8x24xf32, #tpu.memory_space<vmem>>, vector<8x24xf32>
    %c0_79 = arith.constant 0 : index
    %c0_80 = arith.constant 0 : index
    %89 = vector.load %arg10[%c0_79, %c0_80] : memref<8x8xf32, #tpu.memory_space<vmem>>, vector<8x8xf32>
    %90 = vector.extract_strided_slice %87 {offsets = [0, 0, 0], sizes = [4, 8, 16], strides = [1, 1, 1]} : vector<9x8x16xf32> to vector<4x8x16xf32>
    %91 = vector.extract_strided_slice %90 {offsets = [0, 0, 0], sizes = [3, 8, 16], strides = [1, 1, 1]} : vector<4x8x16xf32> to vector<3x8x16xf32>
    %92 = vector.shape_cast %91 : vector<3x8x16xf32> to vector<24x16xf32>
    %93 = vector.extract_strided_slice %90 {offsets = [3, 0, 0], sizes = [1, 8, 16], strides = [1, 1, 1]} : vector<4x8x16xf32> to vector<1x8x16xf32>
    %94 = vector.shape_cast %93 : vector<1x8x16xf32> to vector<8x16xf32>
    %cst_81 = arith.constant dense<0.000000e+00> : vector<8x16xf32>
    %95 = tpu.matmul %88, %92, %cst_81 {dimension_numbers = #tpu.dot_dimension_numbers<[1], [0], [0], [1], [0, 0, 1, 1], [], []>} : vector<8x24xf32>, vector<24x16xf32>, vector<8x16xf32> -> vector<8x16xf32>
    %cst_82 = arith.constant dense<0.000000e+00> : vector<8x16xf32>
    %96 = tpu.matmul %89, %94, %cst_82 {dimension_numbers = #tpu.dot_dimension_numbers<[1], [0], [0], [1], [0, 0, 1, 1], [], []>} : vector<8x8xf32>, vector<8x16xf32>, vector<8x16xf32> -> vector<8x16xf32>
    %97 = arith.addf %95, %96 : vector<8x16xf32>
    %c0_83 = arith.constant 0 : index
    %c0_84 = arith.constant 0 : index
    %c0_85 = arith.constant 0 : index
    %c0_86 = arith.constant 0 : index
    %98 = vector.load %arg11[%c0_83, %c0_84, %c0_85, %c0_86] : memref<6x2x16x32xf32, #tpu.memory_space<vmem>>, vector<1x1x16x32xf32>
    %99 = vector.shape_cast %98 : vector<1x1x16x32xf32> to vector<16x32xf32>
    %cst_87 = arith.constant dense<0.000000e+00> : vector<8x32xf32>
    %100 = tpu.matmul %97, %99, %cst_87 {dimension_numbers = #tpu.dot_dimension_numbers<[1], [0], [0], [1], [0, 0, 1, 1], [], []>} : vector<8x16xf32>, vector<16x32xf32>, vector<8x32xf32> -> vector<8x32xf32>
    %c0_88 = arith.constant 0 : index
    %c0_89 = arith.constant 0 : index
    %c0_90 = arith.constant 0 : index
    %c0_91 = arith.constant 0 : index
    %101 = vector.load %arg12[%c0_88, %c0_89, %c0_90, %c0_91] : memref<6x2x1x32xf32, #tpu.memory_space<vmem>>, vector<1x1x1x32xf32>
    %102 = vector.shape_cast %101 : vector<1x1x1x32xf32> to vector<1x32xf32>
    %103 = vector.broadcast %102 : vector<1x32xf32> to vector<8x32xf32>
    %104 = arith.addf %100, %103 : vector<8x32xf32>
    %105 = vector.extract_strided_slice %104 {offsets = [0, 0], sizes = [8, 16], strides = [1, 1]} : vector<8x32xf32> to vector<8x16xf32>
    %106 = vector.extract_strided_slice %104 {offsets = [0, 16], sizes = [8, 16], strides = [1, 1]} : vector<8x32xf32> to vector<8x16xf32>
    %107 = arith.negf %106 : vector<8x16xf32>
    %108 = math.exp %107 : vector<8x16xf32>
    %cst_92 = arith.constant 1.000000e+00 : f32
    %109 = vector.broadcast %cst_92 : f32 to vector<8x16xf32>
    %110 = arith.addf %109, %108 : vector<8x16xf32>
    %111 = arith.divf %109, %110 : vector<8x16xf32>
    %112 = arith.mulf %105, %111 : vector<8x16xf32>
    %cst_93 = arith.constant dense<0.000000e+00> : vector<8x16xf32>
    %113 = tpu.matmul %89, %112, %cst_93 {dimension_numbers = #tpu.dot_dimension_numbers<[1], [0], [0], [1], [0, 0, 1, 1], [], []>} : vector<8x8xf32>, vector<8x16xf32>, vector<8x16xf32> -> vector<8x16xf32>
    %114 = arith.addf %95, %113 : vector<8x16xf32>
    %c0_94 = arith.constant 0 : index
    %c1_95 = arith.constant 1 : index
    %c0_96 = arith.constant 0 : index
    %c0_97 = arith.constant 0 : index
    %115 = vector.load %arg11[%c0_94, %c1_95, %c0_96, %c0_97] : memref<6x2x16x32xf32, #tpu.memory_space<vmem>>, vector<1x1x16x32xf32>
    %116 = vector.shape_cast %115 : vector<1x1x16x32xf32> to vector<16x32xf32>
    %cst_98 = arith.constant dense<0.000000e+00> : vector<8x32xf32>
    %117 = tpu.matmul %114, %116, %cst_98 {dimension_numbers = #tpu.dot_dimension_numbers<[1], [0], [0], [1], [0, 0, 1, 1], [], []>} : vector<8x16xf32>, vector<16x32xf32>, vector<8x32xf32> -> vector<8x32xf32>
    %c0_99 = arith.constant 0 : index
    %c1_100 = arith.constant 1 : index
    %c0_101 = arith.constant 0 : index
    %c0_102 = arith.constant 0 : index
    %118 = vector.load %arg12[%c0_99, %c1_100, %c0_101, %c0_102] : memref<6x2x1x32xf32, #tpu.memory_space<vmem>>, vector<1x1x1x32xf32>
    %119 = vector.shape_cast %118 : vector<1x1x1x32xf32> to vector<1x32xf32>
    %120 = vector.broadcast %119 : vector<1x32xf32> to vector<8x32xf32>
    %121 = arith.addf %117, %120 : vector<8x32xf32>
    %122 = vector.extract_strided_slice %121 {offsets = [0, 0], sizes = [8, 16], strides = [1, 1]} : vector<8x32xf32> to vector<8x16xf32>
    %123 = vector.extract_strided_slice %121 {offsets = [0, 16], sizes = [8, 16], strides = [1, 1]} : vector<8x32xf32> to vector<8x16xf32>
    %124 = arith.negf %123 : vector<8x16xf32>
    %125 = math.exp %124 : vector<8x16xf32>
    %cst_103 = arith.constant 1.000000e+00 : f32
    %126 = vector.broadcast %cst_103 : f32 to vector<8x16xf32>
    %127 = arith.addf %126, %125 : vector<8x16xf32>
    %128 = arith.divf %126, %127 : vector<8x16xf32>
    %129 = arith.mulf %122, %128 : vector<8x16xf32>
    %130 = arith.maximumf %112, %129 : vector<8x16xf32>
    %131 = arith.addf %130, %94 : vector<8x16xf32>
    %132 = vector.extract_strided_slice %77 {offsets = [0, 0, 0], sizes = [1, 8, 16], strides = [1, 1, 1]} : vector<6x8x16xf32> to vector<1x8x16xf32>
    %133 = vector.shape_cast %132 : vector<1x8x16xf32> to vector<8x16xf32>
    %134 = arith.addf %131, %133 : vector<8x16xf32>
    %c0_104 = arith.constant 0 : index
    %c0_105 = arith.constant 0 : index
    %c0_106 = arith.constant 0 : index
    %c0_107 = arith.constant 0 : index
    %135 = vector.load %arg13[%c0_104, %c0_105, %c0_106, %c0_107] : memref<1x6x8x16xf32, #tpu.memory_space<vmem>>, vector<1x1x8x16xf32>
    %136 = vector.shape_cast %135 : vector<1x1x8x16xf32> to vector<8x16xf32>
    %137 = vector.shape_cast %134 : vector<8x16xf32> to vector<1x1x8x16xf32>
    tpu.vector_store %arg13[%c0_104, %c0_105, %c0_106, %c0_107], %137 {strides = array<i32>} : memref<1x6x8x16xf32, #tpu.memory_space<vmem>>, vector<1x1x8x16xf32>,
    %138 = vector.extract_strided_slice %87 {offsets = [1, 0, 0], sizes = [4, 8, 16], strides = [1, 1, 1]} : vector<9x8x16xf32> to vector<4x8x16xf32>
    %139 = vector.extract_strided_slice %138 {offsets = [0, 0, 0], sizes = [3, 8, 16], strides = [1, 1, 1]} : vector<4x8x16xf32> to vector<3x8x16xf32>
    %140 = vector.shape_cast %139 : vector<3x8x16xf32> to vector<24x16xf32>
    %141 = vector.extract_strided_slice %138 {offsets = [3, 0, 0], sizes = [1, 8, 16], strides = [1, 1, 1]} : vector<4x8x16xf32> to vector<1x8x16xf32>
    %142 = vector.shape_cast %141 : vector<1x8x16xf32> to vector<8x16xf32>
    %cst_108 = arith.constant dense<0.000000e+00> : vector<8x16xf32>
    %143 = tpu.matmul %88, %140, %cst_108 {dimension_numbers = #tpu.dot_dimension_numbers<[1], [0], [0], [1], [0, 0, 1, 1], [], []>} : vector<8x24xf32>, vector<24x16xf32>, vector<8x16xf32> -> vector<8x16xf32>
    %cst_109 = arith.constant dense<0.000000e+00> : vector<8x16xf32>
    %144 = tpu.matmul %89, %142, %cst_109 {dimension_numbers = #tpu.dot_dimension_numbers<[1], [0], [0], [1], [0, 0, 1, 1], [], []>} : vector<8x8xf32>, vector<8x16xf32>, vector<8x16xf32> -> vector<8x16xf32>
    %145 = arith.addf %143, %144 : vector<8x16xf32>
    %c1_110 = arith.constant 1 : index
    %c0_111 = arith.constant 0 : index
    %c0_112 = arith.constant 0 : index
    %c0_113 = arith.constant 0 : index
    %146 = vector.load %arg11[%c1_110, %c0_111, %c0_112, %c0_113] : memref<6x2x16x32xf32, #tpu.memory_space<vmem>>, vector<1x1x16x32xf32>
    %147 = vector.shape_cast %146 : vector<1x1x16x32xf32> to vector<16x32xf32>
    %cst_114 = arith.constant dense<0.000000e+00> : vector<8x32xf32>
    %148 = tpu.matmul %145, %147, %cst_114 {dimension_numbers = #tpu.dot_dimension_numbers<[1], [0], [0], [1], [0, 0, 1, 1], [], []>} : vector<8x16xf32>, vector<16x32xf32>, vector<8x32xf32> -> vector<8x32xf32>
    %c1_115 = arith.constant 1 : index
    %c0_116 = arith.constant 0 : index
    %c0_117 = arith.constant 0 : index
    %c0_118 = arith.constant 0 : index
    %149 = vector.load %arg12[%c1_115, %c0_116, %c0_117, %c0_118] : memref<6x2x1x32xf32, #tpu.memory_space<vmem>>, vector<1x1x1x32xf32>
    %150 = vector.shape_cast %149 : vector<1x1x1x32xf32> to vector<1x32xf32>
    %151 = vector.broadcast %150 : vector<1x32xf32> to vector<8x32xf32>
    %152 = arith.addf %148, %151 : vector<8x32xf32>
    %153 = vector.extract_strided_slice %152 {offsets = [0, 0], sizes = [8, 16], strides = [1, 1]} : vector<8x32xf32> to vector<8x16xf32>
    %154 = vector.extract_strided_slice %152 {offsets = [0, 16], sizes = [8, 16], strides = [1, 1]} : vector<8x32xf32> to vector<8x16xf32>
    %155 = arith.negf %154 : vector<8x16xf32>
    %156 = math.exp %155 : vector<8x16xf32>
    %cst_119 = arith.constant 1.000000e+00 : f32
    %157 = vector.broadcast %cst_119 : f32 to vector<8x16xf32>
    %158 = arith.addf %157, %156 : vector<8x16xf32>
    %159 = arith.divf %157, %158 : vector<8x16xf32>
    %160 = arith.mulf %153, %159 : vector<8x16xf32>
    %cst_120 = arith.constant dense<0.000000e+00> : vector<8x16xf32>
    %161 = tpu.matmul %89, %160, %cst_120 {dimension_numbers = #tpu.dot_dimension_numbers<[1], [0], [0], [1], [0, 0, 1, 1], [], []>} : vector<8x8xf32>, vector<8x16xf32>, vector<8x16xf32> -> vector<8x16xf32>
    %162 = arith.addf %143, %161 : vector<8x16xf32>
    %c1_121 = arith.constant 1 : index
    %c1_122 = arith.constant 1 : index
    %c0_123 = arith.constant 0 : index
    %c0_124 = arith.constant 0 : index
    %163 = vector.load %arg11[%c1_121, %c1_122, %c0_123, %c0_124] : memref<6x2x16x32xf32, #tpu.memory_space<vmem>>, vector<1x1x16x32xf32>
    %164 = vector.shape_cast %163 : vector<1x1x16x32xf32> to vector<16x32xf32>
    %cst_125 = arith.constant dense<0.000000e+00> : vector<8x32xf32>
    %165 = tpu.matmul %162, %164, %cst_125 {dimension_numbers = #tpu.dot_dimension_numbers<[1], [0], [0], [1], [0, 0, 1, 1], [], []>} : vector<8x16xf32>, vector<16x32xf32>, vector<8x32xf32> -> vector<8x32xf32>
    %c1_126 = arith.constant 1 : index
    %c1_127 = arith.constant 1 : index
    %c0_128 = arith.constant 0 : index
    %c0_129 = arith.constant 0 : index
    %166 = vector.load %arg12[%c1_126, %c1_127, %c0_128, %c0_129] : memref<6x2x1x32xf32, #tpu.memory_space<vmem>>, vector<1x1x1x32xf32>
    %167 = vector.shape_cast %166 : vector<1x1x1x32xf32> to vector<1x32xf32>
    %168 = vector.broadcast %167 : vector<1x32xf32> to vector<8x32xf32>
    %169 = arith.addf %165, %168 : vector<8x32xf32>
    %170 = vector.extract_strided_slice %169 {offsets = [0, 0], sizes = [8, 16], strides = [1, 1]} : vector<8x32xf32> to vector<8x16xf32>
    %171 = vector.extract_strided_slice %169 {offsets = [0, 16], sizes = [8, 16], strides = [1, 1]} : vector<8x32xf32> to vector<8x16xf32>
    %172 = arith.negf %171 : vector<8x16xf32>
    %173 = math.exp %172 : vector<8x16xf32>
    %cst_130 = arith.constant 1.000000e+00 : f32
    %174 = vector.broadcast %cst_130 : f32 to vector<8x16xf32>
    %175 = arith.addf %174, %173 : vector<8x16xf32>
    %176 = arith.divf %174, %175 : vector<8x16xf32>
    %177 = arith.mulf %170, %176 : vector<8x16xf32>
    %178 = arith.maximumf %160, %177 : vector<8x16xf32>
    %179 = arith.addf %178, %142 : vector<8x16xf32>
    %180 = vector.extract_strided_slice %77 {offsets = [1, 0, 0], sizes = [1, 8, 16], strides = [1, 1, 1]} : vector<6x8x16xf32> to vector<1x8x16xf32>
    %181 = vector.shape_cast %180 : vector<1x8x16xf32> to vector<8x16xf32>
    %182 = arith.addf %179, %181 : vector<8x16xf32>
    %c0_131 = arith.constant 0 : index
    %c1_132 = arith.constant 1 : index
    %c0_133 = arith.constant 0 : index
    %c0_134 = arith.constant 0 : index
    %183 = vector.load %arg13[%c0_131, %c1_132, %c0_133, %c0_134] : memref<1x6x8x16xf32, #tpu.memory_space<vmem>>, vector<1x1x8x16xf32>
    %184 = vector.shape_cast %183 : vector<1x1x8x16xf32> to vector<8x16xf32>
    %185 = vector.shape_cast %182 : vector<8x16xf32> to vector<1x1x8x16xf32>
    tpu.vector_store %arg13[%c0_131, %c1_132, %c0_133, %c0_134], %185 {strides = array<i32>} : memref<1x6x8x16xf32, #tpu.memory_space<vmem>>, vector<1x1x8x16xf32>,
    %186 = vector.extract_strided_slice %87 {offsets = [2, 0, 0], sizes = [4, 8, 16], strides = [1, 1, 1]} : vector<9x8x16xf32> to vector<4x8x16xf32>
    %187 = vector.extract_strided_slice %186 {offsets = [0, 0, 0], sizes = [3, 8, 16], strides = [1, 1, 1]} : vector<4x8x16xf32> to vector<3x8x16xf32>
    %188 = vector.shape_cast %187 : vector<3x8x16xf32> to vector<24x16xf32>
    %189 = vector.extract_strided_slice %186 {offsets = [3, 0, 0], sizes = [1, 8, 16], strides = [1, 1, 1]} : vector<4x8x16xf32> to vector<1x8x16xf32>
    %190 = vector.shape_cast %189 : vector<1x8x16xf32> to vector<8x16xf32>
    %cst_135 = arith.constant dense<0.000000e+00> : vector<8x16xf32>
    %191 = tpu.matmul %88, %188, %cst_135 {dimension_numbers = #tpu.dot_dimension_numbers<[1], [0], [0], [1], [0, 0, 1, 1], [], []>} : vector<8x24xf32>, vector<24x16xf32>, vector<8x16xf32> -> vector<8x16xf32>
    %cst_136 = arith.constant dense<0.000000e+00> : vector<8x16xf32>
    %192 = tpu.matmul %89, %190, %cst_136 {dimension_numbers = #tpu.dot_dimension_numbers<[1], [0], [0], [1], [0, 0, 1, 1], [], []>} : vector<8x8xf32>, vector<8x16xf32>, vector<8x16xf32> -> vector<8x16xf32>
    %193 = arith.addf %191, %192 : vector<8x16xf32>
    %c2_137 = arith.constant 2 : index
    %c0_138 = arith.constant 0 : index
    %c0_139 = arith.constant 0 : index
    %c0_140 = arith.constant 0 : index
    %194 = vector.load %arg11[%c2_137, %c0_138, %c0_139, %c0_140] : memref<6x2x16x32xf32, #tpu.memory_space<vmem>>, vector<1x1x16x32xf32>
    %195 = vector.shape_cast %194 : vector<1x1x16x32xf32> to vector<16x32xf32>
    %cst_141 = arith.constant dense<0.000000e+00> : vector<8x32xf32>
    %196 = tpu.matmul %193, %195, %cst_141 {dimension_numbers = #tpu.dot_dimension_numbers<[1], [0], [0], [1], [0, 0, 1, 1], [], []>} : vector<8x16xf32>, vector<16x32xf32>, vector<8x32xf32> -> vector<8x32xf32>
    %c2_142 = arith.constant 2 : index
    %c0_143 = arith.constant 0 : index
    %c0_144 = arith.constant 0 : index
    %c0_145 = arith.constant 0 : index
    %197 = vector.load %arg12[%c2_142, %c0_143, %c0_144, %c0_145] : memref<6x2x1x32xf32, #tpu.memory_space<vmem>>, vector<1x1x1x32xf32>
    %198 = vector.shape_cast %197 : vector<1x1x1x32xf32> to vector<1x32xf32>
    %199 = vector.broadcast %198 : vector<1x32xf32> to vector<8x32xf32>
    %200 = arith.addf %196, %199 : vector<8x32xf32>
    %201 = vector.extract_strided_slice %200 {offsets = [0, 0], sizes = [8, 16], strides = [1, 1]} : vector<8x32xf32> to vector<8x16xf32>
    %202 = vector.extract_strided_slice %200 {offsets = [0, 16], sizes = [8, 16], strides = [1, 1]} : vector<8x32xf32> to vector<8x16xf32>
    %203 = arith.negf %202 : vector<8x16xf32>
    %204 = math.exp %203 : vector<8x16xf32>
    %cst_146 = arith.constant 1.000000e+00 : f32
    %205 = vector.broadcast %cst_146 : f32 to vector<8x16xf32>
    %206 = arith.addf %205, %204 : vector<8x16xf32>
    %207 = arith.divf %205, %206 : vector<8x16xf32>
    %208 = arith.mulf %201, %207 : vector<8x16xf32>
    %cst_147 = arith.constant dense<0.000000e+00> : vector<8x16xf32>
    %209 = tpu.matmul %89, %208, %cst_147 {dimension_numbers = #tpu.dot_dimension_numbers<[1], [0], [0], [1], [0, 0, 1, 1], [], []>} : vector<8x8xf32>, vector<8x16xf32>, vector<8x16xf32> -> vector<8x16xf32>
    %210 = arith.addf %191, %209 : vector<8x16xf32>
    %c2_148 = arith.constant 2 : index
    %c1_149 = arith.constant 1 : index
    %c0_150 = arith.constant 0 : index
    %c0_151 = arith.constant 0 : index
    %211 = vector.load %arg11[%c2_148, %c1_149, %c0_150, %c0_151] : memref<6x2x16x32xf32, #tpu.memory_space<vmem>>, vector<1x1x16x32xf32>
    %212 = vector.shape_cast %211 : vector<1x1x16x32xf32> to vector<16x32xf32>
    %cst_152 = arith.constant dense<0.000000e+00> : vector<8x32xf32>
    %213 = tpu.matmul %210, %212, %cst_152 {dimension_numbers = #tpu.dot_dimension_numbers<[1], [0], [0], [1], [0, 0, 1, 1], [], []>} : vector<8x16xf32>, vector<16x32xf32>, vector<8x32xf32> -> vector<8x32xf32>
    %c2_153 = arith.constant 2 : index
    %c1_154 = arith.constant 1 : index
    %c0_155 = arith.constant 0 : index
    %c0_156 = arith.constant 0 : index
    %214 = vector.load %arg12[%c2_153, %c1_154, %c0_155, %c0_156] : memref<6x2x1x32xf32, #tpu.memory_space<vmem>>, vector<1x1x1x32xf32>
    %215 = vector.shape_cast %214 : vector<1x1x1x32xf32> to vector<1x32xf32>
    %216 = vector.broadcast %215 : vector<1x32xf32> to vector<8x32xf32>
    %217 = arith.addf %213, %216 : vector<8x32xf32>
    %218 = vector.extract_strided_slice %217 {offsets = [0, 0], sizes = [8, 16], strides = [1, 1]} : vector<8x32xf32> to vector<8x16xf32>
    %219 = vector.extract_strided_slice %217 {offsets = [0, 16], sizes = [8, 16], strides = [1, 1]} : vector<8x32xf32> to vector<8x16xf32>
    %220 = arith.negf %219 : vector<8x16xf32>
    %221 = math.exp %220 : vector<8x16xf32>
    %cst_157 = arith.constant 1.000000e+00 : f32
    %222 = vector.broadcast %cst_157 : f32 to vector<8x16xf32>
    %223 = arith.addf %222, %221 : vector<8x16xf32>
    %224 = arith.divf %222, %223 : vector<8x16xf32>
    %225 = arith.mulf %218, %224 : vector<8x16xf32>
    %226 = arith.maximumf %208, %225 : vector<8x16xf32>
    %227 = arith.addf %226, %190 : vector<8x16xf32>
    %228 = vector.extract_strided_slice %77 {offsets = [2, 0, 0], sizes = [1, 8, 16], strides = [1, 1, 1]} : vector<6x8x16xf32> to vector<1x8x16xf32>
    %229 = vector.shape_cast %228 : vector<1x8x16xf32> to vector<8x16xf32>
    %230 = arith.addf %227, %229 : vector<8x16xf32>
    %c0_158 = arith.constant 0 : index
    %c2_159 = arith.constant 2 : index
    %c0_160 = arith.constant 0 : index
    %c0_161 = arith.constant 0 : index
    %231 = vector.load %arg13[%c0_158, %c2_159, %c0_160, %c0_161] : memref<1x6x8x16xf32, #tpu.memory_space<vmem>>, vector<1x1x8x16xf32>
    %232 = vector.shape_cast %231 : vector<1x1x8x16xf32> to vector<8x16xf32>
    %233 = vector.shape_cast %230 : vector<8x16xf32> to vector<1x1x8x16xf32>
    tpu.vector_store %arg13[%c0_158, %c2_159, %c0_160, %c0_161], %233 {strides = array<i32>} : memref<1x6x8x16xf32, #tpu.memory_space<vmem>>, vector<1x1x8x16xf32>,
    %234 = vector.extract_strided_slice %87 {offsets = [3, 0, 0], sizes = [4, 8, 16], strides = [1, 1, 1]} : vector<9x8x16xf32> to vector<4x8x16xf32>
    %235 = vector.extract_strided_slice %234 {offsets = [0, 0, 0], sizes = [3, 8, 16], strides = [1, 1, 1]} : vector<4x8x16xf32> to vector<3x8x16xf32>
    %236 = vector.shape_cast %235 : vector<3x8x16xf32> to vector<24x16xf32>
    %237 = vector.extract_strided_slice %234 {offsets = [3, 0, 0], sizes = [1, 8, 16], strides = [1, 1, 1]} : vector<4x8x16xf32> to vector<1x8x16xf32>
    %238 = vector.shape_cast %237 : vector<1x8x16xf32> to vector<8x16xf32>
    %cst_162 = arith.constant dense<0.000000e+00> : vector<8x16xf32>
    %239 = tpu.matmul %88, %236, %cst_162 {dimension_numbers = #tpu.dot_dimension_numbers<[1], [0], [0], [1], [0, 0, 1, 1], [], []>} : vector<8x24xf32>, vector<24x16xf32>, vector<8x16xf32> -> vector<8x16xf32>
    %cst_163 = arith.constant dense<0.000000e+00> : vector<8x16xf32>
    %240 = tpu.matmul %89, %238, %cst_163 {dimension_numbers = #tpu.dot_dimension_numbers<[1], [0], [0], [1], [0, 0, 1, 1], [], []>} : vector<8x8xf32>, vector<8x16xf32>, vector<8x16xf32> -> vector<8x16xf32>
    %241 = arith.addf %239, %240 : vector<8x16xf32>
    %c3_164 = arith.constant 3 : index
    %c0_165 = arith.constant 0 : index
    %c0_166 = arith.constant 0 : index
    %c0_167 = arith.constant 0 : index
    %242 = vector.load %arg11[%c3_164, %c0_165, %c0_166, %c0_167] : memref<6x2x16x32xf32, #tpu.memory_space<vmem>>, vector<1x1x16x32xf32>
    %243 = vector.shape_cast %242 : vector<1x1x16x32xf32> to vector<16x32xf32>
    %cst_168 = arith.constant dense<0.000000e+00> : vector<8x32xf32>
    %244 = tpu.matmul %241, %243, %cst_168 {dimension_numbers = #tpu.dot_dimension_numbers<[1], [0], [0], [1], [0, 0, 1, 1], [], []>} : vector<8x16xf32>, vector<16x32xf32>, vector<8x32xf32> -> vector<8x32xf32>
    %c3_169 = arith.constant 3 : index
    %c0_170 = arith.constant 0 : index
    %c0_171 = arith.constant 0 : index
    %c0_172 = arith.constant 0 : index
    %245 = vector.load %arg12[%c3_169, %c0_170, %c0_171, %c0_172] : memref<6x2x1x32xf32, #tpu.memory_space<vmem>>, vector<1x1x1x32xf32>
    %246 = vector.shape_cast %245 : vector<1x1x1x32xf32> to vector<1x32xf32>
    %247 = vector.broadcast %246 : vector<1x32xf32> to vector<8x32xf32>
    %248 = arith.addf %244, %247 : vector<8x32xf32>
    %249 = vector.extract_strided_slice %248 {offsets = [0, 0], sizes = [8, 16], strides = [1, 1]} : vector<8x32xf32> to vector<8x16xf32>
    %250 = vector.extract_strided_slice %248 {offsets = [0, 16], sizes = [8, 16], strides = [1, 1]} : vector<8x32xf32> to vector<8x16xf32>
    %251 = arith.negf %250 : vector<8x16xf32>
    %252 = math.exp %251 : vector<8x16xf32>
    %cst_173 = arith.constant 1.000000e+00 : f32
    %253 = vector.broadcast %cst_173 : f32 to vector<8x16xf32>
    %254 = arith.addf %253, %252 : vector<8x16xf32>
    %255 = arith.divf %253, %254 : vector<8x16xf32>
    %256 = arith.mulf %249, %255 : vector<8x16xf32>
    %cst_174 = arith.constant dense<0.000000e+00> : vector<8x16xf32>
    %257 = tpu.matmul %89, %256, %cst_174 {dimension_numbers = #tpu.dot_dimension_numbers<[1], [0], [0], [1], [0, 0, 1, 1], [], []>} : vector<8x8xf32>, vector<8x16xf32>, vector<8x16xf32> -> vector<8x16xf32>
    %258 = arith.addf %239, %257 : vector<8x16xf32>
    %c3_175 = arith.constant 3 : index
    %c1_176 = arith.constant 1 : index
    %c0_177 = arith.constant 0 : index
    %c0_178 = arith.constant 0 : index
    %259 = vector.load %arg11[%c3_175, %c1_176, %c0_177, %c0_178] : memref<6x2x16x32xf32, #tpu.memory_space<vmem>>, vector<1x1x16x32xf32>
    %260 = vector.shape_cast %259 : vector<1x1x16x32xf32> to vector<16x32xf32>
    %cst_179 = arith.constant dense<0.000000e+00> : vector<8x32xf32>
    %261 = tpu.matmul %258, %260, %cst_179 {dimension_numbers = #tpu.dot_dimension_numbers<[1], [0], [0], [1], [0, 0, 1, 1], [], []>} : vector<8x16xf32>, vector<16x32xf32>, vector<8x32xf32> -> vector<8x32xf32>
    %c3_180 = arith.constant 3 : index
    %c1_181 = arith.constant 1 : index
    %c0_182 = arith.constant 0 : index
    %c0_183 = arith.constant 0 : index
    %262 = vector.load %arg12[%c3_180, %c1_181, %c0_182, %c0_183] : memref<6x2x1x32xf32, #tpu.memory_space<vmem>>, vector<1x1x1x32xf32>
    %263 = vector.shape_cast %262 : vector<1x1x1x32xf32> to vector<1x32xf32>
    %264 = vector.broadcast %263 : vector<1x32xf32> to vector<8x32xf32>
    %265 = arith.addf %261, %264 : vector<8x32xf32>
    %266 = vector.extract_strided_slice %265 {offsets = [0, 0], sizes = [8, 16], strides = [1, 1]} : vector<8x32xf32> to vector<8x16xf32>
    %267 = vector.extract_strided_slice %265 {offsets = [0, 16], sizes = [8, 16], strides = [1, 1]} : vector<8x32xf32> to vector<8x16xf32>
    %268 = arith.negf %267 : vector<8x16xf32>
    %269 = math.exp %268 : vector<8x16xf32>
    %cst_184 = arith.constant 1.000000e+00 : f32
    %270 = vector.broadcast %cst_184 : f32 to vector<8x16xf32>
    %271 = arith.addf %270, %269 : vector<8x16xf32>
    %272 = arith.divf %270, %271 : vector<8x16xf32>
    %273 = arith.mulf %266, %272 : vector<8x16xf32>
    %274 = arith.maximumf %256, %273 : vector<8x16xf32>
    %275 = arith.addf %274, %238 : vector<8x16xf32>
    %276 = vector.extract_strided_slice %77 {offsets = [3, 0, 0], sizes = [1, 8, 16], strides = [1, 1, 1]} : vector<6x8x16xf32> to vector<1x8x16xf32>
    %277 = vector.shape_cast %276 : vector<1x8x16xf32> to vector<8x16xf32>
    %278 = arith.addf %275, %277 : vector<8x16xf32>
    %c0_185 = arith.constant 0 : index
    %c3_186 = arith.constant 3 : index
    %c0_187 = arith.constant 0 : index
    %c0_188 = arith.constant 0 : index
    %279 = vector.load %arg13[%c0_185, %c3_186, %c0_187, %c0_188] : memref<1x6x8x16xf32, #tpu.memory_space<vmem>>, vector<1x1x8x16xf32>
    %280 = vector.shape_cast %279 : vector<1x1x8x16xf32> to vector<8x16xf32>
    %281 = vector.shape_cast %278 : vector<8x16xf32> to vector<1x1x8x16xf32>
    tpu.vector_store %arg13[%c0_185, %c3_186, %c0_187, %c0_188], %281 {strides = array<i32>} : memref<1x6x8x16xf32, #tpu.memory_space<vmem>>, vector<1x1x8x16xf32>,
    %282 = vector.extract_strided_slice %87 {offsets = [4, 0, 0], sizes = [4, 8, 16], strides = [1, 1, 1]} : vector<9x8x16xf32> to vector<4x8x16xf32>
    %283 = vector.extract_strided_slice %282 {offsets = [0, 0, 0], sizes = [3, 8, 16], strides = [1, 1, 1]} : vector<4x8x16xf32> to vector<3x8x16xf32>
    %284 = vector.shape_cast %283 : vector<3x8x16xf32> to vector<24x16xf32>
    %285 = vector.extract_strided_slice %282 {offsets = [3, 0, 0], sizes = [1, 8, 16], strides = [1, 1, 1]} : vector<4x8x16xf32> to vector<1x8x16xf32>
    %286 = vector.shape_cast %285 : vector<1x8x16xf32> to vector<8x16xf32>
    %cst_189 = arith.constant dense<0.000000e+00> : vector<8x16xf32>
    %287 = tpu.matmul %88, %284, %cst_189 {dimension_numbers = #tpu.dot_dimension_numbers<[1], [0], [0], [1], [0, 0, 1, 1], [], []>} : vector<8x24xf32>, vector<24x16xf32>, vector<8x16xf32> -> vector<8x16xf32>
    %cst_190 = arith.constant dense<0.000000e+00> : vector<8x16xf32>
    %288 = tpu.matmul %89, %286, %cst_190 {dimension_numbers = #tpu.dot_dimension_numbers<[1], [0], [0], [1], [0, 0, 1, 1], [], []>} : vector<8x8xf32>, vector<8x16xf32>, vector<8x16xf32> -> vector<8x16xf32>
    %289 = arith.addf %287, %288 : vector<8x16xf32>
    %c4 = arith.constant 4 : index
    %c0_191 = arith.constant 0 : index
    %c0_192 = arith.constant 0 : index
    %c0_193 = arith.constant 0 : index
    %290 = vector.load %arg11[%c4, %c0_191, %c0_192, %c0_193] : memref<6x2x16x32xf32, #tpu.memory_space<vmem>>, vector<1x1x16x32xf32>
    %291 = vector.shape_cast %290 : vector<1x1x16x32xf32> to vector<16x32xf32>
    %cst_194 = arith.constant dense<0.000000e+00> : vector<8x32xf32>
    %292 = tpu.matmul %289, %291, %cst_194 {dimension_numbers = #tpu.dot_dimension_numbers<[1], [0], [0], [1], [0, 0, 1, 1], [], []>} : vector<8x16xf32>, vector<16x32xf32>, vector<8x32xf32> -> vector<8x32xf32>
    %c4_195 = arith.constant 4 : index
    %c0_196 = arith.constant 0 : index
    %c0_197 = arith.constant 0 : index
    %c0_198 = arith.constant 0 : index
    %293 = vector.load %arg12[%c4_195, %c0_196, %c0_197, %c0_198] : memref<6x2x1x32xf32, #tpu.memory_space<vmem>>, vector<1x1x1x32xf32>
    %294 = vector.shape_cast %293 : vector<1x1x1x32xf32> to vector<1x32xf32>
    %295 = vector.broadcast %294 : vector<1x32xf32> to vector<8x32xf32>
    %296 = arith.addf %292, %295 : vector<8x32xf32>
    %297 = vector.extract_strided_slice %296 {offsets = [0, 0], sizes = [8, 16], strides = [1, 1]} : vector<8x32xf32> to vector<8x16xf32>
    %298 = vector.extract_strided_slice %296 {offsets = [0, 16], sizes = [8, 16], strides = [1, 1]} : vector<8x32xf32> to vector<8x16xf32>
    %299 = arith.negf %298 : vector<8x16xf32>
    %300 = math.exp %299 : vector<8x16xf32>
    %cst_199 = arith.constant 1.000000e+00 : f32
    %301 = vector.broadcast %cst_199 : f32 to vector<8x16xf32>
    %302 = arith.addf %301, %300 : vector<8x16xf32>
    %303 = arith.divf %301, %302 : vector<8x16xf32>
    %304 = arith.mulf %297, %303 : vector<8x16xf32>
    %cst_200 = arith.constant dense<0.000000e+00> : vector<8x16xf32>
    %305 = tpu.matmul %89, %304, %cst_200 {dimension_numbers = #tpu.dot_dimension_numbers<[1], [0], [0], [1], [0, 0, 1, 1], [], []>} : vector<8x8xf32>, vector<8x16xf32>, vector<8x16xf32> -> vector<8x16xf32>
    %306 = arith.addf %287, %305 : vector<8x16xf32>
    %c4_201 = arith.constant 4 : index
    %c1_202 = arith.constant 1 : index
    %c0_203 = arith.constant 0 : index
    %c0_204 = arith.constant 0 : index
    %307 = vector.load %arg11[%c4_201, %c1_202, %c0_203, %c0_204] : memref<6x2x16x32xf32, #tpu.memory_space<vmem>>, vector<1x1x16x32xf32>
    %308 = vector.shape_cast %307 : vector<1x1x16x32xf32> to vector<16x32xf32>
    %cst_205 = arith.constant dense<0.000000e+00> : vector<8x32xf32>
    %309 = tpu.matmul %306, %308, %cst_205 {dimension_numbers = #tpu.dot_dimension_numbers<[1], [0], [0], [1], [0, 0, 1, 1], [], []>} : vector<8x16xf32>, vector<16x32xf32>, vector<8x32xf32> -> vector<8x32xf32>
    %c4_206 = arith.constant 4 : index
    %c1_207 = arith.constant 1 : index
    %c0_208 = arith.constant 0 : index
    %c0_209 = arith.constant 0 : index
    %310 = vector.load %arg12[%c4_206, %c1_207, %c0_208, %c0_209] : memref<6x2x1x32xf32, #tpu.memory_space<vmem>>, vector<1x1x1x32xf32>
    %311 = vector.shape_cast %310 : vector<1x1x1x32xf32> to vector<1x32xf32>
    %312 = vector.broadcast %311 : vector<1x32xf32> to vector<8x32xf32>
    %313 = arith.addf %309, %312 : vector<8x32xf32>
    %314 = vector.extract_strided_slice %313 {offsets = [0, 0], sizes = [8, 16], strides = [1, 1]} : vector<8x32xf32> to vector<8x16xf32>
    %315 = vector.extract_strided_slice %313 {offsets = [0, 16], sizes = [8, 16], strides = [1, 1]} : vector<8x32xf32> to vector<8x16xf32>
    %316 = arith.negf %315 : vector<8x16xf32>
    %317 = math.exp %316 : vector<8x16xf32>
    %cst_210 = arith.constant 1.000000e+00 : f32
    %318 = vector.broadcast %cst_210 : f32 to vector<8x16xf32>
    %319 = arith.addf %318, %317 : vector<8x16xf32>
    %320 = arith.divf %318, %319 : vector<8x16xf32>
    %321 = arith.mulf %314, %320 : vector<8x16xf32>
    %322 = arith.maximumf %304, %321 : vector<8x16xf32>
    %323 = arith.addf %322, %286 : vector<8x16xf32>
    %324 = vector.extract_strided_slice %77 {offsets = [4, 0, 0], sizes = [1, 8, 16], strides = [1, 1, 1]} : vector<6x8x16xf32> to vector<1x8x16xf32>
    %325 = vector.shape_cast %324 : vector<1x8x16xf32> to vector<8x16xf32>
    %326 = arith.addf %323, %325 : vector<8x16xf32>
    %c0_211 = arith.constant 0 : index
    %c4_212 = arith.constant 4 : index
    %c0_213 = arith.constant 0 : index
    %c0_214 = arith.constant 0 : index
    %327 = vector.load %arg13[%c0_211, %c4_212, %c0_213, %c0_214] : memref<1x6x8x16xf32, #tpu.memory_space<vmem>>, vector<1x1x8x16xf32>
    %328 = vector.shape_cast %327 : vector<1x1x8x16xf32> to vector<8x16xf32>
    %329 = vector.shape_cast %326 : vector<8x16xf32> to vector<1x1x8x16xf32>
    tpu.vector_store %arg13[%c0_211, %c4_212, %c0_213, %c0_214], %329 {strides = array<i32>} : memref<1x6x8x16xf32, #tpu.memory_space<vmem>>, vector<1x1x8x16xf32>,
    %330 = vector.extract_strided_slice %87 {offsets = [5, 0, 0], sizes = [4, 8, 16], strides = [1, 1, 1]} : vector<9x8x16xf32> to vector<4x8x16xf32>
    %331 = vector.extract_strided_slice %330 {offsets = [0, 0, 0], sizes = [3, 8, 16], strides = [1, 1, 1]} : vector<4x8x16xf32> to vector<3x8x16xf32>
    %332 = vector.shape_cast %331 : vector<3x8x16xf32> to vector<24x16xf32>
    %333 = vector.extract_strided_slice %330 {offsets = [3, 0, 0], sizes = [1, 8, 16], strides = [1, 1, 1]} : vector<4x8x16xf32> to vector<1x8x16xf32>
    %334 = vector.shape_cast %333 : vector<1x8x16xf32> to vector<8x16xf32>
    %cst_215 = arith.constant dense<0.000000e+00> : vector<8x16xf32>
    %335 = tpu.matmul %88, %332, %cst_215 {dimension_numbers = #tpu.dot_dimension_numbers<[1], [0], [0], [1], [0, 0, 1, 1], [], []>} : vector<8x24xf32>, vector<24x16xf32>, vector<8x16xf32> -> vector<8x16xf32>
    %cst_216 = arith.constant dense<0.000000e+00> : vector<8x16xf32>
    %336 = tpu.matmul %89, %334, %cst_216 {dimension_numbers = #tpu.dot_dimension_numbers<[1], [0], [0], [1], [0, 0, 1, 1], [], []>} : vector<8x8xf32>, vector<8x16xf32>, vector<8x16xf32> -> vector<8x16xf32>
    %337 = arith.addf %335, %336 : vector<8x16xf32>
    %c5 = arith.constant 5 : index
    %c0_217 = arith.constant 0 : index
    %c0_218 = arith.constant 0 : index
    %c0_219 = arith.constant 0 : index
    %338 = vector.load %arg11[%c5, %c0_217, %c0_218, %c0_219] : memref<6x2x16x32xf32, #tpu.memory_space<vmem>>, vector<1x1x16x32xf32>
    %339 = vector.shape_cast %338 : vector<1x1x16x32xf32> to vector<16x32xf32>
    %cst_220 = arith.constant dense<0.000000e+00> : vector<8x32xf32>
    %340 = tpu.matmul %337, %339, %cst_220 {dimension_numbers = #tpu.dot_dimension_numbers<[1], [0], [0], [1], [0, 0, 1, 1], [], []>} : vector<8x16xf32>, vector<16x32xf32>, vector<8x32xf32> -> vector<8x32xf32>
    %c5_221 = arith.constant 5 : index
    %c0_222 = arith.constant 0 : index
    %c0_223 = arith.constant 0 : index
    %c0_224 = arith.constant 0 : index
    %341 = vector.load %arg12[%c5_221, %c0_222, %c0_223, %c0_224] : memref<6x2x1x32xf32, #tpu.memory_space<vmem>>, vector<1x1x1x32xf32>
    %342 = vector.shape_cast %341 : vector<1x1x1x32xf32> to vector<1x32xf32>
    %343 = vector.broadcast %342 : vector<1x32xf32> to vector<8x32xf32>
    %344 = arith.addf %340, %343 : vector<8x32xf32>
    %345 = vector.extract_strided_slice %344 {offsets = [0, 0], sizes = [8, 16], strides = [1, 1]} : vector<8x32xf32> to vector<8x16xf32>
    %346 = vector.extract_strided_slice %344 {offsets = [0, 16], sizes = [8, 16], strides = [1, 1]} : vector<8x32xf32> to vector<8x16xf32>
    %347 = arith.negf %346 : vector<8x16xf32>
    %348 = math.exp %347 : vector<8x16xf32>
    %cst_225 = arith.constant 1.000000e+00 : f32
    %349 = vector.broadcast %cst_225 : f32 to vector<8x16xf32>
    %350 = arith.addf %349, %348 : vector<8x16xf32>
    %351 = arith.divf %349, %350 : vector<8x16xf32>
    %352 = arith.mulf %345, %351 : vector<8x16xf32>
    %cst_226 = arith.constant dense<0.000000e+00> : vector<8x16xf32>
    %353 = tpu.matmul %89, %352, %cst_226 {dimension_numbers = #tpu.dot_dimension_numbers<[1], [0], [0], [1], [0, 0, 1, 1], [], []>} : vector<8x8xf32>, vector<8x16xf32>, vector<8x16xf32> -> vector<8x16xf32>
    %354 = arith.addf %335, %353 : vector<8x16xf32>
    %c5_227 = arith.constant 5 : index
    %c1_228 = arith.constant 1 : index
    %c0_229 = arith.constant 0 : index
    %c0_230 = arith.constant 0 : index
    %355 = vector.load %arg11[%c5_227, %c1_228, %c0_229, %c0_230] : memref<6x2x16x32xf32, #tpu.memory_space<vmem>>, vector<1x1x16x32xf32>
    %356 = vector.shape_cast %355 : vector<1x1x16x32xf32> to vector<16x32xf32>
    %cst_231 = arith.constant dense<0.000000e+00> : vector<8x32xf32>
    %357 = tpu.matmul %354, %356, %cst_231 {dimension_numbers = #tpu.dot_dimension_numbers<[1], [0], [0], [1], [0, 0, 1, 1], [], []>} : vector<8x16xf32>, vector<16x32xf32>, vector<8x32xf32> -> vector<8x32xf32>
    %c5_232 = arith.constant 5 : index
    %c1_233 = arith.constant 1 : index
    %c0_234 = arith.constant 0 : index
    %c0_235 = arith.constant 0 : index
    %358 = vector.load %arg12[%c5_232, %c1_233, %c0_234, %c0_235] : memref<6x2x1x32xf32, #tpu.memory_space<vmem>>, vector<1x1x1x32xf32>
    %359 = vector.shape_cast %358 : vector<1x1x1x32xf32> to vector<1x32xf32>
    %360 = vector.broadcast %359 : vector<1x32xf32> to vector<8x32xf32>
    %361 = arith.addf %357, %360 : vector<8x32xf32>
    %362 = vector.extract_strided_slice %361 {offsets = [0, 0], sizes = [8, 16], strides = [1, 1]} : vector<8x32xf32> to vector<8x16xf32>
    %363 = vector.extract_strided_slice %361 {offsets = [0, 16], sizes = [8, 16], strides = [1, 1]} : vector<8x32xf32> to vector<8x16xf32>
    %364 = arith.negf %363 : vector<8x16xf32>
    %365 = math.exp %364 : vector<8x16xf32>
    %cst_236 = arith.constant 1.000000e+00 : f32
    %366 = vector.broadcast %cst_236 : f32 to vector<8x16xf32>
    %367 = arith.addf %366, %365 : vector<8x16xf32>
    %368 = arith.divf %366, %367 : vector<8x16xf32>
    %369 = arith.mulf %362, %368 : vector<8x16xf32>
    %370 = arith.maximumf %352, %369 : vector<8x16xf32>
    %371 = arith.addf %370, %334 : vector<8x16xf32>
    %372 = vector.extract_strided_slice %77 {offsets = [5, 0, 0], sizes = [1, 8, 16], strides = [1, 1, 1]} : vector<6x8x16xf32> to vector<1x8x16xf32>
    %373 = vector.shape_cast %372 : vector<1x8x16xf32> to vector<8x16xf32>
    %374 = arith.addf %371, %373 : vector<8x16xf32>
    %c0_237 = arith.constant 0 : index
    %c5_238 = arith.constant 5 : index
    %c0_239 = arith.constant 0 : index
    %c0_240 = arith.constant 0 : index
    %375 = vector.load %arg13[%c0_237, %c5_238, %c0_239, %c0_240] : memref<1x6x8x16xf32, #tpu.memory_space<vmem>>, vector<1x1x8x16xf32>
    %376 = vector.shape_cast %375 : vector<1x1x8x16xf32> to vector<8x16xf32>
    %377 = vector.shape_cast %374 : vector<8x16xf32> to vector<1x1x8x16xf32>
    tpu.vector_store %arg13[%c0_237, %c5_238, %c0_239, %c0_240], %377 {strides = array<i32>} : memref<1x6x8x16xf32, #tpu.memory_space<vmem>>, vector<1x1x8x16xf32>,
    return
  }
  func.func @transform_0(%arg0: i32) -> (i32, i32, i32, i32) {
    %c0_i32 = arith.constant 0 : i32
    %c0_i32_0 = arith.constant 0 : i32
    %c0_i32_1 = arith.constant 0 : i32
    %c0_i32_2 = arith.constant 0 : i32
    return %arg0, %c0_i32, %c0_i32_0, %c0_i32_1 : i32, i32, i32, i32
  }
  func.func @transform_1(%arg0: i32) -> (i32, i32, i32, i32) {
    %c0_i32 = arith.constant 0 : i32
    %c0_i32_0 = arith.constant 0 : i32
    %c0_i32_1 = arith.constant 0 : i32
    %c0_i32_2 = arith.constant 0 : i32
    return %arg0, %c0_i32, %c0_i32_0, %c0_i32_1 : i32, i32, i32, i32
  }
  func.func @transform_2(%arg0: i32) -> (i32, i32, i32) {
    %c0_i32 = arith.constant 0 : i32
    %c0_i32_0 = arith.constant 0 : i32
    %c0_i32_1 = arith.constant 0 : i32
    %c0_i32_2 = arith.constant 0 : i32
    return %c0_i32, %c0_i32_0, %c0_i32_1 : i32, i32, i32
  }
  func.func @transform_3(%arg0: i32) -> (i32, i32) {
    %c0_i32 = arith.constant 0 : i32
    %c0_i32_0 = arith.constant 0 : i32
    %c0_i32_1 = arith.constant 0 : i32
    return %c0_i32, %c0_i32_0 : i32, i32
  }
  func.func @transform_4(%arg0: i32) -> (i32, i32, i32) {
    %c0_i32 = arith.constant 0 : i32
    %c0_i32_0 = arith.constant 0 : i32
    %c0_i32_1 = arith.constant 0 : i32
    %c0_i32_2 = arith.constant 0 : i32
    return %c0_i32, %c0_i32_0, %c0_i32_1 : i32, i32, i32
  }
  func.func @transform_5(%arg0: i32) -> (i32, i32) {
    %c0_i32 = arith.constant 0 : i32
    %c0_i32_0 = arith.constant 0 : i32
    %c0_i32_1 = arith.constant 0 : i32
    return %c0_i32, %c0_i32_0 : i32, i32
  }
  func.func @transform_6(%arg0: i32) -> (i32, i32, i32, i32) {
    %c0_i32 = arith.constant 0 : i32
    %c0_i32_0 = arith.constant 0 : i32
    %c0_i32_1 = arith.constant 0 : i32
    %c0_i32_2 = arith.constant 0 : i32
    %c0_i32_3 = arith.constant 0 : i32
    return %c0_i32, %c0_i32_0, %c0_i32_1, %c0_i32_2 : i32, i32, i32, i32
  }
  func.func @transform_7(%arg0: i32) -> (i32, i32, i32, i32) {
    %c0_i32 = arith.constant 0 : i32
    %c0_i32_0 = arith.constant 0 : i32
    %c0_i32_1 = arith.constant 0 : i32
    %c0_i32_2 = arith.constant 0 : i32
    %c0_i32_3 = arith.constant 0 : i32
    return %c0_i32, %c0_i32_0, %c0_i32_1, %c0_i32_2 : i32, i32, i32, i32
  }
  func.func @transform_8(%arg0: i32) -> (i32, i32) {
    %c0_i32 = arith.constant 0 : i32
    %c0_i32_0 = arith.constant 0 : i32
    %c0_i32_1 = arith.constant 0 : i32
    return %c0_i32, %c0_i32_0 : i32, i32
  }
  func.func @transform_9(%arg0: i32) -> (i32, i32) {
    %c0_i32 = arith.constant 0 : i32
    %c0_i32_0 = arith.constant 0 : i32
    %c0_i32_1 = arith.constant 0 : i32
    return %c0_i32, %c0_i32_0 : i32, i32
  }
  func.func @transform_10(%arg0: i32) -> (i32, i32, i32, i32) {
    %c0_i32 = arith.constant 0 : i32
    %c0_i32_0 = arith.constant 0 : i32
    %c0_i32_1 = arith.constant 0 : i32
    %c0_i32_2 = arith.constant 0 : i32
    %c0_i32_3 = arith.constant 0 : i32
    return %c0_i32, %c0_i32_0, %c0_i32_1, %c0_i32_2 : i32, i32, i32, i32
  }
  func.func @transform_11(%arg0: i32) -> (i32, i32, i32, i32) {
    %c0_i32 = arith.constant 0 : i32
    %c0_i32_0 = arith.constant 0 : i32
    %c0_i32_1 = arith.constant 0 : i32
    %c0_i32_2 = arith.constant 0 : i32
    %c0_i32_3 = arith.constant 0 : i32
    return %c0_i32, %c0_i32_0, %c0_i32_1, %c0_i32_2 : i32, i32, i32, i32
  }
  func.func @transform_12(%arg0: i32) -> (i32, i32, i32, i32) {
    %c0_i32 = arith.constant 0 : i32
    %c0_i32_0 = arith.constant 0 : i32
    %c0_i32_1 = arith.constant 0 : i32
    %c0_i32_2 = arith.constant 0 : i32
    return %arg0, %c0_i32, %c0_i32_0, %c0_i32_1 : i32, i32, i32, i32
  }
}

module attributes {stable_mosaic.version = 11 : i64} {
  func.func @_branch_kernel(%arg0: i32, %arg1: memref<1x9x8x16xf32, #tpu.memory_space<vmem>>, %arg2: memref<1x3x8x16xf32, #tpu.memory_space<vmem>>, %arg3: memref<1x9x1x16xf32, #tpu.memory_space<vmem>>, %arg4: memref<1x1x8x16xf32, #tpu.memory_space<vmem>>, %arg5: memref<16x32xf32, #tpu.memory_space<vmem>>, %arg6: memref<1x32xf32, #tpu.memory_space<vmem>>, %arg7: memref<24x72xf32, #tpu.memory_space<vmem>>, %arg8: memref<24x1xf32, #tpu.memory_space<vmem>>, %arg9: memref<1x9x1x16xf32, #tpu.memory_space<vmem>>, %arg10: memref<1x1x8x16xf32, #tpu.memory_space<vmem>>, %arg11: memref<16x32xf32, #tpu.memory_space<vmem>>, %arg12: memref<1x32xf32, #tpu.memory_space<vmem>>, %arg13: memref<24x72xf32, #tpu.memory_space<vmem>>, %arg14: memref<24x1xf32, #tpu.memory_space<vmem>>, %arg15: memref<1x8x16xf32, #tpu.memory_space<vmem>>, %arg16: memref<9x1x16xf32, #tpu.memory_space<vmem>>, %arg17: memref<1x1xf32, #tpu.memory_space<vmem>>, %arg18: memref<9x1x16xf32, #tpu.memory_space<vmem>>, %arg19: memref<1x3x8x16xf32, #tpu.memory_space<vmem>>) attributes {dimension_semantics = [#tpu.dimension_semantics<parallel>], iteration_bounds = array<i64: 2>, scalar_prefetch = 0 : i64, scratch_operands = 0 : i64, tpu.core_type = #tpu.core_type<tc>, window_params = [{transform_indices = @transform_0, window_bounds = array<i64: 1, 9, 8, 16>}, {transform_indices = @transform_1, window_bounds = array<i64: 1, 3, 8, 16>}, {pipeline_mode = #tpu.pipeline_mode<synchronous>, transform_indices = @transform_2, window_bounds = array<i64: 1, 9, 1, 16>}, {pipeline_mode = #tpu.pipeline_mode<synchronous>, transform_indices = @transform_3, window_bounds = array<i64: 1, 1, 8, 16>}, {pipeline_mode = #tpu.pipeline_mode<synchronous>, transform_indices = @transform_4, window_bounds = array<i64: 16, 32>}, {pipeline_mode = #tpu.pipeline_mode<synchronous>, transform_indices = @transform_5, window_bounds = array<i64: 1, 32>}, {pipeline_mode = #tpu.pipeline_mode<synchronous>, transform_indices = @transform_6, window_bounds = array<i64: 24, 72>}, {pipeline_mode = #tpu.pipeline_mode<synchronous>, transform_indices = @transform_7, window_bounds = array<i64: 24, 1>}, {pipeline_mode = #tpu.pipeline_mode<synchronous>, transform_indices = @transform_8, window_bounds = array<i64: 1, 9, 1, 16>}, {pipeline_mode = #tpu.pipeline_mode<synchronous>, transform_indices = @transform_9, window_bounds = array<i64: 1, 1, 8, 16>}, {pipeline_mode = #tpu.pipeline_mode<synchronous>, transform_indices = @transform_10, window_bounds = array<i64: 16, 32>}, {pipeline_mode = #tpu.pipeline_mode<synchronous>, transform_indices = @transform_11, window_bounds = array<i64: 1, 32>}, {pipeline_mode = #tpu.pipeline_mode<synchronous>, transform_indices = @transform_12, window_bounds = array<i64: 24, 72>}, {pipeline_mode = #tpu.pipeline_mode<synchronous>, transform_indices = @transform_13, window_bounds = array<i64: 24, 1>}, {pipeline_mode = #tpu.pipeline_mode<synchronous>, transform_indices = @transform_14, window_bounds = array<i64: 1, 8, 16>}, {pipeline_mode = #tpu.pipeline_mode<synchronous>, transform_indices = @transform_15, window_bounds = array<i64: 9, 1, 16>}, {pipeline_mode = #tpu.pipeline_mode<synchronous>, transform_indices = @transform_16, window_bounds = array<i64: 1, 1>}, {pipeline_mode = #tpu.pipeline_mode<synchronous>, transform_indices = @transform_17, window_bounds = array<i64: 9, 1, 16>}, {transform_indices = @transform_18, window_bounds = array<i64: 1, 3, 8, 16>}]} {
    %c0 = arith.constant 0 : index
    %c0_0 = arith.constant 0 : index
    %c0_1 = arith.constant 0 : index
    %c0_2 = arith.constant 0 : index
    %0 = vector.load %arg1[%c0, %c0_0, %c0_1, %c0_2] : memref<1x9x8x16xf32, #tpu.memory_space<vmem>>, vector<1x9x8x16xf32>
    %1 = vector.shape_cast %0 : vector<1x9x8x16xf32> to vector<9x8x16xf32>
    %2 = vector.shape_cast %1 : vector<9x8x16xf32> to vector<72x16xf32>
    %c0_3 = arith.constant 0 : index
    %c0_4 = arith.constant 0 : index
    %c0_5 = arith.constant 0 : index
    %3 = vector.load %arg15[%c0_3, %c0_4, %c0_5] : memref<1x8x16xf32, #tpu.memory_space<vmem>>, vector<1x8x16xf32>
    %c0_6 = arith.constant 0 : index
    %c0_7 = arith.constant 0 : index
    %c0_8 = arith.constant 0 : index
    %4 = vector.load %arg16[%c0_6, %c0_7, %c0_8] : memref<9x1x16xf32, #tpu.memory_space<vmem>>, vector<9x1x16xf32>
    %c0_9 = arith.constant 0 : index
    %c0_10 = arith.constant 0 : index
    %c0_11 = arith.constant 0 : index
    %c0_12 = arith.constant 0 : index
    %5 = vector.load %arg3[%c0_9, %c0_10, %c0_11, %c0_12] : memref<1x9x1x16xf32, #tpu.memory_space<vmem>>, vector<1x9x1x16xf32>
    %6 = vector.shape_cast %5 : vector<1x9x1x16xf32> to vector<9x1x16xf32>
    %7 = vector.broadcast %6 : vector<9x1x16xf32> to vector<9x8x16xf32>
    %8 = arith.addf %1, %7 : vector<9x8x16xf32>
    %c0_13 = arith.constant 0 : index
    %c0_14 = arith.constant 0 : index
    %c0_15 = arith.constant 0 : index
    %c0_16 = arith.constant 0 : index
    %9 = vector.load %arg4[%c0_13, %c0_14, %c0_15, %c0_16] : memref<1x1x8x16xf32, #tpu.memory_space<vmem>>, vector<1x1x8x16xf32>
    %10 = vector.shape_cast %9 : vector<1x1x8x16xf32> to vector<1x8x16xf32>
    %11 = vector.broadcast %10 : vector<1x8x16xf32> to vector<9x8x16xf32>
    %12 = arith.addf %8, %11 : vector<9x8x16xf32>
    %13 = vector.broadcast %3 : vector<1x8x16xf32> to vector<9x8x16xf32>
    %14 = arith.mulf %12, %13 : vector<9x8x16xf32>
    %15 = vector.broadcast %4 : vector<9x1x16xf32> to vector<9x8x16xf32>
    %16 = arith.mulf %14, %15 : vector<9x8x16xf32>
    %17 = vector.shape_cast %16 : vector<9x8x16xf32> to vector<72x16xf32>
    %c0_17 = arith.constant 0 : index
    %c0_18 = arith.constant 0 : index
    %18 = vector.load %arg5[%c0_17, %c0_18] : memref<16x32xf32, #tpu.memory_space<vmem>>, vector<16x32xf32>
    %cst = arith.constant dense<0.000000e+00> : vector<72x32xf32>
    %19 = tpu.matmul %17, %18, %cst {dimension_numbers = #tpu.dot_dimension_numbers<[1], [0], [0], [1], [0, 0, 1, 1], [], []>} : vector<72x16xf32>, vector<16x32xf32>, vector<72x32xf32> -> vector<72x32xf32>
    %c0_19 = arith.constant 0 : index
    %c0_20 = arith.constant 0 : index
    %20 = vector.load %arg6[%c0_19, %c0_20] : memref<1x32xf32, #tpu.memory_space<vmem>>, vector<1x32xf32>
    %21 = vector.broadcast %20 : vector<1x32xf32> to vector<72x32xf32>
    %22 = arith.addf %19, %21 : vector<72x32xf32>
    %23 = vector.extract_strided_slice %22 {offsets = [0, 0], sizes = [72, 16], strides = [1, 1]} : vector<72x32xf32> to vector<72x16xf32>
    %24 = vector.extract_strided_slice %22 {offsets = [0, 16], sizes = [72, 16], strides = [1, 1]} : vector<72x32xf32> to vector<72x16xf32>
    %25 = arith.negf %24 : vector<72x16xf32>
    %26 = math.exp %25 : vector<72x16xf32>
    %cst_21 = arith.constant 1.000000e+00 : f32
    %27 = vector.broadcast %cst_21 : f32 to vector<72x16xf32>
    %28 = arith.addf %27, %26 : vector<72x16xf32>
    %29 = arith.divf %27, %28 : vector<72x16xf32>
    %30 = arith.mulf %23, %29 : vector<72x16xf32>
    %cst_22 = arith.constant 2.000000e+00 : f32
    %31 = vector.broadcast %cst_22 : f32 to vector<72x16xf32>
    %32 = arith.mulf %31, %2 : vector<72x16xf32>
    %33 = arith.addf %30, %32 : vector<72x16xf32>
    %c0_23 = arith.constant 0 : index
    %c0_24 = arith.constant 0 : index
    %c0_25 = arith.constant 0 : index
    %34 = vector.load %arg18[%c0_23, %c0_24, %c0_25] : memref<9x1x16xf32, #tpu.memory_space<vmem>>, vector<9x1x16xf32>
    %c0_26 = arith.constant 0 : index
    %c0_27 = arith.constant 0 : index
    %35 = vector.load %arg17[%c0_26, %c0_27] : memref<1x1xf32, #tpu.memory_space<vmem>>, vector<1x1xf32>
    %c0_28 = arith.constant 0 : index
    %c0_29 = arith.constant 0 : index
    %c0_30 = arith.constant 0 : index
    %c0_31 = arith.constant 0 : index
    %36 = vector.load %arg9[%c0_28, %c0_29, %c0_30, %c0_31] : memref<1x9x1x16xf32, #tpu.memory_space<vmem>>, vector<1x9x1x16xf32>
    %37 = vector.shape_cast %36 : vector<1x9x1x16xf32> to vector<9x1x16xf32>
    %38 = vector.broadcast %37 : vector<9x1x16xf32> to vector<9x8x16xf32>
    %39 = arith.addf %1, %38 : vector<9x8x16xf32>
    %c0_32 = arith.constant 0 : index
    %c0_33 = arith.constant 0 : index
    %c0_34 = arith.constant 0 : index
    %c0_35 = arith.constant 0 : index
    %40 = vector.load %arg10[%c0_32, %c0_33, %c0_34, %c0_35] : memref<1x1x8x16xf32, #tpu.memory_space<vmem>>, vector<1x1x8x16xf32>
    %41 = vector.shape_cast %40 : vector<1x1x8x16xf32> to vector<1x8x16xf32>
    %42 = vector.broadcast %41 : vector<1x8x16xf32> to vector<9x8x16xf32>
    %43 = arith.addf %39, %42 : vector<9x8x16xf32>
    %44 = vector.broadcast %34 : vector<9x1x16xf32> to vector<9x8x16xf32>
    %45 = arith.mulf %43, %44 : vector<9x8x16xf32>
    %46 = vector.shape_cast %35 : vector<1x1xf32> to vector<1x1x1xf32>
    %47 = vector.broadcast %46 : vector<1x1x1xf32> to vector<9x8x16xf32>
    %48 = arith.mulf %45, %47 : vector<9x8x16xf32>
    %49 = vector.shape_cast %48 : vector<9x8x16xf32> to vector<72x16xf32>
    %c0_36 = arith.constant 0 : index
    %c0_37 = arith.constant 0 : index
    %50 = vector.load %arg11[%c0_36, %c0_37] : memref<16x32xf32, #tpu.memory_space<vmem>>, vector<16x32xf32>
    %cst_38 = arith.constant dense<0.000000e+00> : vector<72x32xf32>
    %51 = tpu.matmul %49, %50, %cst_38 {dimension_numbers = #tpu.dot_dimension_numbers<[1], [0], [0], [1], [0, 0, 1, 1], [], []>} : vector<72x16xf32>, vector<16x32xf32>, vector<72x32xf32> -> vector<72x32xf32>
    %c0_39 = arith.constant 0 : index
    %c0_40 = arith.constant 0 : index
    %52 = vector.load %arg12[%c0_39, %c0_40] : memref<1x32xf32, #tpu.memory_space<vmem>>, vector<1x32xf32>
    %53 = vector.broadcast %52 : vector<1x32xf32> to vector<72x32xf32>
    %54 = arith.addf %51, %53 : vector<72x32xf32>
    %55 = vector.extract_strided_slice %54 {offsets = [0, 0], sizes = [72, 16], strides = [1, 1]} : vector<72x32xf32> to vector<72x16xf32>
    %56 = vector.extract_strided_slice %54 {offsets = [0, 16], sizes = [72, 16], strides = [1, 1]} : vector<72x32xf32> to vector<72x16xf32>
    %57 = arith.negf %56 : vector<72x16xf32>
    %58 = math.exp %57 : vector<72x16xf32>
    %cst_41 = arith.constant 1.000000e+00 : f32
    %59 = vector.broadcast %cst_41 : f32 to vector<72x16xf32>
    %60 = arith.addf %59, %58 : vector<72x16xf32>
    %61 = arith.divf %59, %60 : vector<72x16xf32>
    %62 = arith.mulf %55, %61 : vector<72x16xf32>
    %cst_42 = arith.constant 2.000000e+00 : f32
    %63 = vector.broadcast %cst_42 : f32 to vector<72x16xf32>
    %64 = arith.mulf %63, %2 : vector<72x16xf32>
    %65 = arith.addf %62, %64 : vector<72x16xf32>
    %c0_43 = arith.constant 0 : index
    %c0_44 = arith.constant 0 : index
    %66 = vector.load %arg7[%c0_43, %c0_44] : memref<24x72xf32, #tpu.memory_space<vmem>>, vector<24x72xf32>
    %cst_45 = arith.constant dense<0.000000e+00> : vector<24x16xf32>
    %67 = tpu.matmul %66, %33, %cst_45 {dimension_numbers = #tpu.dot_dimension_numbers<[1], [0], [0], [1], [0, 0, 1, 1], [], []>} : vector<24x72xf32>, vector<72x16xf32>, vector<24x16xf32> -> vector<24x16xf32>
    %c0_46 = arith.constant 0 : index
    %c0_47 = arith.constant 0 : index
    %68 = vector.load %arg8[%c0_46, %c0_47] : memref<24x1xf32, #tpu.memory_space<vmem>>, vector<24x1xf32>
    %69 = vector.broadcast %68 : vector<24x1xf32> to vector<24x16xf32>
    %70 = arith.addf %67, %69 : vector<24x16xf32>
    %c0_48 = arith.constant 0 : index
    %c0_49 = arith.constant 0 : index
    %71 = vector.load %arg13[%c0_48, %c0_49] : memref<24x72xf32, #tpu.memory_space<vmem>>, vector<24x72xf32>
    %cst_50 = arith.constant dense<0.000000e+00> : vector<24x16xf32>
    %72 = tpu.matmul %71, %65, %cst_50 {dimension_numbers = #tpu.dot_dimension_numbers<[1], [0], [0], [1], [0, 0, 1, 1], [], []>} : vector<24x72xf32>, vector<72x16xf32>, vector<24x16xf32> -> vector<24x16xf32>
    %c0_51 = arith.constant 0 : index
    %c0_52 = arith.constant 0 : index
    %73 = vector.load %arg14[%c0_51, %c0_52] : memref<24x1xf32, #tpu.memory_space<vmem>>, vector<24x1xf32>
    %74 = vector.broadcast %73 : vector<24x1xf32> to vector<24x16xf32>
    %75 = arith.addf %72, %74 : vector<24x16xf32>
    %c0_53 = arith.constant 0 : index
    %c0_54 = arith.constant 0 : index
    %c0_55 = arith.constant 0 : index
    %c0_56 = arith.constant 0 : index
    %76 = vector.load %arg2[%c0_53, %c0_54, %c0_55, %c0_56] : memref<1x3x8x16xf32, #tpu.memory_space<vmem>>, vector<1x3x8x16xf32>
    %77 = vector.shape_cast %76 : vector<1x3x8x16xf32> to vector<3x8x16xf32>
    %78 = arith.addf %70, %75 : vector<24x16xf32>
    %79 = vector.shape_cast %78 : vector<24x16xf32> to vector<3x8x16xf32>
    %80 = arith.addf %77, %79 : vector<3x8x16xf32>
    %c0_57 = arith.constant 0 : index
    %c0_58 = arith.constant 0 : index
    %c0_59 = arith.constant 0 : index
    %c0_60 = arith.constant 0 : index
    %81 = vector.load %arg19[%c0_57, %c0_58, %c0_59, %c0_60] : memref<1x3x8x16xf32, #tpu.memory_space<vmem>>, vector<1x3x8x16xf32>
    %82 = vector.shape_cast %81 : vector<1x3x8x16xf32> to vector<3x8x16xf32>
    %83 = vector.shape_cast %80 : vector<3x8x16xf32> to vector<1x3x8x16xf32>
    tpu.vector_store %arg19[%c0_57, %c0_58, %c0_59, %c0_60], %83 {strides = array<i32>} : memref<1x3x8x16xf32, #tpu.memory_space<vmem>>, vector<1x3x8x16xf32>,
    return
  }
  func.func @transform_0(%arg0: i32) -> (i32, i32, i32, i32) {
    %c0_i32 = arith.constant 0 : i32
    %c0_i32_0 = arith.constant 0 : i32
    %c0_i32_1 = arith.constant 0 : i32
    %c0_i32_2 = arith.constant 0 : i32
    return %arg0, %c0_i32, %c0_i32_0, %c0_i32_1 : i32, i32, i32, i32
  }
  func.func @transform_1(%arg0: i32) -> (i32, i32, i32, i32) {
    %c0_i32 = arith.constant 0 : i32
    %c0_i32_0 = arith.constant 0 : i32
    %c0_i32_1 = arith.constant 0 : i32
    %c0_i32_2 = arith.constant 0 : i32
    return %arg0, %c0_i32, %c0_i32_0, %c0_i32_1 : i32, i32, i32, i32
  }
  func.func @transform_2(%arg0: i32) -> (i32, i32, i32, i32) {
    %c0_i32 = arith.constant 0 : i32
    %c0_i32_0 = arith.constant 0 : i32
    %c0_i32_1 = arith.constant 0 : i32
    %c0_i32_2 = arith.constant 0 : i32
    %c0_i32_3 = arith.constant 0 : i32
    return %c0_i32, %c0_i32_0, %c0_i32_1, %c0_i32_2 : i32, i32, i32, i32
  }
  func.func @transform_3(%arg0: i32) -> (i32, i32, i32, i32) {
    %c0_i32 = arith.constant 0 : i32
    %c0_i32_0 = arith.constant 0 : i32
    %c0_i32_1 = arith.constant 0 : i32
    %c0_i32_2 = arith.constant 0 : i32
    %c0_i32_3 = arith.constant 0 : i32
    return %c0_i32, %c0_i32_0, %c0_i32_1, %c0_i32_2 : i32, i32, i32, i32
  }
  func.func @transform_4(%arg0: i32) -> (i32, i32) {
    %c0_i32 = arith.constant 0 : i32
    %c0_i32_0 = arith.constant 0 : i32
    %c0_i32_1 = arith.constant 0 : i32
    return %c0_i32, %c0_i32_0 : i32, i32
  }
  func.func @transform_5(%arg0: i32) -> (i32, i32) {
    %c0_i32 = arith.constant 0 : i32
    %c0_i32_0 = arith.constant 0 : i32
    %c0_i32_1 = arith.constant 0 : i32
    return %c0_i32, %c0_i32_0 : i32, i32
  }
  func.func @transform_6(%arg0: i32) -> (i32, i32) {
    %c0_i32 = arith.constant 0 : i32
    %c0_i32_0 = arith.constant 0 : i32
    %c0_i32_1 = arith.constant 0 : i32
    return %c0_i32, %c0_i32_0 : i32, i32
  }
  func.func @transform_7(%arg0: i32) -> (i32, i32) {
    %c0_i32 = arith.constant 0 : i32
    %c0_i32_0 = arith.constant 0 : i32
    %c0_i32_1 = arith.constant 0 : i32
    return %c0_i32, %c0_i32_0 : i32, i32
  }
  func.func @transform_8(%arg0: i32) -> (i32, i32, i32, i32) {
    %c0_i32 = arith.constant 0 : i32
    %c0_i32_0 = arith.constant 0 : i32
    %c0_i32_1 = arith.constant 0 : i32
    %c0_i32_2 = arith.constant 0 : i32
    %c0_i32_3 = arith.constant 0 : i32
    return %c0_i32, %c0_i32_0, %c0_i32_1, %c0_i32_2 : i32, i32, i32, i32
  }
  func.func @transform_9(%arg0: i32) -> (i32, i32, i32, i32) {
    %c0_i32 = arith.constant 0 : i32
    %c0_i32_0 = arith.constant 0 : i32
    %c0_i32_1 = arith.constant 0 : i32
    %c0_i32_2 = arith.constant 0 : i32
    %c0_i32_3 = arith.constant 0 : i32
    return %c0_i32, %c0_i32_0, %c0_i32_1, %c0_i32_2 : i32, i32, i32, i32
  }
  func.func @transform_10(%arg0: i32) -> (i32, i32) {
    %c0_i32 = arith.constant 0 : i32
    %c0_i32_0 = arith.constant 0 : i32
    %c0_i32_1 = arith.constant 0 : i32
    return %c0_i32, %c0_i32_0 : i32, i32
  }
  func.func @transform_11(%arg0: i32) -> (i32, i32) {
    %c0_i32 = arith.constant 0 : i32
    %c0_i32_0 = arith.constant 0 : i32
    %c0_i32_1 = arith.constant 0 : i32
    return %c0_i32, %c0_i32_0 : i32, i32
  }
  func.func @transform_12(%arg0: i32) -> (i32, i32) {
    %c0_i32 = arith.constant 0 : i32
    %c0_i32_0 = arith.constant 0 : i32
    %c0_i32_1 = arith.constant 0 : i32
    return %c0_i32, %c0_i32_0 : i32, i32
  }
  func.func @transform_13(%arg0: i32) -> (i32, i32) {
    %c0_i32 = arith.constant 0 : i32
    %c0_i32_0 = arith.constant 0 : i32
    %c0_i32_1 = arith.constant 0 : i32
    return %c0_i32, %c0_i32_0 : i32, i32
  }
  func.func @transform_14(%arg0: i32) -> (i32, i32, i32) {
    %c0_i32 = arith.constant 0 : i32
    %c0_i32_0 = arith.constant 0 : i32
    %c0_i32_1 = arith.constant 0 : i32
    %c0_i32_2 = arith.constant 0 : i32
    return %c0_i32, %c0_i32_0, %c0_i32_1 : i32, i32, i32
  }
  func.func @transform_15(%arg0: i32) -> (i32, i32, i32) {
    %c0_i32 = arith.constant 0 : i32
    %c0_i32_0 = arith.constant 0 : i32
    %c0_i32_1 = arith.constant 0 : i32
    %c0_i32_2 = arith.constant 0 : i32
    return %c0_i32, %c0_i32_0, %c0_i32_1 : i32, i32, i32
  }
  func.func @transform_16(%arg0: i32) -> (i32, i32) {
    %c0_i32 = arith.constant 0 : i32
    %c0_i32_0 = arith.constant 0 : i32
    %c0_i32_1 = arith.constant 0 : i32
    return %c0_i32, %c0_i32_0 : i32, i32
  }
  func.func @transform_17(%arg0: i32) -> (i32, i32, i32) {
    %c0_i32 = arith.constant 0 : i32
    %c0_i32_0 = arith.constant 0 : i32
    %c0_i32_1 = arith.constant 0 : i32
    %c0_i32_2 = arith.constant 0 : i32
    return %c0_i32, %c0_i32_0, %c0_i32_1 : i32, i32, i32
  }
  func.func @transform_18(%arg0: i32) -> (i32, i32, i32, i32) {
    %c0_i32 = arith.constant 0 : i32
    %c0_i32_0 = arith.constant 0 : i32
    %c0_i32_1 = arith.constant 0 : i32
    %c0_i32_2 = arith.constant 0 : i32
    return %arg0, %c0_i32, %c0_i32_0, %c0_i32_1 : i32, i32, i32, i32
  }
}

module attributes {stable_mosaic.version = 11 : i64} {
  func.func @_output_kernel(%arg0: memref<16x48xf32, #tpu.memory_space<vmem>>, %arg1: memref<3x48x128xf32, #tpu.memory_space<vmem>>, %arg2: memref<3x1x128xf32, #tpu.memory_space<vmem>>, %arg3: memref<8x128xf32, #tpu.memory_space<vmem>>, %arg4: memref<3x1x128xf32, #tpu.memory_space<vmem>>, %arg5: memref<3x2x8xf32, #tpu.memory_space<vmem>>) attributes {dimension_semantics = [], scalar_prefetch = 0 : i64, scratch_operands = 0 : i64, tpu.core_type = #tpu.core_type<tc>} {
    %c0 = arith.constant 0 : index
    %c0_0 = arith.constant 0 : index
    %0 = vector.load %arg0[%c0, %c0_0] : memref<16x48xf32, #tpu.memory_space<vmem>>, vector<16x48xf32>
    %c0_1 = arith.constant 0 : index
    %c0_2 = arith.constant 0 : index
    %c0_3 = arith.constant 0 : index
    %1 = vector.load %arg1[%c0_1, %c0_2, %c0_3] : memref<3x48x128xf32, #tpu.memory_space<vmem>>, vector<1x48x128xf32>
    %2 = vector.shape_cast %1 : vector<1x48x128xf32> to vector<48x128xf32>
    %cst = arith.constant dense<0.000000e+00> : vector<16x128xf32>
    %3 = tpu.matmul %0, %2, %cst {dimension_numbers = #tpu.dot_dimension_numbers<[1], [0], [0], [1], [0, 0, 1, 1], [], []>} : vector<16x48xf32>, vector<48x128xf32>, vector<16x128xf32> -> vector<16x128xf32>
    %cst_4 = arith.constant 0.000000e+00 : f32
    %4 = vector.broadcast %cst_4 : f32 to vector<16x128xf32>
    %5 = arith.maximumf %3, %4 : vector<16x128xf32>
    %6 = vector.shape_cast %5 : vector<16x128xf32> to vector<2x8x128xf32>
    %c0_5 = arith.constant 0 : index
    %c0_6 = arith.constant 0 : index
    %c0_7 = arith.constant 0 : index
    %7 = vector.load %arg2[%c0_5, %c0_6, %c0_7] : memref<3x1x128xf32, #tpu.memory_space<vmem>>, vector<1x1x128xf32>
    %8 = vector.shape_cast %7 : vector<1x1x128xf32> to vector<1x128xf32>
    %9 = vector.shape_cast %8 : vector<1x128xf32> to vector<1x1x128xf32>
    %10 = vector.broadcast %9 : vector<1x1x128xf32> to vector<2x8x128xf32>
    %11 = arith.addf %6, %10 : vector<2x8x128xf32>
    %c0_8 = arith.constant 0 : index
    %c0_9 = arith.constant 0 : index
    %12 = vector.load %arg3[%c0_8, %c0_9] : memref<8x128xf32, #tpu.memory_space<vmem>>, vector<8x128xf32>
    %13 = vector.shape_cast %12 : vector<8x128xf32> to vector<1x8x128xf32>
    %14 = vector.broadcast %13 : vector<1x8x128xf32> to vector<2x8x128xf32>
    %15 = arith.addf %11, %14 : vector<2x8x128xf32>
    %c0_10 = arith.constant 0 : index
    %c0_11 = arith.constant 0 : index
    %c0_12 = arith.constant 0 : index
    %16 = vector.load %arg4[%c0_10, %c0_11, %c0_12] : memref<3x1x128xf32, #tpu.memory_space<vmem>>, vector<1x1x128xf32>
    %17 = vector.shape_cast %16 : vector<1x1x128xf32> to vector<1x128xf32>
    %18 = vector.shape_cast %17 : vector<1x128xf32> to vector<1x1x128xf32>
    %19 = vector.broadcast %18 : vector<1x1x128xf32> to vector<2x8x128xf32>
    %20 = arith.mulf %15, %19 : vector<2x8x128xf32>
    %cst_13 = arith.constant dense<0.000000e+00> : vector<2x8xf32>
    %21 = vector.multi_reduction <add>, %20, %cst_13 [2] : vector<2x8x128xf32> to vector<2x8xf32>
    %c0_14 = arith.constant 0 : index
    %c0_15 = arith.constant 0 : index
    %c0_16 = arith.constant 0 : index
    %22 = vector.load %arg5[%c0_14, %c0_15, %c0_16] : memref<3x2x8xf32, #tpu.memory_space<vmem>>, vector<1x2x8xf32>
    %23 = vector.shape_cast %22 : vector<1x2x8xf32> to vector<2x8xf32>
    %24 = vector.shape_cast %21 : vector<2x8xf32> to vector<1x2x8xf32>
    tpu.vector_store %arg5[%c0_14, %c0_15, %c0_16], %24 {strides = array<i32>} : memref<3x2x8xf32, #tpu.memory_space<vmem>>, vector<1x2x8xf32>,
    %c1 = arith.constant 1 : index
    %c0_17 = arith.constant 0 : index
    %c0_18 = arith.constant 0 : index
    %25 = vector.load %arg1[%c1, %c0_17, %c0_18] : memref<3x48x128xf32, #tpu.memory_space<vmem>>, vector<1x48x128xf32>
    %26 = vector.shape_cast %25 : vector<1x48x128xf32> to vector<48x128xf32>
    %cst_19 = arith.constant dense<0.000000e+00> : vector<16x128xf32>
    %27 = tpu.matmul %0, %26, %cst_19 {dimension_numbers = #tpu.dot_dimension_numbers<[1], [0], [0], [1], [0, 0, 1, 1], [], []>} : vector<16x48xf32>, vector<48x128xf32>, vector<16x128xf32> -> vector<16x128xf32>
    %cst_20 = arith.constant 0.000000e+00 : f32
    %28 = vector.broadcast %cst_20 : f32 to vector<16x128xf32>
    %29 = arith.maximumf %27, %28 : vector<16x128xf32>
    %30 = vector.shape_cast %29 : vector<16x128xf32> to vector<2x8x128xf32>
    %c1_21 = arith.constant 1 : index
    %c0_22 = arith.constant 0 : index
    %c0_23 = arith.constant 0 : index
    %31 = vector.load %arg2[%c1_21, %c0_22, %c0_23] : memref<3x1x128xf32, #tpu.memory_space<vmem>>, vector<1x1x128xf32>
    %32 = vector.shape_cast %31 : vector<1x1x128xf32> to vector<1x128xf32>
    %33 = vector.shape_cast %32 : vector<1x128xf32> to vector<1x1x128xf32>
    %34 = vector.broadcast %33 : vector<1x1x128xf32> to vector<2x8x128xf32>
    %35 = arith.addf %30, %34 : vector<2x8x128xf32>
    %c0_24 = arith.constant 0 : index
    %c0_25 = arith.constant 0 : index
    %36 = vector.load %arg3[%c0_24, %c0_25] : memref<8x128xf32, #tpu.memory_space<vmem>>, vector<8x128xf32>
    %37 = vector.shape_cast %36 : vector<8x128xf32> to vector<1x8x128xf32>
    %38 = vector.broadcast %37 : vector<1x8x128xf32> to vector<2x8x128xf32>
    %39 = arith.addf %35, %38 : vector<2x8x128xf32>
    %c1_26 = arith.constant 1 : index
    %c0_27 = arith.constant 0 : index
    %c0_28 = arith.constant 0 : index
    %40 = vector.load %arg4[%c1_26, %c0_27, %c0_28] : memref<3x1x128xf32, #tpu.memory_space<vmem>>, vector<1x1x128xf32>
    %41 = vector.shape_cast %40 : vector<1x1x128xf32> to vector<1x128xf32>
    %42 = vector.shape_cast %41 : vector<1x128xf32> to vector<1x1x128xf32>
    %43 = vector.broadcast %42 : vector<1x1x128xf32> to vector<2x8x128xf32>
    %44 = arith.mulf %39, %43 : vector<2x8x128xf32>
    %cst_29 = arith.constant dense<0.000000e+00> : vector<2x8xf32>
    %45 = vector.multi_reduction <add>, %44, %cst_29 [2] : vector<2x8x128xf32> to vector<2x8xf32>
    %c1_30 = arith.constant 1 : index
    %c0_31 = arith.constant 0 : index
    %c0_32 = arith.constant 0 : index
    %46 = vector.load %arg5[%c1_30, %c0_31, %c0_32] : memref<3x2x8xf32, #tpu.memory_space<vmem>>, vector<1x2x8xf32>
    %47 = vector.shape_cast %46 : vector<1x2x8xf32> to vector<2x8xf32>
    %48 = vector.shape_cast %45 : vector<2x8xf32> to vector<1x2x8xf32>
    tpu.vector_store %arg5[%c1_30, %c0_31, %c0_32], %48 {strides = array<i32>} : memref<3x2x8xf32, #tpu.memory_space<vmem>>, vector<1x2x8xf32>,
    %c2 = arith.constant 2 : index
    %c0_33 = arith.constant 0 : index
    %c0_34 = arith.constant 0 : index
    %49 = vector.load %arg1[%c2, %c0_33, %c0_34] : memref<3x48x128xf32, #tpu.memory_space<vmem>>, vector<1x48x128xf32>
    %50 = vector.shape_cast %49 : vector<1x48x128xf32> to vector<48x128xf32>
    %cst_35 = arith.constant dense<0.000000e+00> : vector<16x128xf32>
    %51 = tpu.matmul %0, %50, %cst_35 {dimension_numbers = #tpu.dot_dimension_numbers<[1], [0], [0], [1], [0, 0, 1, 1], [], []>} : vector<16x48xf32>, vector<48x128xf32>, vector<16x128xf32> -> vector<16x128xf32>
    %cst_36 = arith.constant 0.000000e+00 : f32
    %52 = vector.broadcast %cst_36 : f32 to vector<16x128xf32>
    %53 = arith.maximumf %51, %52 : vector<16x128xf32>
    %54 = vector.shape_cast %53 : vector<16x128xf32> to vector<2x8x128xf32>
    %c2_37 = arith.constant 2 : index
    %c0_38 = arith.constant 0 : index
    %c0_39 = arith.constant 0 : index
    %55 = vector.load %arg2[%c2_37, %c0_38, %c0_39] : memref<3x1x128xf32, #tpu.memory_space<vmem>>, vector<1x1x128xf32>
    %56 = vector.shape_cast %55 : vector<1x1x128xf32> to vector<1x128xf32>
    %57 = vector.shape_cast %56 : vector<1x128xf32> to vector<1x1x128xf32>
    %58 = vector.broadcast %57 : vector<1x1x128xf32> to vector<2x8x128xf32>
    %59 = arith.addf %54, %58 : vector<2x8x128xf32>
    %c0_40 = arith.constant 0 : index
    %c0_41 = arith.constant 0 : index
    %60 = vector.load %arg3[%c0_40, %c0_41] : memref<8x128xf32, #tpu.memory_space<vmem>>, vector<8x128xf32>
    %61 = vector.shape_cast %60 : vector<8x128xf32> to vector<1x8x128xf32>
    %62 = vector.broadcast %61 : vector<1x8x128xf32> to vector<2x8x128xf32>
    %63 = arith.addf %59, %62 : vector<2x8x128xf32>
    %c2_42 = arith.constant 2 : index
    %c0_43 = arith.constant 0 : index
    %c0_44 = arith.constant 0 : index
    %64 = vector.load %arg4[%c2_42, %c0_43, %c0_44] : memref<3x1x128xf32, #tpu.memory_space<vmem>>, vector<1x1x128xf32>
    %65 = vector.shape_cast %64 : vector<1x1x128xf32> to vector<1x128xf32>
    %66 = vector.shape_cast %65 : vector<1x128xf32> to vector<1x1x128xf32>
    %67 = vector.broadcast %66 : vector<1x1x128xf32> to vector<2x8x128xf32>
    %68 = arith.mulf %63, %67 : vector<2x8x128xf32>
    %cst_45 = arith.constant dense<0.000000e+00> : vector<2x8xf32>
    %69 = vector.multi_reduction <add>, %68, %cst_45 [2] : vector<2x8x128xf32> to vector<2x8xf32>
    %c2_46 = arith.constant 2 : index
    %c0_47 = arith.constant 0 : index
    %c0_48 = arith.constant 0 : index
    %70 = vector.load %arg5[%c2_46, %c0_47, %c0_48] : memref<3x2x8xf32, #tpu.memory_space<vmem>>, vector<1x2x8xf32>
    %71 = vector.shape_cast %70 : vector<1x2x8xf32> to vector<2x8xf32>
    %72 = vector.shape_cast %69 : vector<2x8xf32> to vector<1x2x8xf32>
    tpu.vector_store %arg5[%c2_46, %c0_47, %c0_48], %72 {strides = array<i32>} : memref<3x2x8xf32, #tpu.memory_space<vmem>>, vector<1x2x8xf32>,
    return
  }
}

</mosaic_0001>

<bundles_post_ra>
// kernel: _lambda_.5
= control target key start
LH: loop header
LB: loop body
LE: loop exit
PB: predicated region body
PF: predicated region fallthrough
CT: control target
= control target key end

     0   :  { %s1174_s0 = inlined_call_operand.vmem [shape: f32[144,2], index: 0, kind: input, shape index: {}]   ;;  %s1175_s1 = inlined_call_operand.vmem [shape: f32[2,16], index: 1, kind: input, shape index: {}]   ;;  %s1176_s2 = inlined_call_operand.vmem [shape: f32[1,16], index: 2, kind: input, shape index: {}]   ;;  %s1177_s3 = inlined_call_operand.vmem [shape: f32[32,8], index: 3, kind: input, shape index: {}]   ;;  %s1178_s4 = inlined_call_operand.vmem [shape: f32[8,32], index: 4, kind: input, shape index: {}]   ;;  %s1179_s5 = inlined_call_operand.vmem [shape: f32[8,8], index: 5, kind: input, shape index: {}]   ;;  %s1180_s6 = inlined_call_operand.vmem [shape: f32[8,8], index: 6, kind: input, shape index: {}]   ;;  %s1181_s7 = inlined_call_operand.vmem [shape: f32[8,8], index: 7, kind: input, shape index: {}]   ;;  %s1182_s8 = inlined_call_operand.vmem [shape: f32[8,8], index: 8, kind: input, shape index: {}]   ;;  %s1183_s9 = inlined_call_operand.vmem [shape: f32[9,9], index: 9, kind: input, shape index: {}]   ;;  %s1184_s10 = inlined_call_operand.vmem [shape: f32[9,9], index: 10, kind: input, shape index: {}]   ;;  %s1185_s11 = inlined_call_operand.vmem [shape: f32[144,16], index: 11, kind: output, shape index: {0}]   ;;  %s1186_s12 = inlined_call_operand.vmem [shape: f32[8,32], index: 12, kind: output, shape index: {1}]   ;;  %s1187_s13 = inlined_call_operand.vmem [shape: f32[8,1], index: 13, kind: output, shape index: {2}]   ;;  %s1188_s14 = inlined_call_operand.vmem [shape: f32[9,1], index: 14, kind: output, shape index: {3}]   ;;  %s1189_s15 = inlined_call_operand.hbm [shape: f32[1,1], index: 15, kind: output, shape index: {4}]   ;;  %s1190_s16 = inlined_call_operand.vmem [shape: f32[9,1], index: 16, kind: output, shape index: {5}]  }
   0x1   :  { %1192 = sst [smem:[#allocation5_spill]] %s1174_s0 }
   0x2   :  { %v304_v0 = vld [vmem:[%s1177_s3] sm:$0xff]  ;;  %v305_v1 = vld [vmem:[%s1177_s3 + $0x8] sm:$0xff]  ;;  %vm309_vm0 = vcmask 64512   ;;  %v831_v2 = vmov 0.0|0.0   ;;  %vm832_vm2 = vmmov 0   ;;  %v833_v4 = vmov 0.0  }
   0x3   :  { %781 = vmatprep.subr.bf16.mxu1 %v831_v2  ;;  %v782_v3 = vpack.c.bf16 %v305_v1, %v304_v0  ;;  %vm783_vm1 = vmpackc.low %vm309_vm0, %vm309_vm0  ;;  %768 = vmatprep.mubr.msk.f32.mxu1 %vm832_vm2, %v833_v4 }
   0x4   :  { %22 = vsyncpa [#allocation3], 0  ;;  %v306_v5 = vld [vmem:[%s1177_s3 + $0x10] sm:$0xff]  ;;  %v307_v6 = vld [vmem:[%s1177_s3 + $0x18] sm:$0xff]  ;;  %vm126_vm3 = vcmask 1041408   ;;  %s1193_s22 = sld [smem:[#allocation5_spill]]  ;;  %v405_v55 = vlaneseq }
   0x5   :  { %784 = vmatpush3.bf16.xpose.msk.msra.mxu1 %vm783_vm1, %v782_v3  ;;  %v786_v7 = vpack.c.bf16 %v307_v6, %v306_v5  ;;  %v412_v8 = vld [vmem:[%s1179_s5] sm:$0xff]  ;;  %vm71_vm4 = vcmask 15360   ;;  %vm392_vm5 = vcmask 261120   ;;  %vm612_vm8 = vcmask 72704  }
   0x6   :  { %785 = vmatprep.subr.bf16.mxu1 %v831_v2  ;;  %v504_v9 = vld [vmem:[%s1181_s7] sm:$0xff]  ;;  %v406_v58 = vshrl.u32 %v405_v55, 7  ;;  %v408_v59 = vand.u32 127, %v405_v55  ;;  %vm616_vm9 = vcmask 65536   ;;  %vm285_vm10 = vcmask 130048  }
   0x7   :  { %v505_v14 = vld [vmem:[%s1182_s8] sm:$0xff]  ;;  %vm502_vm11 = vcmask 7168   ;;  %vm602_vm12 = vcmask 0  }
   0x8   :  { %v413_v15 = vld [vmem:[%s1180_s6] sm:$0xff]  ;;  %vm409_vm6 = vcmp.eq.s32.totalorder %v406_v58, %v408_v59  ;;  %v604_v62 = vadd.s32 8, %v406_v58 }
   0x9   :  { %v63_v22 = vld [vmem:[%s1175_s1] sm:$0x3]  ;;  %v697_v0 = vsel %vm409_vm6, 1.0, %v833_v4 }
   0xa   :  { %v45_v23 = vld [vmem:[%s1193_s22] sm:$0xff]  ;;  %v46_v24 = vld [vmem:[%s1193_s22 + $0x8] sm:$0xff]  ;;  %731 = vmatprep.subr.msk.mxu0 %vm126_vm3, %v63_v22  ;;  %v47_v25 = vld [vmem:[%s1193_s22 + $0x10] sm:$0xff]  ;;  %vm605_vm7 = vcmp.eq.s32.totalorder %v604_v62, %v408_v59 }
   0xb   :  { %733 = vmatprep.mubr.msk.f32.mxu0 %vm71_vm4, %v45_v23  ;;  %732 = vmatpush3.msk.msra.mxu0 %vm126_vm3, %v63_v22  ;;  %v48_v26 = vld [vmem:[%s1193_s22 + $0x18] sm:$0xff]  ;;  %v49_v27 = vld [vmem:[%s1193_s22 + $0x20] sm:$0xff]  ;;  %v50_v28 = vld [vmem:[%s1193_s22 + $0x28] sm:$0xff] }
   0xc   :  { %734 = vmatmul.mubr.msk.f32.vlgmr.msra.gmra.mrb[0].mxu0 %vm71_vm4, %v46_v24  ;;  %v51_v29 = vld [vmem:[%s1193_s22 + $0x30] sm:$0xff]  ;;  %v52_v30 = vld [vmem:[%s1193_s22 + $0x38] sm:$0xff]  ;;  %v53_v31 = vld [vmem:[%s1193_s22 + $0x40] sm:$0xff] }
   0xd   :  { %788 = vmatpush3.bf16.xpose.msk.msra.mxu1 %vm783_vm1, %v786_v7  ;;  %736 = vmatprep.mubr.msk.f32.mxu0 %vm71_vm4, %v47_v25  ;;  %v54_v32 = vld [vmem:[%s1193_s22 + $0x48] sm:$0xff]  ;;  %v55_v33 = vld [vmem:[%s1193_s22 + $0x50] sm:$0xff]  ;;  %v56_v34 = vld [vmem:[%s1193_s22 + $0x58] sm:$0xff]  ;;  %v702_v7 = vsel %vm605_vm7, 1.0, %v833_v4 }
   0xe   :  { %771 = vmatprep.subr.mxu1 %v833_v4  ;;  %v57_v35 = vld [vmem:[%s1193_s22 + $0x60] sm:$0xff]  ;;  %v58_v49 = vld [vmem:[%s1193_s22 + $0x68] sm:$0xff]  ;;  %v59_v50 = vld [vmem:[%s1193_s22 + $0x70] sm:$0xff] }
   0xf   :  { %v308_v42 = vld [vmem:[%s1178_s4] sm:$0xff]  ;;  %v60_v51 = vld [vmem:[%s1193_s22 + $0x78] sm:$0xff]  ;;  %v62_v53 = vld [vmem:[%s1193_s22 + $0x88] sm:$0xff] }
  0x10   :  { %737 = vmatmul.mubr.msk.f32.gmra.mrb[2].mxu0 %vm71_vm4, %v48_v26  ;;  %v61_v52 = vld [vmem:[%s1193_s22 + $0x80] sm:$0xff] }
  0x11   :  { %739 = vmatprep.mubr.msk.f32.mxu0 %vm71_vm4, %v49_v27  ;;  %v608_v1 = vld [vmem:[%s1183_s9] sm:$0xff] }
  0x12   :  { %v610_v5 = vmul.f32 %v697_v0, %v608_v1  ;;  %v672_v24 = vld [vmem:[%s1176_s2] ss:$0 sm:$0xff] }
  0x14   :  { %769 = vmatmul.mubr.msk.f32.vlgmr.msra.gmra.mrb[0].mxu1 %vm309_vm0, %v307_v6  ;;  %740 = vmatmul.mubr.msk.f32.gmra.mrb[4].mxu0 %vm71_vm4, %v50_v28  ;;  %v624_v6 = vld [vmem:[%s1184_s10] sm:$0xff] }
  0x15   :  { %772 = vmatpush3.xpose.msk.msra.mxu1 %vm309_vm0, %v412_v8  ;;  %773 = vmatprep.mubr.msk.f32.mxu1 %vm832_vm2, %v833_v4 }
  0x16   :  { %776 = vmatprep.subr.mxu1 %v833_v4  ;;  %742 = vmatprep.mubr.msk.f32.mxu0 %vm71_vm4, %v51_v29 }
  0x18   :  { %774 = vmatmul.mubr.msk.f32.vlgmr.msra.gmra.mrb[2].mxu1 %vm309_vm0, %v412_v8  ;;  %743 = vmatmul.mubr.msk.f32.gmra.mrb[6].mxu0 %vm71_vm4, %v52_v30  ;;  %v609_v8 = vld [vmem:[%s1183_s9 + $0x8] sm:$0x1] }
  0x19   :  { %777 = vmatpush3.xpose.msk.msra.mxu1 %vm309_vm0, %v504_v9  ;;  %778 = vmatprep.mubr.msk.f32.mxu1 %vm832_vm2, %v833_v4 }
  0x1a   :  { %745 = vmatprep.mubr.msk.f32.mxu0 %vm71_vm4, %v53_v31 }
  0x1c   :  { %779 = vmatmul.mubr.msk.f32.vlgmr.msra.gmra.mrb[4].mxu1 %vm309_vm0, %v504_v9  ;;  %746 = vmatmul.mubr.msk.f32.gmra.mrb[8].mxu0 %vm71_vm4, %v54_v32 }
  0x1d   :  { %748 = vmatprep.mubr.msk.f32.mxu0 %vm71_vm4, %v55_v33 }
  0x20   :  { %749 = vmatmul.mubr.msk.f32.gmra.mrb[10].mxu0 %vm71_vm4, %v56_v34 }
  0x21   :  { %751 = vmatprep.mubr.msk.f32.mxu0 %vm71_vm4, %v57_v35 }
  0x24   :  { %752 = vmatmul.mubr.msk.f32.gmra.mrb[12].mxu0 %vm71_vm4, %v58_v49 }
  0x25   :  { %754 = vmatprep.mubr.msk.f32.mxu0 %vm71_vm4, %v59_v50 }
  0x28   :  { %755 = vmatmul.mubr.msk.f32.gmra.mrb[14].mxu0 %vm71_vm4, %v60_v51 }
  0x29   :  { %757 = vmatprep.mubr.msk.f32.mxu0 %vm71_vm4, %v61_v52 }
  0x2c   :  { %758 = vmatmul.mubr.msk.f32.gmra.mrb[16].mxu0 %vm71_vm4, %v62_v53 }
  0xdf   :  { %v735_v23 = vpop.f32.mrb[0].mxu0 }
  0xe0   :  { %v202_v25 = vadd.f32 %v735_v23, %v672_v24  ;;  %v196_v26 = vpop.f32.mrb[1].mxu0 }
  0xe1   :  { %v197_v27 = vadd.f32 %v672_v24, %v196_v26 }
  0xe2   :  { %287 = vst.msk [vmem:[%s1185_s11 + $0x8] sm:$0xff] %vm285_vm10, %v202_v25 }
  0xe3   :  { %v738_v28 = vpop.f32.mrb[2].mxu0  ;;  %286 = vst.msk [vmem:[%s1185_s11] sm:$0xff] %vm285_vm10, %v197_v27 }
  0xe4   :  { %v212_v29 = vadd.f32 %v738_v28, %v672_v24  ;;  %v206_v30 = vpop.f32.mrb[3].mxu0 }
  0xe5   :  { %v207_v31 = vadd.f32 %v672_v24, %v206_v30 }
  0xe6   :  { %289 = vst.msk [vmem:[%s1185_s11 + $0x18] sm:$0xff] %vm285_vm10, %v212_v29 }
  0xe7   :  { %v388_v10 = vpop.f32.mrb[0].mxu1  ;;  %v741_v32 = vpop.f32.mrb[4].mxu0  ;;  %288 = vst.msk [vmem:[%s1185_s11 + $0x10] sm:$0xff] %vm285_vm10, %v207_v31 }
  0xe8   :  { %v770_v11 = vpop.f32.mrb[1].mxu1  ;;  %v389_v44 = vadd.f32 %v388_v10, %v308_v42  ;;  %v222_v33 = vadd.f32 %v741_v32, %v672_v24  ;;  %v216_v34 = vpop.f32.mrb[5].mxu0 }
  0xe9   :  { %v613_v11 = vsel %vm612_vm8, %v610_v5, 0.0  ;;  %v217_v35 = vadd.f32 %v672_v24, %v216_v34 }
  0xea   :  { %v393_v47 = vsel %vm392_vm5, %v389_v44, -inf  ;;  %291 = vst.msk [vmem:[%s1185_s11 + $0x28] sm:$0xff] %vm285_vm10, %v222_v33 }
  0xeb   :  { %v483_v12 = vpop.f32.mrb[2].mxu1  ;;  %290 = vst.msk [vmem:[%s1185_s11 + $0x20] sm:$0xff] %vm285_vm10, %v217_v35 }
  0xec   :  { %v775_v13 = vpop.f32.mrb[3].mxu1  ;;  %v484_v19 = vadd.f32 %v483_v12, %v413_v15  ;;  %v626_v12 = vmul.f32 %v697_v0, %v624_v6  ;;  %v625_v15 = vld [vmem:[%s1184_s10 + $0x8] sm:$0x1] }
  0xed   :  { %v611_v13 = vmul.f32 %v702_v7, %v609_v8 }
  0xee   :  { %v487_v21 = vsel %vm309_vm0, %v484_v19, -inf }
  0xef   :  { %v575_v16 = vpop.f32.mrb[4].mxu1 }
  0xf0   :  { %v576_v17 = vadd.f32 %v575_v16, %v505_v14  ;;  %v780_v18 = vpop.f32.mrb[5].mxu1 }
  0xf1   :  { %v617_v18 = vsel %vm616_vm9, %v611_v13, 0.0 }
  0xf2   :  { %v579_v20 = vsel %vm309_vm0, %v576_v17, -inf }
  0xf3   :  { %580 = vmax.xlane.f32.xlu0 %v579_v20 }
  0xf7   :  { %488 = vmax.xlane.f32.xlu0 %v487_v21 }
 0x180   :  { %v581_v36 = vpop.xlane.xlu0 %580 }
 0x181   :  { %v582_v37 = vsub.f32 %v576_v17, %v581_v36  ;;  %v628_v17 = vsel %vm612_vm8, %v626_v12, 0.0  ;;  %v744_v36 = vpop.f32.mrb[6].mxu0 }
 0x183   :  { %v583_v38 = vmul.f32 1.442695, %v582_v37  ;;  %v232_v37 = vadd.f32 %v744_v36, %v672_v24 }
 0x184   :  { %v489_v39 = vpop.xlane.xlu0 %488 }
 0x185   :  { %795 = vpow2.f32 %v583_v38  ;;  %v490_v40 = vsub.f32 %v484_v19, %v489_v39  ;;  %v627_v19 = vmul.f32 %v702_v7, %v625_v15  ;;  %v226_v38 = vpop.f32.mrb[7].mxu0  ;;  %293 = vst.msk [vmem:[%s1185_s11 + $0x38] sm:$0xff] %vm285_vm10, %v232_v37 }
 0x186   :  { %v227_v39 = vadd.f32 %v672_v24, %v226_v38 }
 0x187   :  { %v491_v41 = vmul.f32 1.442695, %v490_v40  ;;  %v631_v21 = vsel %vm616_vm9, %v627_v19, 0.0  ;;  %v747_v40 = vpop.f32.mrb[8].mxu0 }
 0x188   :  { %v236_v42 = vpop.f32.mrb[9].mxu0  ;;  %292 = vst.msk [vmem:[%s1185_s11 + $0x30] sm:$0xff] %vm285_vm10, %v227_v39 }
 0x189   :  { %797 = vpow2.f32 %v491_v41  ;;  %v242_v41 = vadd.f32 %v747_v40, %v672_v24 }
 0x18b   :  { %295 = vst.msk [vmem:[%s1185_s11 + $0x48] sm:$0xff] %vm285_vm10, %v242_v41 }
 0x18f   :  { %v796_v43 = vpop.eup %795 }
 0x190   :  { %v585_v45 = vsel %vm309_vm0, %v796_v43, 0.0 }
 0x191   :  { %586 = vadd.xlane.f32.xlu1 %v585_v45 }
 0x193   :  { %v798_v46 = vpop.eup %797 }
 0x194   :  { %v493_v48 = vsel %vm309_vm0, %v798_v46, 0.0 }
 0x195   :  { %394 = vmax.xlane.f32.xlu1 %v393_v47  ;;  %494 = vadd.xlane.f32.xlu0 %v493_v48 }
 0x21e   :  { %v587_v54 = vpop.xlane.xlu1 %586 }
 0x21f   :  { %799 = vrcp.f32 %v587_v54 }
 0x222   :  { %v395_v56 = vpop.xlane.xlu1 %394  ;;  %v495_v57 = vpop.xlane.xlu0 %494 }
 0x223   :  { %v396_v60 = vsub.f32 %v389_v44, %v395_v56  ;;  %801 = vrcp.f32 %v495_v57  ;;  %v750_v44 = vpop.f32.mrb[10].mxu0 }
 0x224   :  { %v252_v45 = vadd.f32 %v750_v44, %v672_v24 }
 0x225   :  { %v397_v61 = vmul.f32 1.442695, %v396_v60 }
 0x226   :  { %297 = vst.msk [vmem:[%s1185_s11 + $0x58] sm:$0xff] %vm285_vm10, %v252_v45 }
 0x227   :  { %803 = vpow2.f32 %v397_v61 }
 0x229   :  { %v800_v63 = vpop.eup %799 }
 0x22a   :  { %v589_v2 = vmul.f32 %v800_v63, %v796_v43  ;;  %v237_v43 = vadd.f32 %v672_v24, %v236_v42 }
 0x22c   :  { %v590_v3 = vmul.f32 %v697_v0, %v589_v2  ;;  %294 = vst.msk [vmem:[%s1185_s11 + $0x40] sm:$0xff] %vm285_vm10, %v237_v43 }
 0x22d   :  { %v802_v10 = vpop.eup %801 }
 0x22e   :  { %v591_v9 = vsel %vm309_vm0, %v590_v3, 0.0  ;;  %v497_v16 = vmul.f32 %v802_v10, %v798_v46  ;;  %v246_v46 = vpop.f32.mrb[11].mxu0 }
 0x22f   :  { %592 = vadd.xlane.f32.xlu1 %v591_v9  ;;  %v247_v47 = vadd.f32 %v672_v24, %v246_v46  ;;  %v753_v48 = vpop.f32.mrb[12].mxu0 }
 0x230   :  { %v498_v20 = vmul.f32 %v697_v0, %v497_v16  ;;  %v262_v49 = vadd.f32 %v753_v48, %v672_v24  ;;  %v256_v50 = vpop.f32.mrb[13].mxu0 }
 0x231   :  { %v1055_v14 = vpop.eup %803  ;;  %296 = vst.msk [vmem:[%s1185_s11 + $0x50] sm:$0xff] %vm285_vm10, %v247_v47  ;;  %v257_v51 = vadd.f32 %v672_v24, %v256_v50  ;;  %v756_v52 = vpop.f32.mrb[14].mxu0 }
 0x232   :  { %v399_v4 = vsel %vm392_vm5, %v1055_v14, 0.0  ;;  %v499_v22 = vsel %vm309_vm0, %v498_v20, 0.0  ;;  %299 = vst.msk [vmem:[%s1185_s11 + $0x68] sm:$0xff] %vm285_vm10, %v262_v49  ;;  %v272_v53 = vadd.f32 %v756_v52, %v672_v24  ;;  %v266_v54 = vpop.f32.mrb[15].mxu0 }
 0x233   :  { %614 = vadd.xlane.f32.xlu1 %v613_v11  ;;  %400 = vadd.xlane.f32.xlu0 %v399_v4  ;;  %298 = vst.msk [vmem:[%s1185_s11 + $0x60] sm:$0xff] %vm285_vm10, %v257_v51  ;;  %v267_v55 = vadd.f32 %v672_v24, %v266_v54  ;;  %v759_v56 = vpop.f32.mrb[16].mxu0 }
 0x234   :  { %301 = vst.msk [vmem:[%s1185_s11 + $0x78] sm:$0xff] %vm285_vm10, %v272_v53  ;;  %v282_v57 = vadd.f32 %v759_v56, %v672_v24  ;;  %v276_v58 = vpop.f32.mrb[17].mxu0 }
 0x235   :  { %300 = vst.msk [vmem:[%s1185_s11 + $0x70] sm:$0xff] %vm285_vm10, %v267_v55  ;;  %v277_v59 = vadd.f32 %v672_v24, %v276_v58 }
 0x236   :  { %303 = vst.msk [vmem:[%s1185_s11 + $0x88] sm:$0xff] %vm285_vm10, %v282_v57 }
 0x237   :  { %629 = vadd.xlane.f32.xlu1 %v628_v17  ;;  %618 = vadd.xlane.f32.xlu0 %v617_v18  ;;  %302 = vst.msk [vmem:[%s1185_s11 + $0x80] sm:$0xff] %vm285_vm10, %v277_v59 }
 0x23b   :  { %500 = vadd.xlane.f32.xlu1 %v499_v22  ;;  %632 = vadd.xlane.f32.xlu0 %v631_v21 }
 0x2bc   :  { %v593_v60 = vpop.xlane.xlu1 %592 }
 0x2bd   :  { %v594_v61 = vrot.slane %v593_v60, 4 }
 0x2bf   :  { %v595_v62 = vadd.f32 %v594_v61, %v593_v60 }
 0x2c0   :  { %v615_v63 = vpop.xlane.xlu1 %614  ;;  %v401_v0 = vpop.xlane.xlu0 %400 }
 0x2c1   :  { %v596_v1 = vrot.slane %v595_v62, 2  ;;  %v620_v2 = vadd.f32 1.0, %v615_v63  ;;  %805 = vrcp.f32 %v401_v0 }
 0x2c3   :  { %622 = vst.msk [vmem:[%s1188_s14] sm:$0xff] %vm502_vm11, %v620_v2  ;;  %v597_v3 = vadd.f32 %v596_v1, %v595_v62 }
 0x2c4   :  { %v630_v5 = vpop.xlane.xlu1 %629  ;;  %v619_v6 = vpop.xlane.xlu0 %618 }
 0x2c5   :  { %v634_v7 = vadd.f32 1.0, %v630_v5  ;;  %v598_v8 = vrot.slane %v597_v3, 1  ;;  %v621_v9 = vadd.f32 1.0, %v619_v6 }
 0x2c7   :  { %636 = vst.msk [vmem:[%s1190_s16] sm:$0xff] %vm502_vm11, %v634_v7  ;;  %v599_v10 = vadd.f32 %v598_v8, %v597_v3 }
 0x2c8   :  { %623 = vst.msk [vmem:[%s1188_s14 + $0x8] sm:$0x1] %vm602_vm12, %v621_v9  ;;  %v501_v11 = vpop.xlane.xlu1 %500  ;;  %v633_v12 = vpop.xlane.xlu0 %632  ;;  %s834_s14 = smov [#allocation2]  }
 0x2c9   :  { %503 = vst.msk [vmem:[%s1187_s13] sm:$0xff] %vm502_vm11, %v501_v11  ;;  %v635_v13 = vadd.f32 1.0, %v633_v12  ;;  %s652_s23 = sshll.u32 %s834_s14, 4  ;;  %s653_s23 = int_to_ptr.vmem [resolvable:$true] %s652_s23 }
 0x2ca   :  { %789 = vpush %v599_v10  ;;  %s807_s13 = scalar_lea.vmem %s653_s23, 16  ;;  %s811_s10 = scalar_lea.vmem %s653_s23, 32 }
 0x2cb   :  { %v806_v15 = vpop.eup %805  ;;  %637 = vst.msk [vmem:[%s1190_s16 + $0x8] sm:$0x1] %vm602_vm12, %v635_v13  ;;  %p808_p0 = scmp.ne.s32.totalorder %s653_s23, %s807_s13  ;;  %p812_p1 = scmp.lt.s32.totalorder %s653_s23, %s653_s23 }
 0x2cc   :  { %v403_v4 = vmul.f32 %v806_v15, %v1055_v14  ;;  %p813_p2 = scmp.lt.s32.totalorder %s811_s10, %s807_s13 }
 0x2ce   :  { %404 = vst.msk [vmem:[%s1186_s12] sm:$0xff] %vm392_vm5, %v403_v4  ;;  %p814_p3 = por %p813_p2, %p812_p1 }
 0x2d0   :  { %p815_p4 = pnand %p814_p3, %p808_p0 }
 0x2fb   :  { %s790_s9 = spop %789 }
 0x2fc   :  { %v601_v16 = vstv %s790_s9 }
 0x2fd   :  { %603 = vst.msk [vmem:[#allocation2] sm:$0x1] %vm602_vm12, %v601_v16 }
 0x2fe   :  { %818 = shalt.err (!%p815_p4)
}
 0x2ff   :  { %s819_s25 = scalar_lea.hbm %s1189_s15, 16 }
 0x300   :  { %p820_p5 = scmp.ne.s32.totalorder %s1189_s15, %s819_s25  ;;  %p823_p6 = scmp.lt.u32.totalorder %s819_s25, %s1189_s15 }
 0x302   :  { %p825_p7 = pnand %p823_p6, %p820_p5 }
 0x304   :  { %828 = shalt.err (!%p825_p7)
}
 0x305   :  { %655 = dma.vmem_to_hbm [thread:$0]  %s653_s23, 16, %s1189_s15, [#allocation3]  }
 0x306   :  { %829 = dma.done.wait [#allocation3], 16  }
 0x307   :  { %830 = vsyncadd [#allocation3], 4294967280 }
 0x308   :  { %671 = vsyncpa [#allocation3], 1 }

// kernel: _lambda_.7
= control target key start
LH: loop header
LB: loop body
LE: loop exit
PB: predicated region body
PF: predicated region fallthrough
CT: control target
= control target key end

     0   :  { %s3638_s21 = smov 0   ;;  %s4164_s0 = inlined_call_operand.vmem [shape: f32[2,6,8,16], index: 0, kind: input, shape index: {}]   ;;  %s4165_s1 = inlined_call_operand.vmem [shape: f32[2,9,8,16], index: 1, kind: input, shape index: {}]   ;;  %s4166_s2 = inlined_call_operand.vmem [shape: f32[4,16,32], index: 2, kind: input, shape index: {}]   ;;  %s4167_s3 = inlined_call_operand.vmem [shape: f32[1,32], index: 3, kind: input, shape index: {}]   ;;  %s4168_s4 = inlined_call_operand.vmem [shape: f32[7,16,32], index: 4, kind: input, shape index: {}]   ;;  %s4169_s5 = inlined_call_operand.vmem [shape: f32[1,32], index: 5, kind: input, shape index: {}]   ;;  %s4170_s6 = inlined_call_operand.vmem [shape: f32[1,6,1,16], index: 6, kind: input, shape index: {}]   ;;  %s4171_s7 = inlined_call_operand.vmem [shape: f32[1,1,8,16], index: 7, kind: input, shape index: {}]   ;;  %s4172_s8 = inlined_call_operand.vmem [shape: f32[8,24], index: 8, kind: input, shape index: {}]   ;;  %s4173_s9 = inlined_call_operand.vmem [shape: f32[8,8], index: 9, kind: input, shape index: {}]   ;;  %s4174_s10 = inlined_call_operand.vmem [shape: f32[3,2,16,32], index: 10, kind: input, shape index: {}]   ;;  %s4175_s11 = inlined_call_operand.vmem [shape: f32[3,2,1,32], index: 11, kind: input, shape index: {}]   ;;  %s4176_s12 = inlined_call_operand.vmem [shape: f32[2,3,8,16], index: 12, kind: output, shape index: {}]  }
   0x1 LB: > { %s2953_s22 = sadd.s32 4294967295, %s3567_s21   ;;  %p2957_p0 = scmp.ge.s32.totalorder %s3567_s21, 1  ;;  %s3567_s21 = sphi %s3638_s21, %s22_s21  }
   0x2   : > { %p372_p1 = scmp.lt.s32.totalorder %s3567_s21, 3 }
   0x4   : > { %p373_p2 = pnand %p2957_p0, %p372_p1 }
   0x5   : > { %v2964_v0 = vld [vmem:[%s4166_s2 + $0x10] sm:$0xff] (!%p373_p2)  ;;  %v2965_v1 = vld [vmem:[%s4166_s2 + $0x18] sm:$0xff] (!%p373_p2)  ;;  %v437_v2 = vld [vmem:[%s4166_s2] sm:$0xff] (!%p373_p2)  ;;  %v3569_v3 = vmov (!%p373_p2), 0.0|0.0   ;;  %p419_p3 = scmp.lt.s32.totalorder (!%p373_p2), %s2953_s22, 1  ;;  %vm3570_vm0 = vmmov (!%p373_p2), 0  }
   0x6   : > { %376 = sbr.rel (%p373_p2) target bundleno = 2814 (0xafe), region = 68  ;;  %3438 = vmatprep.subr.bf16.mxu0 (!%p373_p2), %v3569_v3  ;;  %3441 = vmatprep.subr.bf16.mxu1 (!%p373_p2), %v3569_v3  ;;  %v3439_v4 = vpack.c.bf16 (!%p373_p2), %v2965_v1, %v2964_v0  ;;  %v438_v5 = vld [vmem:[%s4166_s2 + $0x8] sm:$0xff] (!%p373_p2)  ;;  %v3571_v7 = vmov (!%p373_p2), 0.0   ;;  %v2975_v8 = vld [vmem:[%s4166_s2 + $0x20] sm:$0xff] (!%p373_p2)  ;;  %v2983_v10 = vld [vmem:[%s4166_s2 + $0x30] sm:$0xff] (!%p373_p2)  ;;  %vm446_vm1 = vcmask (!%p373_p2), 130048  }
   0x7   : > { %v3442_v6 = vpack.c.bf16 (!%p373_p2), %v438_v5, %v437_v2  ;;  %3200 = vmatprep.mubr.msk.f32.mxu0 (!%p373_p2), %vm3570_vm0, %v3571_v7  ;;  %3213 = vmatprep.mubr.msk.f32.mxu1 (!%p373_p2), %vm3570_vm0, %v3571_v7  ;;  %v2976_v9 = vld [vmem:[%s4166_s2 + $0x28] sm:$0xff] (!%p373_p2)  ;;  %v2984_v11 = vld [vmem:[%s4166_s2 + $0x38] sm:$0xff] (!%p373_p2)  ;;  %v2995_v18 = vld [vmem:[%s4168_s4 + $0x10] sm:$0xff] (!%p373_p2)  ;;  %vm1660_vm2 = vcmask (!%p373_p2), 195584   ;;  %vm1734_vm3 = vcmask (!%p373_p2), 64512   ;;  %s3572_s18 = smov (!%p373_p2), 112  }
   0x8   : > { %3440 = vmatpush3.bf16.msra.mxu0 (!%p373_p2), %v3439_v4  ;;  %v3445_v12 = vpack.c.bf16 (!%p373_p2), %v2976_v9, %v2975_v8  ;;  %v3448_v13 = vpack.c.bf16 (!%p373_p2), %v2984_v11, %v2983_v10  ;;  %v2996_v19 = vld [vmem:[%s4168_s4 + $0x18] sm:$0xff] (!%p373_p2)  ;;  %v869_v20 = vld [vmem:[%s4168_s4] sm:$0xff] (!%p373_p2)  ;;  %v870_v21 = vld [vmem:[%s4168_s4 + $0x8] sm:$0xff] (!%p373_p2) }
   0x9   : > { %3443 = vmatpush3.bf16.msra.mxu1 (!%p373_p2), %v3442_v6  ;;  %3444 = vmatprep.subr.bf16.mxu0 (!%p373_p2), %v3569_v3  ;;  %v3451_v22 = vpack.c.bf16 (!%p373_p2), %v2996_v19, %v2995_v18  ;;  %v3454_v23 = vpack.c.bf16 (!%p373_p2), %v870_v21, %v869_v20  ;;  %v3006_v26 = vld [vmem:[%s4168_s4 + $0x20] sm:$0xff] (!%p373_p2)  ;;  %v3007_v27 = vld [vmem:[%s4168_s4 + $0x28] sm:$0xff] (!%p373_p2)  ;;  %v3014_v28 = vld [vmem:[%s4168_s4 + $0x30] sm:$0xff] (!%p373_p2) }
   0xa   : > { %3447 = vmatprep.subr.bf16.mxu1 (!%p373_p2), %v3569_v3  ;;  %v3015_v29 = vld [vmem:[%s4168_s4 + $0x38] sm:$0xff] (!%p373_p2)  ;;  %v3457_v32 = vpack.c.bf16 (!%p373_p2), %v3007_v27, %v3006_v26  ;;  %v3022_v36 = vld [vmem:[%s4168_s4 + $0x40] sm:$0xff] (!%p373_p2)  ;;  %v3023_v37 = vld [vmem:[%s4168_s4 + $0x48] sm:$0xff] (!%p373_p2) }
   0xb   : > { %v3460_v33 = vpack.c.bf16 (!%p373_p2), %v3015_v29, %v3014_v28  ;;  %v3030_v38 = vld [vmem:[%s4168_s4 + $0x50] sm:$0xff] (!%p373_p2)  ;;  %v3031_v39 = vld [vmem:[%s4168_s4 + $0x58] sm:$0xff] (!%p373_p2)  ;;  %v3463_v40 = vpack.c.bf16 (!%p373_p2), %v3023_v37, %v3022_v36  ;;  %v3047_v42 = vld [vmem:[%s4170_s6] ss:$0 sm:$0xff] (!%p373_p2) }
   0xc   : > { %v3466_v41 = vpack.c.bf16 (!%p373_p2), %v3031_v39, %v3030_v38  ;;  %v3048_v43 = vld [vmem:[%s4170_s6 + $0x1] ss:$0 sm:$0xff] (!%p373_p2)  ;;  %v3039_v52 = vld [vmem:[%s4168_s4 + $0x68] sm:$0xff] (!%p373_p2)  ;;  %v3049_v53 = vld [vmem:[%s4170_s6 + $0x2] ss:$0 sm:$0xff] (!%p373_p2) }
   0xd   : > { %s4178_s22 = smov (!%p419_p3, %s2953_s22), 1  ;;  %v3841_v47 = vld [vmem:[%s4171_s7] sm:$0xff]  ;;  %v1810_v4 = vld [vmem:[%s4174_s10 + $0x8] sm:$0xff] }
   0xe   : > { %s3498_s23 = smul.u32 48, %s4178_s22  ;;  %v3038_v51 = vld [vmem:[%s4168_s4 + $0x60] sm:$0xff] }
   0xf   : > { %s3499_s17 = smul.u32 72, %s4178_s22  ;;  %v3469_v55 = vpack.c.bf16 %v3039_v52, %v3038_v51  ;;  %v3050_v59 = vld [vmem:[%s4170_s6 + $0x3] ss:$0 sm:$0xff]  ;;  %v3948_v36 = vld [vmem:[%s4167_s3] ss:$0 sm:$0xff] }
  0x10   : > { %s3684_s26 = scalar_lea.vmem %s4164_s0, %s3498_s23  ;;  %v3906_v62 = vld [vmem:[%s4172_s8] sm:$0xff]  ;;  %s3500_s16 = smul.u32 24, %s4178_s22 }
  0x11   : > { %v3687_v14 = vld [vmem:[%s3684_s26 + $0x8] sm:$0xff]  ;;  %v3690_v15 = vld [vmem:[%s3684_s26] sm:$0xff]  ;;  %v3701_v16 = vld [vmem:[%s3684_s26 + $0x10] sm:$0xff]  ;;  %s3764_s20 = scalar_lea.vmem %s4165_s1, %s3499_s17 }
  0x12   : > { %3201 = vmatmul.mubr.msk.f32.vlgmr.msra.gmra.mrb[0].mxu0 %vm446_vm1, %v3687_v14  ;;  %3214 = vmatmul.mubr.msk.f32.vlgmr.msra.gmra.mrb[0].mxu1 %vm446_vm1, %v3690_v15  ;;  %v3714_v17 = vld [vmem:[%s3684_s26 + $0x18] sm:$0xff]  ;;  %v3745_v24 = vld [vmem:[%s3684_s26 + $0x20] sm:$0xff]  ;;  %v3759_v25 = vld [vmem:[%s3684_s26 + $0x28] sm:$0xff]  ;;  %v1645_v45 = vadd.f32 %v3047_v42, %v3690_v15  ;;  %v1646_v46 = vadd.f32 %v3048_v43, %v3687_v14  ;;  %v1647_v56 = vadd.f32 %v3049_v53, %v3701_v16  ;;  %s4133_s23 = scalar_lea.vmem %s4176_s12, %s3500_s16 }
  0x13   : > { %3203 = vmatprep.mubr.msk.f32.mxu0 %vm3570_vm0, %v3571_v7  ;;  %3216 = vmatprep.mubr.msk.f32.mxu1 %vm3570_vm0, %v3571_v7  ;;  %v2992_v30 = vld [vmem:[%s3764_s20 + $0x8] sm:$0xff]  ;;  %v866_v31 = vld [vmem:[%s3764_s20] sm:$0xff]  ;;  %v2993_v34 = vld [vmem:[%s3764_s20 + $0x10] sm:$0xff]  ;;  %v1648_v61 = vadd.f32 %v3050_v59, %v3714_v17 }
  0x14   : > { %3446 = vmatpush3.bf16.msra.mxu0 %v3445_v12  ;;  %3449 = vmatpush3.bf16.msra.mxu1 %v3448_v13  ;;  %v2994_v35 = vld [vmem:[%s3764_s20 + $0x18] sm:$0xff]  ;;  %v3012_v44 = vld [vmem:[%s3764_s20 + $0x20] sm:$0xff]  ;;  %v3013_v48 = vld [vmem:[%s3764_s20 + $0x28] sm:$0xff]  ;;  %v1652_v49 = vadd.f32 %v3841_v47, %v1645_v45  ;;  %v3853_v50 = vadd.f32 %v3841_v47, %v1646_v46  ;;  %v3880_v58 = vadd.f32 %v3841_v47, %v1647_v56 }
  0x15   : > { %3450 = vmatprep.subr.bf16.mxu0 %v3569_v3  ;;  %3453 = vmatprep.subr.bf16.mxu1 %v3569_v3  ;;  %v3028_v57 = vld [vmem:[%s3764_s20 + $0x30] sm:$0xff]  ;;  %v3029_v60 = vld [vmem:[%s3764_s20 + $0x38] sm:$0xff]  ;;  %v3909_v63 = vadd.f32 %v3841_v47, %v1648_v61  ;;  %v3920_v0 = vld [vmem:[%s4173_s9] sm:$0xff] }
  0x16   : > { %3204 = vmatmul.mubr.msk.f32.gmra.mrb[2].mxu0 %vm446_vm1, %v3701_v16  ;;  %3217 = vmatmul.mubr.msk.f32.gmra.mrb[2].mxu1 %vm446_vm1, %v3687_v14  ;;  %v3472_v54 = vpack.c.bf16 %v3853_v50, %v1652_v49  ;;  %v3037_v1 = vld [vmem:[%s3764_s20 + $0x40] sm:$0xff] }
  0x17   : > { %3206 = vmatprep.mubr.msk.f32.mxu0 %vm3570_vm0, %v3571_v7  ;;  %3219 = vmatprep.mubr.msk.f32.mxu1 %vm3570_vm0, %v3571_v7  ;;  %v1809_v2 = vld [vmem:[%s4174_s10] sm:$0xff] }
  0x18   : > { %v3475_v5 = vpack.c.bf16 %v1810_v4, %v1809_v2 }
  0x1a   : > { %3207 = vmatmul.mubr.msk.f32.gmra.mrb[4].mxu0 %vm446_vm1, %v3714_v17  ;;  %3220 = vmatmul.mubr.msk.f32.gmra.mrb[4].mxu1 %vm446_vm1, %v3701_v16 }
  0x1b   : > { %3226 = vmatprep.mubr.msk.f32.mxu0 %vm3570_vm0, %v3571_v7  ;;  %3239 = vmatprep.mubr.msk.f32.mxu1 %vm3570_vm0, %v3571_v7 }
  0x1e   : > { %3227 = vmatmul.mubr.msk.f32.vlgmr.msra.gmra.mrb[6].mxu0 %vm446_vm1, %v3701_v16  ;;  %3240 = vmatmul.mubr.msk.f32.vlgmr.msra.gmra.mrb[6].mxu1 %vm446_vm1, %v3714_v17 }
  0x1f   : > { %3229 = vmatprep.mubr.msk.f32.mxu0 %vm3570_vm0, %v3571_v7  ;;  %3242 = vmatprep.mubr.msk.f32.mxu1 %vm3570_vm0, %v3571_v7 }
  0x20   : > { %3452 = vmatpush3.bf16.msra.mxu0 %v3451_v22  ;;  %3455 = vmatpush3.bf16.msra.mxu1 %v3454_v23 }
  0x21   : > { %3456 = vmatprep.subr.bf16.mxu0 %v3569_v3  ;;  %3459 = vmatprep.subr.bf16.mxu1 %v3569_v3 }
  0x22   : > { %3230 = vmatmul.mubr.msk.f32.gmra.mrb[8].mxu0 %vm446_vm1, %v3714_v17  ;;  %3243 = vmatmul.mubr.msk.f32.gmra.mrb[8].mxu1 %vm446_vm1, %v3745_v24 }
  0x23   : > { %3232 = vmatprep.mubr.msk.f32.mxu0 %vm3570_vm0, %v3571_v7  ;;  %3245 = vmatprep.mubr.msk.f32.mxu1 %vm3570_vm0, %v3571_v7 }
  0x26   : > { %3233 = vmatmul.mubr.msk.f32.gmra.mrb[10].mxu0 %vm446_vm1, %v3745_v24  ;;  %3246 = vmatmul.mubr.msk.f32.gmra.mrb[10].mxu1 %vm446_vm1, %v3759_v25 }
  0x27   : > { %3252 = vmatprep.mubr.msk.f32.mxu0 %vm3570_vm0, %v3571_v7  ;;  %3265 = vmatprep.mubr.msk.f32.mxu1 %vm3570_vm0, %v3571_v7 }
  0x2a   : > { %3253 = vmatmul.mubr.msk.f32.vlgmr.msra.gmra.mrb[12].mxu0 %vm446_vm1, %v2992_v30  ;;  %3266 = vmatmul.mubr.msk.f32.vlgmr.msra.gmra.mrb[12].mxu1 %vm446_vm1, %v866_v31 }
  0x2b   : > { %3255 = vmatprep.mubr.msk.f32.mxu0 %vm3570_vm0, %v3571_v7  ;;  %3268 = vmatprep.mubr.msk.f32.mxu1 %vm3570_vm0, %v3571_v7 }
  0x2c   : > { %3458 = vmatpush3.bf16.msra.mxu0 %v3457_v32  ;;  %3461 = vmatpush3.bf16.msra.mxu1 %v3460_v33 }
  0x2d   : > { %3462 = vmatprep.subr.bf16.mxu0 %v3569_v3  ;;  %3465 = vmatprep.subr.bf16.mxu1 %v3569_v3 }
  0x2e   : > { %3256 = vmatmul.mubr.msk.f32.gmra.mrb[14].mxu0 %vm446_vm1, %v2993_v34  ;;  %3269 = vmatmul.mubr.msk.f32.gmra.mrb[14].mxu1 %vm446_vm1, %v2992_v30 }
  0x2f   : > { %3258 = vmatprep.mubr.msk.f32.mxu0 %vm3570_vm0, %v3571_v7  ;;  %3271 = vmatprep.mubr.msk.f32.mxu1 %vm3570_vm0, %v3571_v7 }
  0x32   : > { %3259 = vmatmul.mubr.msk.f32.gmra.mrb[16].mxu0 %vm446_vm1, %v2994_v35  ;;  %3272 = vmatmul.mubr.msk.f32.gmra.mrb[16].mxu1 %vm446_vm1, %v2993_v34 }
  0x33   : > { %3278 = vmatprep.mubr.msk.f32.mxu0 %vm3570_vm0, %v3571_v7  ;;  %3291 = vmatprep.mubr.msk.f32.mxu1 %vm3570_vm0, %v3571_v7 }
  0x36   : > { %3279 = vmatmul.mubr.msk.f32.vlgmr.msra.gmra.mrb[18].mxu0 %vm446_vm1, %v2993_v34  ;;  %3292 = vmatmul.mubr.msk.f32.vlgmr.msra.gmra.mrb[18].mxu1 %vm446_vm1, %v2994_v35 }
  0x37   : > { %3281 = vmatprep.mubr.msk.f32.mxu0 %vm3570_vm0, %v3571_v7  ;;  %3294 = vmatprep.mubr.msk.f32.mxu1 %vm3570_vm0, %v3571_v7 }
  0x38   : > { %3464 = vmatpush3.bf16.msra.mxu0 %v3463_v40  ;;  %3467 = vmatpush3.bf16.msra.mxu1 %v3466_v41 }
  0x39   : > { %3471 = vmatprep.subr.bf16.mxu1 %v3569_v3  ;;  %3468 = vmatprep.subr.bf16.mxu0 %v3569_v3 }
  0x3a   : > { %3282 = vmatmul.mubr.msk.f32.gmra.mrb[20].mxu0 %vm446_vm1, %v2994_v35  ;;  %3295 = vmatmul.mubr.msk.f32.gmra.mrb[20].mxu1 %vm446_vm1, %v3012_v44 }
  0x3b   : > { %3284 = vmatprep.mubr.msk.f32.mxu0 %vm3570_vm0, %v3571_v7  ;;  %3297 = vmatprep.mubr.msk.f32.mxu1 %vm3570_vm0, %v3571_v7 }
  0x3e   : > { %3285 = vmatmul.mubr.msk.f32.gmra.mrb[22].mxu0 %vm446_vm1, %v3012_v44  ;;  %3298 = vmatmul.mubr.msk.f32.gmra.mrb[22].mxu1 %vm446_vm1, %v3013_v48 }
  0x3f   : > { %3304 = vmatprep.mubr.msk.f32.mxu0 %vm3570_vm0, %v3571_v7  ;;  %3317 = vmatprep.mubr.msk.f32.mxu1 %vm3570_vm0, %v3571_v7 }
  0x42   : > { %3305 = vmatmul.mubr.msk.f32.vlgmr.msra.gmra.mrb[24].mxu0 %vm446_vm1, %v3012_v44  ;;  %3318 = vmatmul.mubr.msk.f32.vlgmr.msra.gmra.mrb[24].mxu1 %vm446_vm1, %v3013_v48 }
  0x43   : > { %3307 = vmatprep.mubr.msk.f32.mxu0 %vm3570_vm0, %v3571_v7  ;;  %3320 = vmatprep.mubr.msk.f32.mxu1 %vm3570_vm0, %v3571_v7 }
  0x44   : > { %3473 = vmatpush3.bf16.msra.mxu1 %v3472_v54  ;;  %3470 = vmatpush3.bf16.msra.mxu0 %v3469_v55 }
  0x45   : > { %3343 = vmatprep.subr.mxu1 %v3571_v7  ;;  %3360 = vmatprep.subr.mxu0 %v3571_v7 }
  0x46   : > { %3308 = vmatmul.mubr.msk.f32.gmra.mrb[26].mxu0 %vm446_vm1, %v3013_v48  ;;  %3321 = vmatmul.mubr.msk.f32.gmra.mrb[26].mxu1 %vm446_vm1, %v3028_v57 }
  0x47   : > { %3310 = vmatprep.mubr.msk.f32.mxu0 %vm3570_vm0, %v3571_v7  ;;  %3323 = vmatprep.mubr.msk.f32.mxu1 %vm3570_vm0, %v3571_v7 }
  0x48   : > { %3344 = vmatpush3.msra.mxu1 %v3880_v58 }
  0x49   : > { %3348 = vmatprep.subr.mxu1 %v3571_v7 }
  0x4a   : > { %3311 = vmatmul.mubr.msk.f32.gmra.mrb[28].mxu0 %vm446_vm1, %v3028_v57  ;;  %3324 = vmatmul.mubr.msk.f32.gmra.mrb[28].mxu1 %vm446_vm1, %v3029_v60 }
  0x4b   : > { %3330 = vmatprep.mubr.msk.f32.mxu0 %vm3570_vm0, %v3571_v7  ;;  %3345 = vmatprep.mubr.msk.f32.mxu1 %vm3570_vm0, %v3571_v7 }
  0x4e   : > { %3331 = vmatmul.mubr.msk.f32.vlgmr.msra.gmra.mrb[30].mxu0 %vm446_vm1, %v3028_v57  ;;  %3346 = vmatmul.mubr.msk.f32.vlgmr.msra.gmra.mrb[30].mxu1 %vm1660_vm2, %v3906_v62 }
  0x4f   : > { %3333 = vmatprep.mubr.msk.f32.mxu0 %vm3570_vm0, %v3571_v7  ;;  %3349 = vmatpush3.msra.mxu1 %v3909_v63 }
  0x50   : > { %3350 = vmatprep.mubr.msk.f32.mxu1 %vm3570_vm0, %v3571_v7  ;;  %3474 = vmatprep.subr.bf16.mxu1 %v3569_v3 }
  0x52   : > { %3334 = vmatmul.mubr.msk.f32.gmra.mrb[32].mxu0 %vm446_vm1, %v3029_v60  ;;  %3351 = vmatmul.mubr.msk.f32.vlgmr.msra.gmra.mrb[32].mxu1 %vm1734_vm3, %v3920_v0 }
  0x53   : > { %3336 = vmatprep.mubr.msk.f32.mxu0 %vm3570_vm0, %v3571_v7  ;;  %3357 = vmatprep.mubr.msk.f32.mxu1 %vm3570_vm0, %v3571_v7 }
  0x54   : > { %3476 = vmatpush3.bf16.msra.mxu1 %v3475_v5 }
  0x55   : > { %3477 = vmatprep.subr.bf16.mxu1 %v3569_v3 }
  0x56   : > { %3337 = vmatmul.mubr.msk.f32.gmra.mrb[34].mxu0 %vm446_vm1, %v3037_v1 }
  0x57   : > { %3362 = vmatprep.mubr.msk.f32.mxu0 %vm3570_vm0, %v3571_v7 }
  0xe5   : > { %v522_v6 = vpop.f32.mrb[0].mxu0  ;;  %v611_v8 = vpop.f32.mrb[0].mxu1 }
  0xe6   : > { %v612_v9 = vadd.f32 %v611_v8, %v522_v6  ;;  %v3215_v10 = vpop.f32.mrb[1].mxu1  ;;  %v3202_v11 = vpop.f32.mrb[1].mxu0 }
  0xe9   : > { %v527_v12 = vpop.f32.mrb[2].mxu0  ;;  %v616_v13 = vpop.f32.mrb[2].mxu1 }
  0xea   : > { %v617_v14 = vadd.f32 %v616_v13, %v527_v12  ;;  %v3218_v15 = vpop.f32.mrb[3].mxu1  ;;  %v3205_v16 = vpop.f32.mrb[3].mxu0 }
  0xed   : > { %v532_v17 = vpop.f32.mrb[4].mxu0  ;;  %v621_v18 = vpop.f32.mrb[4].mxu1 }
  0xee   : > { %v622_v19 = vadd.f32 %v621_v18, %v532_v17  ;;  %v3221_v20 = vpop.f32.mrb[5].mxu1  ;;  %v3208_v21 = vpop.f32.mrb[5].mxu0 }
  0xf1   : > { %v707_v22 = vpop.f32.mrb[6].mxu0  ;;  %v806_v23 = vpop.f32.mrb[6].mxu1 }
  0xf2   : > { %v721_v26 = vadd.f32 %v707_v22, %v612_v9  ;;  %v3241_v27 = vpop.f32.mrb[7].mxu1  ;;  %v3228_v28 = vpop.f32.mrb[7].mxu0 }
  0xf4   : > { %v3943_v29 = vadd.f32 %v806_v23, %v721_v26 }
  0xf5   : > { %v712_v30 = vpop.f32.mrb[8].mxu0  ;;  %v811_v31 = vpop.f32.mrb[8].mxu1 }
  0xf6   : > { %v722_v32 = vadd.f32 %v712_v30, %v617_v14  ;;  %v3244_v33 = vpop.f32.mrb[9].mxu1  ;;  %v3231_v34 = vpop.f32.mrb[9].mxu0 }
  0xf8   : > { %v821_v35 = vadd.f32 %v811_v31, %v722_v32 }
  0xf9   : > { %v717_v37 = vpop.f32.mrb[10].mxu0  ;;  %v816_v38 = vpop.f32.mrb[10].mxu1 }
  0xfa   : > { %v3951_v39 = vadd.f32 %v3948_v36, %v821_v35  ;;  %v723_v40 = vadd.f32 %v717_v37, %v622_v19  ;;  %v3247_v41 = vpop.f32.mrb[11].mxu1  ;;  %v3234_v42 = vpop.f32.mrb[11].mxu0 }
  0xfc   : > { %v3953_v43 = vadd.f32 %v816_v38, %v723_v40 }
  0xfd   : > { %v953_v44 = vpop.f32.mrb[12].mxu0  ;;  %v1042_v45 = vpop.f32.mrb[12].mxu1 }
  0xfe   : > { %v1043_v46 = vadd.f32 %v1042_v45, %v953_v44  ;;  %v3267_v48 = vpop.f32.mrb[13].mxu1  ;;  %v3254_v49 = vpop.f32.mrb[13].mxu0 }
 0x101   : > { %v958_v51 = vpop.f32.mrb[14].mxu0  ;;  %v1047_v52 = vpop.f32.mrb[14].mxu1 }
 0x102   : > { %v1048_v53 = vadd.f32 %v1047_v52, %v958_v51  ;;  %v3270_v54 = vpop.f32.mrb[15].mxu1  ;;  %v3257_v55 = vpop.f32.mrb[15].mxu0 }
 0x105   : > { %v963_v56 = vpop.f32.mrb[16].mxu0  ;;  %v1052_v57 = vpop.f32.mrb[16].mxu1 }
 0x106   : > { %v1053_v59 = vadd.f32 %v1052_v57, %v963_v56  ;;  %v3273_v60 = vpop.f32.mrb[17].mxu1  ;;  %v3260_v61 = vpop.f32.mrb[17].mxu0 }
 0x109   : > { %v1138_v1 = vpop.f32.mrb[18].mxu0  ;;  %v1237_v2 = vpop.f32.mrb[18].mxu1 }
 0x10a   : > { %v1152_v4 = vadd.f32 %v1138_v1, %v1043_v46  ;;  %v3293_v5 = vpop.f32.mrb[19].mxu1  ;;  %v3280_v6 = vpop.f32.mrb[19].mxu0  ;;  %v3958_v46 = vld [vmem:[%s4169_s5] ss:$0 sm:$0xff] }
 0x10b   : > { %v3055_v5 = vld [vmem:[%s4175_s11] ss:$0 sm:$0xff] }
 0x10c   : > { %v1251_v8 = vadd.f32 %v1237_v2, %v1152_v4 }
 0x10d   : > { %v1143_v9 = vpop.f32.mrb[20].mxu0  ;;  %v1242_v10 = vpop.f32.mrb[20].mxu1 }
 0x10e   : > { %v1153_v11 = vadd.f32 %v1143_v9, %v1048_v53  ;;  %v3296_v12 = vpop.f32.mrb[21].mxu1  ;;  %v3283_v13 = vpop.f32.mrb[21].mxu0 }
 0x110   : > { %v1252_v14 = vadd.f32 %v1242_v10, %v1153_v11 }
 0x111   : > { %v1148_v15 = vpop.f32.mrb[22].mxu0  ;;  %v1247_v16 = vpop.f32.mrb[22].mxu1 }
 0x112   : > { %v1154_v17 = vadd.f32 %v1148_v15, %v1053_v59  ;;  %v3299_v18 = vpop.f32.mrb[23].mxu1  ;;  %v3286_v19 = vpop.f32.mrb[23].mxu0 }
 0x113   : > { %v3481_v19 = vpack.c.bf16 %v3880_v58, %v3853_v50  ;;  %v3051_v50 = vld [vmem:[%s4170_s6 + $0x4] ss:$0 sm:$0xff] }
 0x114   : > { %v1253_v20 = vadd.f32 %v1247_v16, %v1154_v17  ;;  %v3059_v16 = vld [vmem:[%s4174_s10 + $0x10] sm:$0xff]  ;;  %v3060_v17 = vld [vmem:[%s4174_s10 + $0x18] sm:$0xff] }
 0x115   : > { %v1336_v21 = vpop.f32.mrb[24].mxu0  ;;  %v1435_v22 = vpop.f32.mrb[24].mxu1  ;;  %v3478_v18 = vpack.c.bf16 %v3060_v17, %v3059_v16 }
 0x116   : > { %v1350_v23 = vadd.f32 %v1336_v21, %v1251_v8  ;;  %v3319_v26 = vpop.f32.mrb[25].mxu1  ;;  %v3306_v27 = vpop.f32.mrb[25].mxu0 }
 0x117   : > { %v3068_v27 = vld [vmem:[%s4174_s10 + $0x28] sm:$0xff] }
 0x118   : > { %v1449_v28 = vadd.f32 %v1435_v22, %v1350_v23 }
 0x119   : > { %v1341_v30 = vpop.f32.mrb[26].mxu0  ;;  %v1440_v31 = vpop.f32.mrb[26].mxu1 }
 0x11a   : > { %v1351_v32 = vadd.f32 %v1341_v30, %v1252_v14  ;;  %v3322_v33 = vpop.f32.mrb[27].mxu1  ;;  %v3309_v34 = vpop.f32.mrb[27].mxu0 }
 0x11c   : > { %v1450_v35 = vadd.f32 %v1440_v31, %v1351_v32 }
 0x11d   : > { %v1346_v37 = vpop.f32.mrb[28].mxu0  ;;  %v1445_v38 = vpop.f32.mrb[28].mxu1 }
 0x11e   : > { %v1352_v40 = vadd.f32 %v1346_v37, %v1253_v20  ;;  %v3325_v41 = vpop.f32.mrb[29].mxu1  ;;  %v3312_v42 = vpop.f32.mrb[29].mxu0  ;;  %v1649_v20 = vadd.f32 %v3051_v50, %v3745_v24  ;;  %v3067_v24 = vld [vmem:[%s4174_s10 + $0x20] sm:$0xff]  ;;  %v830_v50 = vadd.f32 %v3948_v36, %v3943_v29 }
 0x120   : > { %v1451_v44 = vadd.f32 %v1445_v38, %v1352_v40  ;;  %v4004_v22 = vadd.f32 %v3841_v47, %v1649_v20  ;;  %v3070_v38 = vld [vmem:[%s4175_s11 + $0x2] ss:$0 sm:$0xff]  ;;  %v4096_v20 = vadd.f32 %v3948_v36, %v3953_v43 }
 0x121   : > { %v1534_v45 = vpop.f32.mrb[30].mxu0  ;;  %v1730_v48 = vpop.f32.mrb[30].mxu1 }
 0x122   : > { %v1548_v49 = vadd.f32 %v1534_v45, %v1449_v28  ;;  %v3347_v51 = vpop.f32.mrb[31].mxu1  ;;  %v3332_v52 = vpop.f32.mrb[31].mxu0  ;;  %v3484_v28 = vpack.c.bf16 %v3068_v27, %v3067_v24 }
 0x124   : > { %v3961_v53 = vadd.f32 %v3958_v46, %v1548_v49 }
 0x125   : > { %v1539_v54 = vpop.f32.mrb[32].mxu0  ;;  %v1804_v55 = vpop.f32.mrb[32].mxu1 }
 0x126   : > { %v3963_v56 = vadd.f32 %v1539_v54, %v1450_v35  ;;  %v1808_v57 = vadd.f32 %v1804_v55, %v1730_v48  ;;  %v3352_v59 = vpop.f32.mrb[33].mxu1  ;;  %v3335_v60 = vpop.f32.mrb[33].mxu0  ;;  %v3074_v54 = vld [vmem:[%s4174_s10 + $0x30] sm:$0xff]  ;;  %v3075_v55 = vld [vmem:[%s4174_s10 + $0x38] sm:$0xff] }
 0x127   : > { %v3490_v59 = vpack.c.bf16 %v3909_v63, %v3880_v58  ;;  %v3052_v58 = vld [vmem:[%s4170_s6 + $0x5] ss:$0 sm:$0xff] }
 0x128   : > { %3358 = vmatmul.mubr.msk.f32.vlgmr.msra.gmra.mrb[34].mxu1 %vm446_vm1, %v1808_v57  ;;  %v3487_v57 = vpack.c.bf16 %v3075_v55, %v3074_v54  ;;  %v1650_v60 = vadd.f32 %v3052_v58, %v3759_v25  ;;  %v3083_v25 = vld [vmem:[%s4174_s10 + $0x40] sm:$0xff] }
 0x129   : > { %v1544_v61 = vpop.f32.mrb[34].mxu0  ;;  %3369 = vmatprep.mubr.msk.f32.mxu1 %vm3570_vm0, %v3571_v7  ;;  %3479 = vmatpush3.bf16.msra.mxu1 %v3478_v18 }
 0x12a   : > { %v1550_v1 = vadd.f32 %v1544_v61, %v1451_v44  ;;  %v3338_v2 = vpop.f32.mrb[35].mxu0  ;;  %3381 = vmatprep.subr.mxu1 %v3571_v7 }
 0x12c   : > { %v3969_v4 = vadd.f32 %v3958_v46, %v1550_v1  ;;  %v4060_v1 = vadd.f32 %v3841_v47, %v1650_v60  ;;  %v3084_v47 = vld [vmem:[%s4174_s10 + $0x48] sm:$0xff] }
 0x1fb   : > { %v1887_v6 = vpop.f32.mrb[34].mxu1 }
 0x1fc   : > { %v1888_v8 = vadd.f32 %v3055_v5, %v1887_v6  ;;  %v3359_v9 = vpop.f32.mrb[35].mxu1 }
 0x1fd   : > { %v3077_v9 = vld [vmem:[%s4175_s11 + $0x3] ss:$0 sm:$0xff] }
 0x1fe   : > { %v3057_v10 = vmul.f32 -1.442695, %v1888_v8 }
 0x200   : > { %3513 = vpow2.f32 %v3057_v10 }
 0x20a   : > { %v3514_v11 = vpop.eup %3513 }
 0x20b   : > { %v1894_v12 = vadd.f32 1.0, %v3514_v11 }
 0x20d   : > { %3515 = vrcp.f32 %v1894_v12 }
 0x217   : > { %v3516_v13 = vpop.eup %3515 }
 0x218   : > { %1898 = vrot.lane.b32.xlu0 %v3516_v13, %s3572_s18 }
 0x28a   : > { %v1899_v14 = vpop.permute.xlu0 %1898 }
 0x28b   : > { %v3975_v15 = vmul.f32 %v1899_v14, %v1888_v8 }
 0x28d   : > { %3361 = vmatpush3.msra.mxu0 %v3975_v15 }
 0x28e   : > { %3363 = vmatmul.mubr.msk.f32.vlgmr.msra.gmra.mrb[36].mxu0 %vm1734_vm3, %v3920_v0  ;;  %3480 = vmatprep.subr.bf16.mxu0 %v3569_v3 }
 0x28f   : > { %3378 = vmatprep.mubr.msk.f32.mxu0 %vm3570_vm0, %v3571_v7  ;;  %3482 = vmatpush3.bf16.msra.mxu0 %v3481_v19 }
 0x290   : > { %3376 = vmatprep.subr.mxu0 %v3571_v7 }
 0x293   : > { %3377 = vmatpush3.msra.mxu0 %v3909_v63 }
 0x294   : > { %3379 = vmatmul.mubr.msk.f32.vlgmr.msra.gmra.mrb[38].mxu0 %vm1660_vm2, %v3906_v62  ;;  %3393 = vmatprep.subr.mxu0 %v3571_v7 }
 0x295   : > { %3395 = vmatprep.mubr.msk.f32.mxu0 %vm3570_vm0, %v3571_v7 }
 0x361   : > { %v1968_v21 = vpop.f32.mrb[36].mxu0 }
 0x362   : > { %v1972_v23 = vadd.f32 %v1968_v21, %v1730_v48  ;;  %v3364_v26 = vpop.f32.mrb[37].mxu0  ;;  %v3062_v21 = vld [vmem:[%s4175_s11 + $0x1] ss:$0 sm:$0xff] }
 0x364   : > { %3370 = vmatmul.mubr.msk.f32.vlgmr.msra.gmra.mrb[36].mxu1 %vm446_vm1, %v1972_v23  ;;  %v3086_v23 = vld [vmem:[%s4175_s11 + $0x4] ss:$0 sm:$0xff] }
 0x365   : > { %3382 = vmatpush3.msra.mxu1 %v4004_v22  ;;  %3383 = vmatprep.mubr.msk.f32.mxu1 %vm3570_vm0, %v3571_v7 }
 0x366   : > { %3483 = vmatprep.subr.bf16.mxu1 %v3569_v3 }
 0x367   : > { %v2138_v30 = vpop.f32.mrb[38].mxu0 }
 0x368   : > { %3384 = vmatmul.mubr.msk.f32.vlgmr.msra.gmra.mrb[38].mxu1 %vm1734_vm3, %v3920_v0  ;;  %v3380_v31 = vpop.f32.mrb[39].mxu0 }
 0x369   : > { %3390 = vmatprep.mubr.msk.f32.mxu1 %vm3570_vm0, %v3571_v7  ;;  %3485 = vmatpush3.bf16.msra.mxu1 %v3484_v28 }
 0x36a   : > { %3486 = vmatprep.subr.bf16.mxu1 %v3569_v3 }
 0x437   : > { %v4022_v32 = vpop.f32.mrb[36].mxu1 }
 0x438   : > { %v3371_v33 = vpop.f32.mrb[37].mxu1  ;;  %v2054_v29 = vadd.f32 %v3062_v21, %v4022_v32 }
 0x439   : > { %v2990_v33 = vmul.f32 -1.442695, %v3951_v39 }
 0x43a   : > { %v3064_v36 = vmul.f32 -1.442695, %v2054_v29 }
 0x43b   : > { %v2208_v34 = vpop.f32.mrb[38].mxu1 }
 0x43c   : > { %v2212_v35 = vadd.f32 %v2208_v34, %v2138_v30  ;;  %v3385_v37 = vpop.f32.mrb[39].mxu1 }
 0x43d   : > { %v3044_v37 = vmul.f32 -1.442695, %v3961_v53 }
 0x43e   : > { %3391 = vmatmul.mubr.msk.f32.vlgmr.msra.gmra.mrb[40].mxu1 %vm446_vm1, %v2212_v35  ;;  %v2989_v35 = vmul.f32 -1.442695, %v830_v50 }
 0x43f   : > { %3402 = vmatprep.mubr.msk.f32.mxu1 %vm3570_vm0, %v3571_v7  ;;  %3488 = vmatpush3.bf16.msra.mxu1 %v3487_v57 }
 0x440   : > { %3414 = vmatprep.subr.mxu1 %v3571_v7 }
 0x511   : > { %v2293_v40 = vpop.f32.mrb[40].mxu1 }
 0x512   : > { %v2294_v41 = vadd.f32 %v3070_v38, %v2293_v40  ;;  %v3392_v42 = vpop.f32.mrb[41].mxu1 }
 0x514   : > { %v3072_v44 = vmul.f32 -1.442695, %v2294_v41 }
 0x516   : > { %3517 = vpow2.f32 %v3072_v44 }
 0x520   : > { %v3518_v45 = vpop.eup %3517 }
 0x521   : > { %v2300_v48 = vadd.f32 1.0, %v3518_v45 }
 0x523   : > { %3519 = vrcp.f32 %v2300_v48 }
 0x52d   : > { %v3520_v49 = vpop.eup %3519 }
 0x52e   : > { %2304 = vrot.lane.b32.xlu0 %v3520_v49, %s3572_s18 }
 0x5a0   : > { %v2305_v51 = vpop.permute.xlu0 %2304 }
 0x5a1   : > { %v4031_v52 = vmul.f32 %v2305_v51, %v2294_v41 }
 0x5a3   : > { %3394 = vmatpush3.msra.mxu0 %v4031_v52 }
 0x5a4   : > { %3396 = vmatmul.mubr.msk.f32.vlgmr.msra.gmra.mrb[40].mxu0 %vm1734_vm3, %v3920_v0  ;;  %3489 = vmatprep.subr.bf16.mxu0 %v3569_v3 }
 0x5a5   : > { %3411 = vmatprep.mubr.msk.f32.mxu0 %vm3570_vm0, %v3571_v7  ;;  %3491 = vmatpush3.bf16.msra.mxu0 %v3490_v59 }
 0x5a6   : > { %3409 = vmatprep.subr.mxu0 %v3571_v7 }
 0x5a9   : > { %3410 = vmatpush3.msra.mxu0 %v4004_v22 }
 0x5aa   : > { %3412 = vmatmul.mubr.msk.f32.vlgmr.msra.gmra.mrb[42].mxu0 %vm1660_vm2, %v3906_v62  ;;  %3492 = vmatprep.subr.bf16.mxu0 %v3569_v3  ;;  %v3493_v62 = vpack.c.bf16 %v3084_v47, %v3083_v25 }
 0x5ab   : > { %3423 = vmatprep.mubr.msk.f32.mxu0 %vm3570_vm0, %v3571_v7 }
 0x5ac   : > { %3494 = vmatpush3.bf16.msra.mxu0 %v3493_v62 }
 0x5ad   : > { %3495 = vmatprep.subr.bf16.mxu0 %v3569_v3 }
 0x677   : > { %v2374_v61 = vpop.f32.mrb[40].mxu0 }
 0x678   : > { %v2378_v2 = vadd.f32 %v2374_v61, %v2138_v30  ;;  %v3397_v5 = vpop.f32.mrb[41].mxu0 }
 0x67a   : > { %3403 = vmatmul.mubr.msk.f32.vlgmr.msra.gmra.mrb[42].mxu1 %vm446_vm1, %v2378_v2 }
 0x67b   : > { %3415 = vmatpush3.msra.mxu1 %v4060_v1  ;;  %3416 = vmatprep.mubr.msk.f32.mxu1 %vm3570_vm0, %v3571_v7 }
 0x67c   : > { %3426 = vmatprep.subr.mxu1 %v3571_v7 }
 0x67d   : > { %v4077_v6 = vpop.f32.mrb[42].mxu0 }
 0x67e   : > { %3417 = vmatmul.mubr.msk.f32.vlgmr.msra.gmra.mrb[44].mxu1 %vm1734_vm3, %v3920_v0  ;;  %v3413_v8 = vpop.f32.mrb[43].mxu0 }
 0x67f   : > { %3428 = vmatprep.mubr.msk.f32.mxu1 %vm3570_vm0, %v3571_v7 }
 0x74d   : > { %v2459_v10 = vpop.f32.mrb[42].mxu1 }
 0x74e   : > { %v4083_v11 = vadd.f32 %v3077_v9, %v2459_v10  ;;  %v3404_v12 = vpop.f32.mrb[43].mxu1 }
 0x750   : > { %v3079_v13 = vmul.f32 -1.442695, %v4083_v11 }
 0x751   : > { %v2615_v14 = vpop.f32.mrb[44].mxu1 }
 0x752   : > { %3521 = vpow2.f32 %v3079_v13  ;;  %v2619_v16 = vadd.f32 %v2615_v14, %v4077_v6  ;;  %v3418_v17 = vpop.f32.mrb[45].mxu1 }
 0x754   : > { %3424 = vmatmul.mubr.msk.f32.vlgmr.msra.gmra.mrb[44].mxu0 %vm446_vm1, %v2619_v16 }
 0x755   : > { %3435 = vmatprep.mubr.msk.f32.mxu0 %vm3570_vm0, %v3571_v7  ;;  %v1559_v7 = vadd.f32 %v3958_v46, %v3963_v56 }
 0x757   : > { %v3045_v34 = vmul.f32 -1.442695, %v1559_v7 }
 0x75c   : > { %v3522_v3 = vpop.eup %3521 }
 0x75d   : > { %v2466_v18 = vadd.f32 1.0, %v3522_v3  ;;  %v3091_v3 = vld [vmem:[%s4174_s10 + $0x58] sm:$0xff] }
 0x75f   : > { %3523 = vrcp.f32 %v2466_v18 }
 0x760   : > { %3525 = vpow2.f32 %v3064_v36 }
 0x769   : > { %v3524_v19 = vpop.eup %3523 }
 0x76a   : > { %2470 = vrot.lane.b32.xlu0 %v3524_v19, %s3572_s18  ;;  %v3526_v46 = vpop.eup %3525 }
 0x76b   : > { %v2060_v30 = vadd.f32 1.0, %v3526_v46 }
 0x76e   : > { %854 = vrot.lane.b32.xlu0 %v830_v50, %s3572_s18 }
 0x772   : > { %858 = vrot.lane.b32.xlu0 %v4096_v20, %s3572_s18 }
 0x776   : > { %1584 = vrot.lane.b32.xlu0 %v1559_v7, %s3572_s18  ;;  %v3093_v7 = vld [vmem:[%s4175_s11 + $0x5] ss:$0 sm:$0xff] }
 0x7dc   : > { %v2471_v38 = vpop.permute.xlu0 %2470 }
 0x7dd   : > { %v2473_v57 = vmul.f32 %v2471_v38, %v4083_v11 }
 0x7df   : > { %v2474_v61 = vmax.f32 %v4031_v52, %v2473_v57 }
 0x7e0   : > { %v855_v48 = vpop.permute.xlu0 %854 }
 0x7e1   : > { %v2475_v9 = vadd.f32 %v2474_v61, %v4004_v22 }
 0x827   : > { %v2700_v43 = vpop.f32.mrb[44].mxu0 }
 0x828   : > { %v2701_v26 = vadd.f32 %v3086_v23, %v2700_v43  ;;  %v3425_v24 = vpop.f32.mrb[45].mxu0 }
 0x82a   : > { %v3088_v27 = vmul.f32 -1.442695, %v2701_v26 }
 0x82c   : > { %3527 = vpow2.f32 %v3088_v27  ;;  %v3046_v27 = vmul.f32 -1.442695, %v3969_v4 }
 0x836   : > { %v3528_v56 = vpop.eup %3527 }
 0x837   : > { %v2707_v28 = vadd.f32 1.0, %v3528_v56 }
 0x839   : > { %3529 = vrcp.f32 %v2707_v28 }
 0x83a   : > { %3531 = vrcp.f32 %v2060_v30 }
 0x83b   : > { %3533 = vpow2.f32 %v2990_v33 }
 0x83c   : > { %3535 = vpow2.f32 %v3045_v34 }
 0x83d   : > { %3537 = vpow2.f32 %v2989_v35 }
 0x83e   : > { %3539 = vpow2.f32 %v3044_v37 }
 0x843   : > { %v3530_v31 = vpop.eup %3529 }
 0x844   : > { %2711 = vrot.lane.b32.xlu1 %v3530_v31, %s3572_s18  ;;  %v3532_v32 = vpop.eup %3531 }
 0x845   : > { %v3534_v40 = vpop.eup %3533 }
 0x846   : > { %v3536_v41 = vpop.eup %3535  ;;  %v843_v42 = vadd.f32 1.0, %v3534_v40 }
 0x847   : > { %v3538_v44 = vpop.eup %3537  ;;  %v1571_v45 = vadd.f32 1.0, %v3536_v41 }
 0x848   : > { %2064 = vrot.lane.b32.xlu1 %v3532_v32, %s3572_s18  ;;  %v3540_v49 = vpop.eup %3539  ;;  %v842_v51 = vadd.f32 1.0, %v3538_v44  ;;  %3541 = vrcp.f32 %v843_v42 }
 0x849   : > { %v1570_v54 = vadd.f32 1.0, %v3540_v49  ;;  %3543 = vrcp.f32 %v1571_v45 }
 0x84a   : > { %3545 = vrcp.f32 %v842_v51 }
 0x84b   : > { %3547 = vrcp.f32 %v1570_v54 }
 0x84c   : > { %856 = vrot.lane.b32.xlu1 %v3951_v39, %s3572_s18  ;;  %v4118_v39 = vpop.permute.xlu0 %858 }
 0x850   : > { %1582 = vrot.lane.b32.xlu1 %v3961_v53, %s3572_s18  ;;  %v1585_v58 = vpop.permute.xlu0 %1584 }
 0x852   : > { %v3542_v60 = vpop.eup %3541 }
 0x853   : > { %v3544_v5 = vpop.eup %3543 }
 0x854   : > { %v1592_v47 = vmul.f32 %v3544_v5, %v1585_v58  ;;  %v3546_v8 = vpop.eup %3545 }
 0x855   : > { %v3548_v12 = vpop.eup %3547  ;;  %v863_v52 = vmul.f32 %v3546_v8, %v855_v48 }
 0x8b6   : > { %v2712_v55 = vpop.permute.xlu1 %2711 }
 0x8b7   : > { %v4120_v53 = vmul.f32 %v2712_v55, %v2701_v26 }
 0x8b9   : > { %3427 = vmatpush3.msra.mxu1 %v4120_v53 }
 0x8ba   : > { %3429 = vmatmul.mubr.msk.f32.vlgmr.msra.gmra.mrb[46].mxu1 %vm1734_vm3, %v3920_v0  ;;  %v2065_v59 = vpop.permute.xlu1 %2064 }
 0x8bb   : > { %v2067_v2 = vmul.f32 %v2065_v59, %v2054_v29 }
 0x8bd   : > { %v2068_v10 = vmax.f32 %v3975_v15, %v2067_v2  ;;  %v3090_v15 = vld [vmem:[%s4174_s10 + $0x50] sm:$0xff] }
 0x8be   : > { %v857_v25 = vpop.permute.xlu1 %856  ;;  %v3496_v18 = vpack.c.bf16 %v3091_v3, %v3090_v15 }
 0x8bf   : > { %v864_v62 = vmul.f32 %v3542_v60, %v857_v25  ;;  %v2069_v16 = vadd.f32 %v2068_v10, %v3909_v63 }
 0x8c0   : > { %3497 = vmatpush3.bf16.msra.mxu0 %v3496_v18 }
 0x8c1   : > { %v1595_v11 = vadd.f32 %v1592_v47, %v864_v62 }
 0x8c2   : > { %v1583_v0 = vpop.permute.xlu1 %1582 }
 0x8c3   : > { %v2476_v13 = vadd.f32 %v2475_v9, %v1595_v11  ;;  %v1591_v14 = vmul.f32 %v3548_v12, %v1583_v0 }
 0x8c5   : > { %3080 = vst.msk [vmem:[%s4133_s23 + $0x8] sm:$0xff] %vm446_vm1, %v2476_v13  ;;  %v1594_v22 = vadd.f32 %v1591_v14, %v863_v52 }
 0x8c7   : > { %v2070_v17 = vadd.f32 %v2069_v16, %v1594_v22 }
 0x8c9   : > { %2071 = vst.msk [vmem:[%s4133_s23] sm:$0xff] %vm446_vm1, %v2070_v17 }
 0x98d   : > { %v2781_v19 = vpop.f32.mrb[46].mxu1 }
 0x98e   : > { %v2785_v50 = vadd.f32 %v2781_v19, %v4077_v6  ;;  %v3430_v63 = vpop.f32.mrb[47].mxu1  ;;  %v2991_v6 = vmul.f32 -1.442695, %v4096_v20 }
 0x990   : > { %3436 = vmatmul.mubr.msk.f32.vlgmr.msra.gmra.mrb[46].mxu0 %vm446_vm1, %v2785_v50 }
 0xa63   : > { %v2866_v21 = vpop.f32.mrb[46].mxu0 }
 0xa64   : > { %v2867_v29 = vadd.f32 %v3093_v7, %v2866_v21  ;;  %v3437_v23 = vpop.f32.mrb[47].mxu0 }
 0xa66   : > { %v3095_v36 = vmul.f32 -1.442695, %v2867_v29 }
 0xa68   : > { %3549 = vpow2.f32 %v3095_v36 }
 0xa72   : > { %v3550_v43 = vpop.eup %3549 }
 0xa73   : > { %v2873_v26 = vadd.f32 1.0, %v3550_v43 }
 0xa75   : > { %3551 = vrcp.f32 %v2873_v26 }
 0xa76   : > { %3553 = vpow2.f32 %v2991_v6 }
 0xa77   : > { %3555 = vpow2.f32 %v3046_v27 }
 0xa7f   : > { %v3552_v24 = vpop.eup %3551 }
 0xa80   : > { %2877 = vrot.lane.b32.xlu1 %v3552_v24, %s3572_s18  ;;  %v3554_v46 = vpop.eup %3553 }
 0xa81   : > { %v3556_v56 = vpop.eup %3555  ;;  %v844_v28 = vadd.f32 1.0, %v3554_v46 }
 0xa82   : > { %v1572_v30 = vadd.f32 1.0, %v3556_v56 }
 0xa83   : > { %3557 = vrcp.f32 %v844_v28 }
 0xa84   : > { %1586 = vrot.lane.b32.xlu1 %v3969_v4, %s3572_s18  ;;  %3559 = vrcp.f32 %v1572_v30 }
 0xa8d   : > { %v3558_v33 = vpop.eup %3557 }
 0xa8e   : > { %v3560_v35 = vpop.eup %3559  ;;  %v865_v20 = vmul.f32 %v3558_v33, %v4118_v39 }
 0xaf2   : > { %v2878_v31 = vpop.permute.xlu1 %2877 }
 0xaf3   : > { %v2880_v32 = vmul.f32 %v2878_v31, %v2867_v29 }
 0xaf5   : > { %v2881_v34 = vmax.f32 %v4120_v53, %v2880_v32 }
 0xaf6   : > { %v1587_v37 = vpop.permute.xlu1 %1586 }
 0xaf7   : > { %v1593_v38 = vmul.f32 %v3560_v35, %v1587_v37  ;;  %v2882_v4 = vadd.f32 %v2881_v34, %v4060_v1 }
 0xaf9   : > { %v1596_v40 = vadd.f32 %v1593_v38, %v865_v20 }
 0xafb   : > { %v2883_v41 = vadd.f32 %v2882_v4, %v1596_v40 }
 0xafd   : > { %3096 = vst.msk [vmem:[%s4133_s23 + $0x10] sm:$0xff] %vm446_vm1, %v2883_v41 }
 0xafe PF: > { %s22_s21 = sadd.s32 1, %s3567_s21  }
 0xaff   : > { %p19_p4 = scmp.ge.s32.totalorder %s22_s21, 4  }
 0xb01   :  { %21 = sbr.rel (!%p19_p4) target bundleno = 1 (0x1), region = 131 }

// kernel: _lambda_.9
= control target key start
LH: loop header
LB: loop body
LE: loop exit
PB: predicated region body
PF: predicated region fallthrough
CT: control target
= control target key end

     0   :  { %vm29_vm0 = vcmask 392192   ;;  %s719_s0 = inlined_call_operand.vmem [shape: f32[16,48], index: 0, kind: input, shape index: {}]   ;;  %s720_s1 = inlined_call_operand.vmem [shape: f32[3,48,128], index: 1, kind: input, shape index: {}]   ;;  %s721_s2 = inlined_call_operand.vmem [shape: f32[3,1,128], index: 2, kind: input, shape index: {}]   ;;  %s722_s3 = inlined_call_operand.vmem [shape: f32[8,128], index: 3, kind: input, shape index: {}]   ;;  %s723_s4 = inlined_call_operand.vmem [shape: f32[3,1,128], index: 4, kind: input, shape index: {}]   ;;  %s724_s5 = inlined_call_operand.hbm [shape: f32[3,2,8], index: 5, kind: output, shape index: {}]  }
   0x1   :  { %v23_v0 = vld [vmem:[%s720_s1] sm:$0xff]  ;;  %v24_v1 = vld [vmem:[%s720_s1 + $0x8] sm:$0xff]  ;;  %v425_v2 = vld [vmem:[%s720_s1 + $0x30] sm:$0xff] }
   0x2   :  { %v518_v3 = vpack.c.bf16 %v24_v1, %v23_v0  ;;  %v426_v4 = vld [vmem:[%s720_s1 + $0x38] sm:$0xff]  ;;  %v25_v5 = vld [vmem:[%s720_s1 + $0x10] sm:$0xff]  ;;  %v427_v9 = vld [vmem:[%s720_s1 + $0x40] sm:$0xff] }
   0x3   :  { %v26_v6 = vld [vmem:[%s720_s1 + $0x18] sm:$0xff]  ;;  %v530_v7 = vpack.c.bf16 %v426_v4, %v425_v2  ;;  %v428_v10 = vld [vmem:[%s720_s1 + $0x48] sm:$0xff]  ;;  %v27_v11 = vld [vmem:[%s720_s1 + $0x20] sm:$0xff] }
   0x4   :  { %v522_v8 = vpack.c.bf16 %v26_v6, %v25_v5  ;;  %519 = vmatprep.subr.bf16.mxu0 %v518_v3  ;;  %v534_v12 = vpack.c.bf16 %v428_v10, %v427_v9  ;;  %v28_v13 = vld [vmem:[%s720_s1 + $0x28] sm:$0xff]  ;;  %v429_v14 = vld [vmem:[%s720_s1 + $0x50] sm:$0xff]  ;;  %v430_v15 = vld [vmem:[%s720_s1 + $0x58] sm:$0xff] }
   0x5   :  { %521 = vmatpush3.bf16.msra.mxu0 %v518_v3  ;;  %531 = vmatprep.subr.bf16.mxu1 %v530_v7  ;;  %v21_v16 = vld [vmem:[%s719_s0] sm:$0xff]  ;;  %v526_v17 = vpack.c.bf16 %v28_v13, %v27_v11  ;;  %v538_v18 = vpack.c.bf16 %v430_v15, %v429_v14  ;;  %v438_v20 = vld [vmem:[%s720_s1 + $0x68] sm:$0xff] }
   0x6   :  { %533 = vmatpush3.bf16.msra.mxu1 %v530_v7  ;;  %523 = vmatprep.subr.bf16.mxu0 %v522_v8  ;;  %v437_v19 = vld [vmem:[%s720_s1 + $0x60] sm:$0xff] }
   0x7   :  { %535 = vmatprep.subr.bf16.mxu1 %v534_v12  ;;  %485 = vmatprep.mubr.msk.f32.mxu0 %vm29_vm0, %v21_v16 }
   0x8   :  { %10 = vsyncpa [#allocation3], 0  ;;  %500 = vmatprep.mubr.msk.f32.mxu1 %vm29_vm0, %v21_v16  ;;  %v542_v21 = vpack.c.bf16 %v438_v20, %v437_v19  ;;  %v439_v22 = vld [vmem:[%s720_s1 + $0x70] sm:$0xff]  ;;  %v440_v23 = vld [vmem:[%s720_s1 + $0x78] sm:$0xff]  ;;  %v140_v2 = vlaneseq  ;;  %vm150_vm1 = vcmask 1041409   ;;  %vm153_vm2 = vcmask 58368  }
   0x9   :  { %525 = vmatpush3.bf16.msra.mxu0 %v522_v8  ;;  %v22_v24 = vld [vmem:[%s719_s0 + $0x8] sm:$0xff]  ;;  %v546_v25 = vpack.c.bf16 %v440_v23, %v439_v22  ;;  %v441_v26 = vld [vmem:[%s720_s1 + $0x80] sm:$0xff] }
   0xa   :  { %537 = vmatpush3.bf16.msra.mxu1 %v534_v12  ;;  %527 = vmatprep.subr.bf16.mxu0 %v526_v17  ;;  %v442_v27 = vld [vmem:[%s720_s1 + $0x88] sm:$0xff]  ;;  %v423_v30 = vld [vmem:[%s721_s2] ss:$0 sm:$0xff]  ;;  %v434_v34 = vld [vmem:[%s721_s2 + $0x1] ss:$0 sm:$0xff]  ;;  %v141_v3 = vand.u32 127, %v140_v2 }
   0xb   :  { %539 = vmatprep.subr.bf16.mxu1 %v538_v18  ;;  %v550_v28 = vpack.c.bf16 %v442_v27, %v441_v26  ;;  %v122_v38 = vld [vmem:[%s722_s3] sm:$0xff]  ;;  %v143_v4 = vshrl.u32 %v140_v2, 7 }
   0xc   :  { %v424_v43 = vld [vmem:[%s723_s4] ss:$0 sm:$0xff]  ;;  %v436_v46 = vld [vmem:[%s723_s4 + $0x1] ss:$0 sm:$0xff]  ;;  %v446_v55 = vld [vmem:[%s721_s2 + $0x2] ss:$0 sm:$0xff] }
   0xd   :  { %529 = vmatpush3.bf16.msra.mxu0 %v526_v17  ;;  %v448_v61 = vld [vmem:[%s723_s4 + $0x2] ss:$0 sm:$0xff]  ;;  %v144_v6 = vsub.s32 %v141_v3, %v143_v4  ;;  %s581_s2 = smov [#allocation2]  }
   0xe   :  { %541 = vmatpush3.bf16.msra.mxu1 %v538_v18  ;;  %543 = vmatprep.subr.bf16.mxu0 %v542_v21  ;;  %s410_s4 = sshll.u32 %s581_s2, 4  ;;  %s411_s4 = int_to_ptr.vmem [resolvable:$true] %s410_s4 }
   0xf   :  { %s557_s19 = scalar_lea.vmem %s411_s4, 96  ;;  %p562_p1 = scmp.lt.s32.totalorder %s411_s4, %s411_s4 }
  0x10   :  { %486 = vmatmul.mubr.msk.f32.vlgmr.msra.gmra.mrb[0].mxu0 %vm29_vm0, %v22_v24  ;;  %p558_p0 = scmp.ne.s32.totalorder %s411_s4, %s557_s19  ;;  %p563_p2 = scmp.lt.s32.totalorder %s557_s19, %s557_s19 }
  0x11   :  { %501 = vmatmul.mubr.msk.f32.vlgmr.msra.gmra.mrb[0].mxu1 %vm29_vm0, %v22_v24  ;;  %545 = vmatpush3.bf16.msra.mxu0 %v542_v21 }
  0x12   :  { %547 = vmatprep.subr.bf16.mxu0 %v546_v25  ;;  %515 = vmatprep.mubr.msk.f32.mxu0 %vm29_vm0, %v21_v16  ;;  %p564_p3 = por %p563_p2, %p562_p1 }
  0x14   :  { %p565_p4 = pnand %p564_p3, %p558_p0 }
  0x15   :  { %549 = vmatpush3.bf16.msra.mxu0 %v546_v25 }
  0x16   :  { %551 = vmatprep.subr.bf16.mxu0 %v550_v28 }
  0x19   :  { %553 = vmatpush3.bf16.msra.mxu0 %v550_v28 }
  0x1c   :  { %516 = vmatmul.mubr.msk.f32.vlgmr.msra.gmra.mrb[2].mxu0 %vm29_vm0, %v22_v24 }
  0xe3   :  { %v487_v29 = vpop.f32.mrb[0].mxu0 }
  0xe4   :  { %v112_v31 = vmax.f32 %v487_v29, 0.0  ;;  %v102_v32 = vpop.f32.mrb[1].mxu0  ;;  %v502_v33 = vpop.f32.mrb[0].mxu1 }
  0xe5   :  { %v111_v35 = vmax.f32 %v102_v32, 0.0  ;;  %v238_v36 = vmax.f32 %v502_v33, 0.0  ;;  %v228_v37 = vpop.f32.mrb[1].mxu1 }
  0xe6   :  { %v121_v39 = vadd.f32 %v423_v30, %v112_v31  ;;  %v237_v40 = vmax.f32 %v228_v37, 0.0 }
  0xe7   :  { %v120_v41 = vadd.f32 %v423_v30, %v111_v35  ;;  %v248_v42 = vadd.f32 %v434_v34, %v238_v36 }
  0xe8   :  { %v247_v44 = vadd.f32 %v434_v34, %v237_v40  ;;  %v124_v45 = vadd.f32 %v122_v38, %v121_v39 }
  0xe9   :  { %v251_v47 = vadd.f32 %v248_v42, %v122_v38  ;;  %v123_v49 = vadd.f32 %v122_v38, %v120_v41 }
  0xea   :  { %v133_v48 = vmul.f32 %v424_v43, %v124_v45  ;;  %v250_v50 = vadd.f32 %v247_v44, %v122_v38 }
  0xeb   :  { %v261_v51 = vmul.f32 %v436_v46, %v251_v47  ;;  %v132_v53 = vmul.f32 %v424_v43, %v123_v49 }
  0xec   :  { %136 = vadd.xlane.f32.xlu0 %v133_v48  ;;  %v260_v52 = vmul.f32 %v436_v46, %v250_v50 }
  0xed   :  { %264 = vadd.xlane.f32.xlu1 %v261_v51 }
  0xef   :  { %v517_v54 = vpop.f32.mrb[2].mxu0 }
  0xf0   :  { %v363_v56 = vmax.f32 %v517_v54, 0.0  ;;  %v353_v57 = vpop.f32.mrb[3].mxu0  ;;  %134 = vadd.xlane.f32.xlu0 %v132_v53 }
  0xf1   :  { %v362_v58 = vmax.f32 %v353_v57, 0.0  ;;  %262 = vadd.xlane.f32.xlu1 %v260_v52 }
  0xf2   :  { %v373_v59 = vadd.f32 %v446_v55, %v363_v56 }
  0xf3   :  { %v372_v60 = vadd.f32 %v446_v55, %v362_v58 }
  0xf4   :  { %v376_v62 = vadd.f32 %v373_v59, %v122_v38 }
  0xf5   :  { %v375_v63 = vadd.f32 %v372_v60, %v122_v38 }
  0xf6   :  { %v386_v0 = vmul.f32 %v448_v61, %v376_v62 }
  0xf7   :  { %v385_v1 = vmul.f32 %v448_v61, %v375_v63 }
  0xf8   :  { %389 = vadd.xlane.f32.xlu1 %v386_v0 }
  0xf9   :  { %387 = vadd.xlane.f32.xlu0 %v385_v1 }
 0x179   :  { %v137_v5 = vpop.xlane.xlu0 %136 }
 0x17a   :  { %v265_v7 = vpop.xlane.xlu1 %264  ;;  %v149_v10 = vrot.slane %v137_v5, %v144_v6 }
 0x17b   :  { %v275_v8 = vrot.slane %v265_v7, %v144_v6 }
 0x17d   :  { %v135_v9 = vpop.xlane.xlu0 %134 }
 0x17e   :  { %v145_v11 = vrot.slane %v135_v9, %v144_v6  ;;  %v263_v12 = vpop.xlane.xlu1 %262 }
 0x17f   :  { %v271_v13 = vrot.slane %v263_v12, %v144_v6 }
 0x180   :  { %v151_v14 = vsel %vm150_vm1, %v149_v10, %v145_v11 }
 0x181   :  { %154 = vst.msk [vmem:[#allocation2] sm:$0x3] %vm153_vm2, %v151_v14  ;;  %v276_v15 = vsel %vm150_vm1, %v275_v8, %v271_v13 }
 0x182   :  { %279 = vst.msk [vmem:[#allocation2 + $0x2] sm:$0x3] %vm153_vm2, %v276_v15 }
 0x185   :  { %v390_v16 = vpop.xlane.xlu1 %389 }
 0x186   :  { %v400_v17 = vrot.slane %v390_v16, %v144_v6  ;;  %v388_v18 = vpop.xlane.xlu0 %387 }
 0x187   :  { %v396_v19 = vrot.slane %v388_v18, %v144_v6 }
 0x189   :  { %v401_v20 = vsel %vm150_vm1, %v400_v17, %v396_v19 }
 0x18a   :  { %404 = vst.msk [vmem:[#allocation2 + $0x4] sm:$0x3] %vm153_vm2, %v401_v20 }
 0x18b   :  { %568 = shalt.err (!%p565_p4)
}
 0x18c   :  { %s569_s22 = scalar_lea.hbm %s724_s5, 96 }
 0x18d   :  { %p570_p5 = scmp.ne.s32.totalorder %s724_s5, %s569_s22  ;;  %p573_p6 = scmp.lt.u32.totalorder %s569_s22, %s724_s5 }
 0x18f   :  { %p575_p7 = pnand %p573_p6, %p570_p5 }
 0x191   :  { %578 = shalt.err (!%p575_p7)
}
 0x192   :  { %s582_s27 = smov 32   ;;  %s583_s28 = smov 2  }
 0x193   :  { %416 = dma.vmem_to_hbm [thread:$0]  %s411_s4, 96, %s724_s5, [#allocation3], %s582_s27, %s582_s27, %s583_s28  }
 0x194   :  { %579 = dma.done.wait [#allocation3], 96  }
 0x195   :  { %580 = vsyncadd [#allocation3], 4294967200 }
 0x196   :  { %420 = vsyncpa [#allocation3], 1 }

// kernel: _lambda_.8
= control target key start
LH: loop header
LB: loop body
LE: loop exit
PB: predicated region body
PF: predicated region fallthrough
CT: control target
= control target key end

     0   :  { %s2245_s29 = smov 0   ;;  %s2734_s0 = inlined_call_operand.vmem [shape: f32[2,9,8,16], index: 0, kind: input, shape index: {}]   ;;  %s2735_s1 = inlined_call_operand.vmem [shape: f32[2,3,8,16], index: 1, kind: input, shape index: {}]   ;;  %s2736_s2 = inlined_call_operand.vmem [shape: f32[1,9,1,16], index: 2, kind: input, shape index: {}]   ;;  %s2737_s3 = inlined_call_operand.vmem [shape: f32[1,1,8,16], index: 3, kind: input, shape index: {}]   ;;  %s2738_s4 = inlined_call_operand.vmem [shape: f32[16,32], index: 4, kind: input, shape index: {}]   ;;  %s2739_s5 = inlined_call_operand.vmem [shape: f32[1,32], index: 5, kind: input, shape index: {}]   ;;  %s2740_s6 = inlined_call_operand.vmem [shape: f32[24,72], index: 6, kind: input, shape index: {}]   ;;  %s2741_s7 = inlined_call_operand.vmem [shape: f32[24,1], index: 7, kind: input, shape index: {}]   ;;  %s2742_s8 = inlined_call_operand.vmem [shape: f32[1,9,1,16], index: 8, kind: input, shape index: {}]   ;;  %s2743_s9 = inlined_call_operand.vmem [shape: f32[1,1,8,16], index: 9, kind: input, shape index: {}]   ;;  %s2744_s10 = inlined_call_operand.vmem [shape: f32[16,32], index: 10, kind: input, shape index: {}]   ;;  %s2745_s11 = inlined_call_operand.vmem [shape: f32[1,32], index: 11, kind: input, shape index: {}]   ;;  %s2746_s12 = inlined_call_operand.vmem [shape: f32[24,72], index: 12, kind: input, shape index: {}]   ;;  %s2747_s13 = inlined_call_operand.vmem [shape: f32[24,1], index: 13, kind: input, shape index: {}]   ;;  %s2748_s14 = inlined_call_operand.vmem [shape: f32[1,8,16], index: 14, kind: input, shape index: {}]   ;;  %s2749_s15 = inlined_call_operand.vmem [shape: f32[9,1,16], index: 15, kind: input, shape index: {}]   ;;  %s2750_s16 = inlined_call_operand.<no memory space> [shape: f32[1,1], index: 16, kind: input, shape index: {}]   ;;  %s2751_s17 = inlined_call_operand.vmem [shape: f32[9,1,16], index: 17, kind: input, shape index: {}]   ;;  %s2752_s18 = inlined_call_operand.vmem [shape: f32[2,3,8,16], index: 18, kind: output, shape index: {}]  }
   0x1   :  { %2754 = sst [smem:[#allocation3_spill]] %s2734_s0  ;;  %v23_v0 = vstv %s2750_s16 }
   0x2   :  { %2755 = sst [smem:[#allocation4_spill]] %s2735_s1  ;;  %24 = vst [vmem:[#allocation2] sm:$0x1] %v23_v0 }
   0x3   :  { %2756 = sst [smem:[#allocation5_spill]] %s2736_s2 }
   0x4 LB: > { %s1762_s30 = sadd.s32 4294967295, %s2140_s29   ;;  %p1766_p0 = scmp.ge.s32.totalorder %s2140_s29, 1  ;;  %s2140_s29 = sphi %s2245_s29, %s30_s29  }
   0x5   : > { %p524_p1 = scmp.lt.s32.totalorder %s2140_s29, 3 }
   0x7   : > { %p525_p2 = pnand %p1766_p0, %p524_p1 }
   0x8   : > { %v771_v2 = vld [vmem:[%s2738_s4] sm:$0xff] (!%p525_p2)  ;;  %v772_v3 = vld [vmem:[%s2738_s4 + $0x8] sm:$0xff] (!%p525_p2)  ;;  %v2142_v4 = vmov (!%p525_p2), 0   ;;  %v2143_v5 = vmov (!%p525_p2), 0.0|0.0   ;;  %p583_p3 = scmp.lt.s32.totalorder (!%p525_p2), %s1762_s30, 1  ;;  %vm2144_vm0 = vmmov (!%p525_p2), 0  }
   0x9   : > { %528 = sbr.rel (%p525_p2) target bundleno = 761 (0x2f9), region = 92  ;;  %v1825_v1 = vld [vmem:[#allocation2] ss:$0 sm:$0xff] (!%p525_p2)  ;;  %2060 = vset.pattern.permute.xlu0 (!%p525_p2), %v2142_v4  ;;  %2015 = vmatprep.subr.bf16.mxu0 (!%p525_p2), %v2143_v5  ;;  %v2016_v6 = vpack.c.bf16 (!%p525_p2), %v772_v3, %v771_v2  ;;  %v2145_v7 = vmov (!%p525_p2), 0.0   ;;  %v1209_v9 = vld [vmem:[%s2744_s10 + $0x8] sm:$0xff] (!%p525_p2)  ;;  %s2757_s26 = sld [smem:[#allocation5_spill]] (!%p525_p2) }
   0xa   : > { %1196 = vperm.xlu0 (!%p525_p2), %2060, %v1825_v1   ;;  %1903 = vmatprep.mubr.msk.f32.mxu0 (!%p525_p2), %vm2144_vm0, %v2145_v7  ;;  %v1208_v8 = vld [vmem:[%s2744_s10] sm:$0xff] (!%p525_p2)  ;;  %s2758_s20 = sld [smem:[#allocation3_spill]] (!%p525_p2)  ;;  %vm780_vm1 = vcmask (!%p525_p2), 130048   ;;  %s2146_s1 = smov (!%p525_p2), 112   ;;  %vm1483_vm2 = vcmask (!%p525_p2), 588800  }
   0xb   : > { %2017 = vmatpush3.bf16.msra.mxu0 (!%p525_p2), %v2016_v6  ;;  %2018 = vmatprep.subr.bf16.mxu1 (!%p525_p2), %v2143_v5  ;;  %v2019_v13 = vpack.c.bf16 (!%p525_p2), %v1209_v9, %v1208_v8  ;;  %v2292_v14 = vld [vmem:[%s2737_s3] sm:$0xff] (!%p525_p2) }
   0xc   : > { %1934 = vmatprep.mubr.msk.f32.mxu1 (!%p525_p2), %vm2144_vm0, %v2145_v7  ;;  %2021 = vmatprep.subr.bf16.mxu0 (!%p525_p2), %v2143_v5  ;;  %v2310_v21 = vld [vmem:[%s2748_s14] sm:$0xff] (!%p525_p2) }
   0xd   : > { %2061 = vset.pattern.permute.xlu1 (!%p525_p2), %v2142_v4  ;;  %2020 = vmatpush3.bf16.msra.mxu1 (!%p525_p2), %v2019_v13  ;;  %v1779_v26 = vld [vmem:[%s2749_s15] ss:$0 sm:$0xff] (!%p525_p2)  ;;  %v1780_v31 = vld [vmem:[%s2749_s15 + $0x1] ss:$0 sm:$0xff] (!%p525_p2)  ;;  %v1781_v39 = vld [vmem:[%s2749_s15 + $0x2] ss:$0 sm:$0xff] (!%p525_p2) }
   0xe   : > { %2033 = vmatprep.subr.bf16.mxu1 (!%p525_p2), %v2143_v5  ;;  %v1782_v46 = vld [vmem:[%s2749_s15 + $0x3] ss:$0 sm:$0xff] (!%p525_p2)  ;;  %v1783_v53 = vld [vmem:[%s2749_s15 + $0x4] ss:$0 sm:$0xff] (!%p525_p2)  ;;  %v1784_v60 = vld [vmem:[%s2749_s15 + $0x5] ss:$0 sm:$0xff] (!%p525_p2) }
   0xf   : > { %v1770_v10 = vld [vmem:[%s2757_s26] ss:$0 sm:$0xff] (!%p525_p2)  ;;  %v1771_v11 = vld [vmem:[%s2757_s26 + $0x1] ss:$0 sm:$0xff] (!%p525_p2)  ;;  %v1772_v12 = vld [vmem:[%s2757_s26 + $0x2] ss:$0 sm:$0xff] (!%p525_p2) }
  0x10   : > { %s2761_s30 = smov (!%p583_p3, %s1762_s30), 1  ;;  %v1773_v23 = vld [vmem:[%s2757_s26 + $0x3] ss:$0 sm:$0xff]  ;;  %v1774_v33 = vld [vmem:[%s2757_s26 + $0x4] ss:$0 sm:$0xff] }
  0x11   : > { %s2045_s22 = smul.u32 72, %s2761_s30  ;;  %v1775_v41 = vld [vmem:[%s2757_s26 + $0x5] ss:$0 sm:$0xff]  ;;  %v1776_v48 = vld [vmem:[%s2757_s26 + $0x6] ss:$0 sm:$0xff] }
  0x12   : > { %v1777_v55 = vld [vmem:[%s2757_s26 + $0x7] ss:$0 sm:$0xff]  ;;  %v1778_v61 = vld [vmem:[%s2757_s26 + $0x8] ss:$0 sm:$0xff]  ;;  %v1785_v3 = vld [vmem:[%s2749_s15 + $0x6] ss:$0 sm:$0xff] }
  0x13   : > { %s2287_s21 = scalar_lea.vmem %s2758_s20, %s2045_s22  ;;  %v1786_v9 = vld [vmem:[%s2749_s15 + $0x7] ss:$0 sm:$0xff]  ;;  %s2046_s20 = smul.u32 24, %s2761_s30 }
  0x14   : > { %v2295_v15 = vld [vmem:[%s2287_s21] sm:$0xff]  ;;  %v2298_v16 = vld [vmem:[%s2287_s21 + $0x8] sm:$0xff]  ;;  %v2301_v17 = vld [vmem:[%s2287_s21 + $0x10] sm:$0xff]  ;;  %s2759_s22 = sld [smem:[#allocation4_spill]] }
  0x15   : > { %v680_v18 = vadd.f32 %v1770_v10, %v2295_v15  ;;  %v681_v19 = vadd.f32 %v1771_v11, %v2298_v16  ;;  %v682_v20 = vadd.f32 %v1772_v12, %v2301_v17  ;;  %v2313_v22 = vld [vmem:[%s2287_s21 + $0x18] sm:$0xff]  ;;  %v2331_v32 = vld [vmem:[%s2287_s21 + $0x20] sm:$0xff]  ;;  %v2346_v40 = vld [vmem:[%s2287_s21 + $0x28] sm:$0xff]  ;;  %s597_s30 = scalar_lea.vmem %s2752_s18, %s2046_s20 }
  0x16   : > { %v683_v30 = vadd.f32 %v1773_v23, %v2313_v22  ;;  %v684_v38 = vadd.f32 %v1774_v33, %v2331_v32  ;;  %v685_v45 = vadd.f32 %v1775_v41, %v2346_v40  ;;  %v2361_v47 = vld [vmem:[%s2287_s21 + $0x30] sm:$0xff]  ;;  %v2376_v54 = vld [vmem:[%s2287_s21 + $0x38] sm:$0xff]  ;;  %v2394_v62 = vld [vmem:[%s2287_s21 + $0x40] sm:$0xff] }
  0x17   : > { %v690_v24 = vadd.f32 %v2292_v14, %v680_v18  ;;  %v691_v25 = vadd.f32 %v2292_v14, %v681_v19  ;;  %v692_v29 = vadd.f32 %v2292_v14, %v682_v20  ;;  %v686_v52 = vadd.f32 %v1776_v48, %v2361_v47  ;;  %v1787_v12 = vld [vmem:[%s2749_s15 + $0x8] ss:$0 sm:$0xff]  ;;  %v1117_v19 = vld [vmem:[%s2743_s9] sm:$0xff] }
  0x18   : > { %v693_v37 = vadd.f32 %v2292_v14, %v683_v30  ;;  %v694_v44 = vadd.f32 %v2292_v14, %v684_v38  ;;  %v695_v51 = vadd.f32 %v2292_v14, %v685_v45  ;;  %v687_v59 = vadd.f32 %v1777_v55, %v2376_v54  ;;  %v1808_v20 = vld [vmem:[%s2742_s8 + $0x1] ss:$0 sm:$0xff]  ;;  %v1810_v30 = vld [vmem:[%s2742_s8 + $0x3] ss:$0 sm:$0xff]  ;;  %v1811_v38 = vld [vmem:[%s2742_s8 + $0x4] ss:$0 sm:$0xff] }
  0x19   : > { %v699_v27 = vmul.f32 %v690_v24, %v2310_v21  ;;  %v700_v28 = vmul.f32 %v691_v25, %v2310_v21  ;;  %v701_v36 = vmul.f32 %v692_v29, %v2310_v21  ;;  %v696_v58 = vadd.f32 %v2292_v14, %v686_v52  ;;  %v1816_v24 = vld [vmem:[%s2751_s17] ss:$0 sm:$0xff]  ;;  %v1809_v25 = vld [vmem:[%s2742_s8 + $0x2] ss:$0 sm:$0xff]  ;;  %v1817_v29 = vld [vmem:[%s2751_s17 + $0x1] ss:$0 sm:$0xff] }
  0x1a   : > { %v702_v43 = vmul.f32 %v693_v37, %v2310_v21  ;;  %v703_v50 = vmul.f32 %v694_v44, %v2310_v21  ;;  %v704_v57 = vmul.f32 %v695_v51, %v2310_v21  ;;  %v697_v1 = vadd.f32 %v2292_v14, %v687_v59  ;;  %v1818_v37 = vld [vmem:[%s2751_s17 + $0x2] ss:$0 sm:$0xff]  ;;  %v1819_v44 = vld [vmem:[%s2751_s17 + $0x3] ss:$0 sm:$0xff]  ;;  %v1812_v45 = vld [vmem:[%s2742_s8 + $0x5] ss:$0 sm:$0xff]  ;;  %s592_s24 = scalar_lea.vmem %s2759_s22, %s2046_s20 }
  0x1b   : > { %v762_v34 = vmul.f32 %v1779_v26, %v699_v27  ;;  %v763_v35 = vmul.f32 %v1780_v31, %v700_v28  ;;  %v764_v42 = vmul.f32 %v1781_v39, %v701_v36  ;;  %v705_v0 = vmul.f32 %v696_v58, %v2310_v21  ;;  %v1820_v51 = vld [vmem:[%s2751_s17 + $0x4] ss:$0 sm:$0xff]  ;;  %v1813_v52 = vld [vmem:[%s2742_s8 + $0x6] ss:$0 sm:$0xff]  ;;  %v1821_v58 = vld [vmem:[%s2751_s17 + $0x5] ss:$0 sm:$0xff] }
  0x1c   : > { %v765_v49 = vmul.f32 %v1782_v46, %v702_v43  ;;  %v766_v56 = vmul.f32 %v1783_v53, %v703_v50  ;;  %v767_v63 = vmul.f32 %v1784_v60, %v704_v57  ;;  %v688_v2 = vadd.f32 %v1778_v61, %v2394_v62  ;;  %v1814_v59 = vld [vmem:[%s2742_s8 + $0x7] ss:$0 sm:$0xff] }
  0x1d   : > { %1904 = vmatmul.mubr.msk.f32.vlgmr.msra.gmra.mrb[0].mxu0 %vm780_vm1, %v762_v34  ;;  %v768_v4 = vmul.f32 %v1785_v3, %v705_v0  ;;  %v706_v6 = vmul.f32 %v697_v1, %v2310_v21  ;;  %v1109_v23 = vadd.f32 %v1808_v20, %v2298_v16  ;;  %v1110_v28 = vadd.f32 %v1809_v25, %v2301_v17  ;;  %v1822_v1 = vld [vmem:[%s2751_s17 + $0x6] ss:$0 sm:$0xff] }
  0x1e   : > { %1906 = vmatprep.mubr.msk.f32.mxu0 %vm2144_vm0, %v2145_v7  ;;  %v698_v8 = vadd.f32 %v2292_v14, %v688_v2  ;;  %v1807_v14 = vld [vmem:[%s2742_s8] ss:$0 sm:$0xff]  ;;  %v1111_v36 = vadd.f32 %v1810_v30, %v2313_v22  ;;  %v1112_v43 = vadd.f32 %v1811_v38, %v2331_v32  ;;  %v1113_v50 = vadd.f32 %v1812_v45, %v2346_v40  ;;  %v1815_v2 = vld [vmem:[%s2742_s8 + $0x8] ss:$0 sm:$0xff] }
  0x1f   : > { %v769_v10 = vmul.f32 %v1786_v9, %v706_v6  ;;  %v1108_v18 = vadd.f32 %v1807_v14, %v2295_v15  ;;  %v1119_v27 = vadd.f32 %v1117_v19, %v1109_v23  ;;  %v1114_v57 = vadd.f32 %v1813_v52, %v2361_v47  ;;  %v1823_v9 = vld [vmem:[%s2751_s17 + $0x7] ss:$0 sm:$0xff] }
  0x20   : > { %v707_v11 = vmul.f32 %v698_v8, %v2310_v21  ;;  %v1115_v0 = vadd.f32 %v1814_v59, %v2376_v54  ;;  %v1116_v8 = vadd.f32 %v1815_v2, %v2394_v62 }
  0x21   : > { %1907 = vmatmul.mubr.msk.f32.gmra.mrb[2].mxu0 %vm780_vm1, %v763_v35  ;;  %v1118_v21 = vadd.f32 %v1117_v19, %v1108_v18  ;;  %v1182_v34 = vmul.f32 %v1817_v29, %v1119_v27  ;;  %v1120_v35 = vadd.f32 %v1117_v19, %v1110_v28 }
  0x22   : > { %1909 = vmatprep.mubr.msk.f32.mxu0 %vm2144_vm0, %v2145_v7  ;;  %v770_v13 = vmul.f32 %v1787_v12, %v707_v11  ;;  %v1125_v6 = vadd.f32 %v1117_v19, %v1115_v0  ;;  %v1126_v12 = vadd.f32 %v1117_v19, %v1116_v8 }
  0x23   : > { %v1181_v26 = vmul.f32 %v1816_v24, %v1118_v21  ;;  %v1183_v41 = vmul.f32 %v1818_v37, %v1120_v35 }
  0x24   : > { %v1188_v11 = vmul.f32 %v1823_v9, %v1125_v6 }
  0x25   : > { %1910 = vmatmul.mubr.msk.f32.gmra.mrb[4].mxu0 %vm780_vm1, %v764_v42  ;;  %v1121_v42 = vadd.f32 %v1117_v19, %v1111_v36 }
  0x26   : > { %1912 = vmatprep.mubr.msk.f32.mxu0 %vm2144_vm0, %v2145_v7 }
  0x27   : > { %v1184_v48 = vmul.f32 %v1819_v44, %v1121_v42 }
  0x29   : > { %1913 = vmatmul.mubr.msk.f32.gmra.mrb[6].mxu0 %vm780_vm1, %v765_v49  ;;  %v1122_v49 = vadd.f32 %v1117_v19, %v1112_v43 }
  0x2a   : > { %1915 = vmatprep.mubr.msk.f32.mxu0 %vm2144_vm0, %v2145_v7 }
  0x2b   : > { %v1185_v55 = vmul.f32 %v1820_v51, %v1122_v49 }
  0x2d   : > { %1916 = vmatmul.mubr.msk.f32.gmra.mrb[8].mxu0 %vm780_vm1, %v766_v56  ;;  %v1123_v56 = vadd.f32 %v1117_v19, %v1113_v50 }
  0x2e   : > { %1918 = vmatprep.mubr.msk.f32.mxu0 %vm2144_vm0, %v2145_v7 }
  0x2f   : > { %v1186_v61 = vmul.f32 %v1821_v58, %v1123_v56 }
  0x31   : > { %1919 = vmatmul.mubr.msk.f32.gmra.mrb[10].mxu0 %vm780_vm1, %v767_v63  ;;  %v1124_v63 = vadd.f32 %v1117_v19, %v1114_v57  ;;  %v1788_v19 = vld [vmem:[%s2739_s5] ss:$0 sm:$0xff] }
  0x32   : > { %1921 = vmatprep.mubr.msk.f32.mxu0 %vm2144_vm0, %v2145_v7 }
  0x35   : > { %1922 = vmatmul.mubr.msk.f32.gmra.mrb[12].mxu0 %vm780_vm1, %v768_v4  ;;  %v1187_v4 = vmul.f32 %v1822_v1, %v1124_v63 }
  0x36   : > { %1924 = vmatprep.mubr.msk.f32.mxu0 %vm2144_vm0, %v2145_v7 }
  0x39   : > { %1925 = vmatmul.mubr.msk.f32.gmra.mrb[14].mxu0 %vm780_vm1, %v769_v10 }
  0x3a   : > { %1927 = vmatprep.mubr.msk.f32.mxu0 %vm2144_vm0, %v2145_v7 }
  0x3d   : > { %1928 = vmatmul.mubr.msk.f32.gmra.mrb[16].mxu0 %vm780_vm1, %v770_v13  ;;  %v1824_v13 = vld [vmem:[%s2751_s17 + $0x8] ss:$0 sm:$0xff] }
  0x3e   : > { %1979 = vmatprep.mubr.msk.f32.mxu0 %vm2144_vm0, %v2145_v7  ;;  %v1189_v18 = vmul.f32 %v1824_v13, %v1126_v12 }
  0x89   : > { %v1197_v31 = vpop.permute.xlu0 %1196 }
  0x8a   : > { %v1199_v33 = vmul.f32 %v1197_v31, %v1181_v26  ;;  %v1200_v39 = vmul.f32 %v1197_v31, %v1182_v34  ;;  %v1201_v46 = vmul.f32 %v1197_v31, %v1183_v41  ;;  %v1202_v53 = vmul.f32 %v1197_v31, %v1184_v48 }
  0x8b   : > { %v1203_v60 = vmul.f32 %v1197_v31, %v1185_v55  ;;  %v1204_v3 = vmul.f32 %v1197_v31, %v1186_v61  ;;  %v1205_v10 = vmul.f32 %v1197_v31, %v1187_v4  ;;  %v1206_v14 = vmul.f32 %v1197_v31, %v1188_v11 }
  0x8c   : > { %1935 = vmatmul.mubr.msk.f32.vlgmr.msra.gmra.mrb[0].mxu1 %vm780_vm1, %v1199_v33  ;;  %v1207_v20 = vmul.f32 %v1197_v31, %v1189_v18 }
  0x8d   : > { %1937 = vmatprep.mubr.msk.f32.mxu1 %vm2144_vm0, %v2145_v7 }
  0x90   : > { %1938 = vmatmul.mubr.msk.f32.gmra.mrb[2].mxu1 %vm780_vm1, %v1200_v39 }
  0x91   : > { %1940 = vmatprep.mubr.msk.f32.mxu1 %vm2144_vm0, %v2145_v7 }
  0x94   : > { %1941 = vmatmul.mubr.msk.f32.gmra.mrb[4].mxu1 %vm780_vm1, %v1201_v46 }
  0x95   : > { %1943 = vmatprep.mubr.msk.f32.mxu1 %vm2144_vm0, %v2145_v7 }
  0x98   : > { %1944 = vmatmul.mubr.msk.f32.gmra.mrb[6].mxu1 %vm780_vm1, %v1202_v53 }
  0x99   : > { %1946 = vmatprep.mubr.msk.f32.mxu1 %vm2144_vm0, %v2145_v7 }
  0x9c   : > { %1947 = vmatmul.mubr.msk.f32.gmra.mrb[8].mxu1 %vm780_vm1, %v1203_v60 }
  0x9d   : > { %1949 = vmatprep.mubr.msk.f32.mxu1 %vm2144_vm0, %v2145_v7 }
  0xa0   : > { %1950 = vmatmul.mubr.msk.f32.gmra.mrb[10].mxu1 %vm780_vm1, %v1204_v3 }
  0xa1   : > { %1952 = vmatprep.mubr.msk.f32.mxu1 %vm2144_vm0, %v2145_v7 }
  0xa4   : > { %1953 = vmatmul.mubr.msk.f32.gmra.mrb[12].mxu1 %vm780_vm1, %v1205_v10 }
  0xa5   : > { %1955 = vmatprep.mubr.msk.f32.mxu1 %vm2144_vm0, %v2145_v7 }
  0xa8   : > { %1956 = vmatmul.mubr.msk.f32.gmra.mrb[14].mxu1 %vm780_vm1, %v1206_v14 }
  0xa9   : > { %1958 = vmatprep.mubr.msk.f32.mxu1 %vm2144_vm0, %v2145_v7 }
  0xac   : > { %1959 = vmatmul.mubr.msk.f32.gmra.mrb[16].mxu1 %vm780_vm1, %v1207_v20 }
  0xad   : > { %2006 = vmatprep.mubr.msk.f32.mxu1 %vm2144_vm0, %v2145_v7 }
  0xf0   : > { %v874_v21 = vpop.f32.mrb[0].mxu0 }
  0xf1   : > { %v2522_v23 = vadd.f32 %v1788_v19, %v874_v21  ;;  %v1905_v24 = vpop.f32.mrb[1].mxu0 }
  0xf3   : > { %v1798_v25 = vmul.f32 -1.442695, %v2522_v23 }
  0xf4   : > { %v879_v26 = vpop.f32.mrb[2].mxu0 }
  0xf5   : > { %2062 = vpow2.f32 %v1798_v25  ;;  %v2525_v27 = vadd.f32 %v1788_v19, %v879_v26  ;;  %v1908_v28 = vpop.f32.mrb[3].mxu0 }
  0xf7   : > { %v1799_v29 = vmul.f32 -1.442695, %v2525_v27 }
  0xf8   : > { %v884_v30 = vpop.f32.mrb[4].mxu0 }
  0xf9   : > { %2064 = vpow2.f32 %v1799_v29  ;;  %v2528_v31 = vadd.f32 %v1788_v19, %v884_v30  ;;  %v1911_v33 = vpop.f32.mrb[5].mxu0  ;;  %v2559_v30 = vld [vmem:[%s2745_s11] ss:$0 sm:$0xff] }
  0xfb   : > { %v1800_v34 = vmul.f32 -1.442695, %v2528_v31 }
  0xfc   : > { %v889_v35 = vpop.f32.mrb[6].mxu0 }
  0xfd   : > { %2066 = vpow2.f32 %v1800_v34  ;;  %v2531_v36 = vadd.f32 %v1788_v19, %v889_v35  ;;  %v1914_v37 = vpop.f32.mrb[7].mxu0 }
  0xff   : > { %v2063_v38 = vpop.eup %2062  ;;  %v1801_v39 = vmul.f32 -1.442695, %v2531_v36 }
 0x100   : > { %v945_v41 = vadd.f32 1.0, %v2063_v38  ;;  %v894_v42 = vpop.f32.mrb[8].mxu0 }
 0x101   : > { %2068 = vpow2.f32 %v1801_v39  ;;  %v2534_v43 = vadd.f32 %v1788_v19, %v894_v42  ;;  %v1917_v44 = vpop.f32.mrb[9].mxu0 }
 0x102   : > { %2070 = vrcp.f32 %v945_v41 }
 0x103   : > { %v2065_v45 = vpop.eup %2064  ;;  %v1802_v46 = vmul.f32 -1.442695, %v2534_v43 }
 0x104   : > { %v946_v48 = vadd.f32 1.0, %v2065_v45  ;;  %v899_v49 = vpop.f32.mrb[10].mxu0 }
 0x105   : > { %2072 = vpow2.f32 %v1802_v46  ;;  %v2537_v50 = vadd.f32 %v1788_v19, %v899_v49  ;;  %v1920_v51 = vpop.f32.mrb[11].mxu0 }
 0x106   : > { %2074 = vrcp.f32 %v946_v48 }
 0x107   : > { %v2067_v52 = vpop.eup %2066  ;;  %v1803_v53 = vmul.f32 -1.442695, %v2537_v50 }
 0x108   : > { %v947_v55 = vadd.f32 1.0, %v2067_v52  ;;  %v904_v56 = vpop.f32.mrb[12].mxu0 }
 0x109   : > { %2076 = vpow2.f32 %v1803_v53  ;;  %v2540_v57 = vadd.f32 %v1788_v19, %v904_v56  ;;  %v1923_v58 = vpop.f32.mrb[13].mxu0 }
 0x10a   : > { %2078 = vrcp.f32 %v947_v55 }
 0x10b   : > { %v2069_v59 = vpop.eup %2068  ;;  %v1804_v60 = vmul.f32 -1.442695, %v2540_v57 }
 0x10c   : > { %v2071_v61 = vpop.eup %2070  ;;  %v948_v63 = vadd.f32 1.0, %v2069_v59  ;;  %v909_v0 = vpop.f32.mrb[14].mxu0 }
 0x10d   : > { %2080 = vpow2.f32 %v1804_v60  ;;  %v2543_v1 = vadd.f32 %v1788_v19, %v909_v0  ;;  %981 = vrot.lane.b32.xlu0 %v2071_v61, %s2146_s1  ;;  %v1926_v2 = vpop.f32.mrb[15].mxu0 }
 0x10e   : > { %2082 = vrcp.f32 %v948_v63 }
 0x10f   : > { %v2073_v3 = vpop.eup %2072  ;;  %v1805_v4 = vmul.f32 -1.442695, %v2543_v1 }
 0x110   : > { %v2075_v6 = vpop.eup %2074  ;;  %v949_v8 = vadd.f32 1.0, %v2073_v3  ;;  %v914_v9 = vpop.f32.mrb[16].mxu0 }
 0x111   : > { %2084 = vpow2.f32 %v1805_v4  ;;  %983 = vrot.lane.b32.xlu1 %v2075_v6, %s2146_s1  ;;  %v2548_v10 = vadd.f32 %v1788_v19, %v914_v9  ;;  %v1929_v11 = vpop.f32.mrb[17].mxu0 }
 0x112   : > { %2086 = vrcp.f32 %v949_v8 }
 0x113   : > { %v2077_v12 = vpop.eup %2076  ;;  %v1806_v9 = vmul.f32 -1.442695, %v2548_v10 }
 0x114   : > { %v2079_v13 = vpop.eup %2078  ;;  %v950_v14 = vadd.f32 1.0, %v2077_v12 }
 0x115   : > { %985 = vrot.lane.b32.xlu1 %v2079_v13, %s2146_s1 }
 0x116   : > { %2088 = vrcp.f32 %v950_v14 }
 0x117   : > { %v2081_v18 = vpop.eup %2080 }
 0x118   : > { %v2083_v20 = vpop.eup %2082  ;;  %v951_v21 = vadd.f32 1.0, %v2081_v18 }
 0x119   : > { %987 = vrot.lane.b32.xlu0 %v2083_v20, %s2146_s1 }
 0x11a   : > { %2090 = vrcp.f32 %v951_v21 }
 0x11b   : > { %v2085_v24 = vpop.eup %2084 }
 0x11c   : > { %v2087_v25 = vpop.eup %2086  ;;  %v952_v26 = vadd.f32 1.0, %v2085_v24 }
 0x11d   : > { %989 = vrot.lane.b32.xlu1 %v2087_v25, %s2146_s1 }
 0x11e   : > { %2092 = vrcp.f32 %v952_v26 }
 0x120   : > { %v2089_v19 = vpop.eup %2088 }
 0x121   : > { %991 = vrot.lane.b32.xlu0 %v2089_v19, %s2146_s1 }
 0x124   : > { %v2091_v28 = vpop.eup %2090 }
 0x125   : > { %993 = vrot.lane.b32.xlu1 %v2091_v28, %s2146_s1 }
 0x128   : > { %v2093_v29 = vpop.eup %2092 }
 0x129   : > { %995 = vrot.lane.b32.xlu0 %v2093_v29, %s2146_s1 }
 0x15f   : > { %v1310_v33 = vpop.f32.mrb[0].mxu1 }
 0x160   : > { %v2562_v34 = vadd.f32 %v2559_v30, %v1310_v33  ;;  %v1936_v35 = vpop.f32.mrb[1].mxu1  ;;  %v2595_v33 = vmul.f32 2.0, %v2295_v15 }
 0x162   : > { %v1836_v37 = vmul.f32 -1.442695, %v2562_v34 }
 0x163   : > { %v1315_v38 = vpop.f32.mrb[2].mxu1 }
 0x164   : > { %2094 = vpow2.f32 %v1836_v37  ;;  %v2566_v39 = vadd.f32 %v2559_v30, %v1315_v38  ;;  %v1939_v41 = vpop.f32.mrb[3].mxu1  ;;  %v2600_v38 = vmul.f32 2.0, %v2298_v16 }
 0x166   : > { %v1837_v42 = vmul.f32 -1.442695, %v2566_v39 }
 0x167   : > { %v1320_v44 = vpop.f32.mrb[4].mxu1 }
 0x168   : > { %2096 = vpow2.f32 %v1837_v42  ;;  %v2570_v45 = vadd.f32 %v2559_v30, %v1320_v44  ;;  %v1942_v46 = vpop.f32.mrb[5].mxu1 }
 0x16a   : > { %v1838_v48 = vmul.f32 -1.442695, %v2570_v45 }
 0x16b   : > { %v1325_v49 = vpop.f32.mrb[6].mxu1 }
 0x16c   : > { %2098 = vpow2.f32 %v1838_v48  ;;  %v2574_v51 = vadd.f32 %v2559_v30, %v1325_v49  ;;  %v1945_v52 = vpop.f32.mrb[7].mxu1 }
 0x16e   : > { %v2095_v53 = vpop.eup %2094  ;;  %v1839_v55 = vmul.f32 -1.442695, %v2574_v51 }
 0x16f   : > { %v1381_v56 = vadd.f32 1.0, %v2095_v53  ;;  %v1330_v58 = vpop.f32.mrb[8].mxu1 }
 0x170   : > { %2100 = vpow2.f32 %v1839_v55  ;;  %v2578_v59 = vadd.f32 %v2559_v30, %v1330_v58  ;;  %v1948_v60 = vpop.f32.mrb[9].mxu1 }
 0x171   : > { %2102 = vrcp.f32 %v1381_v56 }
 0x172   : > { %v2097_v61 = vpop.eup %2096  ;;  %v1840_v63 = vmul.f32 -1.442695, %v2578_v59 }
 0x173   : > { %v1382_v0 = vadd.f32 1.0, %v2097_v61  ;;  %v1335_v2 = vpop.f32.mrb[10].mxu1 }
 0x174   : > { %2104 = vpow2.f32 %v1840_v63  ;;  %v2582_v3 = vadd.f32 %v2559_v30, %v1335_v2  ;;  %v1951_v4 = vpop.f32.mrb[11].mxu1 }
 0x175   : > { %2106 = vrcp.f32 %v1382_v0  ;;  %v2616_v0 = vmul.f32 2.0, %v2313_v22 }
 0x176   : > { %v2099_v6 = vpop.eup %2098  ;;  %v1841_v8 = vmul.f32 -1.442695, %v2582_v3 }
 0x177   : > { %v1383_v11 = vadd.f32 1.0, %v2099_v6  ;;  %v1340_v12 = vpop.f32.mrb[12].mxu1 }
 0x178   : > { %2108 = vpow2.f32 %v1841_v8  ;;  %v2587_v13 = vadd.f32 %v2559_v30, %v1340_v12  ;;  %v1954_v14 = vpop.f32.mrb[13].mxu1 }
 0x179   : > { %2110 = vrcp.f32 %v1383_v11 }
 0x17a   : > { %v2101_v18 = vpop.eup %2100  ;;  %v1842_v20 = vmul.f32 -1.442695, %v2587_v13  ;;  %2112 = vpow2.f32 %v1806_v9 }
 0x17b   : > { %v2103_v21 = vpop.eup %2102  ;;  %v1384_v24 = vadd.f32 1.0, %v2101_v18  ;;  %v1345_v26 = vpop.f32.mrb[14].mxu1 }
 0x17c   : > { %2114 = vpow2.f32 %v1842_v20  ;;  %v2591_v19 = vadd.f32 %v2559_v30, %v1345_v26  ;;  %v1957_v28 = vpop.f32.mrb[15].mxu1  ;;  %1417 = vrot.lane.b32.xlu1 %v2103_v21, %s2146_s1  ;;  %v2625_v21 = vmul.f32 2.0, %v2331_v32 }
 0x17d   : > { %2116 = vrcp.f32 %v1384_v24  ;;  %v2629_v24 = vmul.f32 2.0, %v2346_v40 }
 0x17e   : > { %v2105_v29 = vpop.eup %2104  ;;  %v1843_v37 = vmul.f32 -1.442695, %v2591_v19 }
 0x17f   : > { %v982_v25 = vpop.permute.xlu0 %981  ;;  %v2107_v41 = vpop.eup %2106  ;;  %v1385_v42 = vadd.f32 1.0, %v2105_v29 }
 0x180   : > { %v1008_v35 = vmul.f32 %v982_v25, %v2522_v23  ;;  %v1350_v46 = vpop.f32.mrb[16].mxu1  ;;  %2118 = vpow2.f32 %v1843_v37  ;;  %1419 = vrot.lane.b32.xlu0 %v2107_v41, %s2146_s1 }
 0x181   : > { %v2604_v49 = vadd.f32 %v2559_v30, %v1350_v46  ;;  %v1960_v52 = vpop.f32.mrb[17].mxu1  ;;  %2120 = vrcp.f32 %v1385_v42  ;;  %v2612_v30 = vmul.f32 2.0, %v2301_v17  ;;  %v2638_v42 = vmul.f32 2.0, %v2361_v47 }
 0x182   : > { %v2109_v15 = vpop.eup %2108  ;;  %v1026_v23 = vadd.f32 %v2595_v33, %v1008_v35 }
 0x183   : > { %v984_v44 = vpop.permute.xlu1 %983  ;;  %v1844_v53 = vmul.f32 -1.442695, %v2604_v49  ;;  %v2111_v55 = vpop.eup %2110  ;;  %v1386_v56 = vadd.f32 1.0, %v2109_v15 }
 0x184   : > { %v1009_v48 = vmul.f32 %v984_v44, %v2525_v27  ;;  %v2113_v60 = vpop.eup %2112  ;;  %1421 = vrot.lane.b32.xlu1 %v2111_v55, %s2146_s1  ;;  %v1467_v55 = vld [vmem:[%s2741_s7 + $0x10] sm:$0xff] }
 0x185   : > { %2122 = vpow2.f32 %v1844_v53  ;;  %v953_v6 = vadd.f32 1.0, %v2113_v60  ;;  %v1465_v53 = vld [vmem:[%s2741_s7] sm:$0xff] }
 0x186   : > { %v1027_v16 = vadd.f32 %v2600_v38, %v1009_v48  ;;  %2124 = vrcp.f32 %v1386_v56  ;;  %v2115_v27 = vpop.eup %2114  ;;  %v1577_v56 = vld [vmem:[%s2747_s13 + $0x8] sm:$0xff] }
 0x187   : > { %v986_v58 = vpop.permute.xlu1 %985  ;;  %v2117_v2 = vpop.eup %2116  ;;  %v1387_v4 = vadd.f32 1.0, %v2115_v27 }
 0x188   : > { %v2022_v61 = vpack.c.bf16 %v1027_v16, %v1026_v23  ;;  %v1010_v63 = vmul.f32 %v986_v58, %v2528_v31  ;;  %1423 = vrot.lane.b32.xlu0 %v2117_v2, %s2146_s1 }
 0x189   : > { %2126 = vrcp.f32 %v1387_v4 }
 0x18a   : > { %2023 = vmatpush3.bf16.msra.mxu0 %v2022_v61  ;;  %v2119_v11 = vpop.eup %2118  ;;  %v1028_v17 = vadd.f32 %v2612_v30, %v1010_v63  ;;  %2128 = vrcp.f32 %v953_v6 }
 0x18b   : > { %v988_v8 = vpop.permute.xlu0 %987  ;;  %2024 = vmatprep.subr.bf16.mxu0 %v2143_v5  ;;  %v2121_v12 = vpop.eup %2120  ;;  %v1388_v22 = vadd.f32 1.0, %v2119_v11 }
 0x18c   : > { %v1011_v9 = vmul.f32 %v988_v8, %v2531_v36  ;;  %1425 = vrot.lane.b32.xlu1 %v2121_v12, %s2146_s1 }
 0x18d   : > { %2130 = vrcp.f32 %v1388_v22 }
 0x18e   : > { %v1029_v31 = vadd.f32 %v2616_v0, %v1011_v9 }
 0x18f   : > { %v990_v14 = vpop.permute.xlu1 %989  ;;  %v2123_v20 = vpop.eup %2122 }
 0x190   : > { %v2025_v18 = vpack.c.bf16 %v1029_v31, %v1028_v17  ;;  %v1012_v36 = vmul.f32 %v990_v14, %v2534_v43  ;;  %v2125_v25 = vpop.eup %2124  ;;  %v1389_v26 = vadd.f32 1.0, %v2123_v20 }
 0x191   : > { %1427 = vrot.lane.b32.xlu0 %v2125_v25, %s2146_s1 }
 0x192   : > { %2026 = vmatpush3.bf16.msra.mxu0 %v2025_v18  ;;  %2132 = vrcp.f32 %v1389_v26  ;;  %v1030_v35 = vadd.f32 %v2625_v21, %v1012_v36 }
 0x193   : > { %v992_v28 = vpop.permute.xlu0 %991  ;;  %2027 = vmatprep.subr.bf16.mxu0 %v2143_v5  ;;  %v2127_v37 = vpop.eup %2126 }
 0x194   : > { %v1013_v29 = vmul.f32 %v992_v28, %v2537_v50  ;;  %1429 = vrot.lane.b32.xlu1 %v2127_v37, %s2146_s1  ;;  %v2129_v40 = vpop.eup %2128  ;;  %v1024_v50 = vmul.f32 2.0, %v2376_v54  ;;  %v1466_v54 = vld [vmem:[%s2741_s7 + $0x8] sm:$0xff] }
 0x195   : > { %v1574_v28 = vld [vmem:[%s2746_s12 + $0x8] sm:$0xff] }
 0x196   : > { %v1031_v32 = vadd.f32 %v2629_v24, %v1013_v29  ;;  %v1575_v29 = vld [vmem:[%s2746_s12 + $0x10] sm:$0xff] }
 0x197   : > { %v994_v43 = vpop.permute.xlu1 %993  ;;  %v2131_v46 = vpop.eup %2130 }
 0x198   : > { %v2028_v41 = vpack.c.bf16 %v1031_v32, %v1030_v35  ;;  %v1014_v44 = vmul.f32 %v994_v43, %v2540_v57  ;;  %1431 = vrot.lane.b32.xlu0 %v2131_v46, %s2146_s1  ;;  %997 = vrot.lane.b32.xlu1 %v2129_v40, %s2146_s1  ;;  %v1576_v57 = vld [vmem:[%s2747_s13] sm:$0xff] }
 0x19a   : > { %2029 = vmatpush3.bf16.msra.mxu0 %v2028_v41  ;;  %v1032_v15 = vadd.f32 %v2638_v42, %v1014_v44 }
 0x19b   : > { %v996_v48 = vpop.permute.xlu0 %995  ;;  %2030 = vmatprep.subr.bf16.mxu0 %v2143_v5 }
 0x19c   : > { %v1015_v52 = vmul.f32 %v996_v48, %v2543_v1  ;;  %v2133_v47 = vpop.eup %2132  ;;  %v1578_v1 = vld [vmem:[%s2747_s13 + $0x10] sm:$0xff]  ;;  %1470 = vperm.xlu1 %2061, %v1465_v53  }
 0x19d   : > { %1433 = vrot.lane.b32.xlu0 %v2133_v47, %s2146_s1 }
 0x19e   : > { %v1033_v23 = vadd.f32 %v1024_v50, %v1015_v52  ;;  %v1683_v52 = vld [vmem:[%s592_s24] sm:$0xff] }
 0x1a0   : > { %v2031_v16 = vpack.c.bf16 %v1033_v23, %v1032_v15  ;;  %1480 = vperm.xlu1 %2061, %v1467_v55  }
 0x1a1   : > { %1475 = vperm.xlu0 %2060, %v1466_v54  }
 0x1a2   : > { %2032 = vmatpush3.bf16.msra.mxu0 %v2031_v16 }
 0x1a3   : > { %1977 = vmatprep.subr.mxu0 %v2145_v7 }
 0x1a4   : > { %1586 = vperm.xlu1 %2061, %v1577_v56   ;;  %v1684_v56 = vld [vmem:[%s592_s24 + $0x8] sm:$0xff] }
 0x1a5   : > { %1581 = vperm.xlu0 %2060, %v1576_v57  }
 0x1a9   : > { %1591 = vperm.xlu0 %2060, %v1578_v1  }
 0x1ee   : > { %v1418_v58 = vpop.permute.xlu1 %1417 }
 0x1ef   : > { %v1444_v60 = vmul.f32 %v1418_v58, %v2562_v34 }
 0x1f1   : > { %v1453_v63 = vadd.f32 %v1444_v60, %v2595_v33 }
 0x1f2   : > { %v1420_v61 = vpop.permute.xlu0 %1419 }
 0x1f3   : > { %v1445_v27 = vmul.f32 %v1420_v61, %v2566_v39 }
 0x1f5   : > { %v1454_v2 = vadd.f32 %v1445_v27, %v2600_v38 }
 0x1f6   : > { %v1422_v4 = vpop.permute.xlu1 %1421 }
 0x1f7   : > { %v2034_v6 = vpack.c.bf16 %v1454_v2, %v1453_v63  ;;  %v1446_v8 = vmul.f32 %v1422_v4, %v2570_v45 }
 0x1f9   : > { %2035 = vmatpush3.bf16.msra.mxu1 %v2034_v6  ;;  %v1455_v17 = vadd.f32 %v1446_v8, %v2612_v30  ;;  %v1685_v6 = vld [vmem:[%s592_s24 + $0x10] sm:$0xff] }
 0x1fa   : > { %v1424_v9 = vpop.permute.xlu0 %1423  ;;  %2036 = vmatprep.subr.bf16.mxu1 %v2143_v5 }
 0x1fb   : > { %v1447_v11 = vmul.f32 %v1424_v9, %v2574_v51 }
 0x1fd   : > { %v1456_v34 = vadd.f32 %v1447_v11, %v2616_v0  ;;  %v1025_v0 = vmul.f32 2.0, %v2394_v62 }
 0x1fe   : > { %v1426_v31 = vpop.permute.xlu1 %1425 }
 0x1ff   : > { %v2037_v39 = vpack.c.bf16 %v1456_v34, %v1455_v17  ;;  %v1448_v33 = vmul.f32 %v1426_v31, %v2578_v59 }
 0x201   : > { %2038 = vmatpush3.bf16.msra.mxu1 %v2037_v39  ;;  %v1457_v12 = vadd.f32 %v1448_v33, %v2625_v21 }
 0x202   : > { %2039 = vmatprep.subr.bf16.mxu1 %v2143_v5 }
 0x203   : > { %v1428_v38 = vpop.permute.xlu0 %1427 }
 0x204   : > { %v1449_v45 = vmul.f32 %v1428_v38, %v2582_v3 }
 0x206   : > { %v1458_v22 = vadd.f32 %v1449_v45, %v2629_v24  ;;  %v1430_v14 = vpop.permute.xlu1 %1429  ;;  %v1462_v24 = vld [vmem:[%s2740_s6] sm:$0xff] }
 0x207   : > { %v1450_v30 = vmul.f32 %v1430_v14, %v2587_v13 }
 0x208   : > { %v2040_v51 = vpack.c.bf16 %v1458_v22, %v1457_v12 }
 0x209   : > { %v1459_v3 = vadd.f32 %v1450_v30, %v2638_v42 }
 0x20a   : > { %2041 = vmatpush3.bf16.msra.mxu1 %v2040_v51  ;;  %v1432_v18 = vpop.permute.xlu0 %1431  ;;  %v998_v20 = vpop.permute.xlu1 %997 }
 0x20b   : > { %2042 = vmatprep.subr.bf16.mxu1 %v2143_v5  ;;  %v1451_v59 = vmul.f32 %v1432_v18, %v2591_v19  ;;  %v1016_v36 = vmul.f32 %v998_v20, %v2548_v10  ;;  %v1463_v5 = vld [vmem:[%s2740_s6 + $0x8] sm:$0xff]  ;;  %v1573_v19 = vld [vmem:[%s2746_s12] sm:$0xff] }
 0x20d   : > { %v1460_v21 = vadd.f32 %v1451_v59, %v1024_v50  ;;  %v1034_v25 = vadd.f32 %v1025_v0, %v1016_v36 }
 0x20f   : > { %v1434_v13 = vpop.permute.xlu0 %1433  ;;  %v2043_v26 = vpack.c.bf16 %v1460_v21, %v1459_v3  ;;  %1978 = vmatpush3.msra.mxu0 %v1034_v25 }
 0x210   : > { %v1452_v62 = vmul.f32 %v1434_v13, %v2604_v49  ;;  %1980 = vmatmul.mubr.msk.f32.vlgmr.msra.gmra.mrb[18].mxu0 %vm1483_vm2, %v1462_v24  ;;  %v1464_v49 = vld [vmem:[%s2740_s6 + $0x10] sm:$0xff] }
 0x211   : > { %2044 = vmatpush3.bf16.msra.mxu1 %v2043_v26  ;;  %1982 = vmatprep.mubr.msk.f32.mxu0 %vm2144_vm0, %v2145_v7 }
 0x212   : > { %2004 = vmatprep.subr.mxu1 %v2145_v7  ;;  %v1461_v10 = vadd.f32 %v1452_v62, %v1025_v0 }
 0x214   : > { %1983 = vmatmul.mubr.msk.f32.gmra.mrb[20].mxu0 %vm1483_vm2, %v1463_v5 }
 0x215   : > { %2005 = vmatpush3.msra.mxu1 %v1461_v10  ;;  %1985 = vmatprep.mubr.msk.f32.mxu0 %vm2144_vm0, %v2145_v7 }
 0x216   : > { %2007 = vmatmul.mubr.msk.f32.vlgmr.msra.gmra.mrb[18].mxu1 %vm1483_vm2, %v1573_v19 }
 0x217   : > { %2009 = vmatprep.mubr.msk.f32.mxu1 %vm2144_vm0, %v2145_v7 }
 0x218   : > { %1986 = vmatmul.mubr.msk.f32.gmra.mrb[22].mxu0 %vm1483_vm2, %v1464_v49 }
 0x21a   : > { %2010 = vmatmul.mubr.msk.f32.gmra.mrb[20].mxu1 %vm1483_vm2, %v1574_v28 }
 0x21b   : > { %2012 = vmatprep.mubr.msk.f32.mxu1 %vm2144_vm0, %v2145_v7  ;;  %v1471_v35 = vpop.permute.xlu1 %1470 }
 0x21e   : > { %2013 = vmatmul.mubr.msk.f32.gmra.mrb[22].mxu1 %vm1483_vm2, %v1575_v29 }
 0x21f   : > { %v1481_v40 = vpop.permute.xlu1 %1480 }
 0x220   : > { %v1476_v32 = vpop.permute.xlu0 %1475 }
 0x223   : > { %v1587_v54 = vpop.permute.xlu1 %1586 }
 0x224   : > { %v1582_v7 = vpop.permute.xlu0 %1581 }
 0x228   : > { %v1592_v60 = vpop.permute.xlu0 %1591 }
 0x2e3   : > { %v1559_v37 = vpop.f32.mrb[18].mxu0 }
 0x2e4   : > { %v1981_v43 = vpop.f32.mrb[19].mxu0  ;;  %v1560_v42 = vadd.f32 %v1559_v37, %v1471_v35 }
 0x2e7   : > { %v1564_v41 = vpop.f32.mrb[20].mxu0 }
 0x2e8   : > { %v1984_v44 = vpop.f32.mrb[21].mxu0  ;;  %v1565_v57 = vadd.f32 %v1564_v41, %v1476_v32 }
 0x2e9   : > { %v1669_v50 = vpop.f32.mrb[18].mxu1 }
 0x2ea   : > { %v1670_v46 = vadd.f32 %v1669_v50, %v1582_v7  ;;  %v2008_v48 = vpop.f32.mrb[19].mxu1 }
 0x2eb   : > { %v1569_v15 = vpop.f32.mrb[22].mxu0 }
 0x2ec   : > { %v1686_v23 = vadd.f32 %v1670_v46, %v1560_v42  ;;  %v1987_v47 = vpop.f32.mrb[23].mxu0  ;;  %v1570_v63 = vadd.f32 %v1569_v15, %v1481_v40 }
 0x2ed   : > { %v1674_v16 = vpop.f32.mrb[20].mxu1 }
 0x2ee   : > { %v1689_v1 = vadd.f32 %v1686_v23, %v1683_v52  ;;  %v1675_v53 = vadd.f32 %v1674_v16, %v1587_v54  ;;  %v2011_v55 = vpop.f32.mrb[21].mxu1 }
 0x2f0   : > { %1692 = vst.msk [vmem:[%s597_s30] sm:$0xff] %vm780_vm1, %v1689_v1  ;;  %v1687_v58 = vadd.f32 %v1675_v53, %v1565_v57 }
 0x2f1   : > { %v1679_v61 = vpop.f32.mrb[22].mxu1 }
 0x2f2   : > { %v1690_v27 = vadd.f32 %v1687_v58, %v1684_v56  ;;  %v1680_v2 = vadd.f32 %v1679_v61, %v1592_v60  ;;  %v2014_v4 = vpop.f32.mrb[23].mxu1 }
 0x2f4   : > { %1693 = vst.msk [vmem:[%s597_s30 + $0x8] sm:$0xff] %vm780_vm1, %v1690_v27  ;;  %v1688_v8 = vadd.f32 %v1680_v2, %v1570_v63 }
 0x2f6   : > { %v1691_v9 = vadd.f32 %v1688_v8, %v1685_v6 }
 0x2f8   : > { %1694 = vst.msk [vmem:[%s597_s30 + $0x10] sm:$0xff] %vm780_vm1, %v1691_v9 }
 0x2f9 PF: > { %s30_s29 = sadd.s32 1, %s2140_s29  }
 0x2fa   : > { %p27_p4 = scmp.ge.s32.totalorder %s30_s29, 4  }
 0x2fc   :  { %29 = sbr.rel (!%p27_p4) target bundleno = 4 (0x4), region = 125 }

// kernel: _lambda_.6
= control target key start
LH: loop header
LB: loop body
LE: loop exit
PB: predicated region body
PF: predicated region fallthrough
CT: control target
= control target key end

     0   :  { %s5190_s21 = smov 0   ;;  %s5904_s0 = inlined_call_operand.vmem [shape: f32[2,9,8,16], index: 0, kind: input, shape index: {}, may-alias: {0,1}]   ;;  %s5905_s1 = inlined_call_operand.vmem [shape: f32[2,9,8,16], index: 1, kind: input, shape index: {}, may-alias: {0,1}]   ;;  %s5906_s2 = inlined_call_operand.vmem [shape: f32[4,16,32], index: 2, kind: input, shape index: {}]   ;;  %s5907_s3 = inlined_call_operand.vmem [shape: f32[1,32], index: 3, kind: input, shape index: {}]   ;;  %s5908_s4 = inlined_call_operand.vmem [shape: f32[4,16,32], index: 4, kind: input, shape index: {}]   ;;  %s5909_s5 = inlined_call_operand.vmem [shape: f32[1,32], index: 5, kind: input, shape index: {}]   ;;  %s5910_s6 = inlined_call_operand.vmem [shape: f32[1,9,1,16], index: 6, kind: input, shape index: {}]   ;;  %s5911_s7 = inlined_call_operand.vmem [shape: f32[1,1,8,16], index: 7, kind: input, shape index: {}]   ;;  %s5912_s8 = inlined_call_operand.vmem [shape: f32[8,24], index: 8, kind: input, shape index: {}]   ;;  %s5913_s9 = inlined_call_operand.vmem [shape: f32[8,8], index: 9, kind: input, shape index: {}]   ;;  %s5914_s10 = inlined_call_operand.vmem [shape: f32[6,2,16,32], index: 10, kind: input, shape index: {}]   ;;  %s5915_s11 = inlined_call_operand.vmem [shape: f32[6,2,1,32], index: 11, kind: input, shape index: {}]   ;;  %s5916_s12 = inlined_call_operand.vmem [shape: f32[2,6,8,16], index: 12, kind: output, shape index: {}]  }
   0x1 LB: > { %s4210_s22 = sadd.s32 4294967295, %s5119_s21   ;;  %p4214_p0 = scmp.ge.s32.totalorder %s5119_s21, 1  ;;  %s5119_s21 = sphi %s5190_s21, %s22_s21  }
   0x2   : > { %p372_p1 = scmp.lt.s32.totalorder %s5119_s21, 3 }
   0x4   : > { %p373_p2 = pnand %p4214_p0, %p372_p1 }
   0x5   : > { %v4224_v0 = vld [vmem:[%s5906_s2 + $0x10] sm:$0xff] (!%p373_p2)  ;;  %v4225_v1 = vld [vmem:[%s5906_s2 + $0x18] sm:$0xff] (!%p373_p2)  ;;  %p419_p3 = scmp.lt.s32.totalorder (!%p373_p2), %s4210_s22, 1  ;;  %v440_v5 = vld [vmem:[%s5906_s2] sm:$0xff] (!%p373_p2)  ;;  %vm452_vm0 = vcmask (!%p373_p2), 130048   ;;  %v5121_v42 = vmov (!%p373_p2), 0.0|0.0  }
   0x6   : > { %376 = sbr.rel (%p373_p2) target bundleno = 5170 (0x1432), region = 68  ;;  %v4279_v2 = vld [vmem:[%s5908_s4 + $0x10] sm:$0xff] (!%p373_p2)  ;;  %v4881_v3 = vpack.c.bf16 (!%p373_p2), %v4225_v1, %v4224_v0  ;;  %v4280_v4 = vld [vmem:[%s5908_s4 + $0x18] sm:$0xff] (!%p373_p2)  ;;  %v441_v6 = vld [vmem:[%s5906_s2 + $0x8] sm:$0xff] (!%p373_p2)  ;;  %v5122_v43 = vmov (!%p373_p2), 0.0   ;;  %vm5123_vm1 = vmmov (!%p373_p2), 0  }
   0x7   : > { %v4897_v7 = vpack.c.bf16 (!%p373_p2), %v4280_v4, %v4279_v2  ;;  %v4885_v8 = vpack.c.bf16 (!%p373_p2), %v441_v6, %v440_v5  ;;  %v1022_v9 = vld [vmem:[%s5908_s4] sm:$0xff] (!%p373_p2)  ;;  %v1023_v10 = vld [vmem:[%s5908_s4 + $0x8] sm:$0xff] (!%p373_p2)  ;;  %v4258_v32 = vld [vmem:[%s5906_s2 + $0x30] sm:$0xff] (!%p373_p2)  ;;  %vm1696_vm2 = vcmask (!%p373_p2), 195584   ;;  %vm1770_vm3 = vcmask (!%p373_p2), 64512   ;;  %s5124_s24 = smov (!%p373_p2), 112  }
   0x8   : > { %4882 = vmatprep.subr.bf16.mxu0 (!%p373_p2), %v4881_v3  ;;  %v4901_v11 = vpack.c.bf16 (!%p373_p2), %v1023_v10, %v1022_v9  ;;  %v4244_v12 = vld [vmem:[%s5906_s2 + $0x20] sm:$0xff] (!%p373_p2)  ;;  %v4245_v13 = vld [vmem:[%s5906_s2 + $0x28] sm:$0xff] (!%p373_p2)  ;;  %v4259_v33 = vld [vmem:[%s5906_s2 + $0x38] sm:$0xff] (!%p373_p2) }
   0x9   : > { %4898 = vmatprep.subr.bf16.mxu1 (!%p373_p2), %v4897_v7  ;;  %4884 = vmatpush3.bf16.msra.mxu0 (!%p373_p2), %v4881_v3  ;;  %v4299_v14 = vld [vmem:[%s5908_s4 + $0x20] sm:$0xff] (!%p373_p2)  ;;  %v4300_v15 = vld [vmem:[%s5908_s4 + $0x28] sm:$0xff] (!%p373_p2)  ;;  %v4889_v22 = vpack.c.bf16 (!%p373_p2), %v4245_v13, %v4244_v12  ;;  %v4313_v34 = vld [vmem:[%s5908_s4 + $0x30] sm:$0xff] (!%p373_p2)  ;;  %v4893_v36 = vpack.c.bf16 (!%p373_p2), %v4259_v33, %v4258_v32 }
   0xa   : > { %4900 = vmatpush3.bf16.msra.mxu1 (!%p373_p2), %v4897_v7  ;;  %4886 = vmatprep.subr.bf16.mxu0 (!%p373_p2), %v4885_v8  ;;  %v4905_v23 = vpack.c.bf16 (!%p373_p2), %v4300_v15, %v4299_v14  ;;  %v4314_v35 = vld [vmem:[%s5908_s4 + $0x38] sm:$0xff] (!%p373_p2)  ;;  %v4328_v38 = vld [vmem:[%s5910_s6] ss:$0 sm:$0xff] (!%p373_p2)  ;;  %v4329_v39 = vld [vmem:[%s5910_s6 + $0x1] ss:$0 sm:$0xff] (!%p373_p2) }
   0xb   : > { %4902 = vmatprep.subr.bf16.mxu1 (!%p373_p2), %v4901_v11  ;;  %v4909_v37 = vpack.c.bf16 (!%p373_p2), %v4314_v35, %v4313_v34  ;;  %v5358_v44 = vld [vmem:[%s5911_s7] sm:$0xff] (!%p373_p2)  ;;  %v1846_v61 = vld [vmem:[%s5914_s10 + $0x8] sm:$0xff] (!%p373_p2) }
   0xc   : > { %v4331_v45 = vld [vmem:[%s5910_s6 + $0x3] ss:$0 sm:$0xff] (!%p373_p2)  ;;  %v4330_v51 = vld [vmem:[%s5910_s6 + $0x2] ss:$0 sm:$0xff] (!%p373_p2)  ;;  %v5457_v63 = vld [vmem:[%s5907_s3] ss:$0 sm:$0xff] (!%p373_p2) }
   0xd   : > { %s5918_s22 = smov (!%p419_p3, %s4210_s22), 1  ;;  %v5432_v58 = vld [vmem:[%s5912_s8] sm:$0xff] }
   0xe   : > { %s5003_s23 = smul.u32 72, %s5918_s22  ;;  %v5437_v59 = vld [vmem:[%s5913_s9] sm:$0xff] }
   0xf   : > { %v1845_v60 = vld [vmem:[%s5914_s10] sm:$0xff]  ;;  %s5004_s27 = smul.u32 48, %s5918_s22 }
  0x10   : > { %s5240_s16 = scalar_lea.vmem %s5904_s0, %s5003_s23  ;;  %s5245_s19 = scalar_lea.vmem %s5905_s1, %s5003_s23  ;;  %v4917_v62 = vpack.c.bf16 %v1846_v61, %v1845_v60  ;;  %v5462_v0 = vld [vmem:[%s5909_s5] ss:$0 sm:$0xff] }
  0x11   : > { %v5248_v16 = vld [vmem:[%s5240_s16 + $0x8] sm:$0xff]  ;;  %v5252_v18 = vld [vmem:[%s5240_s16 + $0x10] sm:$0xff]  ;;  %v5259_v20 = vld [vmem:[%s5240_s16 + $0x18] sm:$0xff]  ;;  %s5829_s30 = scalar_lea.vmem %s5916_s12, %s5004_s27 }
  0x12   : > { %v4273_v17 = vld [vmem:[%s5245_s19 + $0x8] sm:$0xff]  ;;  %4583 = vmatprep.mubr.msk.f32.mxu0 %vm452_vm0, %v5248_v16  ;;  %v4274_v19 = vld [vmem:[%s5245_s19 + $0x10] sm:$0xff]  ;;  %v5262_v21 = vld [vmem:[%s5245_s19 + $0x18] sm:$0xff]  ;;  %v1676_v41 = vadd.f32 %v4329_v39, %v5248_v16  ;;  %v1678_v50 = vadd.f32 %v4331_v45, %v5259_v20  ;;  %v1677_v54 = vadd.f32 %v4330_v51, %v5252_v18 }
  0x13   : > { %4635 = vmatprep.mubr.msk.f32.mxu1 %vm452_vm0, %v4273_v17  ;;  %4584 = vmatmul.mubr.msk.f32.vlgmr.msra.gmra.mrb[0].mxu0 %vm452_vm0, %v5252_v18  ;;  %v5270_v24 = vld [vmem:[%s5240_s16 + $0x20] sm:$0xff]  ;;  %v5278_v26 = vld [vmem:[%s5240_s16 + $0x28] sm:$0xff]  ;;  %v5292_v28 = vld [vmem:[%s5240_s16 + $0x30] sm:$0xff] }
  0x14   : > { %4636 = vmatmul.mubr.msk.f32.vlgmr.msra.gmra.mrb[0].mxu1 %vm452_vm0, %v4274_v19  ;;  %4586 = vmatprep.mubr.msk.f32.mxu0 %vm452_vm0, %v5259_v20  ;;  %v5273_v25 = vld [vmem:[%s5245_s19 + $0x20] sm:$0xff]  ;;  %v5281_v27 = vld [vmem:[%s5245_s19 + $0x28] sm:$0xff]  ;;  %v5295_v29 = vld [vmem:[%s5245_s19 + $0x30] sm:$0xff]  ;;  %v5377_v49 = vadd.f32 %v5358_v44, %v1676_v41  ;;  %v5392_v53 = vadd.f32 %v5358_v44, %v1678_v50  ;;  %v5405_v55 = vadd.f32 %v5358_v44, %v1677_v54 }
  0x15   : > { %4888 = vmatpush3.bf16.msra.mxu0 %v4885_v8  ;;  %4638 = vmatprep.mubr.msk.f32.mxu1 %vm452_vm0, %v5262_v21  ;;  %v434_v30 = vld [vmem:[%s5240_s16] sm:$0xff]  ;;  %v5372_v46 = vld [vmem:[%s5240_s16 + $0x38] sm:$0xff]  ;;  %v4352_v51 = vld [vmem:[%s5914_s10 + $0x28] sm:$0xff] }
  0x16   : > { %4904 = vmatpush3.bf16.msra.mxu1 %v4901_v11  ;;  %4890 = vmatprep.subr.bf16.mxu0 %v4889_v22  ;;  %v1016_v31 = vld [vmem:[%s5245_s19] sm:$0xff]  ;;  %v1675_v40 = vadd.f32 %v4328_v38, %v434_v30  ;;  %v4298_v47 = vld [vmem:[%s5245_s19 + $0x38] sm:$0xff] }
  0x17   : > { %4906 = vmatprep.subr.bf16.mxu1 %v4905_v23  ;;  %4587 = vmatmul.mubr.msk.f32.gmra.mrb[2].mxu0 %vm452_vm0, %v5270_v24  ;;  %v5417_v56 = vld [vmem:[%s5240_s16 + $0x40] sm:$0xff]  ;;  %v4344_v38 = vld [vmem:[%s5914_s10 + $0x18] sm:$0xff] }
  0x18   : > { %4639 = vmatmul.mubr.msk.f32.gmra.mrb[2].mxu1 %vm452_vm0, %v5273_v25  ;;  %4589 = vmatprep.mubr.msk.f32.mxu0 %vm452_vm0, %v5278_v26  ;;  %v1685_v48 = vadd.f32 %v5358_v44, %v1675_v40  ;;  %v4312_v57 = vld [vmem:[%s5245_s19 + $0x40] sm:$0xff]  ;;  %v4923_v40 = vpack.c.bf16 %v5405_v55, %v5377_v49 }
  0x19   : > { %4641 = vmatprep.mubr.msk.f32.mxu1 %vm452_vm0, %v5281_v27  ;;  %v4332_v41 = vld [vmem:[%s5910_s6 + $0x4] ss:$0 sm:$0xff] }
  0x1a   : > { %v4914_v52 = vpack.c.bf16 %v5377_v49, %v1685_v48  ;;  %v1679_v45 = vadd.f32 %v4332_v41, %v5270_v24 }
  0x1b   : > { %4590 = vmatmul.mubr.msk.f32.gmra.mrb[4].mxu0 %vm452_vm0, %v5292_v28 }
  0x1c   : > { %4642 = vmatmul.mubr.msk.f32.gmra.mrb[4].mxu1 %vm452_vm0, %v5295_v29  ;;  %4596 = vmatprep.mubr.msk.f32.mxu0 %vm452_vm0, %v434_v30  ;;  %v5530_v48 = vadd.f32 %v5358_v44, %v1679_v45 }
  0x1d   : > { %4648 = vmatprep.mubr.msk.f32.mxu1 %vm452_vm0, %v1016_v31 }
  0x1f   : > { %4597 = vmatmul.mubr.msk.f32.vlgmr.msra.gmra.mrb[0].mxu0 %vm452_vm0, %v5248_v16 }
  0x20   : > { %4649 = vmatmul.mubr.msk.f32.vlgmr.msra.gmra.mrb[0].mxu1 %vm452_vm0, %v4273_v17  ;;  %4599 = vmatprep.mubr.msk.f32.mxu0 %vm452_vm0, %v5252_v18 }
  0x21   : > { %4892 = vmatpush3.bf16.msra.mxu0 %v4889_v22  ;;  %4651 = vmatprep.mubr.msk.f32.mxu1 %vm452_vm0, %v4274_v19 }
  0x22   : > { %4908 = vmatpush3.bf16.msra.mxu1 %v4905_v23  ;;  %4894 = vmatprep.subr.bf16.mxu0 %v4893_v36 }
  0x23   : > { %4910 = vmatprep.subr.bf16.mxu1 %v4909_v37  ;;  %4600 = vmatmul.mubr.msk.f32.gmra.mrb[2].mxu0 %vm452_vm0, %v5259_v20 }
  0x24   : > { %4652 = vmatmul.mubr.msk.f32.gmra.mrb[2].mxu1 %vm452_vm0, %v5262_v21  ;;  %4602 = vmatprep.mubr.msk.f32.mxu0 %vm452_vm0, %v5270_v24 }
  0x25   : > { %4654 = vmatprep.mubr.msk.f32.mxu1 %vm452_vm0, %v5273_v25 }
  0x27   : > { %4603 = vmatmul.mubr.msk.f32.gmra.mrb[4].mxu0 %vm452_vm0, %v5278_v26 }
  0x28   : > { %4655 = vmatmul.mubr.msk.f32.gmra.mrb[4].mxu1 %vm452_vm0, %v5281_v27  ;;  %4609 = vmatprep.mubr.msk.f32.mxu0 %vm452_vm0, %v5252_v18 }
  0x29   : > { %4661 = vmatprep.mubr.msk.f32.mxu1 %vm452_vm0, %v4274_v19 }
  0x2b   : > { %4610 = vmatmul.mubr.msk.f32.vlgmr.msra.gmra.mrb[0].mxu0 %vm452_vm0, %v5259_v20 }
  0x2c   : > { %4662 = vmatmul.mubr.msk.f32.vlgmr.msra.gmra.mrb[0].mxu1 %vm452_vm0, %v5262_v21  ;;  %4612 = vmatprep.mubr.msk.f32.mxu0 %vm452_vm0, %v5270_v24 }
  0x2d   : > { %4896 = vmatpush3.bf16.msra.mxu0 %v4893_v36  ;;  %4664 = vmatprep.mubr.msk.f32.mxu1 %vm452_vm0, %v5273_v25 }
  0x2e   : > { %4912 = vmatpush3.bf16.msra.mxu1 %v4909_v37  ;;  %4913 = vmatprep.subr.bf16.mxu0 %v5121_v42  ;;  %v4343_v37 = vld [vmem:[%s5914_s10 + $0x10] sm:$0xff] }
  0x2f   : > { %4692 = vmatprep.subr.mxu1 %v5122_v43  ;;  %4613 = vmatmul.mubr.msk.f32.gmra.mrb[2].mxu0 %vm452_vm0, %v5278_v26  ;;  %v4920_v39 = vpack.c.bf16 %v4344_v38, %v4343_v37  ;;  %v4368_v38 = vld [vmem:[%s5914_s10 + $0x48] sm:$0xff] }
  0x30   : > { %4665 = vmatmul.mubr.msk.f32.gmra.mrb[2].mxu1 %vm452_vm0, %v5281_v27  ;;  %4615 = vmatprep.mubr.msk.f32.mxu0 %vm452_vm0, %v5292_v28 }
  0x31   : > { %4667 = vmatprep.mubr.msk.f32.mxu1 %vm452_vm0, %v5295_v29 }
  0x33   : > { %4616 = vmatmul.mubr.msk.f32.gmra.mrb[4].mxu0 %vm452_vm0, %v5372_v46 }
  0x34   : > { %4668 = vmatmul.mubr.msk.f32.gmra.mrb[4].mxu1 %vm452_vm0, %v4298_v47  ;;  %4622 = vmatprep.mubr.msk.f32.mxu0 %vm452_vm0, %v5259_v20 }
  0x35   : > { %4674 = vmatprep.mubr.msk.f32.mxu1 %vm452_vm0, %v5262_v21 }
  0x37   : > { %4623 = vmatmul.mubr.msk.f32.vlgmr.msra.gmra.mrb[0].mxu0 %vm452_vm0, %v5270_v24  ;;  %v4351_v24 = vld [vmem:[%s5914_s10 + $0x20] sm:$0xff] }
  0x38   : > { %4675 = vmatmul.mubr.msk.f32.vlgmr.msra.gmra.mrb[0].mxu1 %vm452_vm0, %v5273_v25  ;;  %4625 = vmatprep.mubr.msk.f32.mxu0 %vm452_vm0, %v5278_v26  ;;  %v4339_v25 = vld [vmem:[%s5915_s11] ss:$0 sm:$0xff] }
  0x39   : > { %4677 = vmatprep.mubr.msk.f32.mxu1 %vm452_vm0, %v5281_v27  ;;  %4915 = vmatpush3.bf16.msra.mxu0 %v4914_v52  ;;  %v4926_v52 = vpack.c.bf16 %v4352_v51, %v4351_v24  ;;  %v4370_v51 = vld [vmem:[%s5915_s11 + $0x4] ss:$0 sm:$0xff] }
  0x3a   : > { %4693 = vmatpush3.msra.mxu1 %v5392_v53  ;;  %4687 = vmatprep.subr.mxu0 %v5122_v43 }
  0x3b   : > { %4704 = vmatprep.subr.mxu1 %v5122_v43  ;;  %4626 = vmatmul.mubr.msk.f32.gmra.mrb[2].mxu0 %vm452_vm0, %v5292_v28 }
  0x3c   : > { %4678 = vmatmul.mubr.msk.f32.gmra.mrb[2].mxu1 %vm452_vm0, %v5295_v29  ;;  %4628 = vmatprep.mubr.msk.f32.mxu0 %vm452_vm0, %v5372_v46 }
  0x3d   : > { %4680 = vmatprep.mubr.msk.f32.mxu1 %vm452_vm0, %v4298_v47  ;;  %4688 = vmatpush3.msra.mxu0 %v5405_v55 }
  0x3e   : > { %4916 = vmatprep.subr.bf16.mxu0 %v5121_v42 }
  0x3f   : > { %4629 = vmatmul.mubr.msk.f32.gmra.mrb[4].mxu0 %vm452_vm0, %v5417_v56 }
  0x40   : > { %4681 = vmatmul.mubr.msk.f32.gmra.mrb[4].mxu1 %vm452_vm0, %v4312_v57  ;;  %4689 = vmatprep.mubr.msk.f32.mxu0 %vm5123_vm1, %v5122_v43 }
  0x41   : > { %4694 = vmatprep.mubr.msk.f32.mxu1 %vm5123_vm1, %v5122_v43 }
  0x43   : > { %4690 = vmatmul.mubr.msk.f32.vlgmr.msra.gmra.mrb[6].mxu0 %vm1696_vm2, %v5432_v58 }
  0x44   : > { %4695 = vmatmul.mubr.msk.f32.vlgmr.msra.gmra.mrb[6].mxu1 %vm1770_vm3, %v5437_v59  ;;  %4701 = vmatprep.mubr.msk.f32.mxu0 %vm5123_vm1, %v5122_v43 }
  0x45   : > { %4706 = vmatprep.mubr.msk.f32.mxu1 %vm5123_vm1, %v5122_v43  ;;  %4918 = vmatpush3.bf16.msra.mxu0 %v4917_v62 }
  0x46   : > { %4919 = vmatprep.subr.bf16.mxu0 %v5121_v42 }
 0x10a   : > { %v4624_v1 = vpop.f32.mrb[0].mxu0 }
 0x10b   : > { %v4676_v2 = vpop.f32.mrb[0].mxu1  ;;  %v5465_v3 = vadd.f32 %v4624_v1, %v5457_v63  ;;  %v5470_v5 = vpop.f32.mrb[1].mxu0 }
 0x10c   : > { %v5468_v4 = vadd.f32 %v4676_v2, %v5462_v0  ;;  %v5472_v6 = vpop.f32.mrb[1].mxu1 }
 0x10e   : > { %v4627_v7 = vpop.f32.mrb[2].mxu0 }
 0x10f   : > { %v4679_v8 = vpop.f32.mrb[2].mxu1  ;;  %v5475_v9 = vadd.f32 %v4627_v7, %v5457_v63  ;;  %v5480_v11 = vpop.f32.mrb[3].mxu0  ;;  %v4354_v7 = vld [vmem:[%s5915_s11 + $0x2] ss:$0 sm:$0xff] }
 0x110   : > { %v5478_v10 = vadd.f32 %v4679_v8, %v5462_v0  ;;  %v5482_v12 = vpop.f32.mrb[3].mxu1 }
 0x112   : > { %v4630_v13 = vpop.f32.mrb[4].mxu0 }
 0x113   : > { %v4682_v14 = vpop.f32.mrb[4].mxu1  ;;  %v5485_v15 = vadd.f32 %v4630_v13, %v5457_v63  ;;  %v5490_v17 = vpop.f32.mrb[5].mxu0 }
 0x114   : > { %v5488_v16 = vadd.f32 %v4682_v14, %v5462_v0  ;;  %v5492_v18 = vpop.f32.mrb[5].mxu1 }
 0x116   : > { %v1766_v19 = vpop.f32.mrb[6].mxu0 }
 0x117   : > { %v1840_v20 = vpop.f32.mrb[6].mxu1  ;;  %v4691_v22 = vpop.f32.mrb[7].mxu0 }
 0x118   : > { %v1844_v21 = vadd.f32 %v1840_v20, %v1766_v19  ;;  %v4696_v23 = vpop.f32.mrb[7].mxu1 }
 0x11a   : > { %4702 = vmatmul.mubr.msk.f32.vlgmr.msra.gmra.mrb[8].mxu0 %vm452_vm0, %v1844_v21 }
 0x11b   : > { %4713 = vmatprep.mubr.msk.f32.mxu0 %vm5123_vm1, %v5122_v43  ;;  %4921 = vmatpush3.bf16.msra.mxu0 %v4920_v39 }
 0x11c   : > { %4725 = vmatprep.subr.mxu0 %v5122_v43 }
 0x1ed   : > { %v1923_v27 = vpop.f32.mrb[8].mxu0 }
 0x1ee   : > { %v1924_v29 = vadd.f32 %v4339_v25, %v1923_v27  ;;  %v4703_v30 = vpop.f32.mrb[9].mxu0  ;;  %v4358_v27 = vld [vmem:[%s5914_s10 + $0x30] sm:$0xff] }
 0x1f0   : > { %v4341_v31 = vmul.f32 -1.442695, %v1924_v29 }
 0x1f2   : > { %5017 = vpow2.f32 %v4341_v31  ;;  %v4932_v31 = vpack.c.bf16 %v5392_v53, %v5405_v55  ;;  %v4333_v55 = vld [vmem:[%s5910_s6 + $0x5] ss:$0 sm:$0xff] }
 0x1fc   : > { %v5018_v32 = vpop.eup %5017 }
 0x1fd   : > { %v1930_v33 = vadd.f32 1.0, %v5018_v32  ;;  %v1680_v32 = vadd.f32 %v4333_v55, %v5278_v26  ;;  %v4367_v26 = vld [vmem:[%s5914_s10 + $0x40] sm:$0xff] }
 0x1fe   : > { %v4935_v39 = vpack.c.bf16 %v4368_v38, %v4367_v26 }
 0x1ff   : > { %5019 = vrcp.f32 %v1930_v33 }
 0x209   : > { %v5020_v34 = vpop.eup %5019 }
 0x20a   : > { %1934 = vrot.lane.b32.xlu0 %v5020_v34, %s5124_s24  ;;  %v5586_v34 = vadd.f32 %v5358_v44, %v1680_v32 }
 0x27c   : > { %v1935_v35 = vpop.permute.xlu0 %1934 }
 0x27d   : > { %v5501_v36 = vmul.f32 %v1935_v35, %v1924_v29  ;;  %v4359_v29 = vld [vmem:[%s5914_s10 + $0x38] sm:$0xff] }
 0x27e   : > { %v4929_v30 = vpack.c.bf16 %v4359_v29, %v4358_v27 }
 0x27f   : > { %4705 = vmatpush3.msra.mxu1 %v5501_v36 }
 0x280   : > { %4707 = vmatmul.mubr.msk.f32.vlgmr.msra.gmra.mrb[8].mxu1 %vm1770_vm3, %v5437_v59  ;;  %4922 = vmatprep.subr.bf16.mxu1 %v5121_v42 }
 0x281   : > { %4722 = vmatprep.mubr.msk.f32.mxu1 %vm5123_vm1, %v5122_v43  ;;  %4924 = vmatpush3.bf16.msra.mxu1 %v4923_v40 }
 0x282   : > { %4720 = vmatprep.subr.mxu1 %v5122_v43 }
 0x285   : > { %4721 = vmatpush3.msra.mxu1 %v5392_v53 }
 0x286   : > { %4723 = vmatmul.mubr.msk.f32.vlgmr.msra.gmra.mrb[10].mxu1 %vm1696_vm2, %v5432_v58  ;;  %4925 = vmatprep.subr.bf16.mxu1 %v5121_v42 }
 0x287   : > { %4734 = vmatprep.mubr.msk.f32.mxu1 %vm5123_vm1, %v5122_v43  ;;  %4927 = vmatpush3.bf16.msra.mxu1 %v4926_v52 }
 0x288   : > { %4928 = vmatprep.subr.bf16.mxu1 %v5121_v42 }
 0x353   : > { %v2004_v47 = vpop.f32.mrb[8].mxu1 }
 0x354   : > { %v2008_v49 = vadd.f32 %v2004_v47, %v1766_v19  ;;  %v4708_v50 = vpop.f32.mrb[9].mxu1 }
 0x356   : > { %4714 = vmatmul.mubr.msk.f32.vlgmr.msra.gmra.mrb[10].mxu0 %vm452_vm0, %v2008_v49 }
 0x357   : > { %4726 = vmatpush3.msra.mxu0 %v5530_v48  ;;  %4727 = vmatprep.mubr.msk.f32.mxu0 %vm5123_vm1, %v5122_v43 }
 0x358   : > { %4737 = vmatprep.subr.mxu0 %v5122_v43 }
 0x359   : > { %v2174_v54 = vpop.f32.mrb[10].mxu1 }
 0x35a   : > { %4728 = vmatmul.mubr.msk.f32.vlgmr.msra.gmra.mrb[12].mxu0 %vm1770_vm3, %v5437_v59  ;;  %v4724_v57 = vpop.f32.mrb[11].mxu1 }
 0x35b   : > { %4739 = vmatprep.mubr.msk.f32.mxu0 %vm5123_vm1, %v5122_v43 }
 0x429   : > { %v5548_v60 = vpop.f32.mrb[10].mxu0 }
 0x42a   : > { %v4715_v61 = vpop.f32.mrb[11].mxu0 }
 0x42d   : > { %v2244_v62 = vpop.f32.mrb[12].mxu0 }
 0x42e   : > { %v2248_v1 = vadd.f32 %v2244_v62, %v2174_v54  ;;  %v4729_v2 = vpop.f32.mrb[13].mxu0 }
 0x430   : > { %4735 = vmatmul.mubr.msk.f32.vlgmr.msra.gmra.mrb[12].mxu1 %vm452_vm0, %v2248_v1 }
 0x431   : > { %4746 = vmatprep.mubr.msk.f32.mxu1 %vm5123_vm1, %v5122_v43  ;;  %4930 = vmatpush3.bf16.msra.mxu1 %v4929_v30 }
 0x432   : > { %4758 = vmatprep.subr.mxu1 %v5122_v43 }
 0x503   : > { %v2329_v8 = vpop.f32.mrb[12].mxu1 }
 0x504   : > { %v2330_v13 = vadd.f32 %v4354_v7, %v2329_v8  ;;  %v4736_v14 = vpop.f32.mrb[13].mxu1 }
 0x505   : > { %v4375_v14 = vld [vmem:[%s5914_s10 + $0x58] sm:$0xff] }
 0x506   : > { %v4356_v19 = vmul.f32 -1.442695, %v2330_v13 }
 0x508   : > { %5021 = vpow2.f32 %v4356_v19 }
 0x512   : > { %v5022_v20 = vpop.eup %5021 }
 0x513   : > { %v2336_v21 = vadd.f32 1.0, %v5022_v20  ;;  %v4941_v20 = vpack.c.bf16 %v5530_v48, %v5392_v53 }
 0x515   : > { %5023 = vrcp.f32 %v2336_v21  ;;  %v4334_v21 = vld [vmem:[%s5910_s6 + $0x6] ss:$0 sm:$0xff] }
 0x51f   : > { %v5024_v22 = vpop.eup %5023 }
 0x520   : > { %2340 = vrot.lane.b32.xlu0 %v5024_v22, %s5124_s24  ;;  %v1681_v22 = vadd.f32 %v4334_v21, %v5292_v28  ;;  %v4383_v28 = vld [vmem:[%s5914_s10 + $0x60] sm:$0xff] }
 0x522   : > { %v5642_v27 = vadd.f32 %v5358_v44, %v1681_v22  ;;  %v4400_v22 = vld [vmem:[%s5914_s10 + $0x88] sm:$0xff] }
 0x592   : > { %v2341_v23 = vpop.permute.xlu0 %2340 }
 0x593   : > { %v5557_v25 = vmul.f32 %v2341_v23, %v2330_v13  ;;  %v4374_v13 = vld [vmem:[%s5914_s10 + $0x50] sm:$0xff] }
 0x594   : > { %v4938_v19 = vpack.c.bf16 %v4375_v14, %v4374_v13 }
 0x595   : > { %4738 = vmatpush3.msra.mxu0 %v5557_v25 }
 0x596   : > { %4740 = vmatmul.mubr.msk.f32.vlgmr.msra.gmra.mrb[14].mxu0 %vm1770_vm3, %v5437_v59  ;;  %4931 = vmatprep.subr.bf16.mxu0 %v5121_v42 }
 0x597   : > { %4755 = vmatprep.mubr.msk.f32.mxu0 %vm5123_vm1, %v5122_v43  ;;  %4933 = vmatpush3.bf16.msra.mxu0 %v4932_v31  ;;  %v4384_v31 = vld [vmem:[%s5914_s10 + $0x68] sm:$0xff] }
 0x598   : > { %4753 = vmatprep.subr.mxu0 %v5122_v43  ;;  %v4944_v55 = vpack.c.bf16 %v4384_v31, %v4383_v28 }
 0x59b   : > { %4754 = vmatpush3.msra.mxu0 %v5530_v48 }
 0x59c   : > { %4756 = vmatmul.mubr.msk.f32.vlgmr.msra.gmra.mrb[16].mxu0 %vm1696_vm2, %v5432_v58  ;;  %4934 = vmatprep.subr.bf16.mxu0 %v5121_v42 }
 0x59d   : > { %4767 = vmatprep.mubr.msk.f32.mxu0 %vm5123_vm1, %v5122_v43  ;;  %4936 = vmatpush3.bf16.msra.mxu0 %v4935_v39 }
 0x59e   : > { %4937 = vmatprep.subr.bf16.mxu0 %v5121_v42 }
 0x669   : > { %v2410_v33 = vpop.f32.mrb[14].mxu0 }
 0x66a   : > { %v2414_v35 = vadd.f32 %v2410_v33, %v2174_v54  ;;  %v4741_v37 = vpop.f32.mrb[15].mxu0 }
 0x66c   : > { %4747 = vmatmul.mubr.msk.f32.vlgmr.msra.gmra.mrb[14].mxu1 %vm452_vm0, %v2414_v35 }
 0x66d   : > { %4759 = vmatpush3.msra.mxu1 %v5586_v34  ;;  %4760 = vmatprep.mubr.msk.f32.mxu1 %vm5123_vm1, %v5122_v43 }
 0x66e   : > { %4770 = vmatprep.subr.mxu1 %v5122_v43 }
 0x66f   : > { %v2581_v40 = vpop.f32.mrb[16].mxu0 }
 0x670   : > { %4761 = vmatmul.mubr.msk.f32.vlgmr.msra.gmra.mrb[16].mxu1 %vm1770_vm3, %v5437_v59  ;;  %v4757_v41 = vpop.f32.mrb[17].mxu0 }
 0x671   : > { %4772 = vmatprep.mubr.msk.f32.mxu1 %vm5123_vm1, %v5122_v43 }
 0x73f   : > { %v5604_v45 = vpop.f32.mrb[14].mxu1 }
 0x740   : > { %v4748_v47 = vpop.f32.mrb[15].mxu1 }
 0x743   : > { %v2651_v49 = vpop.f32.mrb[16].mxu1 }
 0x744   : > { %v2655_v50 = vadd.f32 %v2651_v49, %v2581_v40  ;;  %v4762_v24 = vpop.f32.mrb[17].mxu1 }
 0x746   : > { %4768 = vmatmul.mubr.msk.f32.vlgmr.msra.gmra.mrb[18].mxu0 %vm452_vm0, %v2655_v50 }
 0x747   : > { %4779 = vmatprep.mubr.msk.f32.mxu0 %vm5123_vm1, %v5122_v43  ;;  %4939 = vmatpush3.bf16.msra.mxu0 %v4938_v19 }
 0x748   : > { %4791 = vmatprep.subr.mxu0 %v5122_v43 }
 0x819   : > { %v2736_v52 = vpop.f32.mrb[18].mxu0 }
 0x81a   : > { %v2737_v54 = vadd.f32 %v4370_v51, %v2736_v52  ;;  %v4769_v57 = vpop.f32.mrb[19].mxu0 }
 0x81c   : > { %v4372_v61 = vmul.f32 -1.442695, %v2737_v54 }
 0x81e   : > { %5025 = vpow2.f32 %v4372_v61  ;;  %v4390_v61 = vld [vmem:[%s5914_s10 + $0x70] sm:$0xff] }
 0x828   : > { %v5026_v62 = vpop.eup %5025 }
 0x829   : > { %v2743_v1 = vadd.f32 1.0, %v5026_v62  ;;  %v4391_v62 = vld [vmem:[%s5914_s10 + $0x78] sm:$0xff] }
 0x82b   : > { %5027 = vrcp.f32 %v2743_v1  ;;  %v4947_v1 = vpack.c.bf16 %v4391_v62, %v4390_v61 }
 0x835   : > { %v5028_v2 = vpop.eup %5027 }
 0x836   : > { %2747 = vrot.lane.b32.xlu1 %v5028_v2, %s5124_s24  ;;  %v4950_v2 = vpack.c.bf16 %v5586_v34, %v5530_v48 }
 0x8a8   : > { %v2748_v7 = vpop.permute.xlu1 %2747 }
 0x8a9   : > { %v5613_v8 = vmul.f32 %v2748_v7, %v2737_v54  ;;  %v4335_v7 = vld [vmem:[%s5910_s6 + $0x7] ss:$0 sm:$0xff] }
 0x8aa   : > { %v1682_v13 = vadd.f32 %v4335_v7, %v5372_v46  ;;  %v4399_v46 = vld [vmem:[%s5914_s10 + $0x80] sm:$0xff] }
 0x8ab   : > { %4771 = vmatpush3.msra.mxu1 %v5613_v8 }
 0x8ac   : > { %4773 = vmatmul.mubr.msk.f32.vlgmr.msra.gmra.mrb[18].mxu1 %vm1770_vm3, %v5437_v59  ;;  %4940 = vmatprep.subr.bf16.mxu1 %v5121_v42  ;;  %v5698_v19 = vadd.f32 %v5358_v44, %v1682_v13 }
 0x8ad   : > { %4788 = vmatprep.mubr.msk.f32.mxu1 %vm5123_vm1, %v5122_v43  ;;  %4942 = vmatpush3.bf16.msra.mxu1 %v4941_v20 }
 0x8ae   : > { %4786 = vmatprep.subr.mxu1 %v5122_v43 }
 0x8b1   : > { %4787 = vmatpush3.msra.mxu1 %v5586_v34 }
 0x8b2   : > { %4789 = vmatmul.mubr.msk.f32.vlgmr.msra.gmra.mrb[20].mxu1 %vm1696_vm2, %v5432_v58  ;;  %4943 = vmatprep.subr.bf16.mxu1 %v5121_v42 }
 0x8b3   : > { %4800 = vmatprep.mubr.msk.f32.mxu1 %vm5123_vm1, %v5122_v43  ;;  %4945 = vmatpush3.bf16.msra.mxu1 %v4944_v55 }
 0x8b4   : > { %4946 = vmatprep.subr.bf16.mxu1 %v5121_v42 }
 0x97f   : > { %v2817_v23 = vpop.f32.mrb[18].mxu1 }
 0x980   : > { %v2821_v29 = vadd.f32 %v2817_v23, %v2581_v40  ;;  %v4774_v30 = vpop.f32.mrb[19].mxu1  ;;  %v4386_v40 = vld [vmem:[%s5915_s11 + $0x6] ss:$0 sm:$0xff]  ;;  %v4953_v23 = vpack.c.bf16 %v4400_v22, %v4399_v46  ;;  %v4959_v22 = vpack.c.bf16 %v5642_v27, %v5586_v34 }
 0x982   : > { %4780 = vmatmul.mubr.msk.f32.vlgmr.msra.gmra.mrb[20].mxu0 %vm452_vm0, %v2821_v29 }
 0x983   : > { %4792 = vmatpush3.msra.mxu0 %v5642_v27  ;;  %4793 = vmatprep.mubr.msk.f32.mxu0 %vm5123_vm1, %v5122_v43 }
 0x984   : > { %4803 = vmatprep.subr.mxu0 %v5122_v43 }
 0x985   : > { %v2988_v32 = vpop.f32.mrb[20].mxu1 }
 0x986   : > { %4794 = vmatmul.mubr.msk.f32.vlgmr.msra.gmra.mrb[22].mxu0 %vm1770_vm3, %v5437_v59  ;;  %v4790_v33 = vpop.f32.mrb[21].mxu1 }
 0x987   : > { %4805 = vmatprep.mubr.msk.f32.mxu0 %vm5123_vm1, %v5122_v43 }
 0xa55   : > { %v5660_v35 = vpop.f32.mrb[20].mxu0 }
 0xa56   : > { %v4781_v37 = vpop.f32.mrb[21].mxu0 }
 0xa57   : > { %v4346_v37 = vld [vmem:[%s5915_s11 + $0x1] ss:$0 sm:$0xff] }
 0xa59   : > { %v3058_v26 = vpop.f32.mrb[22].mxu0 }
 0xa5a   : > { %v3062_v38 = vadd.f32 %v3058_v26, %v2988_v32  ;;  %v4795_v39 = vpop.f32.mrb[23].mxu0  ;;  %v5725_v26 = vadd.f32 %v4346_v37, %v5548_v60 }
 0xa5b   : > { %v4402_v39 = vld [vmem:[%s5915_s11 + $0x8] ss:$0 sm:$0xff] }
 0xa5c   : > { %4801 = vmatmul.mubr.msk.f32.vlgmr.msra.gmra.mrb[22].mxu1 %vm452_vm0, %v3062_v38  ;;  %v4377_v38 = vld [vmem:[%s5915_s11 + $0x5] ss:$0 sm:$0xff] }
 0xa5d   : > { %4812 = vmatprep.mubr.msk.f32.mxu1 %vm5123_vm1, %v5122_v43  ;;  %4948 = vmatpush3.bf16.msra.mxu1 %v4947_v1 }
 0xa5e   : > { %4824 = vmatprep.subr.mxu1 %v5122_v43 }
 0xb2f   : > { %v3143_v41 = vpop.f32.mrb[22].mxu1 }
 0xb30   : > { %v3144_v47 = vadd.f32 %v4386_v40, %v3143_v41  ;;  %v4802_v49 = vpop.f32.mrb[23].mxu1  ;;  %v4348_v40 = vmul.f32 -1.442695, %v5725_v26 }
 0xb32   : > { %v4388_v50 = vmul.f32 -1.442695, %v3144_v47 }
 0xb34   : > { %5029 = vpow2.f32 %v4388_v50 }
 0xb3e   : > { %v5030_v24 = vpop.eup %5029 }
 0xb3f   : > { %v3150_v51 = vadd.f32 1.0, %v5030_v24 }
 0xb41   : > { %5031 = vrcp.f32 %v3150_v51 }
 0xb42   : > { %5033 = vpow2.f32 %v4348_v40 }
 0xb4b   : > { %v5032_v52 = vpop.eup %5031 }
 0xb4c   : > { %3154 = vrot.lane.b32.xlu1 %v5032_v52, %s5124_s24  ;;  %v5034_v51 = vpop.eup %5033 }
 0xb4d   : > { %v2096_v61 = vadd.f32 1.0, %v5034_v51 }
 0xbbe   : > { %v3155_v54 = vpop.permute.xlu1 %3154 }
 0xbbf   : > { %v5669_v57 = vmul.f32 %v3155_v54, %v3144_v47  ;;  %v5735_v47 = vadd.f32 %v4377_v38, %v5660_v35  ;;  %v4409_v38 = vld [vmem:[%s5915_s11 + $0x9] ss:$0 sm:$0xff] }
 0xbc1   : > { %4804 = vmatpush3.msra.mxu0 %v5669_v57  ;;  %v4379_v60 = vmul.f32 -1.442695, %v5735_v47 }
 0xbc2   : > { %4806 = vmatmul.mubr.msk.f32.vlgmr.msra.gmra.mrb[24].mxu0 %vm1770_vm3, %v5437_v59  ;;  %4949 = vmatprep.subr.bf16.mxu0 %v5121_v42 }
 0xbc3   : > { %4821 = vmatprep.mubr.msk.f32.mxu0 %vm5123_vm1, %v5122_v43  ;;  %4951 = vmatpush3.bf16.msra.mxu0 %v4950_v2 }
 0xbc4   : > { %4819 = vmatprep.subr.mxu0 %v5122_v43 }
 0xbc7   : > { %4820 = vmatpush3.msra.mxu0 %v5642_v27 }
 0xbc8   : > { %4822 = vmatmul.mubr.msk.f32.vlgmr.msra.gmra.mrb[26].mxu0 %vm1696_vm2, %v5432_v58  ;;  %4952 = vmatprep.subr.bf16.mxu0 %v5121_v42 }
 0xbc9   : > { %4833 = vmatprep.mubr.msk.f32.mxu0 %vm5123_vm1, %v5122_v43  ;;  %4954 = vmatpush3.bf16.msra.mxu0 %v4953_v23  ;;  %v4336_v23 = vld [vmem:[%s5910_s6 + $0x8] ss:$0 sm:$0xff] }
 0xbca   : > { %4955 = vmatprep.subr.bf16.mxu0 %v5121_v42 }
 0xc95   : > { %v3224_v14 = vpop.f32.mrb[24].mxu0 }
 0xc96   : > { %v3228_v20 = vadd.f32 %v3224_v14, %v2988_v32  ;;  %v4807_v21 = vpop.f32.mrb[25].mxu0 }
 0xc97   : > { %v4407_v21 = vld [vmem:[%s5914_s10 + $0x98] sm:$0xff] }
 0xc98   : > { %4813 = vmatmul.mubr.msk.f32.vlgmr.msra.gmra.mrb[24].mxu1 %vm452_vm0, %v3228_v20  ;;  %v4406_v20 = vld [vmem:[%s5914_s10 + $0x90] sm:$0xff] }
 0xc99   : > { %4825 = vmatpush3.msra.mxu1 %v5698_v19  ;;  %4826 = vmatprep.mubr.msk.f32.mxu1 %vm5123_vm1, %v5122_v43  ;;  %v4956_v46 = vpack.c.bf16 %v4407_v21, %v4406_v20 }
 0xc9a   : > { %4836 = vmatprep.subr.mxu1 %v5122_v43 }
 0xc9b   : > { %v3395_v29 = vpop.f32.mrb[26].mxu0 }
 0xc9c   : > { %4827 = vmatmul.mubr.msk.f32.vlgmr.msra.gmra.mrb[26].mxu1 %vm1770_vm3, %v5437_v59  ;;  %v4823_v30 = vpop.f32.mrb[27].mxu0 }
 0xc9d   : > { %4838 = vmatprep.mubr.msk.f32.mxu1 %vm5123_vm1, %v5122_v43  ;;  %v1683_v30 = vadd.f32 %v4336_v23, %v5417_v56  ;;  %v4416_v56 = vld [vmem:[%s5914_s10 + $0xa8] sm:$0xff] }
 0xd6b   : > { %v5716_v28 = vpop.f32.mrb[24].mxu1 }
 0xd6c   : > { %v4814_v31 = vpop.f32.mrb[25].mxu1 }
 0xd6f   : > { %v3465_v55 = vpop.f32.mrb[26].mxu1 }
 0xd70   : > { %v3469_v32 = vadd.f32 %v3465_v55, %v3395_v29  ;;  %v4828_v33 = vpop.f32.mrb[27].mxu1  ;;  %v5770_v55 = vadd.f32 %v5358_v44, %v1683_v30  ;;  %v4415_v44 = vld [vmem:[%s5914_s10 + $0xa0] sm:$0xff] }
 0xd72   : > { %4834 = vmatmul.mubr.msk.f32.vlgmr.msra.gmra.mrb[28].mxu0 %vm452_vm0, %v3469_v32 }
 0xd73   : > { %4845 = vmatprep.mubr.msk.f32.mxu0 %vm5123_vm1, %v5122_v43  ;;  %4957 = vmatpush3.bf16.msra.mxu0 %v4956_v46 }
 0xd74   : > { %4857 = vmatprep.subr.mxu0 %v5122_v43 }
 0xe45   : > { %v3550_v41 = vpop.f32.mrb[28].mxu0 }
 0xe46   : > { %v3551_v49 = vadd.f32 %v4402_v39, %v3550_v41  ;;  %v4835_v50 = vpop.f32.mrb[29].mxu0 }
 0xe48   : > { %v4404_v24 = vmul.f32 -1.442695, %v3551_v49 }
 0xe4a   : > { %5035 = vpow2.f32 %v4404_v24 }
 0xe4b   : > { %5037 = vpow2.f32 %v4379_v60 }
 0xe54   : > { %v5036_v52 = vpop.eup %5035 }
 0xe55   : > { %v3557_v54 = vadd.f32 1.0, %v5036_v52  ;;  %v5038_v62 = vpop.eup %5037 }
 0xe56   : > { %v2909_v1 = vadd.f32 1.0, %v5038_v62  ;;  %v948_v62 = vadd.f32 %v5457_v63, %v5490_v17 }
 0xe57   : > { %5039 = vrcp.f32 %v3557_v54  ;;  %v944_v54 = vadd.f32 %v5457_v63, %v5470_v5  ;;  %v1527_v5 = vadd.f32 %v5462_v0, %v5482_v12 }
 0xe58   : > { %5041 = vrcp.f32 %v2096_v61  ;;  %v946_v61 = vadd.f32 %v5457_v63, %v5480_v11  ;;  %v1529_v11 = vadd.f32 %v5462_v0, %v5492_v18 }
 0xe59   : > { %5043 = vrcp.f32 %v2909_v1  ;;  %v4267_v1 = vmul.f32 -1.442695, %v944_v54  ;;  %v4324_v17 = vmul.f32 -1.442695, %v1527_v5 }
 0xe5a   : > { %v4269_v63 = vmul.f32 -1.442695, %v946_v61 }
 0xe61   : > { %v5040_v2 = vpop.eup %5039 }
 0xe62   : > { %3561 = vrot.lane.b32.xlu0 %v5040_v2, %s5124_s24  ;;  %v5042_v35 = vpop.eup %5041 }
 0xe63   : > { %v5044_v7 = vpop.eup %5043 }
 0xe66   : > { %2100 = vrot.lane.b32.xlu0 %v5042_v35, %s5124_s24 }
 0xe6a   : > { %2913 = vrot.lane.b32.xlu0 %v5044_v7, %s5124_s24  ;;  %v4326_v7 = vmul.f32 -1.442695, %v1529_v11 }
 0xed4   : > { %v3562_v13 = vpop.permute.xlu0 %3561 }
 0xed5   : > { %v5741_v14 = vmul.f32 %v3562_v13, %v3551_v49 }
 0xed7   : > { %4837 = vmatpush3.msra.mxu1 %v5741_v14 }
 0xed8   : > { %4839 = vmatmul.mubr.msk.f32.vlgmr.msra.gmra.mrb[28].mxu1 %vm1770_vm3, %v5437_v59  ;;  %4958 = vmatprep.subr.bf16.mxu1 %v5121_v42  ;;  %v2101_v35 = vpop.permute.xlu0 %2100 }
 0xed9   : > { %4854 = vmatprep.mubr.msk.f32.mxu1 %vm5123_vm1, %v5122_v43  ;;  %4960 = vmatpush3.bf16.msra.mxu1 %v4959_v22 }
 0xeda   : > { %4852 = vmatprep.subr.mxu1 %v5122_v43 }
 0xedc   : > { %v2914_v12 = vpop.permute.xlu0 %2913 }
 0xedd   : > { %4853 = vmatpush3.msra.mxu1 %v5698_v19 }
 0xede   : > { %4855 = vmatmul.mubr.msk.f32.vlgmr.msra.gmra.mrb[30].mxu1 %vm1696_vm2, %v5432_v58  ;;  %4961 = vmatprep.subr.bf16.mxu1 %v5121_v42  ;;  %v4962_v58 = vpack.c.bf16 %v4416_v56, %v4415_v44 }
 0xedf   : > { %4866 = vmatprep.mubr.msk.f32.mxu1 %vm5123_vm1, %v5122_v43 }
 0xee0   : > { %4963 = vmatpush3.bf16.msra.mxu1 %v4962_v58 }
 0xee1   : > { %4964 = vmatprep.subr.bf16.mxu1 %v5121_v42 }
 0xfab   : > { %v3631_v31 = vpop.f32.mrb[28].mxu1 }
 0xfac   : > { %v3635_v32 = vadd.f32 %v3631_v31, %v3395_v29  ;;  %v4840_v33 = vpop.f32.mrb[29].mxu1 }
 0xfae   : > { %4846 = vmatmul.mubr.msk.f32.vlgmr.msra.gmra.mrb[30].mxu0 %vm452_vm0, %v3635_v32 }
 0xfaf   : > { %4858 = vmatpush3.msra.mxu0 %v5770_v55  ;;  %4859 = vmatprep.mubr.msk.f32.mxu0 %vm5123_vm1, %v5122_v43 }
 0xfb0   : > { %4869 = vmatprep.subr.mxu0 %v5122_v43 }
 0xfb1   : > { %v5787_v29 = vpop.f32.mrb[30].mxu1 }
 0xfb2   : > { %4860 = vmatmul.mubr.msk.f32.vlgmr.msra.gmra.mrb[32].mxu0 %vm1770_vm3, %v5437_v59  ;;  %v4856_v37 = vpop.f32.mrb[31].mxu1 }
 0xfb3   : > { %4871 = vmatprep.mubr.msk.f32.mxu0 %vm5123_vm1, %v5122_v43  ;;  %v2103_v37 = vmul.f32 %v2101_v35, %v5725_v26 }
0x1081   : > { %v3716_v39 = vpop.f32.mrb[30].mxu0 }
0x1082   : > { %v5793_v40 = vadd.f32 %v4409_v38, %v3716_v39  ;;  %v4847_v41 = vpop.f32.mrb[31].mxu0 }
0x1083   : > { %v2104_v41 = vmax.f32 %v5501_v36, %v2103_v37  ;;  %v4268_v37 = vmul.f32 -1.442695, %v5465_v3 }
0x1084   : > { %v4411_v49 = vmul.f32 -1.442695, %v5793_v40 }
0x1085   : > { %v3872_v50 = vpop.f32.mrb[32].mxu0 }
0x1086   : > { %5045 = vpow2.f32 %v4411_v49  ;;  %v3876_v24 = vadd.f32 %v3872_v50, %v5787_v29  ;;  %v4861_v60 = vpop.f32.mrb[33].mxu0  ;;  %v2916_v49 = vmul.f32 %v2914_v12, %v5735_v47 }
0x1088   : > { %4867 = vmatmul.mubr.msk.f32.vlgmr.msra.gmra.mrb[32].mxu1 %vm452_vm0, %v3876_v24 }
0x1089   : > { %4878 = vmatprep.mubr.msk.f32.mxu1 %vm5123_vm1, %v5122_v43  ;;  %v1525_v43 = vadd.f32 %v5462_v0, %v5472_v6  ;;  %v4271_v6 = vmul.f32 -1.442695, %v948_v62 }
0x108b   : > { %v4322_v2 = vmul.f32 -1.442695, %v1525_v43 }
0x1090   : > { %v5046_v42 = vpop.eup %5045 }
0x1091   : > { %v3723_v51 = vadd.f32 1.0, %v5046_v42 }
0x1093   : > { %5047 = vrcp.f32 %v3723_v51 }
0x1094   : > { %5049 = vpow2.f32 %v4267_v1 }
0x1095   : > { %5051 = vpow2.f32 %v4322_v2 }
0x1096   : > { %5053 = vpow2.f32 %v4269_v63 }
0x1097   : > { %5055 = vpow2.f32 %v4324_v17 }
0x1098   : > { %5057 = vpow2.f32 %v4271_v6 }
0x1099   : > { %5059 = vpow2.f32 %v4326_v7 }
0x109d   : > { %v5048_v52 = vpop.eup %5047 }
0x109e   : > { %3727 = vrot.lane.b32.xlu0 %v5048_v52, %s5124_s24  ;;  %v5050_v13 = vpop.eup %5049  ;;  %v2105_v52 = vadd.f32 %v2104_v41, %v5392_v53  ;;  %v4325_v41 = vmul.f32 -1.442695, %v5478_v10 }
0x109f   : > { %v5052_v20 = vpop.eup %5051  ;;  %v968_v0 = vadd.f32 1.0, %v5050_v13  ;;  %v4393_v13 = vld [vmem:[%s5915_s11 + $0x7] ss:$0 sm:$0xff] }
0x10a0   : > { %v5054_v18 = vpop.eup %5053  ;;  %v1549_v46 = vadd.f32 1.0, %v5052_v20 }
0x10a1   : > { %v5056_v22 = vpop.eup %5055  ;;  %5061 = vrcp.f32 %v968_v0  ;;  %v970_v30 = vadd.f32 1.0, %v5054_v18  ;;  %v3310_v0 = vadd.f32 %v4393_v13, %v5716_v28 }
0x10a2   : > { %992 = vrot.lane.b32.xlu0 %v944_v54, %s5124_s24  ;;  %v5058_v31 = vpop.eup %5057  ;;  %5063 = vrcp.f32 %v1549_v46  ;;  %v1551_v32 = vadd.f32 1.0, %v5056_v22  ;;  %v2917_v54 = vmax.f32 %v5613_v8, %v2916_v49 }
0x10a3   : > { %v5060_v33 = vpop.eup %5059  ;;  %5065 = vrcp.f32 %v970_v30  ;;  %v972_v56 = vadd.f32 1.0, %v5058_v31 }
0x10a4   : > { %5067 = vrcp.f32 %v1551_v32  ;;  %v1553_v58 = vadd.f32 1.0, %v5060_v33  ;;  %v2918_v53 = vadd.f32 %v2917_v54, %v5586_v34  ;;  %v4361_v34 = vld [vmem:[%s5915_s11 + $0x3] ss:$0 sm:$0xff] }
0x10a5   : > { %5069 = vrcp.f32 %v972_v56 }
0x10a6   : > { %996 = vrot.lane.b32.xlu0 %v946_v61, %s5124_s24  ;;  %5071 = vrcp.f32 %v1553_v58 }
0x10aa   : > { %1000 = vrot.lane.b32.xlu0 %v948_v62, %s5124_s24 }
0x10ab   : > { %v5062_v39 = vpop.eup %5061 }
0x10ac   : > { %v5064_v50 = vpop.eup %5063 }
0x10ad   : > { %v5066_v51 = vpop.eup %5065 }
0x10ae   : > { %1573 = vrot.lane.b32.xlu0 %v1525_v43, %s5124_s24  ;;  %v5068_v62 = vpop.eup %5067 }
0x10b2   : > { %1577 = vrot.lane.b32.xlu0 %v1527_v5, %s5124_s24 }
0x10b6   : > { %1581 = vrot.lane.b32.xlu0 %v1529_v11, %s5124_s24  ;;  %v5070_v11 = vpop.eup %5069 }
0x10b7   : > { %v5072_v1 = vpop.eup %5071 }
0x1110   : > { %v3728_v21 = vpop.permute.xlu0 %3727 }
0x1111   : > { %v3730_v26 = vmul.f32 %v3728_v21, %v5793_v40 }
0x1113   : > { %v3731_v8 = vmax.f32 %v5741_v14, %v3730_v26  ;;  %v2496_v14 = vadd.f32 %v4361_v34, %v5604_v45 }
0x1114   : > { %v993_v23 = vpop.permute.xlu0 %992 }
0x1115   : > { %v1010_v60 = vmul.f32 %v5062_v39, %v993_v23  ;;  %v3732_v6 = vadd.f32 %v3731_v8, %v5698_v19  ;;  %v4418_v19 = vld [vmem:[%s5915_s11 + $0xa] ss:$0 sm:$0xff]  ;;  %v4363_v20 = vmul.f32 -1.442695, %v2496_v14  ;;  %v4395_v23 = vmul.f32 -1.442695, %v3310_v0 }
0x1116   : > { %v4270_v39 = vmul.f32 -1.442695, %v5475_v9 }
0x1117   : > { %5073 = vpow2.f32 %v4363_v20 }
0x1118   : > { %v997_v44 = vpop.permute.xlu0 %996 }
0x1119   : > { %v1012_v47 = vmul.f32 %v5066_v51, %v997_v44 }
0x111c   : > { %v1001_v38 = vpop.permute.xlu0 %1000 }
0x111d   : > { %v1014_v63 = vmul.f32 %v5070_v11, %v1001_v38  ;;  %v4323_v38 = vmul.f32 -1.442695, %v5468_v4 }
0x1120   : > { %v1574_v24 = vpop.permute.xlu0 %1573 }
0x1121   : > { %v1591_v42 = vmul.f32 %v5064_v50, %v1574_v24  ;;  %v5074_v45 = vpop.eup %5073 }
0x1122   : > { %v2502_v32 = vadd.f32 1.0, %v5074_v45 }
0x1123   : > { %v1597_v61 = vadd.f32 %v1591_v42, %v1010_v60 }
0x1124   : > { %v1578_v36 = vpop.permute.xlu0 %1577 }
0x1125   : > { %v2106_v43 = vadd.f32 %v2105_v52, %v1597_v61  ;;  %v1593_v5 = vmul.f32 %v5068_v62, %v1578_v36 }
0x1127   : > { %2107 = vst.msk [vmem:[%s5829_s30] sm:$0xff] %vm452_vm0, %v2106_v43  ;;  %v1599_v40 = vadd.f32 %v1593_v5, %v1012_v47 }
0x1128   : > { %v1582_v2 = vpop.permute.xlu0 %1581 }
0x1129   : > { %v2919_v17 = vadd.f32 %v2918_v53, %v1599_v40  ;;  %v1595_v35 = vmul.f32 %v5072_v1, %v1582_v2 }
0x112b   : > { %4380 = vst.msk [vmem:[%s5829_s30 + $0x10] sm:$0xff] %vm452_vm0, %v2919_v17  ;;  %v1601_v7 = vadd.f32 %v1595_v35, %v1014_v63 }
0x112d   : > { %v3733_v12 = vadd.f32 %v3732_v6, %v1601_v7 }
0x112f   : > { %4412 = vst.msk [vmem:[%s5829_s30 + $0x20] sm:$0xff] %vm452_vm0, %v3733_v12 }
0x115b   : > { %v3957_v21 = vpop.f32.mrb[32].mxu1 }
0x115c   : > { %v3958_v18 = vadd.f32 %v4418_v19, %v3957_v21  ;;  %v4868_v46 = vpop.f32.mrb[33].mxu1  ;;  %v4425_v21 = vld [vmem:[%s5915_s11 + $0xb] ss:$0 sm:$0xff] }
0x115e   : > { %v4420_v22 = vmul.f32 -1.442695, %v3958_v18 }
0x1160   : > { %5075 = vpow2.f32 %v4420_v22 }
0x1161   : > { %5077 = vpow2.f32 %v4395_v23 }
0x116a   : > { %v5076_v30 = vpop.eup %5075 }
0x116b   : > { %v3964_v31 = vadd.f32 1.0, %v5076_v30  ;;  %v5078_v33 = vpop.eup %5077 }
0x116c   : > { %v3316_v44 = vadd.f32 1.0, %v5078_v33 }
0x116d   : > { %5079 = vrcp.f32 %v3964_v31  ;;  %v4327_v31 = vmul.f32 -1.442695, %v5488_v16 }
0x116e   : > { %5081 = vrcp.f32 %v2502_v32 }
0x116f   : > { %5083 = vrcp.f32 %v3316_v44 }
0x1170   : > { %5085 = vpow2.f32 %v4268_v37 }
0x1171   : > { %5087 = vpow2.f32 %v4323_v38 }
0x1172   : > { %5089 = vpow2.f32 %v4270_v39 }
0x1173   : > { %5091 = vpow2.f32 %v4325_v41 }
0x1177   : > { %v5080_v56 = vpop.eup %5079 }
0x1178   : > { %3968 = vrot.lane.b32.xlu1 %v5080_v56, %s5124_s24  ;;  %v5082_v28 = vpop.eup %5081 }
0x1179   : > { %v5084_v58 = vpop.eup %5083 }
0x117c   : > { %2506 = vrot.lane.b32.xlu1 %v5082_v28, %s5124_s24 }
0x1180   : > { %3320 = vrot.lane.b32.xlu1 %v5084_v58, %s5124_s24 }
0x1184   : > { %994 = vrot.lane.b32.xlu1 %v5465_v3, %s5124_s24  ;;  %v5086_v3 = vpop.eup %5085 }
0x1185   : > { %v5088_v60 = vpop.eup %5087  ;;  %v969_v42 = vadd.f32 1.0, %v5086_v3 }
0x1186   : > { %v5090_v51 = vpop.eup %5089 }
0x1187   : > { %v5092_v52 = vpop.eup %5091  ;;  %5093 = vrcp.f32 %v969_v42 }
0x1188   : > { %998 = vrot.lane.b32.xlu1 %v5475_v9, %s5124_s24  ;;  %v1550_v9 = vadd.f32 1.0, %v5088_v60  ;;  %v1552_v26 = vadd.f32 1.0, %v5092_v52 }
0x118a   : > { %5095 = vrcp.f32 %v1550_v9 }
0x118c   : > { %1002 = vrot.lane.b32.xlu1 %v5485_v15, %s5124_s24 }
0x1190   : > { %1575 = vrot.lane.b32.xlu1 %v5468_v4, %s5124_s24 }
0x1191   : > { %v5094_v47 = vpop.eup %5093 }
0x1194   : > { %1579 = vrot.lane.b32.xlu1 %v5478_v10, %s5124_s24  ;;  %v971_v10 = vadd.f32 1.0, %v5090_v51  ;;  %v5096_v5 = vpop.eup %5095 }
0x1196   : > { %5097 = vrcp.f32 %v971_v10 }
0x1197   : > { %5099 = vrcp.f32 %v1552_v26 }
0x11a0   : > { %v5098_v40 = vpop.eup %5097 }
0x11a1   : > { %v5100_v17 = vpop.eup %5099 }
0x11ea   : > { %v3969_v49 = vpop.permute.xlu1 %3968 }
0x11eb   : > { %v5868_v50 = vmul.f32 %v3969_v49, %v3958_v18 }
0x11ed   : > { %4870 = vmatpush3.msra.mxu0 %v5868_v50 }
0x11ee   : > { %4872 = vmatmul.mubr.msk.f32.vlgmr.msra.gmra.mrb[34].mxu0 %vm1770_vm3, %v5437_v59  ;;  %v2507_v24 = vpop.permute.xlu1 %2506 }
0x11ef   : > { %v2509_v62 = vmul.f32 %v2507_v24, %v2496_v14 }
0x11f1   : > { %v2510_v59 = vmax.f32 %v5557_v25, %v2509_v62 }
0x11f2   : > { %v3321_v4 = vpop.permute.xlu1 %3320 }
0x11f3   : > { %v3323_v43 = vmul.f32 %v3321_v4, %v3310_v0  ;;  %v2511_v1 = vadd.f32 %v2510_v59, %v5530_v48  ;;  %v4422_v48 = vld [vmem:[%s5914_s10 + $0xb0] sm:$0xff] }
0x11f5   : > { %v3324_v2 = vmax.f32 %v5669_v57, %v3323_v43  ;;  %v4423_v57 = vld [vmem:[%s5914_s10 + $0xb8] sm:$0xff] }
0x11f6   : > { %v995_v54 = vpop.permute.xlu1 %994  ;;  %v4965_v13 = vpack.c.bf16 %v4423_v57, %v4422_v48 }
0x11f7   : > { %v1011_v53 = vmul.f32 %v5094_v47, %v995_v54  ;;  %v3325_v25 = vadd.f32 %v3324_v2, %v5642_v27 }
0x11f8   : > { %4966 = vmatpush3.bf16.msra.mxu1 %v4965_v13 }
0x11fa   : > { %v999_v61 = vpop.permute.xlu1 %998 }
0x11fb   : > { %v1013_v6 = vmul.f32 %v5098_v40, %v999_v61 }
0x11fe   : > { %v1003_v36 = vpop.permute.xlu1 %1002 }
0x1202   : > { %v1576_v11 = vpop.permute.xlu1 %1575 }
0x1203   : > { %v1592_v8 = vmul.f32 %v5096_v5, %v1576_v11 }
0x1205   : > { %v1598_v63 = vadd.f32 %v1592_v8, %v1011_v53 }
0x1206   : > { %v1580_v35 = vpop.permute.xlu1 %1579 }
0x1207   : > { %v2512_v7 = vadd.f32 %v2511_v1, %v1598_v63  ;;  %v1594_v12 = vmul.f32 %v5100_v17, %v1580_v35 }
0x1209   : > { %4364 = vst.msk [vmem:[%s5829_s30 + $0x8] sm:$0xff] %vm452_vm0, %v2512_v7  ;;  %v1600_v34 = vadd.f32 %v1594_v12, %v1013_v6 }
0x120b   : > { %v3326_v14 = vadd.f32 %v3325_v25, %v1600_v34 }
0x120d   : > { %4396 = vst.msk [vmem:[%s5829_s30 + $0x18] sm:$0xff] %vm452_vm0, %v3326_v14 }
0x12c1   : > { %v4038_v19 = vpop.f32.mrb[34].mxu0 }
0x12c2   : > { %v4042_v20 = vadd.f32 %v4038_v19, %v5787_v29  ;;  %v4873_v27 = vpop.f32.mrb[35].mxu0  ;;  %v4272_v29 = vmul.f32 -1.442695, %v5485_v15 }
0x12c4   : > { %4879 = vmatmul.mubr.msk.f32.vlgmr.msra.gmra.mrb[34].mxu1 %vm452_vm0, %v4042_v20 }
0x1397   : > { %v4123_v0 = vpop.f32.mrb[34].mxu1 }
0x1398   : > { %v4124_v18 = vadd.f32 %v4425_v21, %v4123_v0  ;;  %v4880_v46 = vpop.f32.mrb[35].mxu1 }
0x139a   : > { %v4427_v22 = vmul.f32 -1.442695, %v4124_v18 }
0x139c   : > { %5101 = vpow2.f32 %v4427_v22 }
0x13a6   : > { %v5102_v23 = vpop.eup %5101 }
0x13a7   : > { %v4130_v45 = vadd.f32 1.0, %v5102_v23 }
0x13a9   : > { %5103 = vrcp.f32 %v4130_v45 }
0x13aa   : > { %5105 = vpow2.f32 %v4272_v29 }
0x13ab   : > { %5107 = vpow2.f32 %v4327_v31 }
0x13b3   : > { %v5104_v30 = vpop.eup %5103 }
0x13b4   : > { %4134 = vrot.lane.b32.xlu1 %v5104_v30, %s5124_s24  ;;  %v5106_v32 = vpop.eup %5105 }
0x13b5   : > { %v5108_v33 = vpop.eup %5107  ;;  %v973_v44 = vadd.f32 1.0, %v5106_v32 }
0x13b6   : > { %v1554_v56 = vadd.f32 1.0, %v5108_v33 }
0x13b7   : > { %5109 = vrcp.f32 %v973_v44 }
0x13b8   : > { %1583 = vrot.lane.b32.xlu1 %v5488_v16, %s5124_s24  ;;  %5111 = vrcp.f32 %v1554_v56 }
0x13c1   : > { %v5110_v37 = vpop.eup %5109 }
0x13c2   : > { %v5112_v39 = vpop.eup %5111  ;;  %v1015_v49 = vmul.f32 %v5110_v37, %v1003_v36 }
0x1426   : > { %v4135_v28 = vpop.permute.xlu1 %4134 }
0x1427   : > { %v4137_v58 = vmul.f32 %v4135_v28, %v4124_v18 }
0x1429   : > { %v4138_v38 = vmax.f32 %v5868_v50, %v4137_v58 }
0x142a   : > { %v1584_v41 = vpop.permute.xlu1 %1583 }
0x142b   : > { %v1596_v15 = vmul.f32 %v5112_v39, %v1584_v41  ;;  %v4139_v16 = vadd.f32 %v4138_v38, %v5770_v55 }
0x142d   : > { %v1602_v24 = vadd.f32 %v1596_v15, %v1015_v49 }
0x142f   : > { %v4140_v3 = vadd.f32 %v4139_v16, %v1602_v24 }
0x1431   : > { %4428 = vst.msk [vmem:[%s5829_s30 + $0x28] sm:$0xff] %vm452_vm0, %v4140_v3 }
0x1432 PF: > { %s22_s21 = sadd.s32 1, %s5119_s21  }
0x1433   : > { %p19_p4 = scmp.ge.s32.totalorder %s22_s21, 4  }
0x1435   :  { %21 = sbr.rel (!%p19_p4) target bundleno = 1 (0x1), region = 140 }

</bundles_post_ra>
